<compile_context>
chip_gen: v6e
topology: v6e:2x2x1
jax: 0.10.0
libtpu: 0.0.40
codegen_flags: <defaults>
</compile_context>

<pallas_src>
import functools

import jax
import jax.numpy as jnp
import numpy as np
from jax import lax
from jax.experimental import pallas as pl
from jax.experimental.pallas import tpu as pltpu


# ----------------------------------------------------------------------------
# Fused Inception Pallas kernel (one batch element per grid step)
# ----------------------------------------------------------------------------
def _inception_kernel(
    x_ref,                      # (1, H, W, Cin)                 input image
    w1_ref, b1_ref,             # (Cin, c1+c2_0+c3_0), (1, ...)  fused 1x1 convs
    w2_ref, b2_ref,             # (9*c2_0,  c2_1),    (1, c2_1)  3x3 im2col conv
    w3_ref, b3_ref,             # (25*c3_0, c3_1),    (1, c3_1)  5x5 im2col conv
    w4_ref, b4_ref,             # (Cin, c4),          (1, c4)    pool-branch 1x1
    o_ref,                      # (1, H, W, c1+c2_1+c3_1+c4)
    p2pad_ref,                  # VMEM (H+2, W+2, c2_0)  zero-padded p2_1 output
    p3pad_ref,                  # VMEM (H+4, W+4, c3_0)  zero-padded p3_1 output
    xpad_ref,                   # VMEM (H+2, W+2, Cin)   -inf padded input (pool)
    patch2_ref,                 # VMEM (H*W, 9*c2_0)     im2col patches, 3x3
    patch3_ref,                 # VMEM (H*W, 25*c3_0)    im2col patches, 5x5
    *, H, W, cin, c1, c2_0, c2_1, c3_0, c3_1, c4, compute_dtype,
):
    f32 = jnp.float32

    def matmul_bias_relu(a, w_ref, b_ref):
        y = jnp.dot(a.astype(compute_dtype), w_ref[...].astype(compute_dtype),
                    preferred_element_type=f32)
        return jnp.maximum(y + b_ref[...].astype(f32), 0.0)

    x = x_ref[0].astype(f32)                         # (H, W, Cin)
    xm = x.reshape(H * W, cin)

    # ---- fused 1x1 convolutions: p1_1 | p2_1 | p3_1 in one MXU matmul -------
    y1 = matmul_bias_relu(xm, w1_ref, b1_ref)        # (H*W, c1 + c2_0 + c3_0)
    p1 = y1[:, :c1]                                  # (H*W, c1)
    p2a = y1[:, c1:c1 + c2_0].reshape(H, W, c2_0)    # 3x3-branch squeeze output
    p3a = y1[:, c1 + c2_0:].reshape(H, W, c3_0)      # 5x5-branch squeeze output

    # ---- branch 2: 3x3 "same" conv via im2col (single matmul) ---------------
    p2pad_ref[...] = jnp.zeros((H + 2, W + 2, c2_0), f32)
    p2pad_ref[1:1 + H, 1:1 + W, :] = p2a
    for kh in range(3):                              # static tap loop: builds
        for kw in range(3):                          # the patch matrix in VMEM
            t = kh * 3 + kw
            patch2_ref[:, t * c2_0:(t + 1) * c2_0] = (
                p2pad_ref[kh:kh + H, kw:kw + W, :].reshape(H * W, c2_0))
    p2 = matmul_bias_relu(patch2_ref[...], w2_ref, b2_ref)   # (H*W, c2_1)

    # ---- branch 3: 5x5 "same" conv via im2col (single matmul) ---------------
    p3pad_ref[...] = jnp.zeros((H + 4, W + 4, c3_0), f32)
    p3pad_ref[2:2 + H, 2:2 + W, :] = p3a
    for kh in range(5):
        for kw in range(5):
            t = kh * 5 + kw
            patch3_ref[:, t * c3_0:(t + 1) * c3_0] = (
                p3pad_ref[kh:kh + H, kw:kw + W, :].reshape(H * W, c3_0))
    p3 = matmul_bias_relu(patch3_ref[...], w3_ref, b3_ref)   # (H*W, c3_1)

    # ---- branch 4: 3x3 / stride 1 / pad 1 max pool + 1x1 conv ---------------
    xpad_ref[...] = jnp.full((H + 2, W + 2, cin), -jnp.inf, f32)
    xpad_ref[1:1 + H, 1:1 + W, :] = x
    pooled = xpad_ref[0:H, 0:W, :]                   # init from first tap
    for kh in range(3):
        for kw in range(3):
            if kh == 0 and kw == 0:
                continue
            pooled = jnp.maximum(pooled, xpad_ref[kh:kh + H, kw:kw + W, :])
    p4 = matmul_bias_relu(pooled.reshape(H * W, cin), w4_ref, b4_ref)  # (H*W, c4)

    # ---- channel-concatenated output: each branch writes its lane range -----
    od = o_ref.dtype
    o_ref[0, :, :, 0:c1] = p1.reshape(H, W, c1).astype(od)
    o_ref[0, :, :, c1:c1 + c2_1] = p2.reshape(H, W, c2_1).astype(od)
    o_ref[0, :, :, c1 + c2_1:c1 + c2_1 + c3_1] = p3.reshape(H, W, c3_1).astype(od)
    o_ref[0, :, :, c1 + c2_1 + c3_1:] = p4.reshape(H, W, c4).astype(od)


# ----------------------------------------------------------------------------
# Wrapper: repack weights + pallas_call plumbing
# ----------------------------------------------------------------------------
def _fuse_params(params):
    """Repack per-conv HWIO weights into fused / im2col matmul operands."""
    w11, b11 = params["p1_1"]
    w21, b21 = params["p2_1"]
    w22, b22 = params["p2_2"]
    w31, b31 = params["p3_1"]
    w32, b32 = params["p3_2"]
    w42, b42 = params["p4_2"]
    cin = w11.shape[2]
    c1, c2_0, c2_1 = w11.shape[3], w21.shape[3], w22.shape[3]
    c3_0, c3_1, c4 = w31.shape[3], w32.shape[3], w42.shape[3]

    # three 1x1 convs sharing the input -> one (Cin, c1+c2_0+c3_0) weight
    w1 = jnp.concatenate([w11.reshape(cin, c1),
                          w21.reshape(cin, c2_0),
                          w31.reshape(cin, c3_0)], axis=1)
    b1 = jnp.concatenate([b11, b21, b31]).reshape(1, c1 + c2_0 + c3_0)
    # KxK convs as im2col weights (flatten (KH, KW, Cin) -> rows, tap-major)
    w2 = w22.reshape(9 * c2_0, c2_1)
    b2 = b22.reshape(1, c2_1)
    w3 = w32.reshape(25 * c3_0, c3_1)
    b3 = b32.reshape(1, c3_1)
    w4 = w42.reshape(cin, c4)
    b4 = b42.reshape(1, c4)

    dims = dict(cin=cin, c1=c1, c2_0=c2_0, c2_1=c2_1,
                c3_0=c3_0, c3_1=c3_1, c4=c4)
    return (w1, b1, w2, b2, w3, b3, w4, b4), dims


def inception_forward_nhwc(x_nhwc, params, compute_dtype=jnp.float32):
    """Fused Inception block on an NHWC input (no layout transposes)."""
    N, H, W, cin = x_nhwc.shape
    (w1, b1, w2, b2, w3, b3, w4, b4), d = _fuse_params(params)
    assert d["cin"] == cin, "parameter / input channel mismatch"
    c1, c2_0, c2_1 = d["c1"], d["c2_0"], d["c2_1"]
    c3_0, c3_1, c4 = d["c3_0"], d["c3_1"], d["c4"]
    ctot = c1 + c2_1 + c3_1 + c4

    kernel = functools.partial(
        _inception_kernel, H=H, W=W, cin=cin, c1=c1, c2_0=c2_0, c2_1=c2_1,
        c3_0=c3_0, c3_1=c3_1, c4=c4, compute_dtype=compute_dtype)

    rep2 = lambda n: (0, 0)   # weights / biases are replicated across the grid
    return pl.pallas_call(
        kernel,
        out_shape=jax.ShapeDtypeStruct((N, H, W, ctot), x_nhwc.dtype),
        grid=(N,),
        in_specs=[
            pl.BlockSpec((1, H, W, cin), lambda n: (n, 0, 0, 0)),
            pl.BlockSpec(w1.shape, rep2), pl.BlockSpec(b1.shape, rep2),
            pl.BlockSpec(w2.shape, rep2), pl.BlockSpec(b2.shape, rep2),
            pl.BlockSpec(w3.shape, rep2), pl.BlockSpec(b3.shape, rep2),
            pl.BlockSpec(w4.shape, rep2), pl.BlockSpec(b4.shape, rep2),
        ],
        out_specs=pl.BlockSpec((1, H, W, ctot), lambda n: (n, 0, 0, 0)),
        scratch_shapes=[
            pltpu.VMEM((H + 2, W + 2, c2_0), jnp.float32),   # padded p2_1
            pltpu.VMEM((H + 4, W + 4, c3_0), jnp.float32),   # padded p3_1
            pltpu.VMEM((H + 2, W + 2, cin), jnp.float32),    # -inf padded x
            pltpu.VMEM((H * W, 9 * c2_0), jnp.float32),      # 3x3 im2col patch
            pltpu.VMEM((H * W, 25 * c3_0), jnp.float32),     # 5x5 im2col patch
        ],
        compiler_params=pltpu.CompilerParams(
            dimension_semantics=("parallel",)),
    )(x_nhwc, w1, b1, w2, b2, w3, b3, w4, b4)


def inception_forward(x_nchw, params, compute_dtype=jnp.float32):
    """PyTorch-layout (NCHW) interface; transposes only at the boundary."""
    x = jnp.transpose(x_nchw, (0, 2, 3, 1))
    y = inception_forward_nhwc(x, params, compute_dtype)
    return jnp.transpose(y, (0, 3, 1, 2))


# ----------------------------------------------------------------------------
# Parameter init (PyTorch-style uniform(-1/sqrt(fan_in), 1/sqrt(fan_in)))
# ----------------------------------------------------------------------------
def init_conv(key, kh, kw, cin, cout):
    kw_key, kb_key = jax.random.split(key)
    bound = 1.0 / np.sqrt(cin * kh * kw)
    w = jax.random.uniform(kw_key, (kh, kw, cin, cout), jnp.float32, -bound, bound)
    b = jax.random.uniform(kb_key, (cout,), jnp.float32, -bound, bound)
    return w, b


def init_inception_params(key, in_channels, c1, c2, c3, c4):
    keys = jax.random.split(key, 6)
    return {
        "p1_1": init_conv(keys[0], 1, 1, in_channels, c1),
        "p2_1": init_conv(keys[1], 1, 1, in_channels, c2[0]),
        "p2_2": init_conv(keys[2], 3, 3, c2[0], c2[1]),
        "p3_1": init_conv(keys[3], 1, 1, in_channels, c3[0]),
        "p3_2": init_conv(keys[4], 5, 5, c3[0], c3[1]),
        "p4_2": init_conv(keys[5], 1, 1, in_channels, c4),
    }


# ----------------------------------------------------------------------------
# Pure-JAX reference (correctness check only)
# ----------------------------------------------------------------------------
def _conv_ref(x, w, b, pad):
    y = lax.conv_general_dilated(
        x, w, window_strides=(1, 1), padding=[(pad, pad), (pad, pad)],
        dimension_numbers=("NHWC", "HWIO", "NHWC"),
        precision=lax.Precision.HIGHEST)
    return jax.nn.relu(y + b)


def _pool_ref(x):
    return lax.reduce_window(
        x, -jnp.inf, lax.max, (1, 3, 3, 1), (1, 1, 1, 1),
        [(0, 0), (1, 1), (1, 1), (0, 0)])


def inception_ref(x_nchw, params):
    x = jnp.transpose(x_nchw, (0, 2, 3, 1))
    p1 = _conv_ref(x, *params["p1_1"], 0)
    p2 = _conv_ref(_conv_ref(x, *params["p2_1"], 0), *params["p2_2"], 1)
    p3 = _conv_ref(_conv_ref(x, *params["p3_1"], 0), *params["p3_2"], 2)
    p4 = _conv_ref(_pool_ref(x), *params["p4_2"], 0)
    y = jnp.concatenate([p1, p2, p3, p4], axis=-1)
    return jnp.transpose(y, (0, 3, 1, 2))


# ----------------------------------------------------------------------------
if __name__ == "__main__":
    key = jax.random.PRNGKey(0)
    k_x, k_p = jax.random.split(key)

    # Small shapes consistent with the module: NCHW input.
    in_channels, c1, c2, c3, c4 = 4, 8, (4, 8), (4, 8), 8
    x = jax.random.normal(k_x, (2, in_channels, 16, 16), jnp.float32)
    params = init_inception_params(k_p, in_channels, c1, c2, c3, c4)

    fwd = jax.jit(inception_forward)
    out = jax.block_until_ready(fwd(x, params))
    assert out.shape == (2, c1 + c2[1] + c3[1] + c4, 16, 16), out.shape

    ref = jax.block_until_ready(inception_ref(x, params))
    np.testing.assert_allclose(np.asarray(out), np.asarray(ref),
                               rtol=1e-4, atol=1e-4)

    print("KERNEL_OK")
</pallas_src>

<mosaic_0001>
module attributes {stable_mosaic.version = 11 : i64} {
  func.func @_inception_kernel(%arg0: i32, %arg1: memref<1x16x16x4xf32, #tpu.memory_space<vmem>>, %arg2: memref<4x16xf32, #tpu.memory_space<vmem>>, %arg3: memref<1x16xf32, #tpu.memory_space<vmem>>, %arg4: memref<36x8xf32, #tpu.memory_space<vmem>>, %arg5: memref<1x8xf32, #tpu.memory_space<vmem>>, %arg6: memref<100x8xf32, #tpu.memory_space<vmem>>, %arg7: memref<1x8xf32, #tpu.memory_space<vmem>>, %arg8: memref<4x8xf32, #tpu.memory_space<vmem>>, %arg9: memref<1x8xf32, #tpu.memory_space<vmem>>, %arg10: memref<1x16x16x32xf32, #tpu.memory_space<vmem>>, %arg11: memref<18x18x4xf32, #tpu.memory_space<vmem>>, %arg12: memref<20x20x4xf32, #tpu.memory_space<vmem>>, %arg13: memref<18x18x4xf32, #tpu.memory_space<vmem>>, %arg14: memref<256x36xf32, #tpu.memory_space<vmem>>, %arg15: memref<256x100xf32, #tpu.memory_space<vmem>>) attributes {dimension_semantics = [#tpu.dimension_semantics<parallel>], iteration_bounds = array<i64: 2>, scalar_prefetch = 0 : i64, scratch_operands = 5 : i64, tpu.core_type = #tpu.core_type<tc>, window_params = [{transform_indices = @transform_0, window_bounds = array<i64: 1, 16, 16, 4>}, {pipeline_mode = #tpu.pipeline_mode<synchronous>, transform_indices = @transform_1, window_bounds = array<i64: 4, 16>}, {pipeline_mode = #tpu.pipeline_mode<synchronous>, transform_indices = @transform_2, window_bounds = array<i64: 1, 16>}, {pipeline_mode = #tpu.pipeline_mode<synchronous>, transform_indices = @transform_3, window_bounds = array<i64: 36, 8>}, {pipeline_mode = #tpu.pipeline_mode<synchronous>, transform_indices = @transform_4, window_bounds = array<i64: 1, 8>}, {pipeline_mode = #tpu.pipeline_mode<synchronous>, transform_indices = @transform_5, window_bounds = array<i64: 100, 8>}, {pipeline_mode = #tpu.pipeline_mode<synchronous>, transform_indices = @transform_6, window_bounds = array<i64: 1, 8>}, {pipeline_mode = #tpu.pipeline_mode<synchronous>, transform_indices = @transform_7, window_bounds = array<i64: 4, 8>}, {pipeline_mode = #tpu.pipeline_mode<synchronous>, transform_indices = @transform_8, window_bounds = array<i64: 1, 8>}, {transform_indices = @transform_9, window_bounds = array<i64: 1, 16, 16, 32>}]} {
    %c0 = arith.constant 0 : index
    %c0_0 = arith.constant 0 : index
    %c0_1 = arith.constant 0 : index
    %c0_2 = arith.constant 0 : index
    %0 = vector.load %arg1[%c0, %c0_0, %c0_1, %c0_2] : memref<1x16x16x4xf32, #tpu.memory_space<vmem>>, vector<1x16x16x4xf32>
    %1 = vector.shape_cast %0 : vector<1x16x16x4xf32> to vector<16x16x4xf32>
    %2 = vector.shape_cast %1 : vector<16x16x4xf32> to vector<256x4xf32>
    %c0_3 = arith.constant 0 : index
    %c0_4 = arith.constant 0 : index
    %3 = vector.load %arg2[%c0_3, %c0_4] : memref<4x16xf32, #tpu.memory_space<vmem>>, vector<4x16xf32>
    %cst = arith.constant dense<0.000000e+00> : vector<256x16xf32>
    %4 = tpu.matmul %2, %3, %cst {dimension_numbers = #tpu.dot_dimension_numbers<[1], [0], [0], [1], [0, 0, 1, 1], [], []>} : vector<256x4xf32>, vector<4x16xf32>, vector<256x16xf32> -> vector<256x16xf32>
    %c0_5 = arith.constant 0 : index
    %c0_6 = arith.constant 0 : index
    %5 = vector.load %arg3[%c0_5, %c0_6] : memref<1x16xf32, #tpu.memory_space<vmem>>, vector<1x16xf32>
    %6 = vector.broadcast %5 : vector<1x16xf32> to vector<256x16xf32>
    %7 = arith.addf %4, %6 : vector<256x16xf32>
    %cst_7 = arith.constant 0.000000e+00 : f32
    %8 = vector.broadcast %cst_7 : f32 to vector<256x16xf32>
    %9 = arith.maximumf %7, %8 : vector<256x16xf32>
    %10 = vector.extract_strided_slice %9 {offsets = [0, 0], sizes = [256, 8], strides = [1, 1]} : vector<256x16xf32> to vector<256x8xf32>
    %11 = vector.extract_strided_slice %9 {offsets = [0, 8], sizes = [256, 4], strides = [1, 1]} : vector<256x16xf32> to vector<256x4xf32>
    %12 = vector.shape_cast %11 : vector<256x4xf32> to vector<16x16x4xf32>
    %13 = vector.extract_strided_slice %9 {offsets = [0, 12], sizes = [256, 4], strides = [1, 1]} : vector<256x16xf32> to vector<256x4xf32>
    %14 = vector.shape_cast %13 : vector<256x4xf32> to vector<16x16x4xf32>
    %cst_8 = arith.constant 0.000000e+00 : f32
    %15 = vector.broadcast %cst_8 : f32 to vector<18x18x4xf32>
    %c0_9 = arith.constant 0 : index
    %c0_10 = arith.constant 0 : index
    %c0_11 = arith.constant 0 : index
    %16 = vector.load %arg11[%c0_9, %c0_10, %c0_11] : memref<18x18x4xf32, #tpu.memory_space<vmem>>, vector<18x18x4xf32>
    tpu.vector_store %arg11[%c0_9, %c0_10, %c0_11], %15 {strides = array<i32>} : memref<18x18x4xf32, #tpu.memory_space<vmem>>, vector<18x18x4xf32>,
    %c1 = arith.constant 1 : index
    %c1_12 = arith.constant 1 : index
    %c0_13 = arith.constant 0 : index
    %17 = vector.load %arg11[%c1, %c1_12, %c0_13] : memref<18x18x4xf32, #tpu.memory_space<vmem>>, vector<16x16x4xf32>
    tpu.vector_store %arg11[%c1, %c1_12, %c0_13], %12 {strides = array<i32>} : memref<18x18x4xf32, #tpu.memory_space<vmem>>, vector<16x16x4xf32>,
    %c0_14 = arith.constant 0 : index
    %c0_15 = arith.constant 0 : index
    %c0_16 = arith.constant 0 : index
    %18 = vector.load %arg11[%c0_14, %c0_15, %c0_16] : memref<18x18x4xf32, #tpu.memory_space<vmem>>, vector<16x16x4xf32>
    %19 = vector.shape_cast %18 : vector<16x16x4xf32> to vector<256x4xf32>
    %c0_17 = arith.constant 0 : index
    %c0_18 = arith.constant 0 : index
    %20 = vector.load %arg14[%c0_17, %c0_18] : memref<256x36xf32, #tpu.memory_space<vmem>>, vector<256x4xf32>
    tpu.vector_store %arg14[%c0_17, %c0_18], %19 {strides = array<i32>} : memref<256x36xf32, #tpu.memory_space<vmem>>, vector<256x4xf32>,
    %c0_19 = arith.constant 0 : index
    %c1_20 = arith.constant 1 : index
    %c0_21 = arith.constant 0 : index
    %21 = vector.load %arg11[%c0_19, %c1_20, %c0_21] : memref<18x18x4xf32, #tpu.memory_space<vmem>>, vector<16x16x4xf32>
    %22 = vector.shape_cast %21 : vector<16x16x4xf32> to vector<256x4xf32>
    %c0_22 = arith.constant 0 : index
    %c4 = arith.constant 4 : index
    %23 = vector.load %arg14[%c0_22, %c4] : memref<256x36xf32, #tpu.memory_space<vmem>>, vector<256x4xf32>
    tpu.vector_store %arg14[%c0_22, %c4], %22 {strides = array<i32>} : memref<256x36xf32, #tpu.memory_space<vmem>>, vector<256x4xf32>,
    %c0_23 = arith.constant 0 : index
    %c2 = arith.constant 2 : index
    %c0_24 = arith.constant 0 : index
    %24 = vector.load %arg11[%c0_23, %c2, %c0_24] : memref<18x18x4xf32, #tpu.memory_space<vmem>>, vector<16x16x4xf32>
    %25 = vector.shape_cast %24 : vector<16x16x4xf32> to vector<256x4xf32>
    %c0_25 = arith.constant 0 : index
    %c8 = arith.constant 8 : index
    %26 = vector.load %arg14[%c0_25, %c8] : memref<256x36xf32, #tpu.memory_space<vmem>>, vector<256x4xf32>
    tpu.vector_store %arg14[%c0_25, %c8], %25 {strides = array<i32>} : memref<256x36xf32, #tpu.memory_space<vmem>>, vector<256x4xf32>,
    %c1_26 = arith.constant 1 : index
    %c0_27 = arith.constant 0 : index
    %c0_28 = arith.constant 0 : index
    %27 = vector.load %arg11[%c1_26, %c0_27, %c0_28] : memref<18x18x4xf32, #tpu.memory_space<vmem>>, vector<16x16x4xf32>
    %28 = vector.shape_cast %27 : vector<16x16x4xf32> to vector<256x4xf32>
    %c0_29 = arith.constant 0 : index
    %c12 = arith.constant 12 : index
    %29 = vector.load %arg14[%c0_29, %c12] : memref<256x36xf32, #tpu.memory_space<vmem>>, vector<256x4xf32>
    tpu.vector_store %arg14[%c0_29, %c12], %28 {strides = array<i32>} : memref<256x36xf32, #tpu.memory_space<vmem>>, vector<256x4xf32>,
    %c1_30 = arith.constant 1 : index
    %c1_31 = arith.constant 1 : index
    %c0_32 = arith.constant 0 : index
    %30 = vector.load %arg11[%c1_30, %c1_31, %c0_32] : memref<18x18x4xf32, #tpu.memory_space<vmem>>, vector<16x16x4xf32>
    %31 = vector.shape_cast %30 : vector<16x16x4xf32> to vector<256x4xf32>
    %c0_33 = arith.constant 0 : index
    %c16 = arith.constant 16 : index
    %32 = vector.load %arg14[%c0_33, %c16] : memref<256x36xf32, #tpu.memory_space<vmem>>, vector<256x4xf32>
    tpu.vector_store %arg14[%c0_33, %c16], %31 {strides = array<i32>} : memref<256x36xf32, #tpu.memory_space<vmem>>, vector<256x4xf32>,
    %c1_34 = arith.constant 1 : index
    %c2_35 = arith.constant 2 : index
    %c0_36 = arith.constant 0 : index
    %33 = vector.load %arg11[%c1_34, %c2_35, %c0_36] : memref<18x18x4xf32, #tpu.memory_space<vmem>>, vector<16x16x4xf32>
    %34 = vector.shape_cast %33 : vector<16x16x4xf32> to vector<256x4xf32>
    %c0_37 = arith.constant 0 : index
    %c20 = arith.constant 20 : index
    %35 = vector.load %arg14[%c0_37, %c20] : memref<256x36xf32, #tpu.memory_space<vmem>>, vector<256x4xf32>
    tpu.vector_store %arg14[%c0_37, %c20], %34 {strides = array<i32>} : memref<256x36xf32, #tpu.memory_space<vmem>>, vector<256x4xf32>,
    %c2_38 = arith.constant 2 : index
    %c0_39 = arith.constant 0 : index
    %c0_40 = arith.constant 0 : index
    %36 = vector.load %arg11[%c2_38, %c0_39, %c0_40] : memref<18x18x4xf32, #tpu.memory_space<vmem>>, vector<16x16x4xf32>
    %37 = vector.shape_cast %36 : vector<16x16x4xf32> to vector<256x4xf32>
    %c0_41 = arith.constant 0 : index
    %c24 = arith.constant 24 : index
    %38 = vector.load %arg14[%c0_41, %c24] : memref<256x36xf32, #tpu.memory_space<vmem>>, vector<256x4xf32>
    tpu.vector_store %arg14[%c0_41, %c24], %37 {strides = array<i32>} : memref<256x36xf32, #tpu.memory_space<vmem>>, vector<256x4xf32>,
    %c2_42 = arith.constant 2 : index
    %c1_43 = arith.constant 1 : index
    %c0_44 = arith.constant 0 : index
    %39 = vector.load %arg11[%c2_42, %c1_43, %c0_44] : memref<18x18x4xf32, #tpu.memory_space<vmem>>, vector<16x16x4xf32>
    %40 = vector.shape_cast %39 : vector<16x16x4xf32> to vector<256x4xf32>
    %c0_45 = arith.constant 0 : index
    %c28 = arith.constant 28 : index
    %41 = vector.load %arg14[%c0_45, %c28] : memref<256x36xf32, #tpu.memory_space<vmem>>, vector<256x4xf32>
    tpu.vector_store %arg14[%c0_45, %c28], %40 {strides = array<i32>} : memref<256x36xf32, #tpu.memory_space<vmem>>, vector<256x4xf32>,
    %c2_46 = arith.constant 2 : index
    %c2_47 = arith.constant 2 : index
    %c0_48 = arith.constant 0 : index
    %42 = vector.load %arg11[%c2_46, %c2_47, %c0_48] : memref<18x18x4xf32, #tpu.memory_space<vmem>>, vector<16x16x4xf32>
    %43 = vector.shape_cast %42 : vector<16x16x4xf32> to vector<256x4xf32>
    %c0_49 = arith.constant 0 : index
    %c32 = arith.constant 32 : index
    %44 = vector.load %arg14[%c0_49, %c32] : memref<256x36xf32, #tpu.memory_space<vmem>>, vector<256x4xf32>
    tpu.vector_store %arg14[%c0_49, %c32], %43 {strides = array<i32>} : memref<256x36xf32, #tpu.memory_space<vmem>>, vector<256x4xf32>,
    %c0_50 = arith.constant 0 : index
    %c0_51 = arith.constant 0 : index
    %45 = vector.load %arg14[%c0_50, %c0_51] : memref<256x36xf32, #tpu.memory_space<vmem>>, vector<256x36xf32>
    %c0_52 = arith.constant 0 : index
    %c0_53 = arith.constant 0 : index
    %46 = vector.load %arg4[%c0_52, %c0_53] : memref<36x8xf32, #tpu.memory_space<vmem>>, vector<36x8xf32>
    %cst_54 = arith.constant dense<0.000000e+00> : vector<256x8xf32>
    %47 = tpu.matmul %45, %46, %cst_54 {dimension_numbers = #tpu.dot_dimension_numbers<[1], [0], [0], [1], [0, 0, 1, 1], [], []>} : vector<256x36xf32>, vector<36x8xf32>, vector<256x8xf32> -> vector<256x8xf32>
    %c0_55 = arith.constant 0 : index
    %c0_56 = arith.constant 0 : index
    %48 = vector.load %arg5[%c0_55, %c0_56] : memref<1x8xf32, #tpu.memory_space<vmem>>, vector<1x8xf32>
    %49 = vector.broadcast %48 : vector<1x8xf32> to vector<256x8xf32>
    %50 = arith.addf %47, %49 : vector<256x8xf32>
    %cst_57 = arith.constant 0.000000e+00 : f32
    %51 = vector.broadcast %cst_57 : f32 to vector<256x8xf32>
    %52 = arith.maximumf %50, %51 : vector<256x8xf32>
    %cst_58 = arith.constant 0.000000e+00 : f32
    %53 = vector.broadcast %cst_58 : f32 to vector<20x20x4xf32>
    %c0_59 = arith.constant 0 : index
    %c0_60 = arith.constant 0 : index
    %c0_61 = arith.constant 0 : index
    %54 = vector.load %arg12[%c0_59, %c0_60, %c0_61] : memref<20x20x4xf32, #tpu.memory_space<vmem>>, vector<20x20x4xf32>
    tpu.vector_store %arg12[%c0_59, %c0_60, %c0_61], %53 {strides = array<i32>} : memref<20x20x4xf32, #tpu.memory_space<vmem>>, vector<20x20x4xf32>,
    %c2_62 = arith.constant 2 : index
    %c2_63 = arith.constant 2 : index
    %c0_64 = arith.constant 0 : index
    %55 = vector.load %arg12[%c2_62, %c2_63, %c0_64] : memref<20x20x4xf32, #tpu.memory_space<vmem>>, vector<16x16x4xf32>
    tpu.vector_store %arg12[%c2_62, %c2_63, %c0_64], %14 {strides = array<i32>} : memref<20x20x4xf32, #tpu.memory_space<vmem>>, vector<16x16x4xf32>,
    %c0_65 = arith.constant 0 : index
    %c0_66 = arith.constant 0 : index
    %c0_67 = arith.constant 0 : index
    %56 = vector.load %arg12[%c0_65, %c0_66, %c0_67] : memref<20x20x4xf32, #tpu.memory_space<vmem>>, vector<16x16x4xf32>
    %57 = vector.shape_cast %56 : vector<16x16x4xf32> to vector<256x4xf32>
    %c0_68 = arith.constant 0 : index
    %c0_69 = arith.constant 0 : index
    %58 = vector.load %arg15[%c0_68, %c0_69] : memref<256x100xf32, #tpu.memory_space<vmem>>, vector<256x4xf32>
    tpu.vector_store %arg15[%c0_68, %c0_69], %57 {strides = array<i32>} : memref<256x100xf32, #tpu.memory_space<vmem>>, vector<256x4xf32>,
    %c0_70 = arith.constant 0 : index
    %c1_71 = arith.constant 1 : index
    %c0_72 = arith.constant 0 : index
    %59 = vector.load %arg12[%c0_70, %c1_71, %c0_72] : memref<20x20x4xf32, #tpu.memory_space<vmem>>, vector<16x16x4xf32>
    %60 = vector.shape_cast %59 : vector<16x16x4xf32> to vector<256x4xf32>
    %c0_73 = arith.constant 0 : index
    %c4_74 = arith.constant 4 : index
    %61 = vector.load %arg15[%c0_73, %c4_74] : memref<256x100xf32, #tpu.memory_space<vmem>>, vector<256x4xf32>
    tpu.vector_store %arg15[%c0_73, %c4_74], %60 {strides = array<i32>} : memref<256x100xf32, #tpu.memory_space<vmem>>, vector<256x4xf32>,
    %c0_75 = arith.constant 0 : index
    %c2_76 = arith.constant 2 : index
    %c0_77 = arith.constant 0 : index
    %62 = vector.load %arg12[%c0_75, %c2_76, %c0_77] : memref<20x20x4xf32, #tpu.memory_space<vmem>>, vector<16x16x4xf32>
    %63 = vector.shape_cast %62 : vector<16x16x4xf32> to vector<256x4xf32>
    %c0_78 = arith.constant 0 : index
    %c8_79 = arith.constant 8 : index
    %64 = vector.load %arg15[%c0_78, %c8_79] : memref<256x100xf32, #tpu.memory_space<vmem>>, vector<256x4xf32>
    tpu.vector_store %arg15[%c0_78, %c8_79], %63 {strides = array<i32>} : memref<256x100xf32, #tpu.memory_space<vmem>>, vector<256x4xf32>,
    %c0_80 = arith.constant 0 : index
    %c3 = arith.constant 3 : index
    %c0_81 = arith.constant 0 : index
    %65 = vector.load %arg12[%c0_80, %c3, %c0_81] : memref<20x20x4xf32, #tpu.memory_space<vmem>>, vector<16x16x4xf32>
    %66 = vector.shape_cast %65 : vector<16x16x4xf32> to vector<256x4xf32>
    %c0_82 = arith.constant 0 : index
    %c12_83 = arith.constant 12 : index
    %67 = vector.load %arg15[%c0_82, %c12_83] : memref<256x100xf32, #tpu.memory_space<vmem>>, vector<256x4xf32>
    tpu.vector_store %arg15[%c0_82, %c12_83], %66 {strides = array<i32>} : memref<256x100xf32, #tpu.memory_space<vmem>>, vector<256x4xf32>,
    %c0_84 = arith.constant 0 : index
    %c4_85 = arith.constant 4 : index
    %c0_86 = arith.constant 0 : index
    %68 = vector.load %arg12[%c0_84, %c4_85, %c0_86] : memref<20x20x4xf32, #tpu.memory_space<vmem>>, vector<16x16x4xf32>
    %69 = vector.shape_cast %68 : vector<16x16x4xf32> to vector<256x4xf32>
    %c0_87 = arith.constant 0 : index
    %c16_88 = arith.constant 16 : index
    %70 = vector.load %arg15[%c0_87, %c16_88] : memref<256x100xf32, #tpu.memory_space<vmem>>, vector<256x4xf32>
    tpu.vector_store %arg15[%c0_87, %c16_88], %69 {strides = array<i32>} : memref<256x100xf32, #tpu.memory_space<vmem>>, vector<256x4xf32>,
    %c1_89 = arith.constant 1 : index
    %c0_90 = arith.constant 0 : index
    %c0_91 = arith.constant 0 : index
    %71 = vector.load %arg12[%c1_89, %c0_90, %c0_91] : memref<20x20x4xf32, #tpu.memory_space<vmem>>, vector<16x16x4xf32>
    %72 = vector.shape_cast %71 : vector<16x16x4xf32> to vector<256x4xf32>
    %c0_92 = arith.constant 0 : index
    %c20_93 = arith.constant 20 : index
    %73 = vector.load %arg15[%c0_92, %c20_93] : memref<256x100xf32, #tpu.memory_space<vmem>>, vector<256x4xf32>
    tpu.vector_store %arg15[%c0_92, %c20_93], %72 {strides = array<i32>} : memref<256x100xf32, #tpu.memory_space<vmem>>, vector<256x4xf32>,
    %c1_94 = arith.constant 1 : index
    %c1_95 = arith.constant 1 : index
    %c0_96 = arith.constant 0 : index
    %74 = vector.load %arg12[%c1_94, %c1_95, %c0_96] : memref<20x20x4xf32, #tpu.memory_space<vmem>>, vector<16x16x4xf32>
    %75 = vector.shape_cast %74 : vector<16x16x4xf32> to vector<256x4xf32>
    %c0_97 = arith.constant 0 : index
    %c24_98 = arith.constant 24 : index
    %76 = vector.load %arg15[%c0_97, %c24_98] : memref<256x100xf32, #tpu.memory_space<vmem>>, vector<256x4xf32>
    tpu.vector_store %arg15[%c0_97, %c24_98], %75 {strides = array<i32>} : memref<256x100xf32, #tpu.memory_space<vmem>>, vector<256x4xf32>,
    %c1_99 = arith.constant 1 : index
    %c2_100 = arith.constant 2 : index
    %c0_101 = arith.constant 0 : index
    %77 = vector.load %arg12[%c1_99, %c2_100, %c0_101] : memref<20x20x4xf32, #tpu.memory_space<vmem>>, vector<16x16x4xf32>
    %78 = vector.shape_cast %77 : vector<16x16x4xf32> to vector<256x4xf32>
    %c0_102 = arith.constant 0 : index
    %c28_103 = arith.constant 28 : index
    %79 = vector.load %arg15[%c0_102, %c28_103] : memref<256x100xf32, #tpu.memory_space<vmem>>, vector<256x4xf32>
    tpu.vector_store %arg15[%c0_102, %c28_103], %78 {strides = array<i32>} : memref<256x100xf32, #tpu.memory_space<vmem>>, vector<256x4xf32>,
    %c1_104 = arith.constant 1 : index
    %c3_105 = arith.constant 3 : index
    %c0_106 = arith.constant 0 : index
    %80 = vector.load %arg12[%c1_104, %c3_105, %c0_106] : memref<20x20x4xf32, #tpu.memory_space<vmem>>, vector<16x16x4xf32>
    %81 = vector.shape_cast %80 : vector<16x16x4xf32> to vector<256x4xf32>
    %c0_107 = arith.constant 0 : index
    %c32_108 = arith.constant 32 : index
    %82 = vector.load %arg15[%c0_107, %c32_108] : memref<256x100xf32, #tpu.memory_space<vmem>>, vector<256x4xf32>
    tpu.vector_store %arg15[%c0_107, %c32_108], %81 {strides = array<i32>} : memref<256x100xf32, #tpu.memory_space<vmem>>, vector<256x4xf32>,
    %c1_109 = arith.constant 1 : index
    %c4_110 = arith.constant 4 : index
    %c0_111 = arith.constant 0 : index
    %83 = vector.load %arg12[%c1_109, %c4_110, %c0_111] : memref<20x20x4xf32, #tpu.memory_space<vmem>>, vector<16x16x4xf32>
    %84 = vector.shape_cast %83 : vector<16x16x4xf32> to vector<256x4xf32>
    %c0_112 = arith.constant 0 : index
    %c36 = arith.constant 36 : index
    %85 = vector.load %arg15[%c0_112, %c36] : memref<256x100xf32, #tpu.memory_space<vmem>>, vector<256x4xf32>
    tpu.vector_store %arg15[%c0_112, %c36], %84 {strides = array<i32>} : memref<256x100xf32, #tpu.memory_space<vmem>>, vector<256x4xf32>,
    %c2_113 = arith.constant 2 : index
    %c0_114 = arith.constant 0 : index
    %c0_115 = arith.constant 0 : index
    %86 = vector.load %arg12[%c2_113, %c0_114, %c0_115] : memref<20x20x4xf32, #tpu.memory_space<vmem>>, vector<16x16x4xf32>
    %87 = vector.shape_cast %86 : vector<16x16x4xf32> to vector<256x4xf32>
    %c0_116 = arith.constant 0 : index
    %c40 = arith.constant 40 : index
    %88 = vector.load %arg15[%c0_116, %c40] : memref<256x100xf32, #tpu.memory_space<vmem>>, vector<256x4xf32>
    tpu.vector_store %arg15[%c0_116, %c40], %87 {strides = array<i32>} : memref<256x100xf32, #tpu.memory_space<vmem>>, vector<256x4xf32>,
    %c2_117 = arith.constant 2 : index
    %c1_118 = arith.constant 1 : index
    %c0_119 = arith.constant 0 : index
    %89 = vector.load %arg12[%c2_117, %c1_118, %c0_119] : memref<20x20x4xf32, #tpu.memory_space<vmem>>, vector<16x16x4xf32>
    %90 = vector.shape_cast %89 : vector<16x16x4xf32> to vector<256x4xf32>
    %c0_120 = arith.constant 0 : index
    %c44 = arith.constant 44 : index
    %91 = vector.load %arg15[%c0_120, %c44] : memref<256x100xf32, #tpu.memory_space<vmem>>, vector<256x4xf32>
    tpu.vector_store %arg15[%c0_120, %c44], %90 {strides = array<i32>} : memref<256x100xf32, #tpu.memory_space<vmem>>, vector<256x4xf32>,
    %c2_121 = arith.constant 2 : index
    %c2_122 = arith.constant 2 : index
    %c0_123 = arith.constant 0 : index
    %92 = vector.load %arg12[%c2_121, %c2_122, %c0_123] : memref<20x20x4xf32, #tpu.memory_space<vmem>>, vector<16x16x4xf32>
    %93 = vector.shape_cast %92 : vector<16x16x4xf32> to vector<256x4xf32>
    %c0_124 = arith.constant 0 : index
    %c48 = arith.constant 48 : index
    %94 = vector.load %arg15[%c0_124, %c48] : memref<256x100xf32, #tpu.memory_space<vmem>>, vector<256x4xf32>
    tpu.vector_store %arg15[%c0_124, %c48], %93 {strides = array<i32>} : memref<256x100xf32, #tpu.memory_space<vmem>>, vector<256x4xf32>,
    %c2_125 = arith.constant 2 : index
    %c3_126 = arith.constant 3 : index
    %c0_127 = arith.constant 0 : index
    %95 = vector.load %arg12[%c2_125, %c3_126, %c0_127] : memref<20x20x4xf32, #tpu.memory_space<vmem>>, vector<16x16x4xf32>
    %96 = vector.shape_cast %95 : vector<16x16x4xf32> to vector<256x4xf32>
    %c0_128 = arith.constant 0 : index
    %c52 = arith.constant 52 : index
    %97 = vector.load %arg15[%c0_128, %c52] : memref<256x100xf32, #tpu.memory_space<vmem>>, vector<256x4xf32>
    tpu.vector_store %arg15[%c0_128, %c52], %96 {strides = array<i32>} : memref<256x100xf32, #tpu.memory_space<vmem>>, vector<256x4xf32>,
    %c2_129 = arith.constant 2 : index
    %c4_130 = arith.constant 4 : index
    %c0_131 = arith.constant 0 : index
    %98 = vector.load %arg12[%c2_129, %c4_130, %c0_131] : memref<20x20x4xf32, #tpu.memory_space<vmem>>, vector<16x16x4xf32>
    %99 = vector.shape_cast %98 : vector<16x16x4xf32> to vector<256x4xf32>
    %c0_132 = arith.constant 0 : index
    %c56 = arith.constant 56 : index
    %100 = vector.load %arg15[%c0_132, %c56] : memref<256x100xf32, #tpu.memory_space<vmem>>, vector<256x4xf32>
    tpu.vector_store %arg15[%c0_132, %c56], %99 {strides = array<i32>} : memref<256x100xf32, #tpu.memory_space<vmem>>, vector<256x4xf32>,
    %c3_133 = arith.constant 3 : index
    %c0_134 = arith.constant 0 : index
    %c0_135 = arith.constant 0 : index
    %101 = vector.load %arg12[%c3_133, %c0_134, %c0_135] : memref<20x20x4xf32, #tpu.memory_space<vmem>>, vector<16x16x4xf32>
    %102 = vector.shape_cast %101 : vector<16x16x4xf32> to vector<256x4xf32>
    %c0_136 = arith.constant 0 : index
    %c60 = arith.constant 60 : index
    %103 = vector.load %arg15[%c0_136, %c60] : memref<256x100xf32, #tpu.memory_space<vmem>>, vector<256x4xf32>
    tpu.vector_store %arg15[%c0_136, %c60], %102 {strides = array<i32>} : memref<256x100xf32, #tpu.memory_space<vmem>>, vector<256x4xf32>,
    %c3_137 = arith.constant 3 : index
    %c1_138 = arith.constant 1 : index
    %c0_139 = arith.constant 0 : index
    %104 = vector.load %arg12[%c3_137, %c1_138, %c0_139] : memref<20x20x4xf32, #tpu.memory_space<vmem>>, vector<16x16x4xf32>
    %105 = vector.shape_cast %104 : vector<16x16x4xf32> to vector<256x4xf32>
    %c0_140 = arith.constant 0 : index
    %c64 = arith.constant 64 : index
    %106 = vector.load %arg15[%c0_140, %c64] : memref<256x100xf32, #tpu.memory_space<vmem>>, vector<256x4xf32>
    tpu.vector_store %arg15[%c0_140, %c64], %105 {strides = array<i32>} : memref<256x100xf32, #tpu.memory_space<vmem>>, vector<256x4xf32>,
    %c3_141 = arith.constant 3 : index
    %c2_142 = arith.constant 2 : index
    %c0_143 = arith.constant 0 : index
    %107 = vector.load %arg12[%c3_141, %c2_142, %c0_143] : memref<20x20x4xf32, #tpu.memory_space<vmem>>, vector<16x16x4xf32>
    %108 = vector.shape_cast %107 : vector<16x16x4xf32> to vector<256x4xf32>
    %c0_144 = arith.constant 0 : index
    %c68 = arith.constant 68 : index
    %109 = vector.load %arg15[%c0_144, %c68] : memref<256x100xf32, #tpu.memory_space<vmem>>, vector<256x4xf32>
    tpu.vector_store %arg15[%c0_144, %c68], %108 {strides = array<i32>} : memref<256x100xf32, #tpu.memory_space<vmem>>, vector<256x4xf32>,
    %c3_145 = arith.constant 3 : index
    %c3_146 = arith.constant 3 : index
    %c0_147 = arith.constant 0 : index
    %110 = vector.load %arg12[%c3_145, %c3_146, %c0_147] : memref<20x20x4xf32, #tpu.memory_space<vmem>>, vector<16x16x4xf32>
    %111 = vector.shape_cast %110 : vector<16x16x4xf32> to vector<256x4xf32>
    %c0_148 = arith.constant 0 : index
    %c72 = arith.constant 72 : index
    %112 = vector.load %arg15[%c0_148, %c72] : memref<256x100xf32, #tpu.memory_space<vmem>>, vector<256x4xf32>
    tpu.vector_store %arg15[%c0_148, %c72], %111 {strides = array<i32>} : memref<256x100xf32, #tpu.memory_space<vmem>>, vector<256x4xf32>,
    %c3_149 = arith.constant 3 : index
    %c4_150 = arith.constant 4 : index
    %c0_151 = arith.constant 0 : index
    %113 = vector.load %arg12[%c3_149, %c4_150, %c0_151] : memref<20x20x4xf32, #tpu.memory_space<vmem>>, vector<16x16x4xf32>
    %114 = vector.shape_cast %113 : vector<16x16x4xf32> to vector<256x4xf32>
    %c0_152 = arith.constant 0 : index
    %c76 = arith.constant 76 : index
    %115 = vector.load %arg15[%c0_152, %c76] : memref<256x100xf32, #tpu.memory_space<vmem>>, vector<256x4xf32>
    tpu.vector_store %arg15[%c0_152, %c76], %114 {strides = array<i32>} : memref<256x100xf32, #tpu.memory_space<vmem>>, vector<256x4xf32>,
    %c4_153 = arith.constant 4 : index
    %c0_154 = arith.constant 0 : index
    %c0_155 = arith.constant 0 : index
    %116 = vector.load %arg12[%c4_153, %c0_154, %c0_155] : memref<20x20x4xf32, #tpu.memory_space<vmem>>, vector<16x16x4xf32>
    %117 = vector.shape_cast %116 : vector<16x16x4xf32> to vector<256x4xf32>
    %c0_156 = arith.constant 0 : index
    %c80 = arith.constant 80 : index
    %118 = vector.load %arg15[%c0_156, %c80] : memref<256x100xf32, #tpu.memory_space<vmem>>, vector<256x4xf32>
    tpu.vector_store %arg15[%c0_156, %c80], %117 {strides = array<i32>} : memref<256x100xf32, #tpu.memory_space<vmem>>, vector<256x4xf32>,
    %c4_157 = arith.constant 4 : index
    %c1_158 = arith.constant 1 : index
    %c0_159 = arith.constant 0 : index
    %119 = vector.load %arg12[%c4_157, %c1_158, %c0_159] : memref<20x20x4xf32, #tpu.memory_space<vmem>>, vector<16x16x4xf32>
    %120 = vector.shape_cast %119 : vector<16x16x4xf32> to vector<256x4xf32>
    %c0_160 = arith.constant 0 : index
    %c84 = arith.constant 84 : index
    %121 = vector.load %arg15[%c0_160, %c84] : memref<256x100xf32, #tpu.memory_space<vmem>>, vector<256x4xf32>
    tpu.vector_store %arg15[%c0_160, %c84], %120 {strides = array<i32>} : memref<256x100xf32, #tpu.memory_space<vmem>>, vector<256x4xf32>,
    %c4_161 = arith.constant 4 : index
    %c2_162 = arith.constant 2 : index
    %c0_163 = arith.constant 0 : index
    %122 = vector.load %arg12[%c4_161, %c2_162, %c0_163] : memref<20x20x4xf32, #tpu.memory_space<vmem>>, vector<16x16x4xf32>
    %123 = vector.shape_cast %122 : vector<16x16x4xf32> to vector<256x4xf32>
    %c0_164 = arith.constant 0 : index
    %c88 = arith.constant 88 : index
    %124 = vector.load %arg15[%c0_164, %c88] : memref<256x100xf32, #tpu.memory_space<vmem>>, vector<256x4xf32>
    tpu.vector_store %arg15[%c0_164, %c88], %123 {strides = array<i32>} : memref<256x100xf32, #tpu.memory_space<vmem>>, vector<256x4xf32>,
    %c4_165 = arith.constant 4 : index
    %c3_166 = arith.constant 3 : index
    %c0_167 = arith.constant 0 : index
    %125 = vector.load %arg12[%c4_165, %c3_166, %c0_167] : memref<20x20x4xf32, #tpu.memory_space<vmem>>, vector<16x16x4xf32>
    %126 = vector.shape_cast %125 : vector<16x16x4xf32> to vector<256x4xf32>
    %c0_168 = arith.constant 0 : index
    %c92 = arith.constant 92 : index
    %127 = vector.load %arg15[%c0_168, %c92] : memref<256x100xf32, #tpu.memory_space<vmem>>, vector<256x4xf32>
    tpu.vector_store %arg15[%c0_168, %c92], %126 {strides = array<i32>} : memref<256x100xf32, #tpu.memory_space<vmem>>, vector<256x4xf32>,
    %c4_169 = arith.constant 4 : index
    %c4_170 = arith.constant 4 : index
    %c0_171 = arith.constant 0 : index
    %128 = vector.load %arg12[%c4_169, %c4_170, %c0_171] : memref<20x20x4xf32, #tpu.memory_space<vmem>>, vector<16x16x4xf32>
    %129 = vector.shape_cast %128 : vector<16x16x4xf32> to vector<256x4xf32>
    %c0_172 = arith.constant 0 : index
    %c96 = arith.constant 96 : index
    %130 = vector.load %arg15[%c0_172, %c96] : memref<256x100xf32, #tpu.memory_space<vmem>>, vector<256x4xf32>
    tpu.vector_store %arg15[%c0_172, %c96], %129 {strides = array<i32>} : memref<256x100xf32, #tpu.memory_space<vmem>>, vector<256x4xf32>,
    %c0_173 = arith.constant 0 : index
    %c0_174 = arith.constant 0 : index
    %131 = vector.load %arg15[%c0_173, %c0_174] : memref<256x100xf32, #tpu.memory_space<vmem>>, vector<256x100xf32>
    %c0_175 = arith.constant 0 : index
    %c0_176 = arith.constant 0 : index
    %132 = vector.load %arg6[%c0_175, %c0_176] : memref<100x8xf32, #tpu.memory_space<vmem>>, vector<100x8xf32>
    %cst_177 = arith.constant dense<0.000000e+00> : vector<256x8xf32>
    %133 = tpu.matmul %131, %132, %cst_177 {dimension_numbers = #tpu.dot_dimension_numbers<[1], [0], [0], [1], [0, 0, 1, 1], [], []>} : vector<256x100xf32>, vector<100x8xf32>, vector<256x8xf32> -> vector<256x8xf32>
    %c0_178 = arith.constant 0 : index
    %c0_179 = arith.constant 0 : index
    %134 = vector.load %arg7[%c0_178, %c0_179] : memref<1x8xf32, #tpu.memory_space<vmem>>, vector<1x8xf32>
    %135 = vector.broadcast %134 : vector<1x8xf32> to vector<256x8xf32>
    %136 = arith.addf %133, %135 : vector<256x8xf32>
    %cst_180 = arith.constant 0.000000e+00 : f32
    %137 = vector.broadcast %cst_180 : f32 to vector<256x8xf32>
    %138 = arith.maximumf %136, %137 : vector<256x8xf32>
    %cst_181 = arith.constant 0xFF800000 : f32
    %139 = vector.broadcast %cst_181 : f32 to vector<18x18x4xf32>
    %c0_182 = arith.constant 0 : index
    %c0_183 = arith.constant 0 : index
    %c0_184 = arith.constant 0 : index
    %140 = vector.load %arg13[%c0_182, %c0_183, %c0_184] : memref<18x18x4xf32, #tpu.memory_space<vmem>>, vector<18x18x4xf32>
    tpu.vector_store %arg13[%c0_182, %c0_183, %c0_184], %139 {strides = array<i32>} : memref<18x18x4xf32, #tpu.memory_space<vmem>>, vector<18x18x4xf32>,
    %c1_185 = arith.constant 1 : index
    %c1_186 = arith.constant 1 : index
    %c0_187 = arith.constant 0 : index
    %141 = vector.load %arg13[%c1_185, %c1_186, %c0_187] : memref<18x18x4xf32, #tpu.memory_space<vmem>>, vector<16x16x4xf32>
    tpu.vector_store %arg13[%c1_185, %c1_186, %c0_187], %1 {strides = array<i32>} : memref<18x18x4xf32, #tpu.memory_space<vmem>>, vector<16x16x4xf32>,
    %c0_188 = arith.constant 0 : index
    %c0_189 = arith.constant 0 : index
    %c0_190 = arith.constant 0 : index
    %142 = vector.load %arg13[%c0_188, %c0_189, %c0_190] : memref<18x18x4xf32, #tpu.memory_space<vmem>>, vector<16x16x4xf32>
    %c0_191 = arith.constant 0 : index
    %c1_192 = arith.constant 1 : index
    %c0_193 = arith.constant 0 : index
    %143 = vector.load %arg13[%c0_191, %c1_192, %c0_193] : memref<18x18x4xf32, #tpu.memory_space<vmem>>, vector<16x16x4xf32>
    %144 = arith.maximumf %142, %143 : vector<16x16x4xf32>
    %c0_194 = arith.constant 0 : index
    %c2_195 = arith.constant 2 : index
    %c0_196 = arith.constant 0 : index
    %145 = vector.load %arg13[%c0_194, %c2_195, %c0_196] : memref<18x18x4xf32, #tpu.memory_space<vmem>>, vector<16x16x4xf32>
    %146 = arith.maximumf %144, %145 : vector<16x16x4xf32>
    %c1_197 = arith.constant 1 : index
    %c0_198 = arith.constant 0 : index
    %c0_199 = arith.constant 0 : index
    %147 = vector.load %arg13[%c1_197, %c0_198, %c0_199] : memref<18x18x4xf32, #tpu.memory_space<vmem>>, vector<16x16x4xf32>
    %148 = arith.maximumf %146, %147 : vector<16x16x4xf32>
    %c1_200 = arith.constant 1 : index
    %c1_201 = arith.constant 1 : index
    %c0_202 = arith.constant 0 : index
    %149 = vector.load %arg13[%c1_200, %c1_201, %c0_202] : memref<18x18x4xf32, #tpu.memory_space<vmem>>, vector<16x16x4xf32>
    %150 = arith.maximumf %148, %149 : vector<16x16x4xf32>
    %c1_203 = arith.constant 1 : index
    %c2_204 = arith.constant 2 : index
    %c0_205 = arith.constant 0 : index
    %151 = vector.load %arg13[%c1_203, %c2_204, %c0_205] : memref<18x18x4xf32, #tpu.memory_space<vmem>>, vector<16x16x4xf32>
    %152 = arith.maximumf %150, %151 : vector<16x16x4xf32>
    %c2_206 = arith.constant 2 : index
    %c0_207 = arith.constant 0 : index
    %c0_208 = arith.constant 0 : index
    %153 = vector.load %arg13[%c2_206, %c0_207, %c0_208] : memref<18x18x4xf32, #tpu.memory_space<vmem>>, vector<16x16x4xf32>
    %154 = arith.maximumf %152, %153 : vector<16x16x4xf32>
    %c2_209 = arith.constant 2 : index
    %c1_210 = arith.constant 1 : index
    %c0_211 = arith.constant 0 : index
    %155 = vector.load %arg13[%c2_209, %c1_210, %c0_211] : memref<18x18x4xf32, #tpu.memory_space<vmem>>, vector<16x16x4xf32>
    %156 = arith.maximumf %154, %155 : vector<16x16x4xf32>
    %c2_212 = arith.constant 2 : index
    %c2_213 = arith.constant 2 : index
    %c0_214 = arith.constant 0 : index
    %157 = vector.load %arg13[%c2_212, %c2_213, %c0_214] : memref<18x18x4xf32, #tpu.memory_space<vmem>>, vector<16x16x4xf32>
    %158 = arith.maximumf %156, %157 : vector<16x16x4xf32>
    %159 = vector.shape_cast %158 : vector<16x16x4xf32> to vector<256x4xf32>
    %c0_215 = arith.constant 0 : index
    %c0_216 = arith.constant 0 : index
    %160 = vector.load %arg8[%c0_215, %c0_216] : memref<4x8xf32, #tpu.memory_space<vmem>>, vector<4x8xf32>
    %cst_217 = arith.constant dense<0.000000e+00> : vector<256x8xf32>
    %161 = tpu.matmul %159, %160, %cst_217 {dimension_numbers = #tpu.dot_dimension_numbers<[1], [0], [0], [1], [0, 0, 1, 1], [], []>} : vector<256x4xf32>, vector<4x8xf32>, vector<256x8xf32> -> vector<256x8xf32>
    %c0_218 = arith.constant 0 : index
    %c0_219 = arith.constant 0 : index
    %162 = vector.load %arg9[%c0_218, %c0_219] : memref<1x8xf32, #tpu.memory_space<vmem>>, vector<1x8xf32>
    %163 = vector.broadcast %162 : vector<1x8xf32> to vector<256x8xf32>
    %164 = arith.addf %161, %163 : vector<256x8xf32>
    %cst_220 = arith.constant 0.000000e+00 : f32
    %165 = vector.broadcast %cst_220 : f32 to vector<256x8xf32>
    %166 = arith.maximumf %164, %165 : vector<256x8xf32>
    %167 = vector.shape_cast %10 : vector<256x8xf32> to vector<16x16x8xf32>
    %c0_221 = arith.constant 0 : index
    %c0_222 = arith.constant 0 : index
    %c0_223 = arith.constant 0 : index
    %c0_224 = arith.constant 0 : index
    %168 = vector.load %arg10[%c0_221, %c0_222, %c0_223, %c0_224] : memref<1x16x16x32xf32, #tpu.memory_space<vmem>>, vector<1x16x16x8xf32>
    %169 = vector.shape_cast %168 : vector<1x16x16x8xf32> to vector<16x16x8xf32>
    %170 = vector.shape_cast %167 : vector<16x16x8xf32> to vector<1x16x16x8xf32>
    tpu.vector_store %arg10[%c0_221, %c0_222, %c0_223, %c0_224], %170 {strides = array<i32>} : memref<1x16x16x32xf32, #tpu.memory_space<vmem>>, vector<1x16x16x8xf32>,
    %171 = vector.shape_cast %52 : vector<256x8xf32> to vector<16x16x8xf32>
    %c0_225 = arith.constant 0 : index
    %c0_226 = arith.constant 0 : index
    %c0_227 = arith.constant 0 : index
    %c8_228 = arith.constant 8 : index
    %172 = vector.load %arg10[%c0_225, %c0_226, %c0_227, %c8_228] : memref<1x16x16x32xf32, #tpu.memory_space<vmem>>, vector<1x16x16x8xf32>
    %173 = vector.shape_cast %172 : vector<1x16x16x8xf32> to vector<16x16x8xf32>
    %174 = vector.shape_cast %171 : vector<16x16x8xf32> to vector<1x16x16x8xf32>
    tpu.vector_store %arg10[%c0_225, %c0_226, %c0_227, %c8_228], %174 {strides = array<i32>} : memref<1x16x16x32xf32, #tpu.memory_space<vmem>>, vector<1x16x16x8xf32>,
    %175 = vector.shape_cast %138 : vector<256x8xf32> to vector<16x16x8xf32>
    %c0_229 = arith.constant 0 : index
    %c0_230 = arith.constant 0 : index
    %c0_231 = arith.constant 0 : index
    %c16_232 = arith.constant 16 : index
    %176 = vector.load %arg10[%c0_229, %c0_230, %c0_231, %c16_232] : memref<1x16x16x32xf32, #tpu.memory_space<vmem>>, vector<1x16x16x8xf32>
    %177 = vector.shape_cast %176 : vector<1x16x16x8xf32> to vector<16x16x8xf32>
    %178 = vector.shape_cast %175 : vector<16x16x8xf32> to vector<1x16x16x8xf32>
    tpu.vector_store %arg10[%c0_229, %c0_230, %c0_231, %c16_232], %178 {strides = array<i32>} : memref<1x16x16x32xf32, #tpu.memory_space<vmem>>, vector<1x16x16x8xf32>,
    %179 = vector.shape_cast %166 : vector<256x8xf32> to vector<16x16x8xf32>
    %c0_233 = arith.constant 0 : index
    %c0_234 = arith.constant 0 : index
    %c0_235 = arith.constant 0 : index
    %c24_236 = arith.constant 24 : index
    %180 = vector.load %arg10[%c0_233, %c0_234, %c0_235, %c24_236] : memref<1x16x16x32xf32, #tpu.memory_space<vmem>>, vector<1x16x16x8xf32>
    %181 = vector.shape_cast %180 : vector<1x16x16x8xf32> to vector<16x16x8xf32>
    %182 = vector.shape_cast %179 : vector<16x16x8xf32> to vector<1x16x16x8xf32>
    tpu.vector_store %arg10[%c0_233, %c0_234, %c0_235, %c24_236], %182 {strides = array<i32>} : memref<1x16x16x32xf32, #tpu.memory_space<vmem>>, vector<1x16x16x8xf32>,
    return
  }
  func.func @transform_0(%arg0: i32) -> (i32, i32, i32, i32) {
    %c0_i32 = arith.constant 0 : i32
    %c0_i32_0 = arith.constant 0 : i32
    %c0_i32_1 = arith.constant 0 : i32
    %c0_i32_2 = arith.constant 0 : i32
    return %arg0, %c0_i32, %c0_i32_0, %c0_i32_1 : i32, i32, i32, i32
  }
  func.func @transform_1(%arg0: i32) -> (i32, i32) {
    %c0_i32 = arith.constant 0 : i32
    %c0_i32_0 = arith.constant 0 : i32
    %c0_i32_1 = arith.constant 0 : i32
    return %c0_i32, %c0_i32_0 : i32, i32
  }
  func.func @transform_2(%arg0: i32) -> (i32, i32) {
    %c0_i32 = arith.constant 0 : i32
    %c0_i32_0 = arith.constant 0 : i32
    %c0_i32_1 = arith.constant 0 : i32
    return %c0_i32, %c0_i32_0 : i32, i32
  }
  func.func @transform_3(%arg0: i32) -> (i32, i32) {
    %c0_i32 = arith.constant 0 : i32
    %c0_i32_0 = arith.constant 0 : i32
    %c0_i32_1 = arith.constant 0 : i32
    return %c0_i32, %c0_i32_0 : i32, i32
  }
  func.func @transform_4(%arg0: i32) -> (i32, i32) {
    %c0_i32 = arith.constant 0 : i32
    %c0_i32_0 = arith.constant 0 : i32
    %c0_i32_1 = arith.constant 0 : i32
    return %c0_i32, %c0_i32_0 : i32, i32
  }
  func.func @transform_5(%arg0: i32) -> (i32, i32) {
    %c0_i32 = arith.constant 0 : i32
    %c0_i32_0 = arith.constant 0 : i32
    %c0_i32_1 = arith.constant 0 : i32
    return %c0_i32, %c0_i32_0 : i32, i32
  }
  func.func @transform_6(%arg0: i32) -> (i32, i32) {
    %c0_i32 = arith.constant 0 : i32
    %c0_i32_0 = arith.constant 0 : i32
    %c0_i32_1 = arith.constant 0 : i32
    return %c0_i32, %c0_i32_0 : i32, i32
  }
  func.func @transform_7(%arg0: i32) -> (i32, i32) {
    %c0_i32 = arith.constant 0 : i32
    %c0_i32_0 = arith.constant 0 : i32
    %c0_i32_1 = arith.constant 0 : i32
    return %c0_i32, %c0_i32_0 : i32, i32
  }
  func.func @transform_8(%arg0: i32) -> (i32, i32) {
    %c0_i32 = arith.constant 0 : i32
    %c0_i32_0 = arith.constant 0 : i32
    %c0_i32_1 = arith.constant 0 : i32
    return %c0_i32, %c0_i32_0 : i32, i32
  }
  func.func @transform_9(%arg0: i32) -> (i32, i32, i32, i32) {
    %c0_i32 = arith.constant 0 : i32
    %c0_i32_0 = arith.constant 0 : i32
    %c0_i32_1 = arith.constant 0 : i32
    %c0_i32_2 = arith.constant 0 : i32
    return %arg0, %c0_i32, %c0_i32_0, %c0_i32_1 : i32, i32, i32, i32
  }
}

</mosaic_0001>

<bundles_post_ra>
// kernel: inception_forward.1
= control target key start
LH: loop header
LB: loop body
LE: loop exit
PB: predicated region body
PF: predicated region fallthrough
CT: control target
= control target key end

     0   :  { %14 = vsyncpa [#allocation8], 0  ;;  %s14952_s0 = inlined_call_operand.vmem [shape: f32[2,16,16,4], index: 0, kind: input, shape index: {}]   ;;  %s14953_s1 = inlined_call_operand.vmem [shape: f32[4,16], index: 1, kind: input, shape index: {}]   ;;  %s14954_s2 = inlined_call_operand.vmem [shape: f32[1,16], index: 2, kind: input, shape index: {}]   ;;  %s14955_s3 = inlined_call_operand.vmem [shape: f32[36,8], index: 3, kind: input, shape index: {}]   ;;  %s14956_s4 = inlined_call_operand.vmem [shape: f32[1,8], index: 4, kind: input, shape index: {}]   ;;  %s14957_s5 = inlined_call_operand.vmem [shape: f32[100,8], index: 5, kind: input, shape index: {}]   ;;  %s14958_s6 = inlined_call_operand.vmem [shape: f32[1,8], index: 6, kind: input, shape index: {}]   ;;  %s14959_s7 = inlined_call_operand.vmem [shape: f32[4,8], index: 7, kind: input, shape index: {}]   ;;  %s14960_s8 = inlined_call_operand.vmem [shape: f32[1,8], index: 8, kind: input, shape index: {}]   ;;  %s14961_s9 = inlined_call_operand.hbm [shape: f32[2,16,16,32], index: 9, kind: output, shape index: {}]  }
   0x1   :  { %16 = vsyncpa [#allocation8 + $0x1], 0  ;;  %s10580_s30 = smov 0   ;;  %s10582_s10 = smov 0  }
   0x2   :  { %s10584_s11 = smov 0   ;;  %s10586_s12 = smov 0  }
   0x3 LB: > { %s10601_s13 = sadd.s32 4294967295, %s10498_s12   ;;  %s9833_s14 = sadd.s32 4294967294, %s10498_s12   ;;  %s10498_s12 = sphi %s10586_s12, %s15043_s12   ;;  %s10494_s11 = sphi %s10584_s11, %s15042_s11   ;;  %s10490_s10 = sphi %s10582_s10, %s15041_s10   ;;  %s10486_s30 = sphi %s10580_s30, %s15040_s30  }
   0x4   : > { %s10605_s15 = sadd.s32 1, %s10498_s12   ;;  %s223_s16 = sadd.s32 1, %s10494_s11 }
   0x5   : > { %s220_s17 = ssub.s32 %s10498_s12, %s10605_s15  ;;  %p233_p0 = scmp.ne.s32.totalorder %s10494_s11, %s10490_s10 }
   0x6   : > { %p221_p1 = scmp.eq.s32.totalorder %s220_s17, 0  ;;  %p234_p2 = scmp.eq.s32.totalorder %s10601_s13, 1 }
   0x7   : > { %p239_p3 = scmp.ne.s32.totalorder %s10490_s10, %s10486_s30  ;;  %p240_p4 = scmp.eq.s32.totalorder %s9833_s14, 1 }
   0x8   : > { %s10616_s18 = scalar_select %p221_p1, %s10494_s11, %s223_s16  }
   0x9   : > { %p10618_p5 = por %p234_p2, %p233_p0  ;;  %p10622_p6 = por %p240_p4, %p239_p3 }
   0xa   : > { %p9836_p7 = scmp.ge.s32.totalorder %s10498_s12, 1  ;;  %p290_p8 = scmp.lt.s32.totalorder %s10498_s12, 3 }
   0xc   : > { %p291_p9 = pnand %p9836_p7, %p290_p8 }
   0xe   : > { %294 = sbr.rel (%p291_p9) target bundleno = 3019 (0xbcb), region = 56 }
  0x13   : > { %v363_v0 = vld [vmem:[%s14953_s1] sm:$0xf]  ;;  %vm468_vm0 = vcmask 1043456   ;;  %p326_p10 = scmp.lt.s32.totalorder %s10601_s13, 1  ;;  %vm371_vm1 = vcmask 31744   ;;  %v10500_v1 = vmov -inf  }
  0x14   : > { %10131 = vmatprep.subr.msk.mxu0 %vm468_vm0, %v363_v0  ;;  %8248 = vst.msk [vmem:[#allocation4 + $0x18] sm:$0xff] %vm371_vm1, %v10500_v1  ;;  %8249 = vst.msk [vmem:[#allocation4 + $0x20] sm:$0xff] %vm371_vm1, %v10500_v1  ;;  %vm731_vm2 = vcmask 25600   ;;  %v14962_v2 = vmov 0.0   ;;  %s10502_s28 = smov 4   ;;  %s10503_s29 = smov 8  }
  0x15   : > { %8245 = vst.msk [vmem:[#allocation4] sm:$0xff] %vm371_vm1, %v10500_v1  ;;  %8246 = vst.msk [vmem:[#allocation4 + $0x8] sm:$0xff] %vm371_vm1, %v10500_v1  ;;  %10132 = vmatpush3.msk.msra.mxu0 %vm468_vm0, %v363_v0  ;;  %s10673_s23 = scalar_select %p326_p10, %s10601_s13, 1  ;;  %vm1169_vm3 = vcmask 64544   ;;  %vm1362_vm4 = vcmask 97344   ;;  %vm9241_vm5 = vcmask 64512  }
  0x16   : > { %8251 = vst.msk [vmem:[#allocation4 + $0x30] sm:$0xff] %vm371_vm1, %v10500_v1  ;;  %8252 = vst.msk [vmem:[#allocation4 + $0x38] sm:$0xff] %vm371_vm1, %v10500_v1  ;;  %s14985_s14 = sand.u32 1, %s10490_s10   ;;  %v10995_v44 = vld [vmem:[%s14954_s2] ss:$0 sm:$0xff]  ;;  %s10506_s25 = smov 20  }
  0x17   : > { %8254 = vst.msk [vmem:[#allocation4 + $0x48] sm:$0xff] %vm371_vm1, %v10500_v1  ;;  %8255 = vst.msk [vmem:[#allocation4 + $0x50] sm:$0xff] %vm371_vm1, %v10500_v1  ;;  %s9981_s24 = sshll.u32 %s10673_s23, 8  ;;  %s9837_s21 = sshll.u32 %s14985_s14, 8  ;;  %vm1555_vm6 = vcmask 130144   ;;  %vm1748_vm7 = vcmask 162944  }
  0x18   : > { %8257 = vst.msk [vmem:[#allocation4 + $0x60] sm:$0xff] %vm371_vm1, %v10500_v1  ;;  %8258 = vst.msk [vmem:[#allocation4 + $0x68] sm:$0xff] %vm371_vm1, %v10500_v1  ;;  %s10885_s27 = scalar_lea.vmem %s14952_s0, %s9981_s24  ;;  %s11005_s22 = scalar_lea.vmem [#allocation7], %s9837_s21  ;;  %vm1941_vm8 = vcmask 195744   ;;  %vm2135_vm9 = vcmask 228544   ;;  %vm2957_vm10 = vcmask 27648  }
  0x19   : > { %8260 = vst.msk [vmem:[#allocation4 + $0x78] sm:$0xff] %vm371_vm1, %v10500_v1  ;;  %8261 = vst.msk [vmem:[#allocation4 + $0x80] sm:$0xff] %vm371_vm1, %v10500_v1  ;;  %v331_v3 = vld [vmem:[%s10885_s27] sm:$0xff]  ;;  %v332_v4 = vld [vmem:[%s10885_s27 + $0x8] sm:$0xff]  ;;  %s10504_s23 = smov 120   ;;  %s10505_s24 = smov 16  }
  0x1a   : > { %8263 = vst.msk [vmem:[#allocation4 + $0x90] sm:$0xff] %vm371_vm1, %v10500_v1  ;;  %8264 = vst.msk [vmem:[#allocation4 + $0x98] sm:$0xff] %vm371_vm1, %v10500_v1  ;;  %v333_v5 = vld [vmem:[%s10885_s27 + $0x10] sm:$0xff]  ;;  %10133 = vmatprep.mubr.msk.f32.mxu0 %vm371_vm1, %v331_v3  ;;  %v334_v6 = vld [vmem:[%s10885_s27 + $0x18] sm:$0xff]  ;;  %s10507_s26 = smov 12   ;;  %s10509_s16 = smov 28  }
  0x1b   : > { %8266 = vst.msk [vmem:[#allocation4 + $0xa8] sm:$0xff] %vm371_vm1, %v10500_v1  ;;  %8267 = vst.msk [vmem:[#allocation4 + $0xb0] sm:$0xff] %vm371_vm1, %v10500_v1  ;;  %v335_v7 = vld [vmem:[%s10885_s27 + $0x20] sm:$0xff]  ;;  %v336_v8 = vld [vmem:[%s10885_s27 + $0x28] sm:$0xff]  ;;  %10134 = vmatmul.mubr.msk.f32.vlgmr.msra.gmra.mxu0 %vm371_vm1, %v332_v4  ;;  %s10510_s14 = smov 32   ;;  %vm2328_vm11 = vcmask 261344  }
  0x1c   : > { %8269 = vst.msk [vmem:[#allocation4 + $0xc0] sm:$0xff] %vm371_vm1, %v10500_v1  ;;  %8270 = vst.msk [vmem:[#allocation4 + $0xc8] sm:$0xff] %vm371_vm1, %v10500_v1  ;;  %v337_v9 = vld [vmem:[%s10885_s27 + $0x30] sm:$0xff]  ;;  %v338_v10 = vld [vmem:[%s10885_s27 + $0x38] sm:$0xff]  ;;  %10136 = vmatprep.mubr.msk.f32.mxu0 %vm371_vm1, %v333_v5  ;;  %vm2521_vm12 = vcmask 294144   ;;  %vm2598_vm13 = vcmask 293888  }
  0x1d   : > { %8272 = vst.msk [vmem:[#allocation4 + $0xd8] sm:$0xff] %vm371_vm1, %v10500_v1  ;;  %8273 = vst.msk [vmem:[#allocation4 + $0xe0] sm:$0xff] %vm371_vm1, %v10500_v1  ;;  %v339_v11 = vld [vmem:[%s10885_s27 + $0x40] sm:$0xff]  ;;  %v340_v12 = vld [vmem:[%s10885_s27 + $0x48] sm:$0xff]  ;;  %vm4906_vm14 = vcmask 326944   ;;  %vm5099_vm15 = vcmask 359744  }
  0x1e   : > { %8275 = vst.msk [vmem:[#allocation4 + $0xf0] sm:$0xff] %vm371_vm1, %v10500_v1  ;;  %8276 = vst.msk [vmem:[#allocation4 + $0xf8] sm:$0xff] %vm371_vm1, %v10500_v1  ;;  %v341_v13 = vld [vmem:[%s10885_s27 + $0x50] sm:$0xff]  ;;  %v342_v14 = vld [vmem:[%s10885_s27 + $0x58] sm:$0xff]  ;;  %s10516_s17 = smov 52   ;;  %s10517_s21 = smov 56  }
  0x1f   : > { %8278 = vst.msk [vmem:[#allocation4 + $0x108] sm:$0xff] %vm371_vm1, %v10500_v1  ;;  %8279 = vst.msk [vmem:[#allocation4 + $0x110] sm:$0xff] %vm371_vm1, %v10500_v1  ;;  %v343_v15 = vld [vmem:[%s10885_s27 + $0x60] sm:$0xff]  ;;  %v344_v16 = vld [vmem:[%s10885_s27 + $0x68] sm:$0xff]  ;;  %10137 = vmatmul.mubr.msk.f32.gmra.mxu0 %vm371_vm1, %v334_v6 }
  0x20   : > { %8281 = vst.msk [vmem:[#allocation4 + $0x120] sm:$0xff] %vm371_vm1, %v10500_v1  ;;  %8282 = vst.msk [vmem:[#allocation4 + $0x128] sm:$0xff] %vm371_vm1, %v10500_v1  ;;  %v345_v17 = vld [vmem:[%s10885_s27 + $0x70] sm:$0xff]  ;;  %v346_v18 = vld [vmem:[%s10885_s27 + $0x78] sm:$0xff]  ;;  %10139 = vmatprep.mubr.msk.f32.mxu0 %vm371_vm1, %v335_v7 }
  0x21   : > { %8284 = vst.msk [vmem:[#allocation4 + $0x138] sm:$0xff] %vm371_vm1, %v10500_v1  ;;  %8285 = vst.msk [vmem:[#allocation4 + $0x140] sm:$0xff] %vm371_vm1, %v10500_v1  ;;  %v347_v19 = vld [vmem:[%s10885_s27 + $0x80] sm:$0xff]  ;;  %v348_v20 = vld [vmem:[%s10885_s27 + $0x88] sm:$0xff] }
  0x22   : > { %8287 = vst.msk [vmem:[#allocation4 + $0x150] sm:$0xff] %vm371_vm1, %v10500_v1  ;;  %8288 = vst.msk [vmem:[#allocation4 + $0x158] sm:$0xff] %vm371_vm1, %v10500_v1  ;;  %v349_v21 = vld [vmem:[%s10885_s27 + $0x90] sm:$0xff]  ;;  %v350_v22 = vld [vmem:[%s10885_s27 + $0x98] sm:$0xff] }
  0x23   : > { %8290 = vst.msk [vmem:[#allocation4 + $0x168] sm:$0xff] %vm371_vm1, %v10500_v1  ;;  %8291 = vst.msk [vmem:[#allocation4 + $0x170] sm:$0xff] %vm371_vm1, %v10500_v1  ;;  %v351_v23 = vld [vmem:[%s10885_s27 + $0xa0] sm:$0xff]  ;;  %v352_v24 = vld [vmem:[%s10885_s27 + $0xa8] sm:$0xff]  ;;  %10140 = vmatmul.mubr.msk.f32.gmra.mxu0 %vm371_vm1, %v336_v8 }
  0x24   : > { %8293 = vst.msk [vmem:[#allocation4 + $0x180] sm:$0xff] %vm371_vm1, %v10500_v1  ;;  %8294 = vst.msk [vmem:[#allocation4 + $0x188] sm:$0xff] %vm371_vm1, %v10500_v1  ;;  %v353_v25 = vld [vmem:[%s10885_s27 + $0xb0] sm:$0xff]  ;;  %v354_v26 = vld [vmem:[%s10885_s27 + $0xb8] sm:$0xff]  ;;  %10142 = vmatprep.mubr.msk.f32.mxu0 %vm371_vm1, %v337_v9 }
  0x25   : > { %8296 = vst.msk [vmem:[#allocation4 + $0x198] sm:$0xff] %vm371_vm1, %v10500_v1  ;;  %8297 = vst.msk [vmem:[#allocation4 + $0x1a0] sm:$0xff] %vm371_vm1, %v10500_v1  ;;  %v355_v27 = vld [vmem:[%s10885_s27 + $0xc0] sm:$0xff]  ;;  %v356_v28 = vld [vmem:[%s10885_s27 + $0xc8] sm:$0xff] }
  0x26   : > { %8250 = vst.msk [vmem:[#allocation4 + $0x28] sm:$0x3] %vm731_vm2, %v10500_v1  ;;  %8247 = vst.msk [vmem:[#allocation4 + $0x10] sm:$0x3] %vm731_vm2, %v10500_v1  ;;  %v357_v29 = vld [vmem:[%s10885_s27 + $0xd0] sm:$0xff]  ;;  %v358_v30 = vld [vmem:[%s10885_s27 + $0xd8] sm:$0xff] }
  0x27   : > { %8253 = vst.msk [vmem:[#allocation4 + $0x40] sm:$0x3] %vm731_vm2, %v10500_v1  ;;  %8256 = vst.msk [vmem:[#allocation4 + $0x58] sm:$0x3] %vm731_vm2, %v10500_v1  ;;  %v359_v31 = vld [vmem:[%s10885_s27 + $0xe0] sm:$0xff]  ;;  %v360_v32 = vld [vmem:[%s10885_s27 + $0xe8] sm:$0xff]  ;;  %10143 = vmatmul.mubr.msk.f32.gmra.mxu0 %vm371_vm1, %v338_v10 }
  0x28   : > { %8259 = vst.msk [vmem:[#allocation4 + $0x70] sm:$0x3] %vm731_vm2, %v10500_v1  ;;  %8262 = vst.msk [vmem:[#allocation4 + $0x88] sm:$0x3] %vm731_vm2, %v10500_v1  ;;  %v361_v33 = vld [vmem:[%s10885_s27 + $0xf0] sm:$0xff]  ;;  %v362_v34 = vld [vmem:[%s10885_s27 + $0xf8] sm:$0xff]  ;;  %10145 = vmatprep.mubr.msk.f32.mxu0 %vm371_vm1, %v339_v11 }
  0x29   : > { %8265 = vst.msk [vmem:[#allocation4 + $0xa0] sm:$0x3] %vm731_vm2, %v10500_v1  ;;  %8268 = vst.msk [vmem:[#allocation4 + $0xb8] sm:$0x3] %vm731_vm2, %v10500_v1  ;;  %s10508_s27 = smov 24  }
  0x2a   : > { %8271 = vst.msk [vmem:[#allocation4 + $0xd0] sm:$0x3] %vm731_vm2, %v10500_v1  ;;  %8274 = vst.msk [vmem:[#allocation4 + $0xe8] sm:$0x3] %vm731_vm2, %v10500_v1 }
  0x2b   : > { %8277 = vst.msk [vmem:[#allocation4 + $0x100] sm:$0x3] %vm731_vm2, %v10500_v1  ;;  %8280 = vst.msk [vmem:[#allocation4 + $0x118] sm:$0x3] %vm731_vm2, %v10500_v1  ;;  %10146 = vmatmul.mubr.msk.f32.gmra.mxu0 %vm371_vm1, %v340_v12 }
  0x2c   : > { %8283 = vst.msk [vmem:[#allocation4 + $0x130] sm:$0x3] %vm731_vm2, %v10500_v1  ;;  %8286 = vst.msk [vmem:[#allocation4 + $0x148] sm:$0x3] %vm731_vm2, %v10500_v1  ;;  %10148 = vmatprep.mubr.msk.f32.mxu0 %vm371_vm1, %v341_v13 }
  0x2d   : > { %8289 = vst.msk [vmem:[#allocation4 + $0x160] sm:$0x3] %vm731_vm2, %v10500_v1  ;;  %8292 = vst.msk [vmem:[#allocation4 + $0x178] sm:$0x3] %vm731_vm2, %v10500_v1 }
  0x2e   : > { %8295 = vst.msk [vmem:[#allocation4 + $0x190] sm:$0x3] %vm731_vm2, %v10500_v1  ;;  %8298 = vst.msk [vmem:[#allocation4 + $0x1a8] sm:$0x3] %vm731_vm2, %v10500_v1 }
  0x2f   : > { %729 = vst.msk [vmem:[#allocation2] sm:$0xff] %vm371_vm1, %v14962_v2  ;;  %730 = vst.msk [vmem:[#allocation2 + $0x8] sm:$0xff] %vm371_vm1, %v14962_v2  ;;  %10149 = vmatmul.mubr.msk.f32.gmra.mxu0 %vm371_vm1, %v342_v14 }
  0x30   : > { %732 = vst.msk [vmem:[#allocation2 + $0x10] sm:$0x3] %vm731_vm2, %v14962_v2  ;;  %735 = vst.msk [vmem:[#allocation2 + $0x28] sm:$0x3] %vm731_vm2, %v14962_v2  ;;  %10151 = vmatprep.mubr.msk.f32.mxu0 %vm371_vm1, %v343_v15 }
  0x31   : > { %733 = vst.msk [vmem:[#allocation2 + $0x18] sm:$0xff] %vm371_vm1, %v14962_v2  ;;  %734 = vst.msk [vmem:[#allocation2 + $0x20] sm:$0xff] %vm371_vm1, %v14962_v2 }
  0x32   : > { %736 = vst.msk [vmem:[#allocation2 + $0x30] sm:$0xff] %vm371_vm1, %v14962_v2  ;;  %737 = vst.msk [vmem:[#allocation2 + $0x38] sm:$0xff] %vm371_vm1, %v14962_v2 }
  0x33   : > { %738 = vst.msk [vmem:[#allocation2 + $0x40] sm:$0x3] %vm731_vm2, %v14962_v2  ;;  %741 = vst.msk [vmem:[#allocation2 + $0x58] sm:$0x3] %vm731_vm2, %v14962_v2  ;;  %10152 = vmatmul.mubr.msk.f32.gmra.mxu0 %vm371_vm1, %v344_v16 }
  0x34   : > { %739 = vst.msk [vmem:[#allocation2 + $0x48] sm:$0xff] %vm371_vm1, %v14962_v2  ;;  %740 = vst.msk [vmem:[#allocation2 + $0x50] sm:$0xff] %vm371_vm1, %v14962_v2  ;;  %10154 = vmatprep.mubr.msk.f32.mxu0 %vm371_vm1, %v345_v17 }
  0x35   : > { %742 = vst.msk [vmem:[#allocation2 + $0x60] sm:$0xff] %vm371_vm1, %v14962_v2  ;;  %743 = vst.msk [vmem:[#allocation2 + $0x68] sm:$0xff] %vm371_vm1, %v14962_v2 }
  0x36   : > { %744 = vst.msk [vmem:[#allocation2 + $0x70] sm:$0x3] %vm731_vm2, %v14962_v2  ;;  %747 = vst.msk [vmem:[#allocation2 + $0x88] sm:$0x3] %vm731_vm2, %v14962_v2  ;;  %v1009_v35 = vld [vmem:[#allocation2 + $0x1] sm:$0xff] }
  0x37   : > { %745 = vst.msk [vmem:[#allocation2 + $0x78] sm:$0xff] %vm371_vm1, %v14962_v2  ;;  %746 = vst.msk [vmem:[#allocation2 + $0x80] sm:$0xff] %vm371_vm1, %v14962_v2  ;;  %1073 = vrot.lane.b32.xlu0 %v1009_v35, %s10502_s28  ;;  %10155 = vmatmul.mubr.msk.f32.gmra.mxu0 %vm371_vm1, %v346_v18  ;;  %v1202_v36 = vld [vmem:[#allocation2 + $0x2] sm:$0xff]  ;;  %v1203_v38 = vld [vmem:[#allocation2 + $0xa] sm:$0xff] }
  0x38   : > { %748 = vst.msk [vmem:[#allocation2 + $0x90] sm:$0xff] %vm371_vm1, %v14962_v2  ;;  %749 = vst.msk [vmem:[#allocation2 + $0x98] sm:$0xff] %vm371_vm1, %v14962_v2  ;;  %10157 = vmatprep.mubr.msk.f32.mxu0 %vm371_vm1, %v347_v19  ;;  %v1010_v37 = vld [vmem:[#allocation2 + $0x9] sm:$0xff]  ;;  %v945_v39 = vld [vmem:[#allocation2] sm:$0xff] }
  0x39   : > { %750 = vst.msk [vmem:[#allocation2 + $0xa0] sm:$0x3] %vm731_vm2, %v14962_v2  ;;  %753 = vst.msk [vmem:[#allocation2 + $0xb8] sm:$0x3] %vm731_vm2, %v14962_v2  ;;  %1075 = vrot.lane.b32.xlu1 %v1010_v37, %s10502_s28  ;;  %v946_v43 = vld [vmem:[#allocation2 + $0x8] sm:$0xff] }
  0x3a   : > { %751 = vst.msk [vmem:[#allocation2 + $0xa8] sm:$0xff] %vm371_vm1, %v14962_v2  ;;  %752 = vst.msk [vmem:[#allocation2 + $0xb0] sm:$0xff] %vm371_vm1, %v14962_v2 }
  0x3b   : > { %754 = vst.msk [vmem:[#allocation2 + $0xc0] sm:$0xff] %vm371_vm1, %v14962_v2  ;;  %755 = vst.msk [vmem:[#allocation2 + $0xc8] sm:$0xff] %vm371_vm1, %v14962_v2  ;;  %10158 = vmatmul.mubr.msk.f32.gmra.mxu0 %vm371_vm1, %v348_v20  ;;  %1266 = vrot.lane.b32.xlu0 %v1202_v36, %s10503_s29 }
  0x3c   : > { %756 = vst.msk [vmem:[#allocation2 + $0xd0] sm:$0x3] %vm731_vm2, %v14962_v2  ;;  %759 = vst.msk [vmem:[#allocation2 + $0xe8] sm:$0x3] %vm731_vm2, %v14962_v2  ;;  %10160 = vmatprep.mubr.msk.f32.mxu0 %vm371_vm1, %v349_v21 }
  0x3d   : > { %757 = vst.msk [vmem:[#allocation2 + $0xd8] sm:$0xff] %vm371_vm1, %v14962_v2  ;;  %758 = vst.msk [vmem:[#allocation2 + $0xe0] sm:$0xff] %vm371_vm1, %v14962_v2  ;;  %1268 = vrot.lane.b32.xlu1 %v1203_v38, %s10503_s29 }
  0x3e   : > { %760 = vst.msk [vmem:[#allocation2 + $0xf0] sm:$0xff] %vm371_vm1, %v14962_v2  ;;  %761 = vst.msk [vmem:[#allocation2 + $0xf8] sm:$0xff] %vm371_vm1, %v14962_v2 }
  0x3f   : > { %762 = vst.msk [vmem:[#allocation2 + $0x100] sm:$0x3] %vm731_vm2, %v14962_v2  ;;  %765 = vst.msk [vmem:[#allocation2 + $0x118] sm:$0x3] %vm731_vm2, %v14962_v2  ;;  %10161 = vmatmul.mubr.msk.f32.gmra.mxu0 %vm371_vm1, %v350_v22 }
  0x40   : > { %763 = vst.msk [vmem:[#allocation2 + $0x108] sm:$0xff] %vm371_vm1, %v14962_v2  ;;  %764 = vst.msk [vmem:[#allocation2 + $0x110] sm:$0xff] %vm371_vm1, %v14962_v2  ;;  %10163 = vmatprep.mubr.msk.f32.mxu0 %vm371_vm1, %v351_v23 }
  0x41   : > { %766 = vst.msk [vmem:[#allocation2 + $0x120] sm:$0xff] %vm371_vm1, %v14962_v2  ;;  %767 = vst.msk [vmem:[#allocation2 + $0x128] sm:$0xff] %vm371_vm1, %v14962_v2 }
  0x42   : > { %768 = vst.msk [vmem:[#allocation2 + $0x130] sm:$0x3] %vm731_vm2, %v14962_v2  ;;  %771 = vst.msk [vmem:[#allocation2 + $0x148] sm:$0x3] %vm731_vm2, %v14962_v2 }
  0x43   : > { %769 = vst.msk [vmem:[#allocation2 + $0x138] sm:$0xff] %vm371_vm1, %v14962_v2  ;;  %770 = vst.msk [vmem:[#allocation2 + $0x140] sm:$0xff] %vm371_vm1, %v14962_v2  ;;  %10164 = vmatmul.mubr.msk.f32.gmra.mxu0 %vm371_vm1, %v352_v24 }
  0x44   : > { %772 = vst.msk [vmem:[#allocation2 + $0x150] sm:$0xff] %vm371_vm1, %v14962_v2  ;;  %773 = vst.msk [vmem:[#allocation2 + $0x158] sm:$0xff] %vm371_vm1, %v14962_v2  ;;  %10166 = vmatprep.mubr.msk.f32.mxu0 %vm371_vm1, %v353_v25 }
  0x45   : > { %774 = vst.msk [vmem:[#allocation2 + $0x160] sm:$0x3] %vm731_vm2, %v14962_v2  ;;  %777 = vst.msk [vmem:[#allocation2 + $0x178] sm:$0x3] %vm731_vm2, %v14962_v2 }
  0x46   : > { %775 = vst.msk [vmem:[#allocation2 + $0x168] sm:$0xff] %vm371_vm1, %v14962_v2  ;;  %776 = vst.msk [vmem:[#allocation2 + $0x170] sm:$0xff] %vm371_vm1, %v14962_v2 }
  0x47   : > { %778 = vst.msk [vmem:[#allocation2 + $0x180] sm:$0xff] %vm371_vm1, %v14962_v2  ;;  %779 = vst.msk [vmem:[#allocation2 + $0x188] sm:$0xff] %vm371_vm1, %v14962_v2  ;;  %10167 = vmatmul.mubr.msk.f32.gmra.mxu0 %vm371_vm1, %v354_v26 }
  0x48   : > { %780 = vst.msk [vmem:[#allocation2 + $0x190] sm:$0x3] %vm731_vm2, %v14962_v2  ;;  %783 = vst.msk [vmem:[#allocation2 + $0x1a8] sm:$0x3] %vm731_vm2, %v14962_v2  ;;  %10169 = vmatprep.mubr.msk.f32.mxu0 %vm371_vm1, %v355_v27  ;;  %vm5292_vm2 = vcmask 392544  }
  0x49   : > { %781 = vst.msk [vmem:[#allocation2 + $0x198] sm:$0xff] %vm371_vm1, %v14962_v2  ;;  %782 = vst.msk [vmem:[#allocation2 + $0x1a0] sm:$0xff] %vm371_vm1, %v14962_v2 }
  0x4a   : > { %2955 = vst.msk [vmem:[#allocation3] sm:$0xff] %vm371_vm1, %v14962_v2  ;;  %2956 = vst.msk [vmem:[#allocation3 + $0x8] sm:$0xff] %vm371_vm1, %v14962_v2 }
  0x4b   : > { %2959 = vst.msk [vmem:[#allocation3 + $0x18] sm:$0xff] %vm371_vm1, %v14962_v2  ;;  %2960 = vst.msk [vmem:[#allocation3 + $0x20] sm:$0xff] %vm371_vm1, %v14962_v2  ;;  %10170 = vmatmul.mubr.msk.f32.gmra.mxu0 %vm371_vm1, %v356_v28 }
  0x4c   : > { %2962 = vst.msk [vmem:[#allocation3 + $0x30] sm:$0xff] %vm371_vm1, %v14962_v2  ;;  %2963 = vst.msk [vmem:[#allocation3 + $0x38] sm:$0xff] %vm371_vm1, %v14962_v2  ;;  %10172 = vmatprep.mubr.msk.f32.mxu0 %vm371_vm1, %v357_v29 }
  0x4d   : > { %2965 = vst.msk [vmem:[#allocation3 + $0x48] sm:$0xff] %vm371_vm1, %v14962_v2  ;;  %2966 = vst.msk [vmem:[#allocation3 + $0x50] sm:$0xff] %vm371_vm1, %v14962_v2 }
  0x4e   : > { %2968 = vst.msk [vmem:[#allocation3 + $0x60] sm:$0xff] %vm371_vm1, %v14962_v2  ;;  %2969 = vst.msk [vmem:[#allocation3 + $0x68] sm:$0xff] %vm371_vm1, %v14962_v2 }
  0x4f   : > { %2971 = vst.msk [vmem:[#allocation3 + $0x78] sm:$0xff] %vm371_vm1, %v14962_v2  ;;  %2972 = vst.msk [vmem:[#allocation3 + $0x80] sm:$0xff] %vm371_vm1, %v14962_v2  ;;  %10173 = vmatmul.mubr.msk.f32.gmra.mxu0 %vm371_vm1, %v358_v30 }
  0x50   : > { %2974 = vst.msk [vmem:[#allocation3 + $0x90] sm:$0xff] %vm371_vm1, %v14962_v2  ;;  %2975 = vst.msk [vmem:[#allocation3 + $0x98] sm:$0xff] %vm371_vm1, %v14962_v2  ;;  %10175 = vmatprep.mubr.msk.f32.mxu0 %vm371_vm1, %v359_v31 }
  0x51   : > { %2977 = vst.msk [vmem:[#allocation3 + $0xa8] sm:$0xff] %vm371_vm1, %v14962_v2  ;;  %2978 = vst.msk [vmem:[#allocation3 + $0xb0] sm:$0xff] %vm371_vm1, %v14962_v2 }
  0x52   : > { %2980 = vst.msk [vmem:[#allocation3 + $0xc0] sm:$0xff] %vm371_vm1, %v14962_v2  ;;  %2981 = vst.msk [vmem:[#allocation3 + $0xc8] sm:$0xff] %vm371_vm1, %v14962_v2 }
  0x53   : > { %2983 = vst.msk [vmem:[#allocation3 + $0xd8] sm:$0xff] %vm371_vm1, %v14962_v2  ;;  %2984 = vst.msk [vmem:[#allocation3 + $0xe0] sm:$0xff] %vm371_vm1, %v14962_v2  ;;  %10176 = vmatmul.mubr.msk.f32.gmra.mxu0 %vm371_vm1, %v360_v32 }
  0x54   : > { %2986 = vst.msk [vmem:[#allocation3 + $0xf0] sm:$0xff] %vm371_vm1, %v14962_v2  ;;  %2987 = vst.msk [vmem:[#allocation3 + $0xf8] sm:$0xff] %vm371_vm1, %v14962_v2  ;;  %10178 = vmatprep.mubr.msk.f32.mxu0 %vm371_vm1, %v361_v33 }
  0x55   : > { %2989 = vst.msk [vmem:[#allocation3 + $0x108] sm:$0xff] %vm371_vm1, %v14962_v2  ;;  %2990 = vst.msk [vmem:[#allocation3 + $0x110] sm:$0xff] %vm371_vm1, %v14962_v2 }
  0x56   : > { %2992 = vst.msk [vmem:[#allocation3 + $0x120] sm:$0xff] %vm371_vm1, %v14962_v2  ;;  %2993 = vst.msk [vmem:[#allocation3 + $0x128] sm:$0xff] %vm371_vm1, %v14962_v2 }
  0x57   : > { %2995 = vst.msk [vmem:[#allocation3 + $0x138] sm:$0xff] %vm371_vm1, %v14962_v2  ;;  %2996 = vst.msk [vmem:[#allocation3 + $0x140] sm:$0xff] %vm371_vm1, %v14962_v2  ;;  %10179 = vmatmul.mubr.msk.f32.gmra.mxu0 %vm371_vm1, %v362_v34 }
  0x58   : > { %2998 = vst.msk [vmem:[#allocation3 + $0x150] sm:$0xff] %vm371_vm1, %v14962_v2  ;;  %2999 = vst.msk [vmem:[#allocation3 + $0x158] sm:$0xff] %vm371_vm1, %v14962_v2 }
  0x59   : > { %3001 = vst.msk [vmem:[#allocation3 + $0x168] sm:$0xff] %vm371_vm1, %v14962_v2  ;;  %3002 = vst.msk [vmem:[#allocation3 + $0x170] sm:$0xff] %vm371_vm1, %v14962_v2 }
  0x5a   : > { %3004 = vst.msk [vmem:[#allocation3 + $0x180] sm:$0xff] %vm371_vm1, %v14962_v2  ;;  %3005 = vst.msk [vmem:[#allocation3 + $0x188] sm:$0xff] %vm371_vm1, %v14962_v2 }
  0x5b   : > { %3007 = vst.msk [vmem:[#allocation3 + $0x198] sm:$0xff] %vm371_vm1, %v14962_v2  ;;  %3008 = vst.msk [vmem:[#allocation3 + $0x1a0] sm:$0xff] %vm371_vm1, %v14962_v2 }
  0x5c   : > { %3010 = vst.msk [vmem:[#allocation3 + $0x1b0] sm:$0xff] %vm371_vm1, %v14962_v2  ;;  %3011 = vst.msk [vmem:[#allocation3 + $0x1b8] sm:$0xff] %vm371_vm1, %v14962_v2 }
  0x5d   : > { %3013 = vst.msk [vmem:[#allocation3 + $0x1c8] sm:$0xff] %vm371_vm1, %v14962_v2  ;;  %3014 = vst.msk [vmem:[#allocation3 + $0x1d0] sm:$0xff] %vm371_vm1, %v14962_v2 }
  0x5e   : > { %8300 = vst.msk [vmem:[#allocation4 + $0x19] sm:$0xff] %vm371_vm1, %v331_v3  ;;  %8301 = vst.msk [vmem:[#allocation4 + $0x21] sm:$0xff] %vm371_vm1, %v332_v4 }
  0x5f   : > { %8302 = vst.msk [vmem:[#allocation4 + $0x31] sm:$0xff] %vm371_vm1, %v333_v5  ;;  %8303 = vst.msk [vmem:[#allocation4 + $0x39] sm:$0xff] %vm371_vm1, %v334_v6 }
  0x60   : > { %8304 = vst.msk [vmem:[#allocation4 + $0x49] sm:$0xff] %vm371_vm1, %v335_v7  ;;  %8305 = vst.msk [vmem:[#allocation4 + $0x51] sm:$0xff] %vm371_vm1, %v336_v8 }
  0x61   : > { %8306 = vst.msk [vmem:[#allocation4 + $0x61] sm:$0xff] %vm371_vm1, %v337_v9  ;;  %8307 = vst.msk [vmem:[#allocation4 + $0x69] sm:$0xff] %vm371_vm1, %v338_v10 }
  0x62   : > { %8308 = vst.msk [vmem:[#allocation4 + $0x79] sm:$0xff] %vm371_vm1, %v339_v11  ;;  %8309 = vst.msk [vmem:[#allocation4 + $0x81] sm:$0xff] %vm371_vm1, %v340_v12 }
  0x63   : > { %8310 = vst.msk [vmem:[#allocation4 + $0x91] sm:$0xff] %vm371_vm1, %v341_v13  ;;  %8311 = vst.msk [vmem:[#allocation4 + $0x99] sm:$0xff] %vm371_vm1, %v342_v14 }
  0x64   : > { %8312 = vst.msk [vmem:[#allocation4 + $0xa9] sm:$0xff] %vm371_vm1, %v343_v15  ;;  %8313 = vst.msk [vmem:[#allocation4 + $0xb1] sm:$0xff] %vm371_vm1, %v344_v16 }
  0x65   : > { %8314 = vst.msk [vmem:[#allocation4 + $0xc1] sm:$0xff] %vm371_vm1, %v345_v17  ;;  %8315 = vst.msk [vmem:[#allocation4 + $0xc9] sm:$0xff] %vm371_vm1, %v346_v18 }
  0x66   : > { %8316 = vst.msk [vmem:[#allocation4 + $0xd9] sm:$0xff] %vm371_vm1, %v347_v19  ;;  %8317 = vst.msk [vmem:[#allocation4 + $0xe1] sm:$0xff] %vm371_vm1, %v348_v20 }
  0x67   : > { %8318 = vst.msk [vmem:[#allocation4 + $0xf1] sm:$0xff] %vm371_vm1, %v349_v21  ;;  %8319 = vst.msk [vmem:[#allocation4 + $0xf9] sm:$0xff] %vm371_vm1, %v350_v22 }
  0x68   : > { %8320 = vst.msk [vmem:[#allocation4 + $0x109] sm:$0xff] %vm371_vm1, %v351_v23  ;;  %8321 = vst.msk [vmem:[#allocation4 + $0x111] sm:$0xff] %vm371_vm1, %v352_v24 }
  0x69   : > { %8322 = vst.msk [vmem:[#allocation4 + $0x121] sm:$0xff] %vm371_vm1, %v353_v25  ;;  %8323 = vst.msk [vmem:[#allocation4 + $0x129] sm:$0xff] %vm371_vm1, %v354_v26 }
  0x6a   : > { %8324 = vst.msk [vmem:[#allocation4 + $0x139] sm:$0xff] %vm371_vm1, %v355_v27  ;;  %8325 = vst.msk [vmem:[#allocation4 + $0x141] sm:$0xff] %vm371_vm1, %v356_v28 }
  0x6b   : > { %8326 = vst.msk [vmem:[#allocation4 + $0x151] sm:$0xff] %vm371_vm1, %v357_v29  ;;  %8327 = vst.msk [vmem:[#allocation4 + $0x159] sm:$0xff] %vm371_vm1, %v358_v30 }
  0x6c   : > { %8328 = vst.msk [vmem:[#allocation4 + $0x169] sm:$0xff] %vm371_vm1, %v359_v31  ;;  %8329 = vst.msk [vmem:[#allocation4 + $0x171] sm:$0xff] %vm371_vm1, %v360_v32 }
  0x6d   : > { %8330 = vst.msk [vmem:[#allocation4 + $0x181] sm:$0xff] %vm371_vm1, %v361_v33  ;;  %8331 = vst.msk [vmem:[#allocation4 + $0x189] sm:$0xff] %vm371_vm1, %v362_v34 }
  0x6e   : > { %977 = vst.msk [vmem:[#allocation5] sm:$0xff] %vm371_vm1, %v945_v39  ;;  %978 = vst.msk [vmem:[#allocation5 + $0x8] sm:$0xff] %vm371_vm1, %v946_v43 }
  0xa9   : > { %v1074_v40 = vpop.permute.xlu0 %1073 }
  0xaa   : > { %1170 = vst.msk [vmem:[#allocation5] sm:$0xff] %vm1169_vm3, %v1074_v40 }
  0xab   : > { %v1076_v42 = vpop.permute.xlu1 %1075 }
  0xac   : > { %1171 = vst.msk [vmem:[#allocation5 + $0x8] sm:$0xff] %vm1169_vm3, %v1076_v42 }
  0xad   : > { %v1267_v41 = vpop.permute.xlu0 %1266 }
  0xae   : > { %1363 = vst.msk [vmem:[#allocation5] sm:$0xff] %vm1362_vm4, %v1267_v41 }
  0xaf   : > { %v1269_v46 = vpop.permute.xlu1 %1268 }
  0xb0   : > { %1364 = vst.msk [vmem:[#allocation5 + $0x8] sm:$0xff] %vm1362_vm4, %v1269_v46 }
  0xdb   : > { %v10135_v45 = vpop.f32.mrf.mxu0 }
  0xdc   : > { %v544_v47 = vadd.f32 %v10135_v45, %v10995_v44 }
  0xdd   : > { %v538_v48 = vpop.f32.mrf.mxu0 }
  0xde   : > { %v11002_v49 = vmax.f32 %v544_v47, 0.0  ;;  %v539_v50 = vadd.f32 %v10995_v44, %v538_v48 }
  0xdf   : > { %v10138_v51 = vpop.f32.mrf.mxu0 }
  0xe0   : > { %9243 = vst.msk [vmem:[%s11005_s22 + $0x8] sm:$0xff] %vm9241_vm5, %v11002_v49  ;;  %v11010_v52 = vmax.f32 %v539_v50, 0.0  ;;  %818 = vrot.lane.b32.xlu0 %v11002_v49, %s10504_s23  ;;  %v554_v53 = vadd.f32 %v10138_v51, %v10995_v44 }
  0xe1   : > { %v548_v54 = vpop.f32.mrf.mxu0 }
  0xe2   : > { %9242 = vst.msk [vmem:[%s11005_s22] sm:$0xff] %vm9241_vm5, %v11010_v52  ;;  %v11018_v55 = vmax.f32 %v554_v53, 0.0  ;;  %v549_v56 = vadd.f32 %v10995_v44, %v548_v54 }
  0xe3   : > { %v10141_v57 = vpop.f32.mrf.mxu0 }
  0xe4   : > { %816 = vrot.lane.b32.xlu0 %v11010_v52, %s10504_s23  ;;  %9245 = vst.msk [vmem:[%s11005_s22 + $0x18] sm:$0xff] %vm9241_vm5, %v11018_v55  ;;  %v11026_v58 = vmax.f32 %v549_v56, 0.0  ;;  %822 = vrot.lane.b32.xlu1 %v11018_v55, %s10504_s23  ;;  %v564_v59 = vadd.f32 %v10141_v57, %v10995_v44 }
  0xe5   : > { %v558_v60 = vpop.f32.mrf.mxu0 }
  0xe6   : > { %9244 = vst.msk [vmem:[%s11005_s22 + $0x10] sm:$0xff] %vm9241_vm5, %v11026_v58  ;;  %v11034_v61 = vmax.f32 %v564_v59, 0.0  ;;  %v559_v62 = vadd.f32 %v10995_v44, %v558_v60 }
  0xe7   : > { %v10144_v63 = vpop.f32.mrf.mxu0 }
  0xe8   : > { %820 = vrot.lane.b32.xlu1 %v11026_v58, %s10504_s23  ;;  %9247 = vst.msk [vmem:[%s11005_s22 + $0x28] sm:$0xff] %vm9241_vm5, %v11034_v61  ;;  %v11042_v0 = vmax.f32 %v559_v62, 0.0  ;;  %v574_v1 = vadd.f32 %v10144_v63, %v10995_v44 }
  0xe9   : > { %v568_v3 = vpop.f32.mrf.mxu0 }
  0xea   : > { %9246 = vst.msk [vmem:[%s11005_s22 + $0x20] sm:$0xff] %vm9241_vm5, %v11042_v0  ;;  %824 = vrot.lane.b32.xlu0 %v11042_v0, %s10504_s23  ;;  %v11050_v4 = vmax.f32 %v574_v1, 0.0  ;;  %v569_v5 = vadd.f32 %v10995_v44, %v568_v3 }
  0xeb   : > { %v10147_v6 = vpop.f32.mrf.mxu0 }
  0xec   : > { %826 = vrot.lane.b32.xlu1 %v11034_v61, %s10504_s23  ;;  %9249 = vst.msk [vmem:[%s11005_s22 + $0x38] sm:$0xff] %vm9241_vm5, %v11050_v4  ;;  %v11058_v7 = vmax.f32 %v569_v5, 0.0  ;;  %v584_v8 = vadd.f32 %v10147_v6, %v10995_v44 }
  0xed   : > { %v578_v9 = vpop.f32.mrf.mxu0 }
  0xee   : > { %9248 = vst.msk [vmem:[%s11005_s22 + $0x30] sm:$0xff] %vm9241_vm5, %v11058_v7  ;;  %v11064_v10 = vmax.f32 %v584_v8, 0.0  ;;  %828 = vrot.lane.b32.xlu0 %v11058_v7, %s10504_s23  ;;  %v579_v11 = vadd.f32 %v10995_v44, %v578_v9 }
  0xef   : > { %v10150_v12 = vpop.f32.mrf.mxu0 }
  0xf0   : > { %830 = vrot.lane.b32.xlu1 %v11050_v4, %s10504_s23  ;;  %9251 = vst.msk [vmem:[%s11005_s22 + $0x48] sm:$0xff] %vm9241_vm5, %v11064_v10  ;;  %v11074_v13 = vmax.f32 %v579_v11, 0.0  ;;  %v594_v14 = vadd.f32 %v10150_v12, %v10995_v44 }
  0xf1   : > { %v588_v15 = vpop.f32.mrf.mxu0 }
  0xf2   : > { %9250 = vst.msk [vmem:[%s11005_s22 + $0x40] sm:$0xff] %vm9241_vm5, %v11074_v13  ;;  %v11080_v16 = vmax.f32 %v594_v14, 0.0  ;;  %v589_v17 = vadd.f32 %v10995_v44, %v588_v15  ;;  %832 = vrot.lane.b32.xlu0 %v11074_v13, %s10504_s23 }
  0xf3   : > { %v10153_v18 = vpop.f32.mrf.mxu0 }
  0xf4   : > { %9253 = vst.msk [vmem:[%s11005_s22 + $0x58] sm:$0xff] %vm9241_vm5, %v11080_v16  ;;  %834 = vrot.lane.b32.xlu1 %v11064_v10, %s10504_s23  ;;  %v11090_v19 = vmax.f32 %v589_v17, 0.0  ;;  %v604_v20 = vadd.f32 %v10153_v18, %v10995_v44 }
  0xf5   : > { %v598_v21 = vpop.f32.mrf.mxu0 }
  0xf6   : > { %14988 = vst [vmem:[#allocation10_spill] sm:$0xff] %v11090_v19  ;;  %9252 = vst.msk [vmem:[%s11005_s22 + $0x50] sm:$0xff] %vm9241_vm5, %v11090_v19  ;;  %v11096_v22 = vmax.f32 %v604_v20, 0.0  ;;  %v599_v23 = vadd.f32 %v10995_v44, %v598_v21  ;;  %836 = vrot.lane.b32.xlu0 %v11090_v19, %s10504_s23 }
  0xf7   : > { %v10156_v24 = vpop.f32.mrf.mxu0 }
  0xf8   : > { %14989 = vst [vmem:[#allocation11_spill] sm:$0xff] %v11096_v22  ;;  %9255 = vst.msk [vmem:[%s11005_s22 + $0x68] sm:$0xff] %vm9241_vm5, %v11096_v22  ;;  %838 = vrot.lane.b32.xlu1 %v11080_v16, %s10504_s23  ;;  %v11106_v25 = vmax.f32 %v599_v23, 0.0  ;;  %v614_v26 = vadd.f32 %v10156_v24, %v10995_v44 }
  0xf9   : > { %v608_v27 = vpop.f32.mrf.mxu0 }
  0xfa   : > { %14990 = vst [vmem:[#allocation12_spill] sm:$0xff] %v11106_v25  ;;  %9254 = vst.msk [vmem:[%s11005_s22 + $0x60] sm:$0xff] %vm9241_vm5, %v11106_v25  ;;  %v11112_v28 = vmax.f32 %v614_v26, 0.0  ;;  %v609_v29 = vadd.f32 %v10995_v44, %v608_v27  ;;  %840 = vrot.lane.b32.xlu0 %v11106_v25, %s10504_s23 }
  0xfb   : > { %v10159_v30 = vpop.f32.mrf.mxu0 }
  0xfc   : > { %14991 = vst [vmem:[#allocation13_spill] sm:$0xff] %v11112_v28  ;;  %9257 = vst.msk [vmem:[%s11005_s22 + $0x78] sm:$0xff] %vm9241_vm5, %v11112_v28  ;;  %842 = vrot.lane.b32.xlu1 %v11096_v22, %s10504_s23  ;;  %v11122_v31 = vmax.f32 %v609_v29, 0.0  ;;  %v624_v32 = vadd.f32 %v10159_v30, %v10995_v44 }
  0xfd   : > { %v618_v33 = vpop.f32.mrf.mxu0 }
  0xfe   : > { %14992 = vst [vmem:[#allocation14_spill] sm:$0xff] %v11122_v31  ;;  %9256 = vst.msk [vmem:[%s11005_s22 + $0x70] sm:$0xff] %vm9241_vm5, %v11122_v31  ;;  %v11128_v34 = vmax.f32 %v624_v32, 0.0  ;;  %v619_v35 = vadd.f32 %v10995_v44, %v618_v33  ;;  %844 = vrot.lane.b32.xlu0 %v11122_v31, %s10504_s23 }
  0xff   : > { %v10162_v36 = vpop.f32.mrf.mxu0 }
 0x100   : > { %14993 = vst [vmem:[#allocation15_spill] sm:$0xff] %v11128_v34  ;;  %9259 = vst.msk [vmem:[%s11005_s22 + $0x88] sm:$0xff] %vm9241_vm5, %v11128_v34  ;;  %846 = vrot.lane.b32.xlu1 %v11112_v28, %s10504_s23  ;;  %v11138_v37 = vmax.f32 %v619_v35, 0.0  ;;  %v634_v38 = vadd.f32 %v10162_v36, %v10995_v44 }
 0x101   : > { %v628_v39 = vpop.f32.mrf.mxu0 }
 0x102   : > { %14994 = vst [vmem:[#allocation16_spill] sm:$0xff] %v11138_v37  ;;  %9258 = vst.msk [vmem:[%s11005_s22 + $0x80] sm:$0xff] %vm9241_vm5, %v11138_v37  ;;  %v11144_v40 = vmax.f32 %v634_v38, 0.0  ;;  %v629_v41 = vadd.f32 %v10995_v44, %v628_v39  ;;  %848 = vrot.lane.b32.xlu0 %v11138_v37, %s10504_s23 }
 0x103   : > { %v10165_v42 = vpop.f32.mrf.mxu0 }
 0x104   : > { %14995 = vst [vmem:[#allocation17_spill] sm:$0xff] %v11144_v40  ;;  %9261 = vst.msk [vmem:[%s11005_s22 + $0x98] sm:$0xff] %vm9241_vm5, %v11144_v40  ;;  %850 = vrot.lane.b32.xlu1 %v11128_v34, %s10504_s23  ;;  %v11154_v43 = vmax.f32 %v629_v41, 0.0  ;;  %v644_v45 = vadd.f32 %v10165_v42, %v10995_v44 }
 0x105   : > { %v638_v46 = vpop.f32.mrf.mxu0 }
 0x106   : > { %14996 = vst [vmem:[#allocation18_spill] sm:$0xff] %v11154_v43  ;;  %9260 = vst.msk [vmem:[%s11005_s22 + $0x90] sm:$0xff] %vm9241_vm5, %v11154_v43  ;;  %v11160_v47 = vmax.f32 %v644_v45, 0.0  ;;  %v639_v48 = vadd.f32 %v10995_v44, %v638_v46  ;;  %852 = vrot.lane.b32.xlu0 %v11154_v43, %s10504_s23 }
 0x107   : > { %v10168_v50 = vpop.f32.mrf.mxu0 }
 0x108   : > { %14997 = vst [vmem:[#allocation19_spill] sm:$0xff] %v11160_v47  ;;  %9263 = vst.msk [vmem:[%s11005_s22 + $0xa8] sm:$0xff] %vm9241_vm5, %v11160_v47  ;;  %854 = vrot.lane.b32.xlu1 %v11144_v40, %s10504_s23  ;;  %v11170_v51 = vmax.f32 %v639_v48, 0.0  ;;  %v654_v53 = vadd.f32 %v10168_v50, %v10995_v44 }
 0x109   : > { %v648_v54 = vpop.f32.mrf.mxu0 }
 0x10a   : > { %14998 = vst [vmem:[#allocation20_spill] sm:$0xff] %v11170_v51  ;;  %9262 = vst.msk [vmem:[%s11005_s22 + $0xa0] sm:$0xff] %vm9241_vm5, %v11170_v51  ;;  %v11176_v56 = vmax.f32 %v654_v53, 0.0  ;;  %v649_v57 = vadd.f32 %v10995_v44, %v648_v54  ;;  %856 = vrot.lane.b32.xlu0 %v11170_v51, %s10504_s23 }
 0x10b   : > { %v10171_v59 = vpop.f32.mrf.mxu0 }
 0x10c   : > { %14999 = vst [vmem:[#allocation21_spill] sm:$0xff] %v11176_v56  ;;  %9265 = vst.msk [vmem:[%s11005_s22 + $0xb8] sm:$0xff] %vm9241_vm5, %v11176_v56  ;;  %858 = vrot.lane.b32.xlu1 %v11160_v47, %s10504_s23  ;;  %v11186_v60 = vmax.f32 %v649_v57, 0.0  ;;  %v664_v62 = vadd.f32 %v10171_v59, %v10995_v44 }
 0x10d   : > { %v658_v63 = vpop.f32.mrf.mxu0 }
 0x10e   : > { %15000 = vst [vmem:[#allocation22_spill] sm:$0xff] %v11186_v60  ;;  %9264 = vst.msk [vmem:[%s11005_s22 + $0xb0] sm:$0xff] %vm9241_vm5, %v11186_v60  ;;  %v11192_v1 = vmax.f32 %v664_v62, 0.0  ;;  %v659_v3 = vadd.f32 %v10995_v44, %v658_v63  ;;  %860 = vrot.lane.b32.xlu0 %v11186_v60, %s10504_s23 }
 0x10f   : > { %v10174_v5 = vpop.f32.mrf.mxu0 }
 0x110   : > { %15001 = vst [vmem:[#allocation23_spill] sm:$0xff] %v11192_v1  ;;  %9267 = vst.msk [vmem:[%s11005_s22 + $0xc8] sm:$0xff] %vm9241_vm5, %v11192_v1  ;;  %862 = vrot.lane.b32.xlu1 %v11176_v56, %s10504_s23  ;;  %v11202_v6 = vmax.f32 %v659_v3, 0.0  ;;  %v674_v8 = vadd.f32 %v10174_v5, %v10995_v44 }
 0x111   : > { %v668_v9 = vpop.f32.mrf.mxu0 }
 0x112   : > { %15002 = vst [vmem:[#allocation24_spill] sm:$0xff] %v11202_v6  ;;  %9266 = vst.msk [vmem:[%s11005_s22 + $0xc0] sm:$0xff] %vm9241_vm5, %v11202_v6  ;;  %v11208_v11 = vmax.f32 %v674_v8, 0.0  ;;  %v669_v12 = vadd.f32 %v10995_v44, %v668_v9  ;;  %864 = vrot.lane.b32.xlu0 %v11202_v6, %s10504_s23 }
 0x113   : > { %v10177_v14 = vpop.f32.mrf.mxu0 }
 0x114   : > { %15003 = vst [vmem:[#allocation25_spill] sm:$0xff] %v11208_v11  ;;  %9269 = vst.msk [vmem:[%s11005_s22 + $0xd8] sm:$0xff] %vm9241_vm5, %v11208_v11  ;;  %866 = vrot.lane.b32.xlu1 %v11192_v1, %s10504_s23  ;;  %v11218_v15 = vmax.f32 %v669_v12, 0.0  ;;  %v684_v17 = vadd.f32 %v10177_v14, %v10995_v44 }
 0x115   : > { %v678_v18 = vpop.f32.mrf.mxu0 }
 0x116   : > { %15004 = vst [vmem:[#allocation26_spill] sm:$0xff] %v11218_v15  ;;  %9268 = vst.msk [vmem:[%s11005_s22 + $0xd0] sm:$0xff] %vm9241_vm5, %v11218_v15  ;;  %v11224_v20 = vmax.f32 %v684_v17, 0.0  ;;  %v679_v21 = vadd.f32 %v10995_v44, %v678_v18  ;;  %868 = vrot.lane.b32.xlu0 %v11218_v15, %s10504_s23 }
 0x117   : > { %v10180_v23 = vpop.f32.mrf.mxu0 }
 0x118   : > { %15005 = vst [vmem:[#allocation27_spill] sm:$0xff] %v11224_v20  ;;  %9271 = vst.msk [vmem:[%s11005_s22 + $0xe8] sm:$0xff] %vm9241_vm5, %v11224_v20  ;;  %870 = vrot.lane.b32.xlu1 %v11208_v11, %s10504_s23  ;;  %v11234_v24 = vmax.f32 %v679_v21, 0.0  ;;  %v694_v26 = vadd.f32 %v10180_v23, %v10995_v44 }
 0x119   : > { %v688_v27 = vpop.f32.mrf.mxu0 }
 0x11a   : > { %15006 = vst [vmem:[#allocation28_spill] sm:$0xff] %v11234_v24  ;;  %9270 = vst.msk [vmem:[%s11005_s22 + $0xe0] sm:$0xff] %vm9241_vm5, %v11234_v24  ;;  %v11240_v29 = vmax.f32 %v694_v26, 0.0  ;;  %v689_v30 = vadd.f32 %v10995_v44, %v688_v27  ;;  %872 = vrot.lane.b32.xlu0 %v11234_v24, %s10504_s23 }
 0x11c   : > { %15007 = vst [vmem:[#allocation29_spill] sm:$0xff] %v11240_v29  ;;  %9273 = vst.msk [vmem:[%s11005_s22 + $0xf8] sm:$0xff] %vm9241_vm5, %v11240_v29  ;;  %874 = vrot.lane.b32.xlu1 %v11224_v20, %s10504_s23  ;;  %v11250_v32 = vmax.f32 %v689_v30, 0.0 }
 0x11e   : > { %15008 = vst [vmem:[#allocation30_spill] sm:$0xff] %v11250_v32  ;;  %9272 = vst.msk [vmem:[%s11005_s22 + $0xf0] sm:$0xff] %vm9241_vm5, %v11250_v32  ;;  %876 = vrot.lane.b32.xlu0 %v11250_v32, %s10504_s23  ;;  %vm5871_vm5 = vcmask 490944  }
 0x120   : > { %878 = vrot.lane.b32.xlu1 %v11240_v29, %s10504_s23  ;;  %s10511_s23 = smov 116  }
 0x152   : > { %v819_v44 = vpop.permute.xlu0 %818 }
 0x153   : > { %914 = vst.msk [vmem:[#allocation2 + $0x21] sm:$0xff] %vm371_vm1, %v819_v44 }
 0x156   : > { %v817_v33 = vpop.permute.xlu0 %816  ;;  %v823_v35 = vpop.permute.xlu1 %822 }
 0x157   : > { %913 = vst.msk [vmem:[#allocation2 + $0x19] sm:$0xff] %vm371_vm1, %v817_v33  ;;  %916 = vst.msk [vmem:[#allocation2 + $0x39] sm:$0xff] %vm371_vm1, %v823_v35 }
 0x15a   : > { %v1012_v36 = vld [vmem:[#allocation2 + $0x21] sm:$0xff]  ;;  %v821_v38 = vpop.permute.xlu1 %820 }
 0x15b   : > { %1079 = vrot.lane.b32.xlu1 %v1012_v36, %s10502_s28  ;;  %915 = vst.msk [vmem:[#allocation2 + $0x31] sm:$0xff] %vm371_vm1, %v821_v38  ;;  %v1205_v41 = vld [vmem:[#allocation2 + $0x22] sm:$0xff] }
 0x15c   : > { %v825_v39 = vpop.permute.xlu0 %824 }
 0x15d   : > { %917 = vst.msk [vmem:[#allocation2 + $0x49] sm:$0xff] %vm371_vm1, %v825_v39 }
 0x15e   : > { %v1011_v42 = vld [vmem:[#allocation2 + $0x19] sm:$0xff]  ;;  %v827_v46 = vpop.permute.xlu1 %826 }
 0x15f   : > { %v1395_v45 = vld [vmem:[#allocation2 + $0x18] sm:$0xff]  ;;  %1272 = vrot.lane.b32.xlu1 %v1205_v41, %s10503_s29  ;;  %1077 = vrot.lane.b32.xlu0 %v1011_v42, %s10502_s28  ;;  %v1396_v48 = vld [vmem:[#allocation2 + $0x20] sm:$0xff]  ;;  %918 = vst.msk [vmem:[#allocation2 + $0x51] sm:$0xff] %vm371_vm1, %v827_v46 }
 0x160   : > { %979 = vst.msk [vmem:[#allocation5 + $0x10] sm:$0xff] %vm371_vm1, %v1395_v45  ;;  %v829_v50 = vpop.permute.xlu0 %828  ;;  %980 = vst.msk [vmem:[#allocation5 + $0x18] sm:$0xff] %vm371_vm1, %v1396_v48  ;;  %v1204_v53 = vld [vmem:[#allocation2 + $0x1a] sm:$0xff] }
 0x161   : > { %919 = vst.msk [vmem:[#allocation2 + $0x61] sm:$0xff] %vm371_vm1, %v829_v50  ;;  %v1014_v17 = vld [vmem:[#allocation2 + $0x39] sm:$0xff] }
 0x162   : > { %v11271_v54 = vld [vmem:[#allocation2 + $0x30] sm:$0xff]  ;;  %v831_v57 = vpop.permute.xlu1 %830  ;;  %v11275_v59 = vld [vmem:[#allocation2 + $0x38] sm:$0xff] }
 0x163   : > { %1654 = vrot.lane.b32.xlu1 %v1012_v36, %s10505_s24  ;;  %1270 = vrot.lane.b32.xlu0 %v1204_v53, %s10503_s29  ;;  %920 = vst.msk [vmem:[#allocation2 + $0x69] sm:$0xff] %vm371_vm1, %v831_v57  ;;  %981 = vst.msk [vmem:[#allocation5 + $0x20] sm:$0xff] %vm371_vm1, %v11271_v54  ;;  %v1207_v44 = vld [vmem:[#allocation2 + $0x3a] sm:$0xff]  ;;  %v1013_v33 = vld [vmem:[#allocation2 + $0x31] sm:$0xff] }
 0x164   : > { %v11280_v62 = vld [vmem:[#allocation2 + $0x48] sm:$0xff]  ;;  %v833_v63 = vpop.permute.xlu0 %832  ;;  %982 = vst.msk [vmem:[#allocation5 + $0x28] sm:$0xff] %vm371_vm1, %v11275_v59 }
 0x165   : > { %921 = vst.msk [vmem:[#allocation2 + $0x79] sm:$0xff] %vm371_vm1, %v833_v63  ;;  %983 = vst.msk [vmem:[#allocation5 + $0x30] sm:$0xff] %vm371_vm1, %v11280_v62 }
 0x166   : > { %v835_v3 = vpop.permute.xlu1 %834  ;;  %v11289_v5 = vld [vmem:[#allocation2 + $0x50] sm:$0xff] }
 0x167   : > { %1847 = vrot.lane.b32.xlu1 %v1205_v41, %s10506_s25  ;;  %1459 = vrot.lane.b32.xlu0 %v1395_v45, %s10507_s26  ;;  %922 = vst.msk [vmem:[#allocation2 + $0x81] sm:$0xff] %vm371_vm1, %v835_v3  ;;  %984 = vst.msk [vmem:[#allocation5 + $0x38] sm:$0xff] %vm371_vm1, %v11289_v5  ;;  %v1206_v41 = vld [vmem:[#allocation2 + $0x32] sm:$0xff] }
 0x168   : > { %v837_v8 = vpop.permute.xlu0 %836  ;;  %v11292_v9 = vld [vmem:[#allocation2 + $0x60] sm:$0xff] }
 0x169   : > { %923 = vst.msk [vmem:[#allocation2 + $0x91] sm:$0xff] %vm371_vm1, %v837_v8  ;;  %985 = vst.msk [vmem:[#allocation5 + $0x40] sm:$0xff] %vm371_vm1, %v11292_v9 }
 0x16a   : > { %v839_v12 = vpop.permute.xlu1 %838  ;;  %v11302_v14 = vld [vmem:[#allocation2 + $0x68] sm:$0xff] }
 0x16b   : > { %1461 = vrot.lane.b32.xlu1 %v1396_v48, %s10507_s26  ;;  %1652 = vrot.lane.b32.xlu0 %v1011_v42, %s10505_s24  ;;  %924 = vst.msk [vmem:[#allocation2 + $0x99] sm:$0xff] %vm371_vm1, %v839_v12  ;;  %986 = vst.msk [vmem:[#allocation5 + $0x48] sm:$0xff] %vm371_vm1, %v11302_v14  ;;  %v1980_v28 = vld [vmem:[#allocation2 + $0x68] sm:$0xff] }
 0x16c   : > { %v841_v18 = vpop.permute.xlu0 %840  ;;  %v11304_v21 = vld [vmem:[#allocation2 + $0x78] sm:$0xff] }
 0x16d   : > { %925 = vst.msk [vmem:[#allocation2 + $0xa9] sm:$0xff] %vm371_vm1, %v841_v18  ;;  %987 = vst.msk [vmem:[#allocation5 + $0x50] sm:$0xff] %vm371_vm1, %v11304_v21 }
 0x16e   : > { %v843_v23 = vpop.permute.xlu1 %842  ;;  %v11314_v26 = vld [vmem:[#allocation2 + $0x80] sm:$0xff] }
 0x16f   : > { %1083 = vrot.lane.b32.xlu1 %v1014_v17, %s10502_s28  ;;  %1845 = vrot.lane.b32.xlu0 %v1204_v53, %s10506_s25  ;;  %926 = vst.msk [vmem:[#allocation2 + $0xb1] sm:$0xff] %vm371_vm1, %v843_v23  ;;  %988 = vst.msk [vmem:[#allocation5 + $0x58] sm:$0xff] %vm371_vm1, %v11314_v26 }
 0x170   : > { %v845_v27 = vpop.permute.xlu0 %844  ;;  %v11316_v30 = vld [vmem:[#allocation2 + $0x90] sm:$0xff] }
 0x171   : > { %927 = vst.msk [vmem:[#allocation2 + $0xc1] sm:$0xff] %vm371_vm1, %v845_v27  ;;  %989 = vst.msk [vmem:[#allocation5 + $0x60] sm:$0xff] %vm371_vm1, %v11316_v30  ;;  %v1016_v27 = vld [vmem:[#allocation2 + $0x51] sm:$0xff] }
 0x172   : > { %v847_v35 = vpop.permute.xlu1 %846  ;;  %v11326_v36 = vld [vmem:[#allocation2 + $0x98] sm:$0xff] }
 0x173   : > { %1276 = vrot.lane.b32.xlu1 %v1207_v44, %s10503_s29  ;;  %1081 = vrot.lane.b32.xlu0 %v1013_v33, %s10502_s28  ;;  %928 = vst.msk [vmem:[#allocation2 + $0xc9] sm:$0xff] %vm371_vm1, %v847_v35  ;;  %990 = vst.msk [vmem:[#allocation5 + $0x68] sm:$0xff] %vm371_vm1, %v11326_v36 }
 0x174   : > { %v849_v38 = vpop.permute.xlu0 %848  ;;  %v11328_v39 = vld [vmem:[#allocation2 + $0xa8] sm:$0xff] }
 0x175   : > { %929 = vst.msk [vmem:[#allocation2 + $0xd9] sm:$0xff] %vm371_vm1, %v849_v38  ;;  %991 = vst.msk [vmem:[#allocation5 + $0x70] sm:$0xff] %vm371_vm1, %v11328_v39 }
 0x176   : > { %v851_v42 = vpop.permute.xlu1 %850  ;;  %v11338_v45 = vld [vmem:[#allocation2 + $0xb0] sm:$0xff] }
 0x177   : > { %1658 = vrot.lane.b32.xlu1 %v1014_v17, %s10505_s24  ;;  %1274 = vrot.lane.b32.xlu0 %v1206_v41, %s10503_s29  ;;  %930 = vst.msk [vmem:[#allocation2 + $0xe1] sm:$0xff] %vm371_vm1, %v851_v42  ;;  %992 = vst.msk [vmem:[#allocation5 + $0x78] sm:$0xff] %vm371_vm1, %v11338_v45  ;;  %v1209_v42 = vld [vmem:[#allocation2 + $0x52] sm:$0xff]  ;;  %v1216_v2 = vld [vmem:[#allocation2 + $0xaa] sm:$0xff] }
 0x178   : > { %v853_v46 = vpop.permute.xlu0 %852  ;;  %v11340_v48 = vld [vmem:[#allocation2 + $0xc0] sm:$0xff] }
 0x179   : > { %931 = vst.msk [vmem:[#allocation2 + $0xf1] sm:$0xff] %vm371_vm1, %v853_v46  ;;  %993 = vst.msk [vmem:[#allocation5 + $0x80] sm:$0xff] %vm371_vm1, %v11340_v48  ;;  %v1015_v46 = vld [vmem:[#allocation2 + $0x49] sm:$0xff] }
 0x17a   : > { %v855_v50 = vpop.permute.xlu1 %854  ;;  %v11351_v53 = vld [vmem:[#allocation2 + $0xc8] sm:$0xff] }
 0x17b   : > { %1851 = vrot.lane.b32.xlu1 %v1207_v44, %s10506_s25  ;;  %1463 = vrot.lane.b32.xlu0 %v11271_v54, %s10507_s26  ;;  %932 = vst.msk [vmem:[#allocation2 + $0xf9] sm:$0xff] %vm371_vm1, %v855_v50  ;;  %994 = vst.msk [vmem:[#allocation5 + $0x88] sm:$0xff] %vm371_vm1, %v11351_v53 }
 0x17c   : > { %v857_v57 = vpop.permute.xlu0 %856  ;;  %v11353_v63 = vld [vmem:[#allocation2 + $0xd8] sm:$0xff] }
 0x17d   : > { %933 = vst.msk [vmem:[#allocation2 + $0x109] sm:$0xff] %vm371_vm1, %v857_v57  ;;  %995 = vst.msk [vmem:[#allocation5 + $0x90] sm:$0xff] %vm371_vm1, %v11353_v63 }
 0x17e   : > { %v859_v3 = vpop.permute.xlu1 %858  ;;  %v11364_v8 = vld [vmem:[#allocation2 + $0xe0] sm:$0xff] }
 0x17f   : > { %1465 = vrot.lane.b32.xlu1 %v11275_v59, %s10507_s26  ;;  %1656 = vrot.lane.b32.xlu0 %v1013_v33, %s10505_s24  ;;  %934 = vst.msk [vmem:[#allocation2 + $0x111] sm:$0xff] %vm371_vm1, %v859_v3  ;;  %996 = vst.msk [vmem:[#allocation5 + $0x98] sm:$0xff] %vm371_vm1, %v11364_v8 }
 0x180   : > { %v861_v12 = vpop.permute.xlu0 %860  ;;  %v11366_v17 = vld [vmem:[#allocation2 + $0xf0] sm:$0xff] }
 0x181   : > { %935 = vst.msk [vmem:[#allocation2 + $0x121] sm:$0xff] %vm371_vm1, %v861_v12  ;;  %997 = vst.msk [vmem:[#allocation5 + $0xa0] sm:$0xff] %vm371_vm1, %v11366_v17  ;;  %v1208_v12 = vld [vmem:[#allocation2 + $0x4a] sm:$0xff] }
 0x182   : > { %v863_v18 = vpop.permute.xlu1 %862  ;;  %v11377_v23 = vld [vmem:[#allocation2 + $0xf8] sm:$0xff] }
 0x183   : > { %2041 = vrot.lane.b32.xlu1 %v11275_v59, %s10508_s27  ;;  %1849 = vrot.lane.b32.xlu0 %v1206_v41, %s10506_s25  ;;  %936 = vst.msk [vmem:[#allocation2 + $0x129] sm:$0xff] %vm371_vm1, %v863_v18  ;;  %998 = vst.msk [vmem:[#allocation5 + $0xa8] sm:$0xff] %vm371_vm1, %v11377_v23 }
 0x184   : > { %v865_v44 = vpop.permute.xlu0 %864  ;;  %v11379_v33 = vld [vmem:[#allocation2 + $0x108] sm:$0xff] }
 0x185   : > { %937 = vst.msk [vmem:[#allocation2 + $0x139] sm:$0xff] %vm371_vm1, %v865_v44  ;;  %999 = vst.msk [vmem:[#allocation5 + $0xb0] sm:$0xff] %vm371_vm1, %v11379_v33 }
 0x186   : > { %v867_v35 = vpop.permute.xlu1 %866  ;;  %v11390_v59 = vld [vmem:[#allocation2 + $0x110] sm:$0xff] }
 0x187   : > { %1087 = vrot.lane.b32.xlu1 %v1016_v27, %s10502_s28  ;;  %2039 = vrot.lane.b32.xlu0 %v11271_v54, %s10508_s27  ;;  %938 = vst.msk [vmem:[#allocation2 + $0x141] sm:$0xff] %vm371_vm1, %v867_v35  ;;  %1000 = vst.msk [vmem:[#allocation5 + $0xb8] sm:$0xff] %vm371_vm1, %v11390_v59  ;;  %v1224_v32 = vld [vmem:[#allocation2 + $0x10a] sm:$0xff] }
 0x188   : > { %v869_v38 = vpop.permute.xlu0 %868  ;;  %v11392_v41 = vld [vmem:[#allocation2 + $0x120] sm:$0xff] }
 0x189   : > { %939 = vst.msk [vmem:[#allocation2 + $0x151] sm:$0xff] %vm371_vm1, %v869_v38  ;;  %1001 = vst.msk [vmem:[#allocation5 + $0xc0] sm:$0xff] %vm371_vm1, %v11392_v41 }
 0x18a   : > { %v871_v50 = vpop.permute.xlu1 %870  ;;  %v11402_v54 = vld [vmem:[#allocation2 + $0x128] sm:$0xff] }
 0x18b   : > { %1280 = vrot.lane.b32.xlu1 %v1209_v42, %s10503_s29  ;;  %1085 = vrot.lane.b32.xlu0 %v1015_v46, %s10502_s28  ;;  %940 = vst.msk [vmem:[#allocation2 + $0x159] sm:$0xff] %vm371_vm1, %v871_v50  ;;  %1002 = vst.msk [vmem:[#allocation5 + $0xc8] sm:$0xff] %vm371_vm1, %v11402_v54  ;;  %v1226_v29 = vld [vmem:[#allocation2 + $0x122] sm:$0xff] }
 0x18c   : > { %v873_v57 = vpop.permute.xlu0 %872  ;;  %v11404_v3 = vld [vmem:[#allocation2 + $0x138] sm:$0xff] }
 0x18d   : > { %941 = vst.msk [vmem:[#allocation2 + $0x169] sm:$0xff] %vm371_vm1, %v873_v57  ;;  %1003 = vst.msk [vmem:[#allocation5 + $0xd0] sm:$0xff] %vm371_vm1, %v11404_v3 }
 0x18e   : > { %v875_v18 = vpop.permute.xlu1 %874  ;;  %v11414_v44 = vld [vmem:[#allocation2 + $0x140] sm:$0xff] }
 0x18f   : > { %1662 = vrot.lane.b32.xlu1 %v1016_v27, %s10505_s24  ;;  %1278 = vrot.lane.b32.xlu0 %v1208_v12, %s10503_s29  ;;  %942 = vst.msk [vmem:[#allocation2 + $0x171] sm:$0xff] %vm371_vm1, %v875_v18  ;;  %1004 = vst.msk [vmem:[#allocation5 + $0xd8] sm:$0xff] %vm371_vm1, %v11414_v44  ;;  %v1018_v18 = vld [vmem:[#allocation2 + $0x69] sm:$0xff]  ;;  %v11660_v20 = vld [vmem:[#allocation2 + $0x13a] sm:$0xff] }
 0x190   : > { %v877_v35 = vpop.permute.xlu0 %876  ;;  %v11416_v38 = vld [vmem:[#allocation2 + $0x150] sm:$0xff] }
 0x191   : > { %943 = vst.msk [vmem:[#allocation2 + $0x181] sm:$0xff] %vm371_vm1, %v877_v35  ;;  %1005 = vst.msk [vmem:[#allocation5 + $0xe0] sm:$0xff] %vm371_vm1, %v11416_v38  ;;  %v1211_v35 = vld [vmem:[#allocation2 + $0x6a] sm:$0xff] }
 0x192   : > { %v879_v50 = vpop.permute.xlu1 %878  ;;  %v11427_v27 = vld [vmem:[#allocation2 + $0x158] sm:$0xff] }
 0x193   : > { %1855 = vrot.lane.b32.xlu1 %v1209_v42, %s10506_s25  ;;  %1467 = vrot.lane.b32.xlu0 %v11280_v62, %s10507_s26  ;;  %944 = vst.msk [vmem:[#allocation2 + $0x189] sm:$0xff] %vm371_vm1, %v879_v50  ;;  %1006 = vst.msk [vmem:[#allocation5 + $0xe8] sm:$0xff] %vm371_vm1, %v11427_v27  ;;  %v1017_v50 = vld [vmem:[#allocation2 + $0x61] sm:$0xff]  ;;  %v11691_v11 = vld [vmem:[#allocation2 + $0x151] sm:$0xff] }
 0x194   : > { %v11429_v57 = vld [vmem:[#allocation2 + $0x168] sm:$0xff]  ;;  %v11698_v60 = vld [vmem:[#allocation2 + $0x152] sm:$0xff] }
 0x195   : > { %1007 = vst.msk [vmem:[#allocation5 + $0xf0] sm:$0xff] %vm371_vm1, %v11429_v57  ;;  %v11729_v56 = vld [vmem:[#allocation2 + $0x169] sm:$0xff] }
 0x196   : > { %v11438_v42 = vld [vmem:[#allocation2 + $0x170] sm:$0xff] }
 0x197   : > { %1469 = vrot.lane.b32.xlu1 %v11289_v5, %s10507_s26  ;;  %1660 = vrot.lane.b32.xlu0 %v1015_v46, %s10505_s24  ;;  %1008 = vst.msk [vmem:[#allocation5 + $0xf8] sm:$0xff] %vm371_vm1, %v11438_v42  ;;  %v1210_v46 = vld [vmem:[#allocation2 + $0x62] sm:$0xff]  ;;  %v11736_v43 = vld [vmem:[#allocation2 + $0x16a] sm:$0xff] }
 0x198   : > { %v11767_v40 = vld [vmem:[#allocation2 + $0x180] sm:$0xff] }
 0x199   : > { %v11776_v34 = vld [vmem:[#allocation2 + $0x181] sm:$0xff] }
 0x19a   : > { %v11774_v31 = vld [vmem:[#allocation2 + $0x188] sm:$0xff] }
 0x19b   : > { %2045 = vrot.lane.b32.xlu1 %v11289_v5, %s10508_s27  ;;  %1853 = vrot.lane.b32.xlu0 %v1208_v12, %s10506_s25  ;;  %v1213_v5 = vld [vmem:[#allocation2 + $0x82] sm:$0xff]  ;;  %v1019_v12 = vld [vmem:[#allocation2 + $0x79] sm:$0xff] }
 0x19c   : > { %v11784_v19 = vld [vmem:[#allocation2 + $0x182] sm:$0xff] }
 0x19f   : > { %1091 = vrot.lane.b32.xlu1 %v1018_v18, %s10502_s28  ;;  %2043 = vrot.lane.b32.xlu0 %v11280_v62, %s10508_s27  ;;  %v1020_v62 = vld [vmem:[#allocation2 + $0x81] sm:$0xff] }
 0x1a3   : > { %1284 = vrot.lane.b32.xlu1 %v1211_v35, %s10503_s29  ;;  %1089 = vrot.lane.b32.xlu0 %v1017_v50, %s10502_s28 }
 0x1a7   : > { %1666 = vrot.lane.b32.xlu1 %v1018_v18, %s10505_s24  ;;  %1282 = vrot.lane.b32.xlu0 %v1210_v46, %s10503_s29  ;;  %v1212_v18 = vld [vmem:[#allocation2 + $0x7a] sm:$0xff] }
 0x1ab   : > { %1859 = vrot.lane.b32.xlu1 %v1211_v35, %s10506_s25  ;;  %1471 = vrot.lane.b32.xlu0 %v11292_v9, %s10507_s26  ;;  %v1022_v9 = vld [vmem:[#allocation2 + $0x99] sm:$0xff]  ;;  %v1021_v35 = vld [vmem:[#allocation2 + $0x91] sm:$0xff] }
 0x1af   : > { %1473 = vrot.lane.b32.xlu1 %v11302_v14, %s10507_s26  ;;  %1664 = vrot.lane.b32.xlu0 %v1017_v50, %s10505_s24  ;;  %v1215_v14 = vld [vmem:[#allocation2 + $0x9a] sm:$0xff] }
 0x1b3   : > { %1095 = vrot.lane.b32.xlu1 %v1020_v62, %s10502_s28  ;;  %1857 = vrot.lane.b32.xlu0 %v1210_v46, %s10506_s25  ;;  %v1214_v46 = vld [vmem:[#allocation2 + $0x92] sm:$0xff] }
 0x1b7   : > { %1288 = vrot.lane.b32.xlu1 %v1213_v5, %s10503_s29  ;;  %1093 = vrot.lane.b32.xlu0 %v1019_v12, %s10502_s28 }
 0x1bb   : > { %1670 = vrot.lane.b32.xlu1 %v1020_v62, %s10505_s24  ;;  %1286 = vrot.lane.b32.xlu0 %v1212_v18, %s10503_s29 }
 0x1bf   : > { %1863 = vrot.lane.b32.xlu1 %v1213_v5, %s10506_s25  ;;  %1475 = vrot.lane.b32.xlu0 %v11304_v21, %s10507_s26 }
 0x1c3   : > { %1477 = vrot.lane.b32.xlu1 %v11314_v26, %s10507_s26  ;;  %1668 = vrot.lane.b32.xlu0 %v1019_v12, %s10505_s24 }
 0x1c7   : > { %1099 = vrot.lane.b32.xlu1 %v1022_v9, %s10502_s28  ;;  %1861 = vrot.lane.b32.xlu0 %v1212_v18, %s10506_s25 }
 0x1cb   : > { %1292 = vrot.lane.b32.xlu1 %v1215_v14, %s10503_s29  ;;  %1097 = vrot.lane.b32.xlu0 %v1021_v35, %s10502_s28 }
 0x1cd   : > { %v1080_v50 = vpop.permute.xlu1 %1079 }
 0x1ce   : > { %1173 = vst.msk [vmem:[#allocation5 + $0x18] sm:$0xff] %vm1169_vm3, %v1080_v50 }
 0x1cf   : > { %1674 = vrot.lane.b32.xlu1 %v1022_v9, %s10505_s24  ;;  %1290 = vrot.lane.b32.xlu0 %v1214_v46, %s10503_s29 }
 0x1d1   : > { %v1273_v62 = vpop.permute.xlu1 %1272  ;;  %v1078_v5 = vpop.permute.xlu0 %1077 }
 0x1d2   : > { %1366 = vst.msk [vmem:[#allocation5 + $0x18] sm:$0xff] %vm1362_vm4, %v1273_v62  ;;  %v1024_v62 = vld [vmem:[#allocation2 + $0xb1] sm:$0xff] }
 0x1d3   : > { %1172 = vst.msk [vmem:[#allocation5 + $0x10] sm:$0xff] %vm1169_vm3, %v1078_v5  ;;  %1867 = vrot.lane.b32.xlu1 %v1215_v14, %s10506_s25  ;;  %1479 = vrot.lane.b32.xlu0 %v11316_v30, %s10507_s26 }
 0x1d5   : > { %v1655_v12 = vpop.permute.xlu1 %1654  ;;  %v1271_v18 = vpop.permute.xlu0 %1270 }
 0x1d6   : > { %1365 = vst.msk [vmem:[#allocation5 + $0x10] sm:$0xff] %vm1362_vm4, %v1271_v18  ;;  %v1217_v18 = vld [vmem:[#allocation2 + $0xb2] sm:$0xff] }
 0x1d7   : > { %1481 = vrot.lane.b32.xlu1 %v11326_v36, %s10507_s26  ;;  %1672 = vrot.lane.b32.xlu0 %v1021_v35, %s10505_s24  ;;  %v1023_v35 = vld [vmem:[#allocation2 + $0xa9] sm:$0xff] }
 0x1d9   : > { %v1848_v9 = vpop.permute.xlu1 %1847  ;;  %v1460_v50 = vpop.permute.xlu0 %1459 }
 0x1da   : > { %1556 = vst.msk [vmem:[#allocation5] sm:$0xff] %vm1555_vm6, %v1460_v50 }
 0x1db   : > { %1103 = vrot.lane.b32.xlu1 %v1024_v62, %s10502_s28  ;;  %1865 = vrot.lane.b32.xlu0 %v1214_v46, %s10506_s25 }
 0x1dd   : > { %v1462_v14 = vpop.permute.xlu1 %1461  ;;  %v1653_v5 = vpop.permute.xlu0 %1652 }
 0x1de   : > { %1557 = vst.msk [vmem:[#allocation5 + $0x8] sm:$0xff] %vm1555_vm6, %v1462_v14 }
 0x1df   : > { %1749 = vst.msk [vmem:[#allocation5] sm:$0xff] %vm1748_vm7, %v1653_v5  ;;  %1750 = vst.msk [vmem:[#allocation5 + $0x8] sm:$0xff] %vm1748_vm7, %v1655_v12  ;;  %1296 = vrot.lane.b32.xlu1 %v1217_v18, %s10503_s29  ;;  %1101 = vrot.lane.b32.xlu0 %v1023_v35, %s10502_s28 }
 0x1e0   : > { %1943 = vst.msk [vmem:[#allocation5 + $0x8] sm:$0xff] %vm1941_vm8, %v1848_v9 }
 0x1e1   : > { %v1084_v50 = vpop.permute.xlu1 %1083  ;;  %v1846_v46 = vpop.permute.xlu0 %1845 }
 0x1e2   : > { %1175 = vst.msk [vmem:[#allocation5 + $0x28] sm:$0xff] %vm1169_vm3, %v1084_v50 }
 0x1e3   : > { %1942 = vst.msk [vmem:[#allocation5] sm:$0xff] %vm1941_vm8, %v1846_v46  ;;  %1678 = vrot.lane.b32.xlu1 %v1024_v62, %s10505_s24  ;;  %1294 = vrot.lane.b32.xlu0 %v1216_v2, %s10503_s29  ;;  %v1026_v46 = vld [vmem:[#allocation2 + $0xc9] sm:$0xff] }
 0x1e5   : > { %v1277_v14 = vpop.permute.xlu1 %1276  ;;  %v1082_v5 = vpop.permute.xlu0 %1081 }
 0x1e6   : > { %1368 = vst.msk [vmem:[#allocation5 + $0x28] sm:$0xff] %vm1362_vm4, %v1277_v14 }
 0x1e7   : > { %1174 = vst.msk [vmem:[#allocation5 + $0x20] sm:$0xff] %vm1169_vm3, %v1082_v5  ;;  %1871 = vrot.lane.b32.xlu1 %v1217_v18, %s10506_s25  ;;  %1483 = vrot.lane.b32.xlu0 %v11328_v39, %s10507_s26  ;;  %v1219_v5 = vld [vmem:[#allocation2 + $0xca] sm:$0xff] }
 0x1e9   : > { %v1659_v12 = vpop.permute.xlu1 %1658  ;;  %v1275_v9 = vpop.permute.xlu0 %1274 }
 0x1ea   : > { %1367 = vst.msk [vmem:[#allocation5 + $0x20] sm:$0xff] %vm1362_vm4, %v1275_v9  ;;  %v1025_v9 = vld [vmem:[#allocation2 + $0xc1] sm:$0xff] }
 0x1eb   : > { %1485 = vrot.lane.b32.xlu1 %v11338_v45, %s10507_s26  ;;  %1676 = vrot.lane.b32.xlu0 %v1023_v35, %s10505_s24 }
 0x1ed   : > { %v1852_v62 = vpop.permute.xlu1 %1851  ;;  %v1464_v50 = vpop.permute.xlu0 %1463 }
 0x1ee   : > { %1558 = vst.msk [vmem:[#allocation5 + $0x10] sm:$0xff] %vm1555_vm6, %v1464_v50 }
 0x1ef   : > { %1107 = vrot.lane.b32.xlu1 %v1026_v46, %s10502_s28  ;;  %1869 = vrot.lane.b32.xlu0 %v1216_v2, %s10506_s25  ;;  %v1218_v2 = vld [vmem:[#allocation2 + $0xc2] sm:$0xff] }
 0x1f1   : > { %v1466_v18 = vpop.permute.xlu1 %1465  ;;  %v1657_v14 = vpop.permute.xlu0 %1656 }
 0x1f2   : > { %1559 = vst.msk [vmem:[#allocation5 + $0x18] sm:$0xff] %vm1555_vm6, %v1466_v18 }
 0x1f3   : > { %1751 = vst.msk [vmem:[#allocation5 + $0x10] sm:$0xff] %vm1748_vm7, %v1657_v14  ;;  %1752 = vst.msk [vmem:[#allocation5 + $0x18] sm:$0xff] %vm1748_vm7, %v1659_v12  ;;  %1300 = vrot.lane.b32.xlu1 %v1219_v5, %s10503_s29  ;;  %1105 = vrot.lane.b32.xlu0 %v1025_v9, %s10502_s28 }
 0x1f4   : > { %1945 = vst.msk [vmem:[#allocation5 + $0x18] sm:$0xff] %vm1941_vm8, %v1852_v62 }
 0x1f5   : > { %v2042_v35 = vpop.permute.xlu1 %2041  ;;  %v1850_v50 = vpop.permute.xlu0 %1849 }
 0x1f6   : > { %2137 = vst.msk [vmem:[#allocation5 + $0x8] sm:$0xff] %vm2135_vm9, %v2042_v35 }
 0x1f7   : > { %1944 = vst.msk [vmem:[#allocation5 + $0x10] sm:$0xff] %vm1941_vm8, %v1850_v50  ;;  %1682 = vrot.lane.b32.xlu1 %v1026_v46, %s10505_s24  ;;  %1298 = vrot.lane.b32.xlu0 %v1218_v2, %s10503_s29  ;;  %v1028_v50 = vld [vmem:[#allocation2 + $0xe1] sm:$0xff] }
 0x1f9   : > { %v1088_v18 = vpop.permute.xlu1 %1087  ;;  %v2040_v12 = vpop.permute.xlu0 %2039 }
 0x1fa   : > { %1177 = vst.msk [vmem:[#allocation5 + $0x38] sm:$0xff] %vm1169_vm3, %v1088_v18 }
 0x1fb   : > { %2136 = vst.msk [vmem:[#allocation5] sm:$0xff] %vm2135_vm9, %v2040_v12  ;;  %1875 = vrot.lane.b32.xlu1 %v1219_v5, %s10506_s25  ;;  %1487 = vrot.lane.b32.xlu0 %v11340_v48, %s10507_s26  ;;  %v1221_v12 = vld [vmem:[#allocation2 + $0xe2] sm:$0xff] }
 0x1fd   : > { %v1281_v62 = vpop.permute.xlu1 %1280  ;;  %v1086_v14 = vpop.permute.xlu0 %1085 }
 0x1fe   : > { %1370 = vst.msk [vmem:[#allocation5 + $0x38] sm:$0xff] %vm1362_vm4, %v1281_v62  ;;  %v1027_v62 = vld [vmem:[#allocation2 + $0xd9] sm:$0xff] }
 0x1ff   : > { %1176 = vst.msk [vmem:[#allocation5 + $0x30] sm:$0xff] %vm1169_vm3, %v1086_v14  ;;  %1489 = vrot.lane.b32.xlu1 %v11351_v53, %s10507_s26  ;;  %1680 = vrot.lane.b32.xlu0 %v1025_v9, %s10505_s24 }
 0x201   : > { %v1663_v46 = vpop.permute.xlu1 %1662  ;;  %v1279_v35 = vpop.permute.xlu0 %1278 }
 0x202   : > { %1369 = vst.msk [vmem:[#allocation5 + $0x30] sm:$0xff] %vm1362_vm4, %v1279_v35  ;;  %v1220_v35 = vld [vmem:[#allocation2 + $0xda] sm:$0xff] }
 0x203   : > { %1111 = vrot.lane.b32.xlu1 %v1028_v50, %s10502_s28  ;;  %1873 = vrot.lane.b32.xlu0 %v1218_v2, %s10506_s25 }
 0x205   : > { %v1856_v5 = vpop.permute.xlu1 %1855  ;;  %v1468_v18 = vpop.permute.xlu0 %1467 }
 0x206   : > { %1560 = vst.msk [vmem:[#allocation5 + $0x20] sm:$0xff] %vm1555_vm6, %v1468_v18 }
 0x207   : > { %1304 = vrot.lane.b32.xlu1 %v1221_v12, %s10503_s29  ;;  %1109 = vrot.lane.b32.xlu0 %v1027_v62, %s10502_s28 }
 0x209   : > { %v1470_v9 = vpop.permute.xlu1 %1469  ;;  %v1661_v14 = vpop.permute.xlu0 %1660 }
 0x20a   : > { %1561 = vst.msk [vmem:[#allocation5 + $0x28] sm:$0xff] %vm1555_vm6, %v1470_v9 }
 0x20b   : > { %1753 = vst.msk [vmem:[#allocation5 + $0x20] sm:$0xff] %vm1748_vm7, %v1661_v14  ;;  %1754 = vst.msk [vmem:[#allocation5 + $0x28] sm:$0xff] %vm1748_vm7, %v1663_v46  ;;  %1686 = vrot.lane.b32.xlu1 %v1028_v50, %s10505_s24  ;;  %1302 = vrot.lane.b32.xlu0 %v1220_v35, %s10503_s29 }
 0x20c   : > { %1947 = vst.msk [vmem:[#allocation5 + $0x28] sm:$0xff] %vm1941_vm8, %v1856_v5  ;;  %v11555_v5 = vld [vmem:[#allocation2 + $0xf9] sm:$0xff] }
 0x20d   : > { %v2046_v2 = vpop.permute.xlu1 %2045  ;;  %v1854_v18 = vpop.permute.xlu0 %1853 }
 0x20e   : > { %2139 = vst.msk [vmem:[#allocation5 + $0x18] sm:$0xff] %vm2135_vm9, %v2046_v2 }
 0x20f   : > { %1946 = vst.msk [vmem:[#allocation5 + $0x20] sm:$0xff] %vm1941_vm8, %v1854_v18  ;;  %1879 = vrot.lane.b32.xlu1 %v1221_v12, %s10506_s25  ;;  %1491 = vrot.lane.b32.xlu0 %v11353_v63, %s10507_s26  ;;  %v1223_v18 = vld [vmem:[#allocation2 + $0xfa] sm:$0xff] }
 0x211   : > { %v1092_v9 = vpop.permute.xlu1 %1091  ;;  %v2044_v14 = vpop.permute.xlu0 %2043 }
 0x212   : > { %1179 = vst.msk [vmem:[#allocation5 + $0x48] sm:$0xff] %vm1169_vm3, %v1092_v9  ;;  %v11561_v9 = vld [vmem:[#allocation2 + $0xf1] sm:$0xff] }
 0x213   : > { %2138 = vst.msk [vmem:[#allocation5 + $0x10] sm:$0xff] %vm2135_vm9, %v2044_v14  ;;  %1493 = vrot.lane.b32.xlu1 %v11364_v8, %s10507_s26  ;;  %1684 = vrot.lane.b32.xlu0 %v1027_v62, %s10505_s24 }
 0x215   : > { %v1285_v46 = vpop.permute.xlu1 %1284  ;;  %v1090_v50 = vpop.permute.xlu0 %1089 }
 0x216   : > { %1372 = vst.msk [vmem:[#allocation5 + $0x48] sm:$0xff] %vm1362_vm4, %v1285_v46  ;;  %v1222_v46 = vld [vmem:[#allocation2 + $0xf2] sm:$0xff] }
 0x217   : > { %1178 = vst.msk [vmem:[#allocation5 + $0x40] sm:$0xff] %vm1169_vm3, %v1090_v50  ;;  %1115 = vrot.lane.b32.xlu1 %v11555_v5, %s10502_s28  ;;  %1877 = vrot.lane.b32.xlu0 %v1220_v35, %s10506_s25 }
 0x219   : > { %v1667_v12 = vpop.permute.xlu1 %1666  ;;  %v1283_v2 = vpop.permute.xlu0 %1282 }
 0x21a   : > { %1371 = vst.msk [vmem:[#allocation5 + $0x40] sm:$0xff] %vm1362_vm4, %v1283_v2 }
 0x21b   : > { %1308 = vrot.lane.b32.xlu1 %v1223_v18, %s10503_s29  ;;  %1113 = vrot.lane.b32.xlu0 %v11561_v9, %s10502_s28 }
 0x21d   : > { %v1860_v62 = vpop.permute.xlu1 %1859  ;;  %v1472_v14 = vpop.permute.xlu0 %1471 }
 0x21e   : > { %1562 = vst.msk [vmem:[#allocation5 + $0x30] sm:$0xff] %vm1555_vm6, %v1472_v14 }
 0x21f   : > { %1690 = vrot.lane.b32.xlu1 %v11555_v5, %s10505_s24  ;;  %1306 = vrot.lane.b32.xlu0 %v1222_v46, %s10503_s29 }
 0x221   : > { %v1474_v35 = vpop.permute.xlu1 %1473  ;;  %v1665_v50 = vpop.permute.xlu0 %1664 }
 0x222   : > { %1563 = vst.msk [vmem:[#allocation5 + $0x38] sm:$0xff] %vm1555_vm6, %v1474_v35 }
 0x223   : > { %1755 = vst.msk [vmem:[#allocation5 + $0x30] sm:$0xff] %vm1748_vm7, %v1665_v50  ;;  %1756 = vst.msk [vmem:[#allocation5 + $0x38] sm:$0xff] %vm1748_vm7, %v1667_v12  ;;  %1883 = vrot.lane.b32.xlu1 %v1223_v18, %s10506_s25  ;;  %1495 = vrot.lane.b32.xlu0 %v11366_v17, %s10507_s26  ;;  %v11585_v18 = vld [vmem:[#allocation2 + $0x111] sm:$0xff] }
 0x224   : > { %1949 = vst.msk [vmem:[#allocation5 + $0x38] sm:$0xff] %vm1941_vm8, %v1860_v62 }
 0x225   : > { %v1096_v2 = vpop.permute.xlu1 %1095  ;;  %v1858_v14 = vpop.permute.xlu0 %1857 }
 0x226   : > { %1181 = vst.msk [vmem:[#allocation5 + $0x58] sm:$0xff] %vm1169_vm3, %v1096_v2  ;;  %v1225_v2 = vld [vmem:[#allocation2 + $0x112] sm:$0xff] }
 0x227   : > { %1948 = vst.msk [vmem:[#allocation5 + $0x30] sm:$0xff] %vm1941_vm8, %v1858_v14  ;;  %1497 = vrot.lane.b32.xlu1 %v11377_v23, %s10507_s26  ;;  %1688 = vrot.lane.b32.xlu0 %v11561_v9, %s10505_s24  ;;  %v11591_v14 = vld [vmem:[#allocation2 + $0x109] sm:$0xff] }
 0x229   : > { %v1289_v12 = vpop.permute.xlu1 %1288  ;;  %v1094_v35 = vpop.permute.xlu0 %1093 }
 0x22a   : > { %1374 = vst.msk [vmem:[#allocation5 + $0x58] sm:$0xff] %vm1362_vm4, %v1289_v12 }
 0x22b   : > { %1180 = vst.msk [vmem:[#allocation5 + $0x50] sm:$0xff] %vm1169_vm3, %v1094_v35  ;;  %1119 = vrot.lane.b32.xlu1 %v11585_v18, %s10502_s28  ;;  %1881 = vrot.lane.b32.xlu0 %v1222_v46, %s10506_s25 }
 0x22d   : > { %v1671_v62 = vpop.permute.xlu1 %1670  ;;  %v1287_v50 = vpop.permute.xlu0 %1286 }
 0x22e   : > { %1373 = vst.msk [vmem:[#allocation5 + $0x50] sm:$0xff] %vm1362_vm4, %v1287_v50 }
 0x22f   : > { %1312 = vrot.lane.b32.xlu1 %v1225_v2, %s10503_s29  ;;  %1117 = vrot.lane.b32.xlu0 %v11591_v14, %s10502_s28 }
 0x231   : > { %v1864_v12 = vpop.permute.xlu1 %1863  ;;  %v1476_v35 = vpop.permute.xlu0 %1475 }
 0x232   : > { %1564 = vst.msk [vmem:[#allocation5 + $0x40] sm:$0xff] %vm1555_vm6, %v1476_v35 }
 0x233   : > { %1694 = vrot.lane.b32.xlu1 %v11585_v18, %s10505_s24  ;;  %1310 = vrot.lane.b32.xlu0 %v1224_v32, %s10503_s29 }
 0x235   : > { %v1478_v46 = vpop.permute.xlu1 %1477  ;;  %v1669_v50 = vpop.permute.xlu0 %1668 }
 0x236   : > { %1565 = vst.msk [vmem:[#allocation5 + $0x48] sm:$0xff] %vm1555_vm6, %v1478_v46 }
 0x237   : > { %1757 = vst.msk [vmem:[#allocation5 + $0x40] sm:$0xff] %vm1748_vm7, %v1669_v50  ;;  %1758 = vst.msk [vmem:[#allocation5 + $0x48] sm:$0xff] %vm1748_vm7, %v1671_v62  ;;  %1887 = vrot.lane.b32.xlu1 %v1225_v2, %s10506_s25  ;;  %1499 = vrot.lane.b32.xlu0 %v11379_v33, %s10507_s26  ;;  %v11615_v2 = vld [vmem:[#allocation2 + $0x129] sm:$0xff] }
 0x238   : > { %1951 = vst.msk [vmem:[#allocation5 + $0x48] sm:$0xff] %vm1941_vm8, %v1864_v12  ;;  %v1227_v50 = vld [vmem:[#allocation2 + $0x12a] sm:$0xff] }
 0x239   : > { %v1100_v35 = vpop.permute.xlu1 %1099  ;;  %v1862_v24 = vpop.permute.xlu0 %1861 }
 0x23a   : > { %1183 = vst.msk [vmem:[#allocation5 + $0x68] sm:$0xff] %vm1169_vm3, %v1100_v35  ;;  %v11621_v35 = vld [vmem:[#allocation2 + $0x121] sm:$0xff] }
 0x23b   : > { %1950 = vst.msk [vmem:[#allocation5 + $0x40] sm:$0xff] %vm1941_vm8, %v1862_v24  ;;  %1501 = vrot.lane.b32.xlu1 %v11390_v59, %s10507_s26  ;;  %1692 = vrot.lane.b32.xlu0 %v11591_v14, %s10505_s24 }
 0x23d   : > { %v1293_v62 = vpop.permute.xlu1 %1292  ;;  %v1098_v46 = vpop.permute.xlu0 %1097 }
 0x23e   : > { %1376 = vst.msk [vmem:[#allocation5 + $0x68] sm:$0xff] %vm1362_vm4, %v1293_v62 }
 0x23f   : > { %1182 = vst.msk [vmem:[#allocation5 + $0x60] sm:$0xff] %vm1169_vm3, %v1098_v46  ;;  %1123 = vrot.lane.b32.xlu1 %v11615_v2, %s10502_s28  ;;  %1885 = vrot.lane.b32.xlu0 %v1224_v32, %s10506_s25 }
 0x241   : > { %v1675_v24 = vpop.permute.xlu1 %1674  ;;  %v1291_v12 = vpop.permute.xlu0 %1290 }
 0x242   : > { %1375 = vst.msk [vmem:[#allocation5 + $0x60] sm:$0xff] %vm1362_vm4, %v1291_v12 }
 0x243   : > { %1316 = vrot.lane.b32.xlu1 %v1227_v50, %s10503_s29  ;;  %1121 = vrot.lane.b32.xlu0 %v11621_v35, %s10502_s28 }
 0x245   : > { %v1868_v62 = vpop.permute.xlu1 %1867  ;;  %v1480_v46 = vpop.permute.xlu0 %1479 }
 0x246   : > { %1566 = vst.msk [vmem:[#allocation5 + $0x50] sm:$0xff] %vm1555_vm6, %v1480_v46 }
 0x247   : > { %1698 = vrot.lane.b32.xlu1 %v11615_v2, %s10505_s24  ;;  %1314 = vrot.lane.b32.xlu0 %v1226_v29, %s10503_s29 }
 0x249   : > { %v1482_v32 = vpop.permute.xlu1 %1481  ;;  %v1673_v12 = vpop.permute.xlu0 %1672 }
 0x24a   : > { %1567 = vst.msk [vmem:[#allocation5 + $0x58] sm:$0xff] %vm1555_vm6, %v1482_v32 }
 0x24b   : > { %1759 = vst.msk [vmem:[#allocation5 + $0x50] sm:$0xff] %vm1748_vm7, %v1673_v12  ;;  %1760 = vst.msk [vmem:[#allocation5 + $0x58] sm:$0xff] %vm1748_vm7, %v1675_v24  ;;  %1891 = vrot.lane.b32.xlu1 %v1227_v50, %s10506_s25  ;;  %1503 = vrot.lane.b32.xlu0 %v11392_v41, %s10507_s26  ;;  %v11645_v50 = vld [vmem:[#allocation2 + $0x141] sm:$0xff] }
 0x24c   : > { %1953 = vst.msk [vmem:[#allocation5 + $0x58] sm:$0xff] %vm1941_vm8, %v1868_v62  ;;  %v11651_v12 = vld [vmem:[#allocation2 + $0x142] sm:$0xff] }
 0x24d   : > { %v1104_v46 = vpop.permute.xlu1 %1103  ;;  %v1866_v15 = vpop.permute.xlu0 %1865 }
 0x24e   : > { %1185 = vst.msk [vmem:[#allocation5 + $0x78] sm:$0xff] %vm1169_vm3, %v1104_v46  ;;  %v11653_v46 = vld [vmem:[#allocation2 + $0x139] sm:$0xff] }
 0x24f   : > { %1952 = vst.msk [vmem:[#allocation5 + $0x50] sm:$0xff] %vm1941_vm8, %v1866_v15  ;;  %1505 = vrot.lane.b32.xlu1 %v11402_v54, %s10507_s26  ;;  %1696 = vrot.lane.b32.xlu0 %v11621_v35, %s10505_s24 }
 0x251   : > { %v1297_v24 = vpop.permute.xlu1 %1296  ;;  %v1102_v32 = vpop.permute.xlu0 %1101 }
 0x252   : > { %1378 = vst.msk [vmem:[#allocation5 + $0x78] sm:$0xff] %vm1362_vm4, %v1297_v24 }
 0x253   : > { %1184 = vst.msk [vmem:[#allocation5 + $0x70] sm:$0xff] %vm1169_vm3, %v1102_v32  ;;  %1127 = vrot.lane.b32.xlu1 %v11645_v50, %s10502_s28  ;;  %1889 = vrot.lane.b32.xlu0 %v1226_v29, %s10506_s25 }
 0x255   : > { %v1679_v15 = vpop.permute.xlu1 %1678  ;;  %v1295_v62 = vpop.permute.xlu0 %1294 }
 0x256   : > { %1377 = vst.msk [vmem:[#allocation5 + $0x70] sm:$0xff] %vm1362_vm4, %v1295_v62 }
 0x257   : > { %1320 = vrot.lane.b32.xlu1 %v11651_v12, %s10503_s29  ;;  %1125 = vrot.lane.b32.xlu0 %v11653_v46, %s10502_s28 }
 0x259   : > { %v1872_v24 = vpop.permute.xlu1 %1871  ;;  %v1484_v32 = vpop.permute.xlu0 %1483 }
 0x25a   : > { %1568 = vst.msk [vmem:[#allocation5 + $0x60] sm:$0xff] %vm1555_vm6, %v1484_v32 }
 0x25b   : > { %1702 = vrot.lane.b32.xlu1 %v11645_v50, %s10505_s24  ;;  %1318 = vrot.lane.b32.xlu0 %v11660_v20, %s10503_s29 }
 0x25d   : > { %v1486_v29 = vpop.permute.xlu1 %1485  ;;  %v1677_v62 = vpop.permute.xlu0 %1676 }
 0x25e   : > { %1569 = vst.msk [vmem:[#allocation5 + $0x68] sm:$0xff] %vm1555_vm6, %v1486_v29 }
 0x25f   : > { %1761 = vst.msk [vmem:[#allocation5 + $0x60] sm:$0xff] %vm1748_vm7, %v1677_v62  ;;  %1762 = vst.msk [vmem:[#allocation5 + $0x68] sm:$0xff] %vm1748_vm7, %v1679_v15  ;;  %1895 = vrot.lane.b32.xlu1 %v11651_v12, %s10506_s25  ;;  %1507 = vrot.lane.b32.xlu0 %v11404_v3, %s10507_s26  ;;  %v11682_v62 = vld [vmem:[#allocation2 + $0x159] sm:$0xff] }
 0x260   : > { %1955 = vst.msk [vmem:[#allocation5 + $0x68] sm:$0xff] %vm1941_vm8, %v1872_v24 }
 0x261   : > { %v1108_v32 = vpop.permute.xlu1 %1107  ;;  %v1870_v6 = vpop.permute.xlu0 %1869 }
 0x262   : > { %1187 = vst.msk [vmem:[#allocation5 + $0x88] sm:$0xff] %vm1169_vm3, %v1108_v32  ;;  %v11689_v32 = vld [vmem:[#allocation2 + $0x15a] sm:$0xff] }
 0x263   : > { %1954 = vst.msk [vmem:[#allocation5 + $0x60] sm:$0xff] %vm1941_vm8, %v1870_v6  ;;  %1509 = vrot.lane.b32.xlu1 %v11414_v44, %s10507_s26  ;;  %1700 = vrot.lane.b32.xlu0 %v11653_v46, %s10505_s24 }
 0x265   : > { %v1301_v15 = vpop.permute.xlu1 %1300  ;;  %v1106_v29 = vpop.permute.xlu0 %1105 }
 0x266   : > { %1380 = vst.msk [vmem:[#allocation5 + $0x88] sm:$0xff] %vm1362_vm4, %v1301_v15 }
 0x267   : > { %1186 = vst.msk [vmem:[#allocation5 + $0x80] sm:$0xff] %vm1169_vm3, %v1106_v29  ;;  %1131 = vrot.lane.b32.xlu1 %v11682_v62, %s10502_s28  ;;  %1893 = vrot.lane.b32.xlu0 %v11660_v20, %s10506_s25 }
 0x269   : > { %v1683_v6 = vpop.permute.xlu1 %1682  ;;  %v1299_v24 = vpop.permute.xlu0 %1298 }
 0x26a   : > { %1379 = vst.msk [vmem:[#allocation5 + $0x80] sm:$0xff] %vm1362_vm4, %v1299_v24 }
 0x26b   : > { %1324 = vrot.lane.b32.xlu1 %v11689_v32, %s10503_s29  ;;  %1129 = vrot.lane.b32.xlu0 %v11691_v11, %s10502_s28 }
 0x26d   : > { %v1876_v15 = vpop.permute.xlu1 %1875  ;;  %v1488_v29 = vpop.permute.xlu0 %1487 }
 0x26e   : > { %1570 = vst.msk [vmem:[#allocation5 + $0x70] sm:$0xff] %vm1555_vm6, %v1488_v29 }
 0x26f   : > { %1706 = vrot.lane.b32.xlu1 %v11682_v62, %s10505_s24  ;;  %1322 = vrot.lane.b32.xlu0 %v11698_v60, %s10503_s29 }
 0x271   : > { %v1490_v24 = vpop.permute.xlu1 %1489  ;;  %v1681_v1 = vpop.permute.xlu0 %1680 }
 0x272   : > { %1571 = vst.msk [vmem:[#allocation5 + $0x78] sm:$0xff] %vm1555_vm6, %v1490_v24  ;;  %v11720_v24 = vld [vmem:[#allocation2 + $0x171] sm:$0xff] }
 0x273   : > { %1763 = vst.msk [vmem:[#allocation5 + $0x70] sm:$0xff] %vm1748_vm7, %v1681_v1  ;;  %1764 = vst.msk [vmem:[#allocation5 + $0x78] sm:$0xff] %vm1748_vm7, %v1683_v6  ;;  %1899 = vrot.lane.b32.xlu1 %v11689_v32, %s10506_s25  ;;  %1511 = vrot.lane.b32.xlu0 %v11416_v38, %s10507_s26 }
 0x274   : > { %1957 = vst.msk [vmem:[#allocation5 + $0x78] sm:$0xff] %vm1941_vm8, %v1876_v15 }
 0x275   : > { %v1112_v29 = vpop.permute.xlu1 %1111  ;;  %v1874_v51 = vpop.permute.xlu0 %1873 }
 0x276   : > { %1189 = vst.msk [vmem:[#allocation5 + $0x98] sm:$0xff] %vm1169_vm3, %v1112_v29  ;;  %v11727_v29 = vld [vmem:[#allocation2 + $0x172] sm:$0xff] }
 0x277   : > { %1956 = vst.msk [vmem:[#allocation5 + $0x70] sm:$0xff] %vm1941_vm8, %v1874_v51  ;;  %1513 = vrot.lane.b32.xlu1 %v11427_v27, %s10507_s26  ;;  %1704 = vrot.lane.b32.xlu0 %v11691_v11, %s10505_s24 }
 0x279   : > { %v1305_v1 = vpop.permute.xlu1 %1304  ;;  %v1110_v6 = vpop.permute.xlu0 %1109 }
 0x27a   : > { %1382 = vst.msk [vmem:[#allocation5 + $0x98] sm:$0xff] %vm1362_vm4, %v1305_v1 }
 0x27b   : > { %1188 = vst.msk [vmem:[#allocation5 + $0x90] sm:$0xff] %vm1169_vm3, %v1110_v6  ;;  %1135 = vrot.lane.b32.xlu1 %v11720_v24, %s10502_s28  ;;  %1897 = vrot.lane.b32.xlu0 %v11698_v60, %s10506_s25 }
 0x27d   : > { %v1687_v51 = vpop.permute.xlu1 %1686  ;;  %v1303_v15 = vpop.permute.xlu0 %1302 }
 0x27e   : > { %1381 = vst.msk [vmem:[#allocation5 + $0x90] sm:$0xff] %vm1362_vm4, %v1303_v15 }
 0x27f   : > { %1328 = vrot.lane.b32.xlu1 %v11727_v29, %s10503_s29  ;;  %1133 = vrot.lane.b32.xlu0 %v11729_v56, %s10502_s28 }
 0x281   : > { %v1880_v1 = vpop.permute.xlu1 %1879  ;;  %v1492_v6 = vpop.permute.xlu0 %1491 }
 0x282   : > { %1572 = vst.msk [vmem:[#allocation5 + $0x80] sm:$0xff] %vm1555_vm6, %v1492_v6 }
 0x283   : > { %1710 = vrot.lane.b32.xlu1 %v11720_v24, %s10505_s24  ;;  %1326 = vrot.lane.b32.xlu0 %v11736_v43, %s10503_s29 }
 0x285   : > { %v1494_v15 = vpop.permute.xlu1 %1493  ;;  %v1685_v47 = vpop.permute.xlu0 %1684 }
 0x286   : > { %1573 = vst.msk [vmem:[#allocation5 + $0x88] sm:$0xff] %vm1555_vm6, %v1494_v15  ;;  %v11758_v15 = vld [vmem:[#allocation2 + $0x189] sm:$0xff] }
 0x287   : > { %1765 = vst.msk [vmem:[#allocation5 + $0x80] sm:$0xff] %vm1748_vm7, %v1685_v47  ;;  %1766 = vst.msk [vmem:[#allocation5 + $0x88] sm:$0xff] %vm1748_vm7, %v1687_v51  ;;  %1903 = vrot.lane.b32.xlu1 %v11727_v29, %s10506_s25  ;;  %1515 = vrot.lane.b32.xlu0 %v11429_v57, %s10507_s26 }
 0x288   : > { %1959 = vst.msk [vmem:[#allocation5 + $0x88] sm:$0xff] %vm1941_vm8, %v1880_v1 }
 0x289   : > { %v1116_v6 = vpop.permute.xlu1 %1115  ;;  %v1878_v37 = vpop.permute.xlu0 %1877 }
 0x28a   : > { %1191 = vst.msk [vmem:[#allocation5 + $0xa8] sm:$0xff] %vm1169_vm3, %v1116_v6  ;;  %v11765_v6 = vld [vmem:[#allocation2 + $0x18a] sm:$0xff] }
 0x28b   : > { %1958 = vst.msk [vmem:[#allocation5 + $0x80] sm:$0xff] %vm1941_vm8, %v1878_v37  ;;  %1517 = vrot.lane.b32.xlu1 %v11438_v42, %s10507_s26  ;;  %1708 = vrot.lane.b32.xlu0 %v11729_v56, %s10505_s24 }
 0x28d   : > { %v1309_v47 = vpop.permute.xlu1 %1308  ;;  %v1114_v51 = vpop.permute.xlu0 %1113 }
 0x28e   : > { %1384 = vst.msk [vmem:[#allocation5 + $0xa8] sm:$0xff] %vm1362_vm4, %v1309_v47 }
 0x28f   : > { %1190 = vst.msk [vmem:[#allocation5 + $0xa0] sm:$0xff] %vm1169_vm3, %v1114_v51  ;;  %1714 = vrot.lane.b32.xlu1 %v11758_v15, %s10505_s24  ;;  %1901 = vrot.lane.b32.xlu0 %v11736_v43, %s10506_s25 }
 0x291   : > { %v1691_v37 = vpop.permute.xlu1 %1690  ;;  %v1307_v1 = vpop.permute.xlu0 %1306 }
 0x292   : > { %1383 = vst.msk [vmem:[#allocation5 + $0xa0] sm:$0xff] %vm1362_vm4, %v1307_v1 }
 0x293   : > { %1907 = vrot.lane.b32.xlu1 %v11765_v6, %s10506_s25  ;;  %1519 = vrot.lane.b32.xlu0 %v11767_v40, %s10507_s26 }
 0x295   : > { %v1884_v47 = vpop.permute.xlu1 %1883  ;;  %v1496_v51 = vpop.permute.xlu0 %1495 }
 0x296   : > { %1574 = vst.msk [vmem:[#allocation5 + $0x90] sm:$0xff] %vm1555_vm6, %v1496_v51 }
 0x297   : > { %1521 = vrot.lane.b32.xlu1 %v11774_v31, %s10507_s26  ;;  %1712 = vrot.lane.b32.xlu0 %v11776_v34, %s10505_s24 }
 0x299   : > { %v1498_v1 = vpop.permute.xlu1 %1497  ;;  %v1689_v25 = vpop.permute.xlu0 %1688 }
 0x29a   : > { %1575 = vst.msk [vmem:[#allocation5 + $0x98] sm:$0xff] %vm1555_vm6, %v1498_v1  ;;  %v1979_v1 = vld [vmem:[#allocation2 + $0x60] sm:$0xff] }
 0x29b   : > { %1767 = vst.msk [vmem:[#allocation5 + $0x90] sm:$0xff] %vm1748_vm7, %v1689_v25  ;;  %1768 = vst.msk [vmem:[#allocation5 + $0x98] sm:$0xff] %vm1748_vm7, %v1691_v37  ;;  %2049 = vrot.lane.b32.xlu1 %v1980_v28, %s10508_s27  ;;  %1905 = vrot.lane.b32.xlu0 %v11784_v19, %s10506_s25 }
 0x29c   : > { %1961 = vst.msk [vmem:[#allocation5 + $0x98] sm:$0xff] %vm1941_vm8, %v1884_v47 }
 0x29d   : > { %v1120_v51 = vpop.permute.xlu1 %1119  ;;  %v1882_v22 = vpop.permute.xlu0 %1881 }
 0x29e   : > { %1193 = vst.msk [vmem:[#allocation5 + $0xb8] sm:$0xff] %vm1169_vm3, %v1120_v51 }
 0x29f   : > { %1960 = vst.msk [vmem:[#allocation5 + $0x90] sm:$0xff] %vm1941_vm8, %v1882_v22  ;;  %2053 = vrot.lane.b32.xlu1 %v11314_v26, %s10508_s27  ;;  %2047 = vrot.lane.b32.xlu0 %v1979_v1, %s10508_s27 }
 0x2a1   : > { %v1313_v25 = vpop.permute.xlu1 %1312  ;;  %v1118_v37 = vpop.permute.xlu0 %1117 }
 0x2a2   : > { %1386 = vst.msk [vmem:[#allocation5 + $0xb8] sm:$0xff] %vm1362_vm4, %v1313_v25  ;;  %v2169_v25 = vld [vmem:[#allocation2 + $0x39] sm:$0xff] }
 0x2a3   : > { %1192 = vst.msk [vmem:[#allocation5 + $0xb0] sm:$0xff] %vm1169_vm3, %v1118_v37  ;;  %2057 = vrot.lane.b32.xlu1 %v11326_v36, %s10508_s27  ;;  %2051 = vrot.lane.b32.xlu0 %v11304_v21, %s10508_s27  ;;  %v2171_v37 = vld [vmem:[#allocation2 + $0x51] sm:$0xff] }
 0x2a5   : > { %v1695_v28 = vpop.permute.xlu1 %1694  ;;  %v1311_v22 = vpop.permute.xlu0 %1310 }
 0x2a6   : > { %1385 = vst.msk [vmem:[#allocation5 + $0xb0] sm:$0xff] %vm1362_vm4, %v1311_v22 }
 0x2a7   : > { %2061 = vrot.lane.b32.xlu1 %v11338_v45, %s10508_s27  ;;  %2055 = vrot.lane.b32.xlu0 %v11316_v30, %s10508_s27 }
 0x2a9   : > { %v1888_v26 = vpop.permute.xlu1 %1887  ;;  %v1500_v47 = vpop.permute.xlu0 %1499 }
 0x2aa   : > { %1576 = vst.msk [vmem:[#allocation5 + $0xa0] sm:$0xff] %vm1555_vm6, %v1500_v47  ;;  %v2170_v47 = vld [vmem:[#allocation2 + $0x49] sm:$0xff] }
 0x2ab   : > { %2065 = vrot.lane.b32.xlu1 %v11351_v53, %s10508_s27  ;;  %2059 = vrot.lane.b32.xlu0 %v11328_v39, %s10508_s27 }
 0x2ad   : > { %v1502_v21 = vpop.permute.xlu1 %1501  ;;  %v1693_v36 = vpop.permute.xlu0 %1692 }
 0x2ae   : > { %1577 = vst.msk [vmem:[#allocation5 + $0xa8] sm:$0xff] %vm1555_vm6, %v1502_v21 }
 0x2af   : > { %1769 = vst.msk [vmem:[#allocation5 + $0xa0] sm:$0xff] %vm1748_vm7, %v1693_v36  ;;  %1770 = vst.msk [vmem:[#allocation5 + $0xa8] sm:$0xff] %vm1748_vm7, %v1695_v28  ;;  %2069 = vrot.lane.b32.xlu1 %v11364_v8, %s10508_s27  ;;  %2063 = vrot.lane.b32.xlu0 %v11340_v48, %s10508_s27  ;;  %v2168_v28 = vld [vmem:[#allocation2 + $0x31] sm:$0xff] }
 0x2b0   : > { %1963 = vst.msk [vmem:[#allocation5 + $0xa8] sm:$0xff] %vm1941_vm8, %v1888_v26  ;;  %v2173_v26 = vld [vmem:[#allocation2 + $0x69] sm:$0xff] }
 0x2b1   : > { %v1124_v30 = vpop.permute.xlu1 %1123  ;;  %v1886_v45 = vpop.permute.xlu0 %1885 }
 0x2b2   : > { %1195 = vst.msk [vmem:[#allocation5 + $0xc8] sm:$0xff] %vm1169_vm3, %v1124_v30  ;;  %v2175_v30 = vld [vmem:[#allocation2 + $0x81] sm:$0xff] }
 0x2b3   : > { %1962 = vst.msk [vmem:[#allocation5 + $0xa0] sm:$0xff] %vm1941_vm8, %v1886_v45  ;;  %2073 = vrot.lane.b32.xlu1 %v11377_v23, %s10508_s27  ;;  %2067 = vrot.lane.b32.xlu0 %v11353_v63, %s10508_s27  ;;  %v2172_v45 = vld [vmem:[#allocation2 + $0x61] sm:$0xff] }
 0x2b5   : > { %v1317_v39 = vpop.permute.xlu1 %1316  ;;  %v1122_v53 = vpop.permute.xlu0 %1121 }
 0x2b6   : > { %1388 = vst.msk [vmem:[#allocation5 + $0xc8] sm:$0xff] %vm1362_vm4, %v1317_v39 }
 0x2b7   : > { %1194 = vst.msk [vmem:[#allocation5 + $0xc0] sm:$0xff] %vm1169_vm3, %v1122_v53  ;;  %2077 = vrot.lane.b32.xlu1 %v11390_v59, %s10508_s27  ;;  %2071 = vrot.lane.b32.xlu0 %v11366_v17, %s10508_s27 }
 0x2b9   : > { %v1699_v48 = vpop.permute.xlu1 %1698  ;;  %v1315_v8 = vpop.permute.xlu0 %1314 }
 0x2ba   : > { %1387 = vst.msk [vmem:[#allocation5 + $0xc0] sm:$0xff] %vm1362_vm4, %v1315_v8  ;;  %v2174_v8 = vld [vmem:[#allocation2 + $0x79] sm:$0xff] }
 0x2bb   : > { %2081 = vrot.lane.b32.xlu1 %v11402_v54, %s10508_s27  ;;  %2075 = vrot.lane.b32.xlu0 %v11379_v33, %s10508_s27 }
 0x2bd   : > { %v1892_v63 = vpop.permute.xlu1 %1891  ;;  %v1504_v23 = vpop.permute.xlu0 %1503 }
 0x2be   : > { %1578 = vst.msk [vmem:[#allocation5 + $0xb0] sm:$0xff] %vm1555_vm6, %v1504_v23 }
 0x2bf   : > { %2085 = vrot.lane.b32.xlu1 %v11414_v44, %s10508_s27  ;;  %2079 = vrot.lane.b32.xlu0 %v11392_v41, %s10508_s27 }
 0x2c1   : > { %v1506_v17 = vpop.permute.xlu1 %1505  ;;  %v1697_v59 = vpop.permute.xlu0 %1696 }
 0x2c2   : > { %1579 = vst.msk [vmem:[#allocation5 + $0xb8] sm:$0xff] %vm1555_vm6, %v1506_v17  ;;  %v2179_v17 = vld [vmem:[#allocation2 + $0xb1] sm:$0xff] }
 0x2c3   : > { %1771 = vst.msk [vmem:[#allocation5 + $0xb0] sm:$0xff] %vm1748_vm7, %v1697_v59  ;;  %1772 = vst.msk [vmem:[#allocation5 + $0xb8] sm:$0xff] %vm1748_vm7, %v1699_v48  ;;  %2089 = vrot.lane.b32.xlu1 %v11427_v27, %s10508_s27  ;;  %2083 = vrot.lane.b32.xlu0 %v11404_v3, %s10508_s27  ;;  %v2006_v3 = vld [vmem:[#allocation2 + $0x1a0] sm:$0xff]  ;;  %v2176_v59 = vld [vmem:[#allocation2 + $0x91] sm:$0xff] }
 0x2c4   : > { %1965 = vst.msk [vmem:[#allocation5 + $0xb8] sm:$0xff] %vm1941_vm8, %v1892_v63  ;;  %v2177_v48 = vld [vmem:[#allocation2 + $0x99] sm:$0xff] }
 0x2c5   : > { %v1128_v33 = vpop.permute.xlu1 %1127  ;;  %v1890_v54 = vpop.permute.xlu0 %1889 }
 0x2c6   : > { %1197 = vst.msk [vmem:[#allocation5 + $0xd8] sm:$0xff] %vm1169_vm3, %v1128_v33 }
 0x2c7   : > { %1964 = vst.msk [vmem:[#allocation5 + $0xb0] sm:$0xff] %vm1941_vm8, %v1890_v54  ;;  %2093 = vrot.lane.b32.xlu1 %v11438_v42, %s10508_s27  ;;  %2087 = vrot.lane.b32.xlu0 %v11416_v38, %s10508_s27  ;;  %v2005_v38 = vld [vmem:[#allocation2 + $0x198] sm:$0xff] }
 0x2c9   : > { %v1321_v41 = vpop.permute.xlu1 %1320  ;;  %v1126_v44 = vpop.permute.xlu0 %1125 }
 0x2ca   : > { %1390 = vst.msk [vmem:[#allocation5 + $0xd8] sm:$0xff] %vm1362_vm4, %v1321_v41  ;;  %v2181_v41 = vld [vmem:[#allocation2 + $0xc9] sm:$0xff] }
 0x2cb   : > { %1196 = vst.msk [vmem:[#allocation5 + $0xd0] sm:$0xff] %vm1169_vm3, %v1126_v44  ;;  %2097 = vrot.lane.b32.xlu1 %v11774_v31, %s10508_s27  ;;  %2091 = vrot.lane.b32.xlu0 %v11429_v57, %s10508_s27  ;;  %v2178_v44 = vld [vmem:[#allocation2 + $0xa9] sm:$0xff] }
 0x2cd   : > { %v1703_v27 = vpop.permute.xlu1 %1702  ;;  %v1319_v51 = vpop.permute.xlu0 %1318 }
 0x2ce   : > { %1389 = vst.msk [vmem:[#allocation5 + $0xd0] sm:$0xff] %vm1362_vm4, %v1319_v51  ;;  %v2183_v51 = vld [vmem:[#allocation2 + $0xe1] sm:$0xff] }
 0x2cf   : > { %2101 = vrot.lane.b32.xlu1 %v2006_v3, %s10508_s27  ;;  %2095 = vrot.lane.b32.xlu0 %v11767_v40, %s10508_s27 }
 0x2d1   : > { %v1896_v42 = vpop.permute.xlu1 %1895  ;;  %v1508_v1 = vpop.permute.xlu0 %1507 }
 0x2d2   : > { %1580 = vst.msk [vmem:[#allocation5 + $0xc0] sm:$0xff] %vm1555_vm6, %v1508_v1 }
 0x2d3   : > { %2234 = vrot.lane.b32.xlu1 %v2169_v25, %s10509_s16  ;;  %2099 = vrot.lane.b32.xlu0 %v2005_v38, %s10508_s27  ;;  %v2180_v38 = vld [vmem:[#allocation2 + $0xc1] sm:$0xff]  ;;  %v2182_v25 = vld [vmem:[#allocation2 + $0xd9] sm:$0xff] }
 0x2d5   : > { %v1510_v31 = vpop.permute.xlu1 %1509  ;;  %v1701_v57 = vpop.permute.xlu0 %1700 }
 0x2d6   : > { %1581 = vst.msk [vmem:[#allocation5 + $0xc8] sm:$0xff] %vm1555_vm6, %v1510_v31 }
 0x2d7   : > { %1773 = vst.msk [vmem:[#allocation5 + $0xc0] sm:$0xff] %vm1748_vm7, %v1701_v57  ;;  %1774 = vst.msk [vmem:[#allocation5 + $0xc8] sm:$0xff] %vm1748_vm7, %v1703_v27  ;;  %2238 = vrot.lane.b32.xlu1 %v2171_v37, %s10509_s16  ;;  %2232 = vrot.lane.b32.xlu0 %v2168_v28, %s10509_s16 }
 0x2d8   : > { %1967 = vst.msk [vmem:[#allocation5 + $0xc8] sm:$0xff] %vm1941_vm8, %v1896_v42 }
 0x2d9   : > { %v1132_v40 = vpop.permute.xlu1 %1131  ;;  %v1894_v22 = vpop.permute.xlu0 %1893 }
 0x2da   : > { %1199 = vst.msk [vmem:[#allocation5 + $0xe8] sm:$0xff] %vm1169_vm3, %v1132_v40 }
 0x2db   : > { %1966 = vst.msk [vmem:[#allocation5 + $0xc0] sm:$0xff] %vm1941_vm8, %v1894_v22  ;;  %2242 = vrot.lane.b32.xlu1 %v2173_v26, %s10509_s16  ;;  %2236 = vrot.lane.b32.xlu0 %v2170_v47, %s10509_s16 }
 0x2dd   : > { %v1325_v21 = vpop.permute.xlu1 %1324  ;;  %v1130_v36 = vpop.permute.xlu0 %1129 }
 0x2de   : > { %1392 = vst.msk [vmem:[#allocation5 + $0xe8] sm:$0xff] %vm1362_vm4, %v1325_v21 }
 0x2df   : > { %1198 = vst.msk [vmem:[#allocation5 + $0xe0] sm:$0xff] %vm1169_vm3, %v1130_v36  ;;  %2246 = vrot.lane.b32.xlu1 %v2175_v30, %s10509_s16  ;;  %2240 = vrot.lane.b32.xlu0 %v2172_v45, %s10509_s16  ;;  %v2586_v36 = vld [vmem:[%s14955_s3] sm:$0xff] }
 0x2e0   : > { %v2362_v30 = vld [vmem:[#allocation2 + $0x3a] sm:$0xff] }
 0x2e1   : > { %v1707_v39 = vpop.permute.xlu1 %1706  ;;  %v1323_v53 = vpop.permute.xlu0 %1322 }
 0x2e2   : > { %1391 = vst.msk [vmem:[#allocation5 + $0xe0] sm:$0xff] %vm1362_vm4, %v1323_v53  ;;  %v2361_v53 = vld [vmem:[#allocation2 + $0x32] sm:$0xff] }
 0x2e3   : > { %2250 = vrot.lane.b32.xlu1 %v2177_v48, %s10509_s16  ;;  %2244 = vrot.lane.b32.xlu0 %v2174_v8, %s10509_s16 }
 0x2e5   : > { %v1900_v63 = vpop.permute.xlu1 %1899  ;;  %v1512_v23 = vpop.permute.xlu0 %1511 }
 0x2e6   : > { %1582 = vst.msk [vmem:[#allocation5 + $0xd0] sm:$0xff] %vm1555_vm6, %v1512_v23  ;;  %v2363_v23 = vld [vmem:[#allocation2 + $0x4a] sm:$0xff] }
 0x2e7   : > { %2254 = vrot.lane.b32.xlu1 %v2179_v17, %s10509_s16  ;;  %2248 = vrot.lane.b32.xlu0 %v2176_v59, %s10509_s16 }
 0x2e9   : > { %v1514_v33 = vpop.permute.xlu1 %1513  ;;  %v1705_v54 = vpop.permute.xlu0 %1704 }
 0x2ea   : > { %1583 = vst.msk [vmem:[#allocation5 + $0xd8] sm:$0xff] %vm1555_vm6, %v1514_v33  ;;  %v2368_v33 = vld [vmem:[#allocation2 + $0x82] sm:$0xff] }
 0x2eb   : > { %1775 = vst.msk [vmem:[#allocation5 + $0xd0] sm:$0xff] %vm1748_vm7, %v1705_v54  ;;  %1776 = vst.msk [vmem:[#allocation5 + $0xd8] sm:$0xff] %vm1748_vm7, %v1707_v39  ;;  %2258 = vrot.lane.b32.xlu1 %v2181_v41, %s10509_s16  ;;  %2252 = vrot.lane.b32.xlu0 %v2178_v44, %s10509_s16  ;;  %v2364_v39 = vld [vmem:[#allocation2 + $0x52] sm:$0xff]  ;;  %v2365_v54 = vld [vmem:[#allocation2 + $0x62] sm:$0xff] }
 0x2ec   : > { %1969 = vst.msk [vmem:[#allocation5 + $0xd8] sm:$0xff] %vm1941_vm8, %v1900_v63  ;;  %v2366_v63 = vld [vmem:[#allocation2 + $0x6a] sm:$0xff] }
 0x2ed   : > { %v1136_v3 = vpop.permute.xlu1 %1135  ;;  %v1898_v27 = vpop.permute.xlu0 %1897 }
 0x2ee   : > { %1201 = vst.msk [vmem:[#allocation5 + $0xf8] sm:$0xff] %vm1169_vm3, %v1136_v3  ;;  %v2370_v3 = vld [vmem:[#allocation2 + $0x9a] sm:$0xff] }
 0x2ef   : > { %1968 = vst.msk [vmem:[#allocation5 + $0xd0] sm:$0xff] %vm1941_vm8, %v1898_v27  ;;  %2262 = vrot.lane.b32.xlu1 %v2183_v51, %s10509_s16  ;;  %2256 = vrot.lane.b32.xlu0 %v2180_v38, %s10509_s16  ;;  %v2367_v27 = vld [vmem:[#allocation2 + $0x7a] sm:$0xff] }
 0x2f1   : > { %v1329_v42 = vpop.permute.xlu1 %1328  ;;  %v1134_v1 = vpop.permute.xlu0 %1133 }
 0x2f2   : > { %1394 = vst.msk [vmem:[#allocation5 + $0xf8] sm:$0xff] %vm1362_vm4, %v1329_v42  ;;  %v2372_v42 = vld [vmem:[#allocation2 + $0xb2] sm:$0xff] }
 0x2f3   : > { %1200 = vst.msk [vmem:[#allocation5 + $0xf0] sm:$0xff] %vm1169_vm3, %v1134_v1  ;;  %2266 = vrot.lane.b32.xlu1 %v11555_v5, %s10509_s16  ;;  %2260 = vrot.lane.b32.xlu0 %v2182_v25, %s10509_s16  ;;  %v2369_v1 = vld [vmem:[#allocation2 + $0x92] sm:$0xff] }
 0x2f5   : > { %v1711_v31 = vpop.permute.xlu1 %1710  ;;  %v1327_v57 = vpop.permute.xlu0 %1326 }
 0x2f6   : > { %1393 = vst.msk [vmem:[#allocation5 + $0xf0] sm:$0xff] %vm1362_vm4, %v1327_v57  ;;  %v2374_v57 = vld [vmem:[#allocation2 + $0xca] sm:$0xff] }
 0x2f7   : > { %2270 = vrot.lane.b32.xlu1 %v11585_v18, %s10509_s16  ;;  %2264 = vrot.lane.b32.xlu0 %v11561_v9, %s10509_s16 }
 0x2f9   : > { %v1904_v37 = vpop.permute.xlu1 %1903  ;;  %v1516_v28 = vpop.permute.xlu0 %1515 }
 0x2fa   : > { %1584 = vst.msk [vmem:[#allocation5 + $0xe0] sm:$0xff] %vm1555_vm6, %v1516_v28 }
 0x2fb   : > { %2274 = vrot.lane.b32.xlu1 %v11615_v2, %s10509_s16  ;;  %2268 = vrot.lane.b32.xlu0 %v11591_v14, %s10509_s16 }
 0x2fd   : > { %v1518_v5 = vpop.permute.xlu1 %1517  ;;  %v1709_v40 = vpop.permute.xlu0 %1708 }
 0x2fe   : > { %1585 = vst.msk [vmem:[#allocation5 + $0xe8] sm:$0xff] %vm1555_vm6, %v1518_v5 }
 0x2ff   : > { %1777 = vst.msk [vmem:[#allocation5 + $0xe0] sm:$0xff] %vm1748_vm7, %v1709_v40  ;;  %1778 = vst.msk [vmem:[#allocation5 + $0xe8] sm:$0xff] %vm1748_vm7, %v1711_v31  ;;  %2278 = vrot.lane.b32.xlu1 %v11645_v50, %s10509_s16  ;;  %2272 = vrot.lane.b32.xlu0 %v11621_v35, %s10509_s16  ;;  %v2590_v35 = vld [vmem:[%s14955_s3 + $0x20] sm:$0xf] }
 0x300   : > { %1971 = vst.msk [vmem:[#allocation5 + $0xe8] sm:$0xff] %vm1941_vm8, %v1904_v37  ;;  %10181 = vmatprep.subr.msk.mxu1 %vm468_vm0, %v2590_v35  ;;  %v2371_v37 = vld [vmem:[#allocation2 + $0xaa] sm:$0xff]  ;;  %v2376_v40 = vld [vmem:[#allocation2 + $0xe2] sm:$0xff] }
 0x301   : > { %v1715_v9 = vpop.permute.xlu1 %1714  ;;  %v1902_v18 = vpop.permute.xlu0 %1901  ;;  %10182 = vmatpush3.msk.msra.mxu1 %vm468_vm0, %v2590_v35  ;;  %v2375_v35 = vld [vmem:[#allocation2 + $0xda] sm:$0xff] }
 0x302   : > { %1970 = vst.msk [vmem:[#allocation5 + $0xe0] sm:$0xff] %vm1941_vm8, %v1902_v18 }
 0x303   : > { %2282 = vrot.lane.b32.xlu1 %v11682_v62, %s10509_s16  ;;  %2276 = vrot.lane.b32.xlu0 %v11653_v46, %s10509_s16  ;;  %v2589_v46 = vld [vmem:[%s14955_s3 + $0x18] sm:$0xff] }
 0x304   : > { %10183 = vmatprep.subr.mxu1 %v2589_v46 }
 0x305   : > { %v1908_v14 = vpop.permute.xlu1 %1907  ;;  %v1520_v2 = vpop.permute.xlu0 %1519  ;;  %10184 = vmatpush3.msra.mxu1 %v2589_v46  ;;  %v2380_v46 = vld [vmem:[#allocation2 + $0x112] sm:$0xff] }
 0x306   : > { %1586 = vst.msk [vmem:[#allocation5 + $0xf0] sm:$0xff] %vm1555_vm6, %v1520_v2  ;;  %v2378_v2 = vld [vmem:[#allocation2 + $0xfa] sm:$0xff] }
 0x307   : > { %2286 = vrot.lane.b32.xlu1 %v11720_v24, %s10509_s16  ;;  %2280 = vrot.lane.b32.xlu0 %v11691_v11, %s10509_s16  ;;  %v2588_v11 = vld [vmem:[%s14955_s3 + $0x10] sm:$0xff]  ;;  %v2199_v24 = vld [vmem:[#allocation2 + $0x1a1] sm:$0xff] }
 0x308   : > { %10185 = vmatprep.subr.mxu1 %v2588_v11 }
 0x309   : > { %v1522_v50 = vpop.permute.xlu1 %1521  ;;  %v1713_v62 = vpop.permute.xlu0 %1712  ;;  %10186 = vmatpush3.msra.mxu1 %v2588_v11  ;;  %v2377_v11 = vld [vmem:[#allocation2 + $0xf2] sm:$0xff] }
 0x30a   : > { %1587 = vst.msk [vmem:[#allocation5 + $0xf8] sm:$0xff] %vm1555_vm6, %v1522_v50 }
 0x30b   : > { %1779 = vst.msk [vmem:[#allocation5 + $0xf0] sm:$0xff] %vm1748_vm7, %v1713_v62  ;;  %1780 = vst.msk [vmem:[#allocation5 + $0xf8] sm:$0xff] %vm1748_vm7, %v1715_v9  ;;  %2290 = vrot.lane.b32.xlu1 %v11758_v15, %s10509_s16  ;;  %2284 = vrot.lane.b32.xlu0 %v11729_v56, %s10509_s16  ;;  %v2587_v56 = vld [vmem:[%s14955_s3 + $0x8] sm:$0xff]  ;;  %v2198_v15 = vld [vmem:[#allocation2 + $0x199] sm:$0xff] }
 0x30c   : > { %1973 = vst.msk [vmem:[#allocation5 + $0xf8] sm:$0xff] %vm1941_vm8, %v1908_v14  ;;  %10187 = vmatprep.subr.mxu1 %v2587_v56  ;;  %v2373_v9 = vld [vmem:[#allocation2 + $0xc2] sm:$0xff] }
 0x30d   : > { %v2050_v22 = vpop.permute.xlu1 %2049  ;;  %v1906_v26 = vpop.permute.xlu0 %1905  ;;  %10188 = vmatpush3.msra.mxu1 %v2587_v56  ;;  %v2379_v56 = vld [vmem:[#allocation2 + $0x10a] sm:$0xff] }
 0x30e   : > { %2141 = vst.msk [vmem:[#allocation5 + $0x28] sm:$0xff] %vm2135_vm9, %v2050_v22  ;;  %10189 = vmatprep.subr.mxu1 %v2586_v36 }
 0x30f   : > { %1972 = vst.msk [vmem:[#allocation5 + $0xf0] sm:$0xff] %vm1941_vm8, %v1906_v26  ;;  %2294 = vrot.lane.b32.xlu1 %v2199_v24, %s10509_s16  ;;  %2288 = vrot.lane.b32.xlu0 %v11776_v34, %s10509_s16  ;;  %v2382_v26 = vld [vmem:[#allocation2 + $0x12a] sm:$0xff] }
 0x310   : > { %10190 = vmatpush3.msra.mxu1 %v2586_v36 }
 0x311   : > { %v2054_v47 = vpop.permute.xlu1 %2053  ;;  %v2048_v21 = vpop.permute.xlu0 %2047 }
 0x312   : > { %2143 = vst.msk [vmem:[#allocation5 + $0x38] sm:$0xff] %vm2135_vm9, %v2054_v47  ;;  %2140 = vst.msk [vmem:[#allocation5 + $0x20] sm:$0xff] %vm2135_vm9, %v2048_v21  ;;  %v2381_v21 = vld [vmem:[#allocation2 + $0x122] sm:$0xff] }
 0x313   : > { %2427 = vrot.lane.b32.xlu1 %v2362_v30, %s10510_s14  ;;  %2292 = vrot.lane.b32.xlu0 %v2198_v15, %s10509_s16 }
 0x315   : > { %v2058_v34 = vpop.permute.xlu1 %2057  ;;  %v2052_v45 = vpop.permute.xlu0 %2051 }
 0x316   : > { %2145 = vst.msk [vmem:[#allocation5 + $0x48] sm:$0xff] %vm2135_vm9, %v2058_v34  ;;  %2142 = vst.msk [vmem:[#allocation5 + $0x30] sm:$0xff] %vm2135_vm9, %v2052_v45  ;;  %v15009_v34 = vmov 0.0  }
 0x317   : > { %2431 = vrot.lane.b32.xlu1 %v2364_v39, %s10510_s14  ;;  %2425 = vrot.lane.b32.xlu0 %v2361_v53, %s10510_s14  ;;  %2964 = vst.msk [vmem:[#allocation3 + $0x40] sm:$0xf] %vm2957_vm10, %v15009_v34  ;;  %2958 = vst.msk [vmem:[#allocation3 + $0x10] sm:$0xf] %vm2957_vm10, %v15009_v34  ;;  %v2392_v39 = vld [vmem:[#allocation2 + $0x1a2] sm:$0xff] }
 0x318   : > { %2961 = vst.msk [vmem:[#allocation3 + $0x28] sm:$0xf] %vm2957_vm10, %v15009_v34  ;;  %2967 = vst.msk [vmem:[#allocation3 + $0x58] sm:$0xf] %vm2957_vm10, %v15009_v34 }
 0x319   : > { %v2062_v48 = vpop.permute.xlu1 %2061  ;;  %v2056_v8 = vpop.permute.xlu0 %2055  ;;  %2970 = vst.msk [vmem:[#allocation3 + $0x70] sm:$0xf] %vm2957_vm10, %v15009_v34  ;;  %2973 = vst.msk [vmem:[#allocation3 + $0x88] sm:$0xf] %vm2957_vm10, %v15009_v34 }
 0x31a   : > { %2147 = vst.msk [vmem:[#allocation5 + $0x58] sm:$0xff] %vm2135_vm9, %v2062_v48  ;;  %2144 = vst.msk [vmem:[#allocation5 + $0x40] sm:$0xff] %vm2135_vm9, %v2056_v8 }
 0x31b   : > { %2435 = vrot.lane.b32.xlu1 %v2366_v63, %s10510_s14  ;;  %2429 = vrot.lane.b32.xlu0 %v2363_v23, %s10510_s14  ;;  %2976 = vst.msk [vmem:[#allocation3 + $0xa0] sm:$0xf] %vm2957_vm10, %v15009_v34  ;;  %2979 = vst.msk [vmem:[#allocation3 + $0xb8] sm:$0xf] %vm2957_vm10, %v15009_v34 }
 0x31c   : > { %2982 = vst.msk [vmem:[#allocation3 + $0xd0] sm:$0xf] %vm2957_vm10, %v15009_v34  ;;  %2985 = vst.msk [vmem:[#allocation3 + $0xe8] sm:$0xf] %vm2957_vm10, %v15009_v34 }
 0x31d   : > { %v2066_v17 = vpop.permute.xlu1 %2065  ;;  %v2060_v59 = vpop.permute.xlu0 %2059  ;;  %2988 = vst.msk [vmem:[#allocation3 + $0x100] sm:$0xf] %vm2957_vm10, %v15009_v34  ;;  %2991 = vst.msk [vmem:[#allocation3 + $0x118] sm:$0xf] %vm2957_vm10, %v15009_v34 }
 0x31e   : > { %2149 = vst.msk [vmem:[#allocation5 + $0x68] sm:$0xff] %vm2135_vm9, %v2066_v17  ;;  %2146 = vst.msk [vmem:[#allocation5 + $0x50] sm:$0xff] %vm2135_vm9, %v2060_v59 }
 0x31f   : > { %2439 = vrot.lane.b32.xlu1 %v2368_v33, %s10510_s14  ;;  %2433 = vrot.lane.b32.xlu0 %v2365_v54, %s10510_s14  ;;  %2994 = vst.msk [vmem:[#allocation3 + $0x130] sm:$0xf] %vm2957_vm10, %v15009_v34  ;;  %2997 = vst.msk [vmem:[#allocation3 + $0x148] sm:$0xf] %vm2957_vm10, %v15009_v34 }
 0x320   : > { %3000 = vst.msk [vmem:[#allocation3 + $0x160] sm:$0xf] %vm2957_vm10, %v15009_v34  ;;  %3003 = vst.msk [vmem:[#allocation3 + $0x178] sm:$0xf] %vm2957_vm10, %v15009_v34 }
 0x321   : > { %v2070_v41 = vpop.permute.xlu1 %2069  ;;  %v2064_v44 = vpop.permute.xlu0 %2063  ;;  %3006 = vst.msk [vmem:[#allocation3 + $0x190] sm:$0xf] %vm2957_vm10, %v15009_v34  ;;  %3009 = vst.msk [vmem:[#allocation3 + $0x1a8] sm:$0xf] %vm2957_vm10, %v15009_v34 }
 0x322   : > { %2151 = vst.msk [vmem:[#allocation5 + $0x78] sm:$0xff] %vm2135_vm9, %v2070_v41  ;;  %2148 = vst.msk [vmem:[#allocation5 + $0x60] sm:$0xff] %vm2135_vm9, %v2064_v44  ;;  %v15014_v41 = vld [vmem:[#allocation15_spill] sm:$0xff]  ;;  %v15015_v44 = vld [vmem:[#allocation14_spill] sm:$0xff] }
 0x323   : > { %2443 = vrot.lane.b32.xlu1 %v2370_v3, %s10510_s14  ;;  %2437 = vrot.lane.b32.xlu0 %v2367_v27, %s10510_s14  ;;  %3012 = vst.msk [vmem:[#allocation3 + $0x1c0] sm:$0xf] %vm2957_vm10, %v15009_v34  ;;  %3015 = vst.msk [vmem:[#allocation3 + $0x1d8] sm:$0xf] %vm2957_vm10, %v15009_v34  ;;  %v3210_v34 = vld [vmem:[#allocation3 + $0x9] sm:$0xff]  ;;  %vm6837_vm10 = vcmask 654944  }
 0x325   : > { %v2074_v51 = vpop.permute.xlu1 %2073  ;;  %v2068_v38 = vpop.permute.xlu0 %2067 }
 0x326   : > { %2153 = vst.msk [vmem:[#allocation5 + $0x88] sm:$0xff] %vm2135_vm9, %v2074_v51  ;;  %2150 = vst.msk [vmem:[#allocation5 + $0x70] sm:$0xff] %vm2135_vm9, %v2068_v38  ;;  %v15016_v51 = vld [vmem:[#allocation17_spill] sm:$0xff]  ;;  %v15017_v38 = vld [vmem:[#allocation16_spill] sm:$0xff] }
 0x327   : > { %2447 = vrot.lane.b32.xlu1 %v2372_v42, %s10510_s14  ;;  %2441 = vrot.lane.b32.xlu0 %v2369_v1, %s10510_s14 }
 0x329   : > { %v2078_v25 = vpop.permute.xlu1 %2077  ;;  %v2072_v31 = vpop.permute.xlu0 %2071 }
 0x32a   : > { %2155 = vst.msk [vmem:[#allocation5 + $0x98] sm:$0xff] %vm2135_vm9, %v2078_v25  ;;  %2152 = vst.msk [vmem:[#allocation5 + $0x80] sm:$0xff] %vm2135_vm9, %v2072_v31  ;;  %v15018_v25 = vld [vmem:[#allocation19_spill] sm:$0xff]  ;;  %v15019_v31 = vld [vmem:[#allocation18_spill] sm:$0xff] }
 0x32b   : > { %2451 = vrot.lane.b32.xlu1 %v2374_v57, %s10510_s14  ;;  %2445 = vrot.lane.b32.xlu0 %v2371_v37, %s10510_s14 }
 0x32d   : > { %v2082_v28 = vpop.permute.xlu1 %2081  ;;  %v2076_v5 = vpop.permute.xlu0 %2075 }
 0x32e   : > { %2157 = vst.msk [vmem:[#allocation5 + $0xa8] sm:$0xff] %vm2135_vm9, %v2082_v28  ;;  %2154 = vst.msk [vmem:[#allocation5 + $0x90] sm:$0xff] %vm2135_vm9, %v2076_v5  ;;  %v15020_v28 = vld [vmem:[#allocation21_spill] sm:$0xff]  ;;  %v15021_v5 = vld [vmem:[#allocation20_spill] sm:$0xff] }
 0x32f   : > { %2455 = vrot.lane.b32.xlu1 %v2376_v40, %s10510_s14  ;;  %2449 = vrot.lane.b32.xlu0 %v2373_v9, %s10510_s14 }
 0x331   : > { %v2086_v18 = vpop.permute.xlu1 %2085  ;;  %v2080_v14 = vpop.permute.xlu0 %2079 }
 0x332   : > { %2159 = vst.msk [vmem:[#allocation5 + $0xb8] sm:$0xff] %vm2135_vm9, %v2086_v18  ;;  %2156 = vst.msk [vmem:[#allocation5 + $0xa0] sm:$0xff] %vm2135_vm9, %v2080_v14  ;;  %v15022_v18 = vld [vmem:[#allocation23_spill] sm:$0xff]  ;;  %v15023_v14 = vld [vmem:[#allocation22_spill] sm:$0xff] }
 0x333   : > { %2459 = vrot.lane.b32.xlu1 %v2378_v2, %s10510_s14  ;;  %2453 = vrot.lane.b32.xlu0 %v2375_v35, %s10510_s14 }
 0x335   : > { %v2090_v50 = vpop.permute.xlu1 %2089  ;;  %v2084_v62 = vpop.permute.xlu0 %2083 }
 0x336   : > { %2161 = vst.msk [vmem:[#allocation5 + $0xc8] sm:$0xff] %vm2135_vm9, %v2090_v50  ;;  %2158 = vst.msk [vmem:[#allocation5 + $0xb0] sm:$0xff] %vm2135_vm9, %v2084_v62  ;;  %v15024_v50 = vld [vmem:[#allocation25_spill] sm:$0xff]  ;;  %v15025_v62 = vld [vmem:[#allocation24_spill] sm:$0xff] }
 0x337   : > { %2463 = vrot.lane.b32.xlu1 %v2380_v46, %s10510_s14  ;;  %2457 = vrot.lane.b32.xlu0 %v2377_v11, %s10510_s14 }
 0x339   : > { %v2094_v24 = vpop.permute.xlu1 %2093  ;;  %v2088_v22 = vpop.permute.xlu0 %2087 }
 0x33a   : > { %2163 = vst.msk [vmem:[#allocation5 + $0xd8] sm:$0xff] %vm2135_vm9, %v2094_v24  ;;  %2160 = vst.msk [vmem:[#allocation5 + $0xc0] sm:$0xff] %vm2135_vm9, %v2088_v22  ;;  %v15026_v24 = vld [vmem:[#allocation27_spill] sm:$0xff]  ;;  %v15027_v22 = vld [vmem:[#allocation26_spill] sm:$0xff] }
 0x33b   : > { %2467 = vrot.lane.b32.xlu1 %v2382_v26, %s10510_s14  ;;  %2461 = vrot.lane.b32.xlu0 %v2379_v56, %s10510_s14 }
 0x33d   : > { %v2098_v15 = vpop.permute.xlu1 %2097  ;;  %v2092_v47 = vpop.permute.xlu0 %2091 }
 0x33e   : > { %2165 = vst.msk [vmem:[#allocation5 + $0xe8] sm:$0xff] %vm2135_vm9, %v2098_v15  ;;  %2162 = vst.msk [vmem:[#allocation5 + $0xd0] sm:$0xff] %vm2135_vm9, %v2092_v47  ;;  %v15028_v15 = vld [vmem:[#allocation29_spill] sm:$0xff]  ;;  %v15029_v47 = vld [vmem:[#allocation28_spill] sm:$0xff] }
 0x33f   : > { %2471 = vrot.lane.b32.xlu1 %v11651_v12, %s10510_s14  ;;  %2465 = vrot.lane.b32.xlu0 %v2381_v21, %s10510_s14 }
 0x341   : > { %v2102_v36 = vpop.permute.xlu1 %2101  ;;  %v2096_v30 = vpop.permute.xlu0 %2095 }
 0x342   : > { %2167 = vst.msk [vmem:[#allocation5 + $0xf8] sm:$0xff] %vm2135_vm9, %v2102_v36  ;;  %2164 = vst.msk [vmem:[#allocation5 + $0xe0] sm:$0xff] %vm2135_vm9, %v2096_v30 }
 0x343   : > { %2475 = vrot.lane.b32.xlu1 %v11689_v32, %s10510_s14  ;;  %2469 = vrot.lane.b32.xlu0 %v11660_v20, %s10510_s14 }
 0x345   : > { %v2235_v20 = vpop.permute.xlu1 %2234  ;;  %v2100_v12 = vpop.permute.xlu0 %2099 }
 0x346   : > { %2330 = vst.msk [vmem:[#allocation5 + $0x8] sm:$0xff] %vm2328_vm11, %v2235_v20 }
 0x347   : > { %2166 = vst.msk [vmem:[#allocation5 + $0xf0] sm:$0xff] %vm2135_vm9, %v2100_v12  ;;  %2479 = vrot.lane.b32.xlu1 %v11727_v29, %s10510_s14  ;;  %2473 = vrot.lane.b32.xlu0 %v11698_v60, %s10510_s14  ;;  %v2391_v60 = vld [vmem:[#allocation2 + $0x19a] sm:$0xff] }
 0x348   : > { %v15030_v12 = vld [vmem:[#allocation30_spill] sm:$0xff] }
 0x349   : > { %v2239_v32 = vpop.permute.xlu1 %2238  ;;  %v2233_v45 = vpop.permute.xlu0 %2232 }
 0x34a   : > { %2332 = vst.msk [vmem:[#allocation5 + $0x18] sm:$0xff] %vm2328_vm11, %v2239_v32  ;;  %2329 = vst.msk [vmem:[#allocation5] sm:$0xff] %vm2328_vm11, %v2233_v45  ;;  %v3209_v32 = vld [vmem:[#allocation3 + $0x1] sm:$0xff] }
 0x34b   : > { %2483 = vrot.lane.b32.xlu1 %v11765_v6, %s10510_s14  ;;  %2477 = vrot.lane.b32.xlu0 %v11736_v43, %s10510_s14 }
 0x34d   : > { %v2243_v53 = vpop.permute.xlu1 %2242  ;;  %v2237_v48 = vpop.permute.xlu0 %2236 }
 0x34e   : > { %2334 = vst.msk [vmem:[#allocation5 + $0x28] sm:$0xff] %vm2328_vm11, %v2243_v53  ;;  %2331 = vst.msk [vmem:[#allocation5 + $0x10] sm:$0xff] %vm2328_vm11, %v2237_v48  ;;  %v3212_v48 = vld [vmem:[#allocation3 + $0x21] sm:$0xff] }
 0x34f   : > { %2487 = vrot.lane.b32.xlu1 %v2392_v39, %s10510_s14  ;;  %2481 = vrot.lane.b32.xlu0 %v11784_v19, %s10510_s14 }
 0x351   : > { %v2247_v29 = vpop.permute.xlu1 %2246  ;;  %v2241_v8 = vpop.permute.xlu0 %2240 }
 0x352   : > { %2336 = vst.msk [vmem:[#allocation5 + $0x38] sm:$0xff] %vm2328_vm11, %v2247_v29  ;;  %2333 = vst.msk [vmem:[#allocation5 + $0x20] sm:$0xff] %vm2328_vm11, %v2241_v8  ;;  %v3211_v29 = vld [vmem:[#allocation3 + $0x19] sm:$0xff] }
 0x353   : > { %3018 = vrot.lane.b32.xlu1 %v11002_v49, %s10511_s23  ;;  %2485 = vrot.lane.b32.xlu0 %v2391_v60, %s10510_s14 }
 0x355   : > { %v2251_v43 = vpop.permute.xlu1 %2250  ;;  %v2245_v6 = vpop.permute.xlu0 %2244 }
 0x356   : > { %2338 = vst.msk [vmem:[#allocation5 + $0x48] sm:$0xff] %vm2328_vm11, %v2251_v43  ;;  %2335 = vst.msk [vmem:[#allocation5 + $0x30] sm:$0xff] %vm2328_vm11, %v2245_v6 }
 0x357   : > { %3022 = vrot.lane.b32.xlu1 %v11018_v55, %s10511_s23  ;;  %3016 = vrot.lane.b32.xlu0 %v11010_v52, %s10511_s23 }
 0x359   : > { %v2255_v19 = vpop.permute.xlu1 %2254  ;;  %v2249_v63 = vpop.permute.xlu0 %2248 }
 0x35a   : > { %2340 = vst.msk [vmem:[#allocation5 + $0x58] sm:$0xff] %vm2328_vm11, %v2255_v19  ;;  %2337 = vst.msk [vmem:[#allocation5 + $0x40] sm:$0xff] %vm2328_vm11, %v2249_v63 }
 0x35b   : > { %3026 = vrot.lane.b32.xlu1 %v11034_v61, %s10511_s23  ;;  %3020 = vrot.lane.b32.xlu0 %v11026_v58, %s10511_s23 }
 0x35d   : > { %v2259_v49 = vpop.permute.xlu1 %2258  ;;  %v2253_v23 = vpop.permute.xlu0 %2252 }
 0x35e   : > { %2342 = vst.msk [vmem:[#allocation5 + $0x68] sm:$0xff] %vm2328_vm11, %v2259_v49  ;;  %2339 = vst.msk [vmem:[#allocation5 + $0x50] sm:$0xff] %vm2328_vm11, %v2253_v23 }
 0x35f   : > { %3030 = vrot.lane.b32.xlu1 %v11050_v4, %s10511_s23  ;;  %3024 = vrot.lane.b32.xlu0 %v11042_v0, %s10511_s23 }
 0x361   : > { %v2263_v52 = vpop.permute.xlu1 %2262  ;;  %v2257_v55 = vpop.permute.xlu0 %2256 }
 0x362   : > { %2344 = vst.msk [vmem:[#allocation5 + $0x78] sm:$0xff] %vm2328_vm11, %v2263_v52  ;;  %2341 = vst.msk [vmem:[#allocation5 + $0x60] sm:$0xff] %vm2328_vm11, %v2257_v55 }
 0x363   : > { %3034 = vrot.lane.b32.xlu1 %v11064_v10, %s10511_s23  ;;  %3028 = vrot.lane.b32.xlu0 %v11058_v7, %s10511_s23  ;;  %v15010_v7 = vld [vmem:[#allocation11_spill] sm:$0xff]  ;;  %v15011_v10 = vld [vmem:[#allocation10_spill] sm:$0xff] }
 0x365   : > { %v2267_v58 = vpop.permute.xlu1 %2266  ;;  %v2261_v61 = vpop.permute.xlu0 %2260 }
 0x366   : > { %2346 = vst.msk [vmem:[#allocation5 + $0x88] sm:$0xff] %vm2328_vm11, %v2267_v58  ;;  %2343 = vst.msk [vmem:[#allocation5 + $0x70] sm:$0xff] %vm2328_vm11, %v2261_v61 }
 0x367   : > { %3038 = vrot.lane.b32.xlu1 %v11080_v16, %s10511_s23  ;;  %3032 = vrot.lane.b32.xlu0 %v11074_v13, %s10511_s23  ;;  %v15012_v13 = vld [vmem:[#allocation13_spill] sm:$0xff]  ;;  %v15013_v16 = vld [vmem:[#allocation12_spill] sm:$0xff] }
 0x369   : > { %v2271_v0 = vpop.permute.xlu1 %2270  ;;  %v2265_v4 = vpop.permute.xlu0 %2264 }
 0x36a   : > { %2348 = vst.msk [vmem:[#allocation5 + $0x98] sm:$0xff] %vm2328_vm11, %v2271_v0  ;;  %2345 = vst.msk [vmem:[#allocation5 + $0x80] sm:$0xff] %vm2328_vm11, %v2265_v4 }
 0x36b   : > { %3042 = vrot.lane.b32.xlu1 %v15010_v7, %s10511_s23  ;;  %3036 = vrot.lane.b32.xlu0 %v15011_v10, %s10511_s23 }
 0x36d   : > { %v2275_v17 = vpop.permute.xlu1 %2274  ;;  %v2269_v59 = vpop.permute.xlu0 %2268 }
 0x36e   : > { %2350 = vst.msk [vmem:[#allocation5 + $0xa8] sm:$0xff] %vm2328_vm11, %v2275_v17  ;;  %2347 = vst.msk [vmem:[#allocation5 + $0x90] sm:$0xff] %vm2328_vm11, %v2269_v59 }
 0x36f   : > { %3046 = vrot.lane.b32.xlu1 %v15012_v13, %s10511_s23  ;;  %3040 = vrot.lane.b32.xlu0 %v15013_v16, %s10511_s23 }
 0x371   : > { %v2279_v33 = vpop.permute.xlu1 %2278  ;;  %v2273_v54 = vpop.permute.xlu0 %2272 }
 0x372   : > { %2352 = vst.msk [vmem:[#allocation5 + $0xb8] sm:$0xff] %vm2328_vm11, %v2279_v33  ;;  %2349 = vst.msk [vmem:[#allocation5 + $0xa0] sm:$0xff] %vm2328_vm11, %v2273_v54 }
 0x373   : > { %3050 = vrot.lane.b32.xlu1 %v15014_v41, %s10511_s23  ;;  %3044 = vrot.lane.b32.xlu0 %v15015_v44, %s10511_s23 }
 0x375   : > { %v2283_v3 = vpop.permute.xlu1 %2282  ;;  %v2277_v27 = vpop.permute.xlu0 %2276 }
 0x376   : > { %2354 = vst.msk [vmem:[#allocation5 + $0xc8] sm:$0xff] %vm2328_vm11, %v2283_v3  ;;  %2351 = vst.msk [vmem:[#allocation5 + $0xb0] sm:$0xff] %vm2328_vm11, %v2277_v27 }
 0x377   : > { %3054 = vrot.lane.b32.xlu1 %v15016_v51, %s10511_s23  ;;  %3048 = vrot.lane.b32.xlu0 %v15017_v38, %s10511_s23 }
 0x379   : > { %v2287_v42 = vpop.permute.xlu1 %2286  ;;  %v2281_v1 = vpop.permute.xlu0 %2280 }
 0x37a   : > { %2356 = vst.msk [vmem:[#allocation5 + $0xd8] sm:$0xff] %vm2328_vm11, %v2287_v42  ;;  %2353 = vst.msk [vmem:[#allocation5 + $0xc0] sm:$0xff] %vm2328_vm11, %v2281_v1 }
 0x37b   : > { %3058 = vrot.lane.b32.xlu1 %v15018_v25, %s10511_s23  ;;  %3052 = vrot.lane.b32.xlu0 %v15019_v31, %s10511_s23 }
 0x37d   : > { %v2291_v57 = vpop.permute.xlu1 %2290  ;;  %v2285_v37 = vpop.permute.xlu0 %2284 }
 0x37e   : > { %2358 = vst.msk [vmem:[#allocation5 + $0xe8] sm:$0xff] %vm2328_vm11, %v2291_v57  ;;  %2355 = vst.msk [vmem:[#allocation5 + $0xd0] sm:$0xff] %vm2328_vm11, %v2285_v37 }
 0x37f   : > { %3062 = vrot.lane.b32.xlu1 %v15020_v28, %s10511_s23  ;;  %3056 = vrot.lane.b32.xlu0 %v15021_v5, %s10511_s23 }
 0x381   : > { %v2295_v40 = vpop.permute.xlu1 %2294  ;;  %v2289_v9 = vpop.permute.xlu0 %2288 }
 0x382   : > { %2360 = vst.msk [vmem:[#allocation5 + $0xf8] sm:$0xff] %vm2328_vm11, %v2295_v40  ;;  %2357 = vst.msk [vmem:[#allocation5 + $0xe0] sm:$0xff] %vm2328_vm11, %v2289_v9  ;;  %v3146_v9 = vld [vmem:[#allocation3 + $0x8] sm:$0xff] }
 0x383   : > { %3066 = vrot.lane.b32.xlu1 %v15022_v18, %s10511_s23  ;;  %3060 = vrot.lane.b32.xlu0 %v15023_v14, %s10511_s23  ;;  %v3145_v18 = vld [vmem:[#allocation3] sm:$0xff]  ;;  %3178 = vst.msk [vmem:[#allocation6 + $0x8] sm:$0xff] %vm371_vm1, %v3146_v9 }
 0x384   : > { %3177 = vst.msk [vmem:[#allocation6] sm:$0xff] %vm371_vm1, %v3145_v18 }
 0x385   : > { %v2428_v2 = vpop.permute.xlu1 %2427  ;;  %v2293_v35 = vpop.permute.xlu0 %2292 }
 0x386   : > { %2523 = vst.msk [vmem:[#allocation5 + $0x8] sm:$0xff] %vm2521_vm12, %v2428_v2 }
 0x387   : > { %2359 = vst.msk [vmem:[#allocation5 + $0xf0] sm:$0xff] %vm2328_vm11, %v2293_v35  ;;  %3070 = vrot.lane.b32.xlu1 %v15024_v50, %s10511_s23  ;;  %3064 = vrot.lane.b32.xlu0 %v15025_v62, %s10511_s23  ;;  %v12224_v62 = vld [vmem:[#allocation3 + $0x20] sm:$0xff] }
 0x388   : > { %3180 = vst.msk [vmem:[#allocation6 + $0x18] sm:$0xff] %vm371_vm1, %v12224_v62 }
 0x389   : > { %v2432_v46 = vpop.permute.xlu1 %2431  ;;  %v2426_v11 = vpop.permute.xlu0 %2425 }
 0x38a   : > { %2525 = vst.msk [vmem:[#allocation5 + $0x18] sm:$0xff] %vm2521_vm12, %v2432_v46  ;;  %2522 = vst.msk [vmem:[#allocation5] sm:$0xff] %vm2521_vm12, %v2426_v11  ;;  %v12226_v46 = vld [vmem:[#allocation3 + $0x18] sm:$0xff] }
 0x38b   : > { %3074 = vrot.lane.b32.xlu1 %v15026_v24, %s10511_s23  ;;  %3068 = vrot.lane.b32.xlu0 %v15027_v22, %s10511_s23  ;;  %3179 = vst.msk [vmem:[#allocation6 + $0x10] sm:$0xff] %vm371_vm1, %v12226_v46 }
 0x38d   : > { %v2436_v26 = vpop.permute.xlu1 %2435  ;;  %v2430_v56 = vpop.permute.xlu0 %2429  ;;  %v2555_v20 = vld [vmem:[#allocation5 + $0x8] sm:$0xff] }
 0x38e   : > { %2527 = vst.msk [vmem:[#allocation5 + $0x28] sm:$0xff] %vm2521_vm12, %v2436_v26  ;;  %2524 = vst.msk [vmem:[#allocation5 + $0x10] sm:$0xff] %vm2521_vm12, %v2430_v56 }
 0x38f   : > { %3078 = vrot.lane.b32.xlu1 %v15028_v15, %s10511_s23  ;;  %3072 = vrot.lane.b32.xlu0 %v15029_v47, %s10511_s23 }
 0x391   : > { %v2440_v21 = vpop.permute.xlu1 %2439  ;;  %v2434_v36 = vpop.permute.xlu0 %2433  ;;  %v2554_v30 = vld [vmem:[#allocation5] sm:$0xff]  ;;  %v2557_v60 = vld [vmem:[#allocation5 + $0x18] sm:$0xff] }
 0x392   : > { %2529 = vst.msk [vmem:[#allocation5 + $0x38] sm:$0xff] %vm2521_vm12, %v2440_v21  ;;  %2526 = vst.msk [vmem:[#allocation5 + $0x20] sm:$0xff] %vm2521_vm12, %v2434_v36  ;;  %10191 = vmatprep.mubr.msk.f32.mxu1 %vm2598_vm13, %v2554_v30 }
 0x393   : > { %3076 = vrot.lane.b32.xlu0 %v15030_v12, %s10511_s23  ;;  %10192 = vmatmul.mubr.msk.f32.vlgmr.msra.gmra.mxu1 %vm2598_vm13, %v2555_v20  ;;  %s10519_s23 = smov 64  }
 0x394   : > { %3275 = vrot.lane.b32.xlu1 %v3210_v34, %s10502_s28 }
 0x395   : > { %v2444_v45 = vpop.permute.xlu1 %2443  ;;  %v2438_v39 = vpop.permute.xlu0 %2437  ;;  %v2556_v53 = vld [vmem:[#allocation5 + $0x10] sm:$0xff]  ;;  %v2559_v19 = vld [vmem:[#allocation5 + $0x28] sm:$0xff] }
 0x396   : > { %2531 = vst.msk [vmem:[#allocation5 + $0x48] sm:$0xff] %vm2521_vm12, %v2444_v45  ;;  %2528 = vst.msk [vmem:[#allocation5 + $0x30] sm:$0xff] %vm2521_vm12, %v2438_v39  ;;  %10194 = vmatprep.mubr.msk.f32.mxu1 %vm2598_vm13, %v2556_v53 }
 0x397   : > { %10195 = vmatmul.mubr.msk.f32.gmra.mxu1 %vm2598_vm13, %v2557_v60  ;;  %3273 = vrot.lane.b32.xlu0 %v3209_v32, %s10502_s28 }
 0x398   : > { %3279 = vrot.lane.b32.xlu1 %v3212_v48, %s10502_s28 }
 0x399   : > { %v2448_v8 = vpop.permute.xlu1 %2447  ;;  %v2442_v43 = vpop.permute.xlu0 %2441  ;;  %v2558_v6 = vld [vmem:[#allocation5 + $0x20] sm:$0xff]  ;;  %v2561_v52 = vld [vmem:[#allocation5 + $0x38] sm:$0xff] }
 0x39a   : > { %2533 = vst.msk [vmem:[#allocation5 + $0x58] sm:$0xff] %vm2521_vm12, %v2448_v8  ;;  %2530 = vst.msk [vmem:[#allocation5 + $0x40] sm:$0xff] %vm2521_vm12, %v2442_v43  ;;  %10197 = vmatprep.mubr.msk.f32.mxu1 %vm2598_vm13, %v2558_v6 }
 0x39b   : > { %10198 = vmatmul.mubr.msk.f32.gmra.mxu1 %vm2598_vm13, %v2559_v19  ;;  %3277 = vrot.lane.b32.xlu0 %v3211_v29, %s10502_s28 }
 0x39d   : > { %v2452_v63 = vpop.permute.xlu1 %2451  ;;  %v2446_v49 = vpop.permute.xlu0 %2445  ;;  %v2560_v23 = vld [vmem:[#allocation5 + $0x30] sm:$0xff]  ;;  %v2563_v0 = vld [vmem:[#allocation5 + $0x48] sm:$0xff] }
 0x39e   : > { %2535 = vst.msk [vmem:[#allocation5 + $0x68] sm:$0xff] %vm2521_vm12, %v2452_v63  ;;  %2532 = vst.msk [vmem:[#allocation5 + $0x50] sm:$0xff] %vm2521_vm12, %v2446_v49  ;;  %10200 = vmatprep.mubr.msk.f32.mxu1 %vm2598_vm13, %v2560_v23 }
 0x39f   : > { %10201 = vmatmul.mubr.msk.f32.gmra.mxu1 %vm2598_vm13, %v2561_v52 }
 0x3a1   : > { %v2456_v55 = vpop.permute.xlu1 %2455  ;;  %v2450_v58 = vpop.permute.xlu0 %2449  ;;  %v2562_v61 = vld [vmem:[#allocation5 + $0x40] sm:$0xff]  ;;  %v2565_v17 = vld [vmem:[#allocation5 + $0x58] sm:$0xff] }
 0x3a2   : > { %2537 = vst.msk [vmem:[#allocation5 + $0x78] sm:$0xff] %vm2521_vm12, %v2456_v55  ;;  %2534 = vst.msk [vmem:[#allocation5 + $0x60] sm:$0xff] %vm2521_vm12, %v2450_v58  ;;  %10203 = vmatprep.mubr.msk.f32.mxu1 %vm2598_vm13, %v2562_v61 }
 0x3a3   : > { %10204 = vmatmul.mubr.msk.f32.gmra.mxu1 %vm2598_vm13, %v2563_v0 }
 0x3a5   : > { %v2460_v4 = vpop.permute.xlu1 %2459  ;;  %v2454_v7 = vpop.permute.xlu0 %2453  ;;  %v2564_v10 = vld [vmem:[#allocation5 + $0x50] sm:$0xff]  ;;  %v2567_v33 = vld [vmem:[#allocation5 + $0x68] sm:$0xff] }
 0x3a6   : > { %2539 = vst.msk [vmem:[#allocation5 + $0x88] sm:$0xff] %vm2521_vm12, %v2460_v4  ;;  %2536 = vst.msk [vmem:[#allocation5 + $0x70] sm:$0xff] %vm2521_vm12, %v2454_v7  ;;  %10206 = vmatprep.mubr.msk.f32.mxu1 %vm2598_vm13, %v2564_v10 }
 0x3a7   : > { %10207 = vmatmul.mubr.msk.f32.gmra.mxu1 %vm2598_vm13, %v2565_v17 }
 0x3a9   : > { %v2464_v59 = vpop.permute.xlu1 %2463  ;;  %v2458_v13 = vpop.permute.xlu0 %2457  ;;  %v2566_v16 = vld [vmem:[#allocation5 + $0x60] sm:$0xff]  ;;  %v2569_v3 = vld [vmem:[#allocation5 + $0x78] sm:$0xff] }
 0x3aa   : > { %2541 = vst.msk [vmem:[#allocation5 + $0x98] sm:$0xff] %vm2521_vm12, %v2464_v59  ;;  %2538 = vst.msk [vmem:[#allocation5 + $0x80] sm:$0xff] %vm2521_vm12, %v2458_v13  ;;  %10209 = vmatprep.mubr.msk.f32.mxu1 %vm2598_vm13, %v2566_v16 }
 0x3ab   : > { %10210 = vmatmul.mubr.msk.f32.gmra.mxu1 %vm2598_vm13, %v2567_v33 }
 0x3ad   : > { %v2468_v54 = vpop.permute.xlu1 %2467  ;;  %v2462_v41 = vpop.permute.xlu0 %2461  ;;  %v2568_v44 = vld [vmem:[#allocation5 + $0x70] sm:$0xff]  ;;  %v2571_v42 = vld [vmem:[#allocation5 + $0x88] sm:$0xff] }
 0x3ae   : > { %2543 = vst.msk [vmem:[#allocation5 + $0xa8] sm:$0xff] %vm2521_vm12, %v2468_v54  ;;  %2540 = vst.msk [vmem:[#allocation5 + $0x90] sm:$0xff] %vm2521_vm12, %v2462_v41  ;;  %10212 = vmatprep.mubr.msk.f32.mxu1 %vm2598_vm13, %v2568_v44 }
 0x3af   : > { %10213 = vmatmul.mubr.msk.f32.gmra.mxu1 %vm2598_vm13, %v2569_v3 }
 0x3b1   : > { %v2472_v27 = vpop.permute.xlu1 %2471  ;;  %v2466_v51 = vpop.permute.xlu0 %2465  ;;  %v2570_v38 = vld [vmem:[#allocation5 + $0x80] sm:$0xff]  ;;  %v2573_v57 = vld [vmem:[#allocation5 + $0x98] sm:$0xff] }
 0x3b2   : > { %2545 = vst.msk [vmem:[#allocation5 + $0xb8] sm:$0xff] %vm2521_vm12, %v2472_v27  ;;  %2542 = vst.msk [vmem:[#allocation5 + $0xa0] sm:$0xff] %vm2521_vm12, %v2466_v51  ;;  %10215 = vmatprep.mubr.msk.f32.mxu1 %vm2598_vm13, %v2570_v38 }
 0x3b3   : > { %10216 = vmatmul.mubr.msk.f32.gmra.mxu1 %vm2598_vm13, %v2571_v42 }
 0x3b5   : > { %v2476_v1 = vpop.permute.xlu1 %2475  ;;  %v2470_v25 = vpop.permute.xlu0 %2469  ;;  %v2572_v31 = vld [vmem:[#allocation5 + $0x90] sm:$0xff]  ;;  %v2575_v40 = vld [vmem:[#allocation5 + $0xa8] sm:$0xff] }
 0x3b6   : > { %2547 = vst.msk [vmem:[#allocation5 + $0xc8] sm:$0xff] %vm2521_vm12, %v2476_v1  ;;  %2544 = vst.msk [vmem:[#allocation5 + $0xb0] sm:$0xff] %vm2521_vm12, %v2470_v25  ;;  %10218 = vmatprep.mubr.msk.f32.mxu1 %vm2598_vm13, %v2572_v31 }
 0x3b7   : > { %10219 = vmatmul.mubr.msk.f32.gmra.mxu1 %vm2598_vm13, %v2573_v57 }
 0x3b9   : > { %v2480_v37 = vpop.permute.xlu1 %2479  ;;  %v2474_v28 = vpop.permute.xlu0 %2473  ;;  %v2574_v5 = vld [vmem:[#allocation5 + $0xa0] sm:$0xff]  ;;  %v2577_v50 = vld [vmem:[#allocation5 + $0xb8] sm:$0xff] }
 0x3ba   : > { %2549 = vst.msk [vmem:[#allocation5 + $0xd8] sm:$0xff] %vm2521_vm12, %v2480_v37  ;;  %2546 = vst.msk [vmem:[#allocation5 + $0xc0] sm:$0xff] %vm2521_vm12, %v2474_v28  ;;  %10221 = vmatprep.mubr.msk.f32.mxu1 %vm2598_vm13, %v2574_v5 }
 0x3bb   : > { %10222 = vmatmul.mubr.msk.f32.gmra.mxu1 %vm2598_vm13, %v2575_v40 }
 0x3bd   : > { %v2484_v14 = vpop.permute.xlu1 %2483  ;;  %v2478_v2 = vpop.permute.xlu0 %2477  ;;  %v2576_v35 = vld [vmem:[#allocation5 + $0xb0] sm:$0xff]  ;;  %v2579_v26 = vld [vmem:[#allocation5 + $0xc8] sm:$0xff] }
 0x3be   : > { %2551 = vst.msk [vmem:[#allocation5 + $0xe8] sm:$0xff] %vm2521_vm12, %v2484_v14  ;;  %2548 = vst.msk [vmem:[#allocation5 + $0xd0] sm:$0xff] %vm2521_vm12, %v2478_v2  ;;  %10224 = vmatprep.mubr.msk.f32.mxu1 %vm2598_vm13, %v2576_v35 }
 0x3bf   : > { %10225 = vmatmul.mubr.msk.f32.gmra.mxu1 %vm2598_vm13, %v2577_v50 }
 0x3c1   : > { %v2488_v11 = vpop.permute.xlu1 %2487  ;;  %v2482_v24 = vpop.permute.xlu0 %2481  ;;  %v2578_v22 = vld [vmem:[#allocation5 + $0xc0] sm:$0xff]  ;;  %v2581_v21 = vld [vmem:[#allocation5 + $0xd8] sm:$0xff] }
 0x3c2   : > { %2553 = vst.msk [vmem:[#allocation5 + $0xf8] sm:$0xff] %vm2521_vm12, %v2488_v11  ;;  %2550 = vst.msk [vmem:[#allocation5 + $0xe0] sm:$0xff] %vm2521_vm12, %v2482_v24  ;;  %10227 = vmatprep.mubr.msk.f32.mxu1 %vm2598_vm13, %v2578_v22 }
 0x3c3   : > { %10228 = vmatmul.mubr.msk.f32.gmra.mxu1 %vm2598_vm13, %v2579_v26 }
 0x3c5   : > { %v3019_v56 = vpop.permute.xlu1 %3018  ;;  %v2486_v15 = vpop.permute.xlu0 %2485  ;;  %v2580_v47 = vld [vmem:[#allocation5 + $0xd0] sm:$0xff]  ;;  %v2583_v20 = vld [vmem:[#allocation5 + $0xe8] sm:$0xff] }
 0x3c6   : > { %3114 = vst.msk [vmem:[#allocation3 + $0x3a] sm:$0xff] %vm371_vm1, %v3019_v56  ;;  %10230 = vmatprep.mubr.msk.f32.mxu1 %vm2598_vm13, %v2580_v47 }
 0x3c7   : > { %2552 = vst.msk [vmem:[#allocation5 + $0xf0] sm:$0xff] %vm2521_vm12, %v2486_v15  ;;  %10231 = vmatmul.mubr.msk.f32.gmra.mxu1 %vm2598_vm13, %v2581_v21 }
 0x3c9   : > { %v3023_v36 = vpop.permute.xlu1 %3022  ;;  %v3017_v30 = vpop.permute.xlu0 %3016  ;;  %v2582_v34 = vld [vmem:[#allocation5 + $0xe0] sm:$0xff]  ;;  %v2585_v12 = vld [vmem:[#allocation5 + $0xf8] sm:$0xff] }
 0x3ca   : > { %3116 = vst.msk [vmem:[#allocation3 + $0x52] sm:$0xff] %vm371_vm1, %v3023_v36  ;;  %3113 = vst.msk [vmem:[#allocation3 + $0x32] sm:$0xff] %vm371_vm1, %v3017_v30  ;;  %10233 = vmatprep.mubr.msk.f32.mxu1 %vm2598_vm13, %v2582_v34 }
 0x3cb   : > { %10234 = vmatmul.mubr.msk.f32.gmra.mxu1 %vm2598_vm13, %v2583_v20 }
 0x3cd   : > { %v3027_v32 = vpop.permute.xlu1 %3026  ;;  %v3021_v45 = vpop.permute.xlu0 %3020 }
 0x3ce   : > { %v2584_v39 = vld [vmem:[#allocation5 + $0xf0] sm:$0xff]  ;;  %3118 = vst.msk [vmem:[#allocation3 + $0x6a] sm:$0xff] %vm371_vm1, %v3027_v32  ;;  %3115 = vst.msk [vmem:[#allocation3 + $0x4a] sm:$0xff] %vm371_vm1, %v3021_v45 }
 0x3cf   : > { %10236 = vmatprep.mubr.msk.f32.mxu1 %vm2598_vm13, %v2584_v39 }
 0x3d0   : > { %10237 = vmatmul.mubr.msk.f32.gmra.mxu1 %vm2598_vm13, %v2585_v12  ;;  %vm7417_vm13 = vcmask 753344  }
 0x3d1   : > { %v3031_v53 = vpop.permute.xlu1 %3030  ;;  %v3025_v48 = vpop.permute.xlu0 %3024  ;;  %v3214_v60 = vld [vmem:[#allocation3 + $0x39] sm:$0xff]  ;;  %v3213_v29 = vld [vmem:[#allocation3 + $0x31] sm:$0xff] }
 0x3d2   : > { %3120 = vst.msk [vmem:[#allocation3 + $0x82] sm:$0xff] %vm371_vm1, %v3031_v53  ;;  %3117 = vst.msk [vmem:[#allocation3 + $0x62] sm:$0xff] %vm371_vm1, %v3025_v48  ;;  %3283 = vrot.lane.b32.xlu1 %v3214_v60, %s10502_s28  ;;  %3281 = vrot.lane.b32.xlu0 %v3213_v29, %s10502_s28  ;;  %v12253_v8 = vld [vmem:[#allocation3 + $0x38] sm:$0xff]  ;;  %v12255_v43 = vld [vmem:[#allocation3 + $0x30] sm:$0xff] }
 0x3d3   : > { %3182 = vst.msk [vmem:[#allocation6 + $0x28] sm:$0xff] %vm371_vm1, %v12253_v8  ;;  %3181 = vst.msk [vmem:[#allocation6 + $0x20] sm:$0xff] %vm371_vm1, %v12255_v43 }
 0x3d5   : > { %v3035_v6 = vpop.permute.xlu1 %3034  ;;  %v3029_v19 = vpop.permute.xlu0 %3028  ;;  %v3216_v63 = vld [vmem:[#allocation3 + $0x51] sm:$0xff]  ;;  %v3215_v49 = vld [vmem:[#allocation3 + $0x49] sm:$0xff] }
 0x3d6   : > { %3122 = vst.msk [vmem:[#allocation3 + $0x9a] sm:$0xff] %vm371_vm1, %v3035_v6  ;;  %3119 = vst.msk [vmem:[#allocation3 + $0x7a] sm:$0xff] %vm371_vm1, %v3029_v19  ;;  %3287 = vrot.lane.b32.xlu1 %v3216_v63, %s10502_s28  ;;  %3285 = vrot.lane.b32.xlu0 %v3215_v49, %s10502_s28  ;;  %v12265_v23 = vld [vmem:[#allocation3 + $0x50] sm:$0xff]  ;;  %v12267_v52 = vld [vmem:[#allocation3 + $0x48] sm:$0xff] }
 0x3d7   : > { %3184 = vst.msk [vmem:[#allocation6 + $0x38] sm:$0xff] %vm371_vm1, %v12265_v23  ;;  %3183 = vst.msk [vmem:[#allocation6 + $0x30] sm:$0xff] %vm371_vm1, %v12267_v52 }
 0x3d9   : > { %v3039_v55 = vpop.permute.xlu1 %3038  ;;  %v3033_v58 = vpop.permute.xlu0 %3032  ;;  %v3218_v61 = vld [vmem:[#allocation3 + $0x69] sm:$0xff]  ;;  %v3217_v0 = vld [vmem:[#allocation3 + $0x61] sm:$0xff] }
 0x3da   : > { %3124 = vst.msk [vmem:[#allocation3 + $0xb2] sm:$0xff] %vm371_vm1, %v3039_v55  ;;  %3121 = vst.msk [vmem:[#allocation3 + $0x92] sm:$0xff] %vm371_vm1, %v3033_v58  ;;  %3291 = vrot.lane.b32.xlu1 %v3218_v61, %s10502_s28  ;;  %3289 = vrot.lane.b32.xlu0 %v3217_v0, %s10502_s28  ;;  %v12277_v4 = vld [vmem:[#allocation3 + $0x68] sm:$0xff]  ;;  %v12279_v7 = vld [vmem:[#allocation3 + $0x60] sm:$0xff] }
 0x3db   : > { %3186 = vst.msk [vmem:[#allocation6 + $0x48] sm:$0xff] %vm371_vm1, %v12277_v4  ;;  %3185 = vst.msk [vmem:[#allocation6 + $0x40] sm:$0xff] %vm371_vm1, %v12279_v7 }
 0x3dd   : > { %v3043_v10 = vpop.permute.xlu1 %3042  ;;  %v3037_v17 = vpop.permute.xlu0 %3036  ;;  %v3220_v59 = vld [vmem:[#allocation3 + $0x81] sm:$0xff]  ;;  %v3219_v13 = vld [vmem:[#allocation3 + $0x79] sm:$0xff] }
 0x3de   : > { %3126 = vst.msk [vmem:[#allocation3 + $0xca] sm:$0xff] %vm371_vm1, %v3043_v10  ;;  %3123 = vst.msk [vmem:[#allocation3 + $0xaa] sm:$0xff] %vm371_vm1, %v3037_v17  ;;  %3295 = vrot.lane.b32.xlu1 %v3220_v59, %s10502_s28  ;;  %3293 = vrot.lane.b32.xlu0 %v3219_v13, %s10502_s28  ;;  %v12289_v16 = vld [vmem:[#allocation3 + $0x80] sm:$0xff]  ;;  %v12291_v33 = vld [vmem:[#allocation3 + $0x78] sm:$0xff] }
 0x3df   : > { %3188 = vst.msk [vmem:[#allocation6 + $0x58] sm:$0xff] %vm371_vm1, %v12289_v16  ;;  %3187 = vst.msk [vmem:[#allocation6 + $0x50] sm:$0xff] %vm371_vm1, %v12291_v33 }
 0x3e1   : > { %v3047_v54 = vpop.permute.xlu1 %3046  ;;  %v3041_v41 = vpop.permute.xlu0 %3040  ;;  %v3222_v44 = vld [vmem:[#allocation3 + $0x99] sm:$0xff]  ;;  %v3221_v3 = vld [vmem:[#allocation3 + $0x91] sm:$0xff] }
 0x3e2   : > { %3128 = vst.msk [vmem:[#allocation3 + $0xe2] sm:$0xff] %vm371_vm1, %v3047_v54  ;;  %3125 = vst.msk [vmem:[#allocation3 + $0xc2] sm:$0xff] %vm371_vm1, %v3041_v41  ;;  %3299 = vrot.lane.b32.xlu1 %v3222_v44, %s10502_s28  ;;  %3297 = vrot.lane.b32.xlu0 %v3221_v3, %s10502_s28  ;;  %v12301_v27 = vld [vmem:[#allocation3 + $0x98] sm:$0xff]  ;;  %v12303_v51 = vld [vmem:[#allocation3 + $0x90] sm:$0xff] }
 0x3e3   : > { %3190 = vst.msk [vmem:[#allocation6 + $0x68] sm:$0xff] %vm371_vm1, %v12301_v27  ;;  %3189 = vst.msk [vmem:[#allocation6 + $0x60] sm:$0xff] %vm371_vm1, %v12303_v51 }
 0x3e5   : > { %v3051_v38 = vpop.permute.xlu1 %3050  ;;  %v3045_v42 = vpop.permute.xlu0 %3044  ;;  %v3224_v1 = vld [vmem:[#allocation3 + $0xb1] sm:$0xff]  ;;  %v3223_v25 = vld [vmem:[#allocation3 + $0xa9] sm:$0xff] }
 0x3e6   : > { %3130 = vst.msk [vmem:[#allocation3 + $0xfa] sm:$0xff] %vm371_vm1, %v3051_v38  ;;  %3127 = vst.msk [vmem:[#allocation3 + $0xda] sm:$0xff] %vm371_vm1, %v3045_v42  ;;  %3303 = vrot.lane.b32.xlu1 %v3224_v1, %s10502_s28  ;;  %3301 = vrot.lane.b32.xlu0 %v3223_v25, %s10502_s28  ;;  %v12313_v31 = vld [vmem:[#allocation3 + $0xb0] sm:$0xff]  ;;  %v12315_v57 = vld [vmem:[#allocation3 + $0xa8] sm:$0xff] }
 0x3e7   : > { %3192 = vst.msk [vmem:[#allocation6 + $0x78] sm:$0xff] %vm371_vm1, %v12313_v31  ;;  %3191 = vst.msk [vmem:[#allocation6 + $0x70] sm:$0xff] %vm371_vm1, %v12315_v57  ;;  %v3402_v1 = vld [vmem:[#allocation3 + $0xa] sm:$0xff]  ;;  %v3401_v25 = vld [vmem:[#allocation3 + $0x2] sm:$0xff] }
 0x3e9   : > { %v3055_v37 = vpop.permute.xlu1 %3054  ;;  %v3049_v28 = vpop.permute.xlu0 %3048  ;;  %v3226_v5 = vld [vmem:[#allocation3 + $0xc9] sm:$0xff]  ;;  %v3225_v40 = vld [vmem:[#allocation3 + $0xc1] sm:$0xff] }
 0x3ea   : > { %3132 = vst.msk [vmem:[#allocation3 + $0x112] sm:$0xff] %vm371_vm1, %v3055_v37  ;;  %3129 = vst.msk [vmem:[#allocation3 + $0xf2] sm:$0xff] %vm371_vm1, %v3049_v28  ;;  %3307 = vrot.lane.b32.xlu1 %v3226_v5, %s10502_s28  ;;  %3305 = vrot.lane.b32.xlu0 %v3225_v40, %s10502_s28  ;;  %v12325_v9 = vld [vmem:[#allocation3 + $0xc8] sm:$0xff]  ;;  %v12327_v18 = vld [vmem:[#allocation3 + $0xc0] sm:$0xff] }
 0x3eb   : > { %3194 = vst.msk [vmem:[#allocation6 + $0x88] sm:$0xff] %vm371_vm1, %v12325_v9  ;;  %3193 = vst.msk [vmem:[#allocation6 + $0x80] sm:$0xff] %vm371_vm1, %v12327_v18  ;;  %v3404_v5 = vld [vmem:[#allocation3 + $0x22] sm:$0xff]  ;;  %v3403_v40 = vld [vmem:[#allocation3 + $0x1a] sm:$0xff] }
 0x3ed   : > { %v3059_v14 = vpop.permute.xlu1 %3058  ;;  %v3053_v2 = vpop.permute.xlu0 %3052  ;;  %v3228_v35 = vld [vmem:[#allocation3 + $0xe1] sm:$0xff]  ;;  %v3227_v50 = vld [vmem:[#allocation3 + $0xd9] sm:$0xff] }
 0x3ee   : > { %3134 = vst.msk [vmem:[#allocation3 + $0x12a] sm:$0xff] %vm371_vm1, %v3059_v14  ;;  %3131 = vst.msk [vmem:[#allocation3 + $0x10a] sm:$0xff] %vm371_vm1, %v3053_v2  ;;  %3311 = vrot.lane.b32.xlu1 %v3228_v35, %s10502_s28  ;;  %3309 = vrot.lane.b32.xlu0 %v3227_v50, %s10502_s28  ;;  %v12337_v11 = vld [vmem:[#allocation3 + $0xe0] sm:$0xff]  ;;  %v12339_v24 = vld [vmem:[#allocation3 + $0xd8] sm:$0xff] }
 0x3ef   : > { %3196 = vst.msk [vmem:[#allocation6 + $0x98] sm:$0xff] %vm371_vm1, %v12337_v11  ;;  %3195 = vst.msk [vmem:[#allocation6 + $0x90] sm:$0xff] %vm371_vm1, %v12339_v24  ;;  %v3406_v2 = vld [vmem:[#allocation3 + $0x3a] sm:$0xff]  ;;  %v3405_v35 = vld [vmem:[#allocation3 + $0x32] sm:$0xff] }
 0x3f0   : > { %v3408_v50 = vld [vmem:[#allocation3 + $0x52] sm:$0xff] }
 0x3f1   : > { %v3063_v22 = vpop.permute.xlu1 %3062  ;;  %v3057_v26 = vpop.permute.xlu0 %3056  ;;  %v3230_v56 = vld [vmem:[#allocation3 + $0xf9] sm:$0xff]  ;;  %v3229_v15 = vld [vmem:[#allocation3 + $0xf1] sm:$0xff] }
 0x3f2   : > { %3136 = vst.msk [vmem:[#allocation3 + $0x142] sm:$0xff] %vm371_vm1, %v3063_v22  ;;  %3133 = vst.msk [vmem:[#allocation3 + $0x122] sm:$0xff] %vm371_vm1, %v3057_v26  ;;  %3315 = vrot.lane.b32.xlu1 %v3230_v56, %s10502_s28  ;;  %3313 = vrot.lane.b32.xlu0 %v3229_v15, %s10502_s28  ;;  %v12349_v47 = vld [vmem:[#allocation3 + $0xf8] sm:$0xff]  ;;  %v12351_v21 = vld [vmem:[#allocation3 + $0xf0] sm:$0xff] }
 0x3f3   : > { %3198 = vst.msk [vmem:[#allocation6 + $0xa8] sm:$0xff] %vm371_vm1, %v12349_v47  ;;  %3197 = vst.msk [vmem:[#allocation6 + $0xa0] sm:$0xff] %vm371_vm1, %v12351_v21  ;;  %v3407_v22 = vld [vmem:[#allocation3 + $0x4a] sm:$0xff]  ;;  %v3409_v56 = vld [vmem:[#allocation3 + $0x62] sm:$0xff] }
 0x3f4   : > { %v3410_v26 = vld [vmem:[#allocation3 + $0x6a] sm:$0xff]  ;;  %v3412_v15 = vld [vmem:[#allocation3 + $0x82] sm:$0xff] }
 0x3f5   : > { %v3067_v36 = vpop.permute.xlu1 %3066  ;;  %v3061_v30 = vpop.permute.xlu0 %3060  ;;  %v3232_v34 = vld [vmem:[#allocation3 + $0x111] sm:$0xff]  ;;  %v3231_v20 = vld [vmem:[#allocation3 + $0x109] sm:$0xff] }
 0x3f6   : > { %3138 = vst.msk [vmem:[#allocation3 + $0x15a] sm:$0xff] %vm371_vm1, %v3067_v36  ;;  %3135 = vst.msk [vmem:[#allocation3 + $0x13a] sm:$0xff] %vm371_vm1, %v3061_v30  ;;  %3319 = vrot.lane.b32.xlu1 %v3232_v34, %s10502_s28  ;;  %3317 = vrot.lane.b32.xlu0 %v3231_v20, %s10502_s28  ;;  %v12361_v12 = vld [vmem:[#allocation3 + $0x110] sm:$0xff]  ;;  %v12363_v32 = vld [vmem:[#allocation3 + $0x108] sm:$0xff] }
 0x3f7   : > { %3200 = vst.msk [vmem:[#allocation6 + $0xb8] sm:$0xff] %vm371_vm1, %v12361_v12  ;;  %3199 = vst.msk [vmem:[#allocation6 + $0xb0] sm:$0xff] %vm371_vm1, %v12363_v32  ;;  %v3411_v36 = vld [vmem:[#allocation3 + $0x7a] sm:$0xff]  ;;  %v3413_v34 = vld [vmem:[#allocation3 + $0x92] sm:$0xff] }
 0x3f8   : > { %v3414_v30 = vld [vmem:[#allocation3 + $0x9a] sm:$0xff]  ;;  %v3416_v20 = vld [vmem:[#allocation3 + $0xb2] sm:$0xff] }
 0x3f9   : > { %v3071_v45 = vpop.permute.xlu1 %3070  ;;  %v3065_v39 = vpop.permute.xlu0 %3064  ;;  %v3234_v53 = vld [vmem:[#allocation3 + $0x129] sm:$0xff]  ;;  %v3233_v48 = vld [vmem:[#allocation3 + $0x121] sm:$0xff] }
 0x3fa   : > { %3140 = vst.msk [vmem:[#allocation3 + $0x172] sm:$0xff] %vm371_vm1, %v3071_v45  ;;  %3137 = vst.msk [vmem:[#allocation3 + $0x152] sm:$0xff] %vm371_vm1, %v3065_v39  ;;  %3323 = vrot.lane.b32.xlu1 %v3234_v53, %s10502_s28  ;;  %3321 = vrot.lane.b32.xlu0 %v3233_v48, %s10502_s28  ;;  %v12373_v60 = vld [vmem:[#allocation3 + $0x128] sm:$0xff]  ;;  %v12375_v29 = vld [vmem:[#allocation3 + $0x120] sm:$0xff] }
 0x3fb   : > { %3202 = vst.msk [vmem:[#allocation6 + $0xc8] sm:$0xff] %vm371_vm1, %v12373_v60  ;;  %3201 = vst.msk [vmem:[#allocation6 + $0xc0] sm:$0xff] %vm371_vm1, %v12375_v29  ;;  %v3415_v45 = vld [vmem:[#allocation3 + $0xaa] sm:$0xff]  ;;  %v3417_v53 = vld [vmem:[#allocation3 + $0xc2] sm:$0xff] }
 0x3fc   : > { %v3418_v39 = vld [vmem:[#allocation3 + $0xca] sm:$0xff]  ;;  %v3420_v48 = vld [vmem:[#allocation3 + $0xe2] sm:$0xff] }
 0x3fd   : > { %v3075_v6 = vpop.permute.xlu1 %3074  ;;  %v3069_v19 = vpop.permute.xlu0 %3068  ;;  %v3236_v63 = vld [vmem:[#allocation3 + $0x141] sm:$0xff]  ;;  %v3235_v49 = vld [vmem:[#allocation3 + $0x139] sm:$0xff] }
 0x3fe   : > { %3142 = vst.msk [vmem:[#allocation3 + $0x18a] sm:$0xff] %vm371_vm1, %v3075_v6  ;;  %3139 = vst.msk [vmem:[#allocation3 + $0x16a] sm:$0xff] %vm371_vm1, %v3069_v19  ;;  %3327 = vrot.lane.b32.xlu1 %v3236_v63, %s10502_s28  ;;  %3325 = vrot.lane.b32.xlu0 %v3235_v49, %s10502_s28  ;;  %v12385_v55 = vld [vmem:[#allocation3 + $0x140] sm:$0xff]  ;;  %v12387_v58 = vld [vmem:[#allocation3 + $0x138] sm:$0xff] }
 0x3ff   : > { %3204 = vst.msk [vmem:[#allocation6 + $0xd8] sm:$0xff] %vm371_vm1, %v12385_v55  ;;  %3203 = vst.msk [vmem:[#allocation6 + $0xd0] sm:$0xff] %vm371_vm1, %v12387_v58  ;;  %v3419_v6 = vld [vmem:[#allocation3 + $0xda] sm:$0xff]  ;;  %v3421_v63 = vld [vmem:[#allocation3 + $0xf2] sm:$0xff] }
 0x400   : > { %v3422_v19 = vld [vmem:[#allocation3 + $0xfa] sm:$0xff]  ;;  %v3424_v49 = vld [vmem:[#allocation3 + $0x112] sm:$0xff] }
 0x401   : > { %v3079_v61 = vpop.permute.xlu1 %3078  ;;  %v3073_v0 = vpop.permute.xlu0 %3072  ;;  %v3238_v10 = vld [vmem:[#allocation3 + $0x159] sm:$0xff]  ;;  %v3237_v17 = vld [vmem:[#allocation3 + $0x151] sm:$0xff] }
 0x402   : > { %3144 = vst.msk [vmem:[#allocation3 + $0x1a2] sm:$0xff] %vm371_vm1, %v3079_v61  ;;  %3141 = vst.msk [vmem:[#allocation3 + $0x182] sm:$0xff] %vm371_vm1, %v3073_v0  ;;  %3331 = vrot.lane.b32.xlu1 %v3238_v10, %s10502_s28  ;;  %3329 = vrot.lane.b32.xlu0 %v3237_v17, %s10502_s28  ;;  %v12397_v59 = vld [vmem:[#allocation3 + $0x158] sm:$0xff]  ;;  %v12399_v13 = vld [vmem:[#allocation3 + $0x150] sm:$0xff] }
 0x403   : > { %3206 = vst.msk [vmem:[#allocation6 + $0xe8] sm:$0xff] %vm371_vm1, %v12397_v59  ;;  %3205 = vst.msk [vmem:[#allocation6 + $0xe0] sm:$0xff] %vm371_vm1, %v12399_v13  ;;  %v3423_v61 = vld [vmem:[#allocation3 + $0x10a] sm:$0xff]  ;;  %v3425_v10 = vld [vmem:[#allocation3 + $0x122] sm:$0xff] }
 0x404   : > { %v3426_v0 = vld [vmem:[#allocation3 + $0x12a] sm:$0xff]  ;;  %v3428_v17 = vld [vmem:[#allocation3 + $0x142] sm:$0xff] }
 0x405   : > { %v3077_v54 = vpop.permute.xlu0 %3076  ;;  %v3240_v41 = vld [vmem:[#allocation3 + $0x171] sm:$0xff]  ;;  %v3239_v44 = vld [vmem:[#allocation3 + $0x169] sm:$0xff] }
 0x406   : > { %3143 = vst.msk [vmem:[#allocation3 + $0x19a] sm:$0xff] %vm371_vm1, %v3077_v54  ;;  %3335 = vrot.lane.b32.xlu1 %v3240_v41, %s10502_s28  ;;  %3333 = vrot.lane.b32.xlu0 %v3239_v44, %s10502_s28  ;;  %v3276_v3 = vpop.permute.xlu1 %3275  ;;  %v12408_v38 = vld [vmem:[#allocation3 + $0x170] sm:$0xff]  ;;  %v12410_v42 = vld [vmem:[#allocation3 + $0x168] sm:$0xff]  ;;  %v3427_v54 = vld [vmem:[#allocation3 + $0x13a] sm:$0xff]  ;;  %s10512_s28 = smov 36  }
 0x407   : > { %3370 = vst.msk [vmem:[#allocation6 + $0x8] sm:$0xff] %vm1169_vm3, %v3276_v3  ;;  %v3430_v41 = vld [vmem:[#allocation3 + $0x15a] sm:$0xff]  ;;  %v3429_v44 = vld [vmem:[#allocation3 + $0x152] sm:$0xff] }
 0x408   : > { %3208 = vst.msk [vmem:[#allocation6 + $0xf8] sm:$0xff] %vm371_vm1, %v12408_v38  ;;  %3207 = vst.msk [vmem:[#allocation6 + $0xf0] sm:$0xff] %vm371_vm1, %v12410_v42 }
 0x409   : > { %v3274_v37 = vpop.permute.xlu0 %3273 }
 0x40a   : > { %3467 = vrot.lane.b32.xlu1 %v3402_v1, %s10503_s29  ;;  %3465 = vrot.lane.b32.xlu0 %v3401_v25, %s10503_s29  ;;  %3369 = vst.msk [vmem:[#allocation6] sm:$0xff] %vm1169_vm3, %v3274_v37  ;;  %v3280_v28 = vpop.permute.xlu1 %3279  ;;  %v3432_v25 = vld [vmem:[#allocation3 + $0x172] sm:$0xff]  ;;  %v3431_v37 = vld [vmem:[#allocation3 + $0x16a] sm:$0xff] }
 0x40b   : > { %3372 = vst.msk [vmem:[#allocation6 + $0x18] sm:$0xff] %vm1169_vm3, %v3280_v28  ;;  %v3594_v28 = vld [vmem:[#allocation3 + $0xb] sm:$0xff] }
 0x40d   : > { %v3278_v14 = vpop.permute.xlu0 %3277 }
 0x40e   : > { %3471 = vrot.lane.b32.xlu1 %v3404_v5, %s10503_s29  ;;  %3469 = vrot.lane.b32.xlu0 %v3403_v40, %s10503_s29  ;;  %3371 = vst.msk [vmem:[#allocation6 + $0x10] sm:$0xff] %vm1169_vm3, %v3278_v14  ;;  %v3593_v5 = vld [vmem:[#allocation3 + $0x3] sm:$0xff] }
 0x412   : > { %3475 = vrot.lane.b32.xlu1 %v3406_v2, %s10503_s29  ;;  %3473 = vrot.lane.b32.xlu0 %v3405_v35, %s10503_s29  ;;  %v3596_v2 = vld [vmem:[#allocation3 + $0x23] sm:$0xff]  ;;  %v3595_v35 = vld [vmem:[#allocation3 + $0x1b] sm:$0xff] }
 0x416   : > { %3479 = vrot.lane.b32.xlu1 %v3408_v50, %s10503_s29  ;;  %3477 = vrot.lane.b32.xlu0 %v3407_v22, %s10503_s29 }
 0x41a   : > { %3483 = vrot.lane.b32.xlu1 %v3410_v26, %s10503_s29  ;;  %3481 = vrot.lane.b32.xlu0 %v3409_v56, %s10503_s29 }
 0x41e   : > { %3487 = vrot.lane.b32.xlu1 %v3412_v15, %s10503_s29  ;;  %3485 = vrot.lane.b32.xlu0 %v3411_v36, %s10503_s29  ;;  %v3598_v15 = vld [vmem:[#allocation3 + $0x3b] sm:$0xff]  ;;  %v3597_v36 = vld [vmem:[#allocation3 + $0x33] sm:$0xff] }
 0x422   : > { %3491 = vrot.lane.b32.xlu1 %v3414_v30, %s10503_s29  ;;  %3489 = vrot.lane.b32.xlu0 %v3413_v34, %s10503_s29 }
 0x426   : > { %3495 = vrot.lane.b32.xlu1 %v3416_v20, %s10503_s29  ;;  %3493 = vrot.lane.b32.xlu0 %v3415_v45, %s10503_s29  ;;  %v3600_v20 = vld [vmem:[#allocation3 + $0x53] sm:$0xff]  ;;  %v3599_v45 = vld [vmem:[#allocation3 + $0x4b] sm:$0xff] }
 0x42a   : > { %3499 = vrot.lane.b32.xlu1 %v3418_v39, %s10503_s29  ;;  %3497 = vrot.lane.b32.xlu0 %v3417_v53, %s10503_s29 }
 0x42e   : > { %3503 = vrot.lane.b32.xlu1 %v3420_v48, %s10503_s29  ;;  %3501 = vrot.lane.b32.xlu0 %v3419_v6, %s10503_s29  ;;  %v3602_v48 = vld [vmem:[#allocation3 + $0x6b] sm:$0xff]  ;;  %v3601_v6 = vld [vmem:[#allocation3 + $0x63] sm:$0xff] }
 0x432   : > { %3507 = vrot.lane.b32.xlu1 %v3422_v19, %s10503_s29  ;;  %3505 = vrot.lane.b32.xlu0 %v3421_v63, %s10503_s29 }
 0x436   : > { %3511 = vrot.lane.b32.xlu1 %v3424_v49, %s10503_s29  ;;  %3509 = vrot.lane.b32.xlu0 %v3423_v61, %s10503_s29  ;;  %v3604_v49 = vld [vmem:[#allocation3 + $0x83] sm:$0xff]  ;;  %v3603_v61 = vld [vmem:[#allocation3 + $0x7b] sm:$0xff] }
 0x43a   : > { %3515 = vrot.lane.b32.xlu1 %v3426_v0, %s10503_s29  ;;  %3513 = vrot.lane.b32.xlu0 %v3425_v10, %s10503_s29 }
 0x43e   : > { %3519 = vrot.lane.b32.xlu1 %v3428_v17, %s10503_s29  ;;  %3517 = vrot.lane.b32.xlu0 %v3427_v54, %s10503_s29  ;;  %v3606_v17 = vld [vmem:[#allocation3 + $0x9b] sm:$0xff]  ;;  %v3605_v54 = vld [vmem:[#allocation3 + $0x93] sm:$0xff] }
 0x442   : > { %3523 = vrot.lane.b32.xlu1 %v3430_v41, %s10503_s29  ;;  %3521 = vrot.lane.b32.xlu0 %v3429_v44, %s10503_s29 }
 0x444   : > { %v3284_v3 = vpop.permute.xlu1 %3283  ;;  %v3282_v1 = vpop.permute.xlu0 %3281 }
 0x445   : > { %3374 = vst.msk [vmem:[#allocation6 + $0x28] sm:$0xff] %vm1169_vm3, %v3284_v3  ;;  %3373 = vst.msk [vmem:[#allocation6 + $0x20] sm:$0xff] %vm1169_vm3, %v3282_v1  ;;  %v3608_v3 = vld [vmem:[#allocation3 + $0xb3] sm:$0xff]  ;;  %v3607_v1 = vld [vmem:[#allocation3 + $0xab] sm:$0xff] }
 0x446   : > { %3527 = vrot.lane.b32.xlu1 %v3432_v25, %s10503_s29  ;;  %3525 = vrot.lane.b32.xlu0 %v3431_v37, %s10503_s29 }
 0x448   : > { %v3288_v40 = vpop.permute.xlu1 %3287  ;;  %v3286_v14 = vpop.permute.xlu0 %3285 }
 0x449   : > { %3376 = vst.msk [vmem:[#allocation6 + $0x38] sm:$0xff] %vm1169_vm3, %v3288_v40  ;;  %3375 = vst.msk [vmem:[#allocation6 + $0x30] sm:$0xff] %vm1169_vm3, %v3286_v14 }
 0x44a   : > { %3659 = vrot.lane.b32.xlu1 %v3594_v28, %s10507_s26  ;;  %3657 = vrot.lane.b32.xlu0 %v3593_v5, %s10507_s26  ;;  %v3610_v28 = vld [vmem:[#allocation3 + $0xcb] sm:$0xff]  ;;  %v3609_v5 = vld [vmem:[#allocation3 + $0xc3] sm:$0xff] }
 0x44c   : > { %v3292_v50 = vpop.permute.xlu1 %3291  ;;  %v3290_v22 = vpop.permute.xlu0 %3289 }
 0x44d   : > { %3378 = vst.msk [vmem:[#allocation6 + $0x48] sm:$0xff] %vm1169_vm3, %v3292_v50  ;;  %3377 = vst.msk [vmem:[#allocation6 + $0x40] sm:$0xff] %vm1169_vm3, %v3290_v22 }
 0x44e   : > { %3663 = vrot.lane.b32.xlu1 %v3596_v2, %s10507_s26  ;;  %3661 = vrot.lane.b32.xlu0 %v3595_v35, %s10507_s26  ;;  %v3612_v2 = vld [vmem:[#allocation3 + $0xe3] sm:$0xff]  ;;  %v3611_v35 = vld [vmem:[#allocation3 + $0xdb] sm:$0xff] }
 0x450   : > { %v3296_v26 = vpop.permute.xlu1 %3295  ;;  %v3294_v56 = vpop.permute.xlu0 %3293 }
 0x451   : > { %3380 = vst.msk [vmem:[#allocation6 + $0x58] sm:$0xff] %vm1169_vm3, %v3296_v26  ;;  %3379 = vst.msk [vmem:[#allocation6 + $0x50] sm:$0xff] %vm1169_vm3, %v3294_v56  ;;  %v3614_v26 = vld [vmem:[#allocation3 + $0xfb] sm:$0xff]  ;;  %v3613_v56 = vld [vmem:[#allocation3 + $0xf3] sm:$0xff] }
 0x452   : > { %3667 = vrot.lane.b32.xlu1 %v3598_v15, %s10507_s26  ;;  %3665 = vrot.lane.b32.xlu0 %v3597_v36, %s10507_s26 }
 0x454   : > { %v3300_v30 = vpop.permute.xlu1 %3299  ;;  %v3298_v34 = vpop.permute.xlu0 %3297 }
 0x455   : > { %3382 = vst.msk [vmem:[#allocation6 + $0x68] sm:$0xff] %vm1169_vm3, %v3300_v30  ;;  %3381 = vst.msk [vmem:[#allocation6 + $0x60] sm:$0xff] %vm1169_vm3, %v3298_v34  ;;  %v3616_v30 = vld [vmem:[#allocation3 + $0x113] sm:$0xff]  ;;  %v3615_v34 = vld [vmem:[#allocation3 + $0x10b] sm:$0xff] }
 0x456   : > { %3671 = vrot.lane.b32.xlu1 %v3600_v20, %s10507_s26  ;;  %3669 = vrot.lane.b32.xlu0 %v3599_v45, %s10507_s26 }
 0x458   : > { %v3304_v39 = vpop.permute.xlu1 %3303  ;;  %v3302_v53 = vpop.permute.xlu0 %3301 }
 0x459   : > { %3384 = vst.msk [vmem:[#allocation6 + $0x78] sm:$0xff] %vm1169_vm3, %v3304_v39  ;;  %3383 = vst.msk [vmem:[#allocation6 + $0x70] sm:$0xff] %vm1169_vm3, %v3302_v53  ;;  %v3618_v39 = vld [vmem:[#allocation3 + $0x12b] sm:$0xff]  ;;  %v3617_v53 = vld [vmem:[#allocation3 + $0x123] sm:$0xff] }
 0x45a   : > { %3675 = vrot.lane.b32.xlu1 %v3602_v48, %s10507_s26  ;;  %3673 = vrot.lane.b32.xlu0 %v3601_v6, %s10507_s26 }
 0x45c   : > { %v3308_v19 = vpop.permute.xlu1 %3307  ;;  %v3306_v63 = vpop.permute.xlu0 %3305 }
 0x45d   : > { %3386 = vst.msk [vmem:[#allocation6 + $0x88] sm:$0xff] %vm1169_vm3, %v3308_v19  ;;  %3385 = vst.msk [vmem:[#allocation6 + $0x80] sm:$0xff] %vm1169_vm3, %v3306_v63  ;;  %v3620_v19 = vld [vmem:[#allocation3 + $0x143] sm:$0xff]  ;;  %v3619_v63 = vld [vmem:[#allocation3 + $0x13b] sm:$0xff] }
 0x45e   : > { %3679 = vrot.lane.b32.xlu1 %v3604_v49, %s10507_s26  ;;  %3677 = vrot.lane.b32.xlu0 %v3603_v61, %s10507_s26 }
 0x460   : > { %v3312_v0 = vpop.permute.xlu1 %3311  ;;  %v3310_v10 = vpop.permute.xlu0 %3309 }
 0x461   : > { %3388 = vst.msk [vmem:[#allocation6 + $0x98] sm:$0xff] %vm1169_vm3, %v3312_v0  ;;  %3387 = vst.msk [vmem:[#allocation6 + $0x90] sm:$0xff] %vm1169_vm3, %v3310_v10  ;;  %v3622_v0 = vld [vmem:[#allocation3 + $0x15b] sm:$0xff]  ;;  %v3621_v10 = vld [vmem:[#allocation3 + $0x153] sm:$0xff] }
 0x462   : > { %3683 = vrot.lane.b32.xlu1 %v3606_v17, %s10507_s26  ;;  %3681 = vrot.lane.b32.xlu0 %v3605_v54, %s10507_s26 }
 0x464   : > { %v3316_v41 = vpop.permute.xlu1 %3315  ;;  %v3314_v44 = vpop.permute.xlu0 %3313 }
 0x465   : > { %3390 = vst.msk [vmem:[#allocation6 + $0xa8] sm:$0xff] %vm1169_vm3, %v3316_v41  ;;  %3389 = vst.msk [vmem:[#allocation6 + $0xa0] sm:$0xff] %vm1169_vm3, %v3314_v44  ;;  %v3624_v41 = vld [vmem:[#allocation3 + $0x173] sm:$0xff]  ;;  %v3623_v44 = vld [vmem:[#allocation3 + $0x16b] sm:$0xff] }
 0x466   : > { %3687 = vrot.lane.b32.xlu1 %v3608_v3, %s10507_s26  ;;  %3685 = vrot.lane.b32.xlu0 %v3607_v1, %s10507_s26  ;;  %v3786_v3 = vld [vmem:[#allocation3 + $0xc] sm:$0xff]  ;;  %v3785_v1 = vld [vmem:[#allocation3 + $0x4] sm:$0xff] }
 0x468   : > { %v3320_v25 = vpop.permute.xlu1 %3319  ;;  %v3318_v37 = vpop.permute.xlu0 %3317 }
 0x469   : > { %3392 = vst.msk [vmem:[#allocation6 + $0xb8] sm:$0xff] %vm1169_vm3, %v3320_v25  ;;  %3391 = vst.msk [vmem:[#allocation6 + $0xb0] sm:$0xff] %vm1169_vm3, %v3318_v37 }
 0x46a   : > { %3691 = vrot.lane.b32.xlu1 %v3610_v28, %s10507_s26  ;;  %3689 = vrot.lane.b32.xlu0 %v3609_v5, %s10507_s26  ;;  %v3788_v28 = vld [vmem:[#allocation3 + $0x24] sm:$0xff]  ;;  %v3787_v5 = vld [vmem:[#allocation3 + $0x1c] sm:$0xff] }
 0x46c   : > { %v3324_v40 = vpop.permute.xlu1 %3323  ;;  %v3322_v14 = vpop.permute.xlu0 %3321 }
 0x46d   : > { %3394 = vst.msk [vmem:[#allocation6 + $0xc8] sm:$0xff] %vm1169_vm3, %v3324_v40  ;;  %3393 = vst.msk [vmem:[#allocation6 + $0xc0] sm:$0xff] %vm1169_vm3, %v3322_v14 }
 0x46e   : > { %3695 = vrot.lane.b32.xlu1 %v3612_v2, %s10507_s26  ;;  %3693 = vrot.lane.b32.xlu0 %v3611_v35, %s10507_s26 }
 0x470   : > { %v3328_v50 = vpop.permute.xlu1 %3327  ;;  %v3326_v22 = vpop.permute.xlu0 %3325 }
 0x471   : > { %3396 = vst.msk [vmem:[#allocation6 + $0xd8] sm:$0xff] %vm1169_vm3, %v3328_v50  ;;  %3395 = vst.msk [vmem:[#allocation6 + $0xd0] sm:$0xff] %vm1169_vm3, %v3326_v22  ;;  %v3790_v50 = vld [vmem:[#allocation3 + $0x3c] sm:$0xff]  ;;  %v3789_v22 = vld [vmem:[#allocation3 + $0x34] sm:$0xff] }
 0x472   : > { %3699 = vrot.lane.b32.xlu1 %v3614_v26, %s10507_s26  ;;  %3697 = vrot.lane.b32.xlu0 %v3613_v56, %s10507_s26 }
 0x474   : > { %v3332_v15 = vpop.permute.xlu1 %3331  ;;  %v3330_v36 = vpop.permute.xlu0 %3329 }
 0x475   : > { %3398 = vst.msk [vmem:[#allocation6 + $0xe8] sm:$0xff] %vm1169_vm3, %v3332_v15  ;;  %3397 = vst.msk [vmem:[#allocation6 + $0xe0] sm:$0xff] %vm1169_vm3, %v3330_v36  ;;  %v3792_v15 = vld [vmem:[#allocation3 + $0x54] sm:$0xff]  ;;  %v3791_v36 = vld [vmem:[#allocation3 + $0x4c] sm:$0xff] }
 0x476   : > { %3703 = vrot.lane.b32.xlu1 %v3616_v30, %s10507_s26  ;;  %3701 = vrot.lane.b32.xlu0 %v3615_v34, %s10507_s26 }
 0x478   : > { %v3336_v20 = vpop.permute.xlu1 %3335  ;;  %v3334_v45 = vpop.permute.xlu0 %3333 }
 0x479   : > { %3400 = vst.msk [vmem:[#allocation6 + $0xf8] sm:$0xff] %vm1169_vm3, %v3336_v20  ;;  %3399 = vst.msk [vmem:[#allocation6 + $0xf0] sm:$0xff] %vm1169_vm3, %v3334_v45  ;;  %v3794_v20 = vld [vmem:[#allocation3 + $0x6c] sm:$0xff]  ;;  %v3793_v45 = vld [vmem:[#allocation3 + $0x64] sm:$0xff]  ;;  %vm5485_vm3 = vcmask 425344  }
 0x47a   : > { %3707 = vrot.lane.b32.xlu1 %v3618_v39, %s10507_s26  ;;  %3705 = vrot.lane.b32.xlu0 %v3617_v53, %s10507_s26 }
 0x47c   : > { %v3468_v48 = vpop.permute.xlu1 %3467  ;;  %v3466_v6 = vpop.permute.xlu0 %3465 }
 0x47d   : > { %3562 = vst.msk [vmem:[#allocation6 + $0x8] sm:$0xff] %vm1362_vm4, %v3468_v48  ;;  %3561 = vst.msk [vmem:[#allocation6] sm:$0xff] %vm1362_vm4, %v3466_v6  ;;  %v3796_v48 = vld [vmem:[#allocation3 + $0x84] sm:$0xff]  ;;  %v3795_v6 = vld [vmem:[#allocation3 + $0x7c] sm:$0xff] }
 0x47e   : > { %3711 = vrot.lane.b32.xlu1 %v3620_v19, %s10507_s26  ;;  %3709 = vrot.lane.b32.xlu0 %v3619_v63, %s10507_s26 }
 0x480   : > { %v3472_v49 = vpop.permute.xlu1 %3471  ;;  %v3470_v61 = vpop.permute.xlu0 %3469 }
 0x481   : > { %3564 = vst.msk [vmem:[#allocation6 + $0x18] sm:$0xff] %vm1362_vm4, %v3472_v49  ;;  %3563 = vst.msk [vmem:[#allocation6 + $0x10] sm:$0xff] %vm1362_vm4, %v3470_v61  ;;  %v3798_v49 = vld [vmem:[#allocation3 + $0x9c] sm:$0xff]  ;;  %v3797_v61 = vld [vmem:[#allocation3 + $0x94] sm:$0xff] }
 0x482   : > { %3715 = vrot.lane.b32.xlu1 %v3622_v0, %s10507_s26  ;;  %3713 = vrot.lane.b32.xlu0 %v3621_v10, %s10507_s26 }
 0x484   : > { %v3476_v17 = vpop.permute.xlu1 %3475  ;;  %v3474_v54 = vpop.permute.xlu0 %3473 }
 0x485   : > { %3566 = vst.msk [vmem:[#allocation6 + $0x28] sm:$0xff] %vm1362_vm4, %v3476_v17  ;;  %3565 = vst.msk [vmem:[#allocation6 + $0x20] sm:$0xff] %vm1362_vm4, %v3474_v54  ;;  %v3800_v17 = vld [vmem:[#allocation3 + $0xb4] sm:$0xff]  ;;  %v3799_v54 = vld [vmem:[#allocation3 + $0xac] sm:$0xff] }
 0x486   : > { %3719 = vrot.lane.b32.xlu1 %v3624_v41, %s10507_s26  ;;  %3717 = vrot.lane.b32.xlu0 %v3623_v44, %s10507_s26  ;;  %s10514_s26 = smov 44  }
 0x488   : > { %v3480_v25 = vpop.permute.xlu1 %3479  ;;  %v3478_v37 = vpop.permute.xlu0 %3477 }
 0x489   : > { %3568 = vst.msk [vmem:[#allocation6 + $0x38] sm:$0xff] %vm1362_vm4, %v3480_v25  ;;  %3567 = vst.msk [vmem:[#allocation6 + $0x30] sm:$0xff] %vm1362_vm4, %v3478_v37 }
 0x48a   : > { %3851 = vrot.lane.b32.xlu1 %v3786_v3, %s10505_s24  ;;  %3849 = vrot.lane.b32.xlu0 %v3785_v1, %s10505_s24  ;;  %v3802_v3 = vld [vmem:[#allocation3 + $0xcc] sm:$0xff]  ;;  %v3801_v1 = vld [vmem:[#allocation3 + $0xc4] sm:$0xff] }
 0x48c   : > { %v3484_v40 = vpop.permute.xlu1 %3483  ;;  %v3482_v14 = vpop.permute.xlu0 %3481 }
 0x48d   : > { %3570 = vst.msk [vmem:[#allocation6 + $0x48] sm:$0xff] %vm1362_vm4, %v3484_v40  ;;  %3569 = vst.msk [vmem:[#allocation6 + $0x40] sm:$0xff] %vm1362_vm4, %v3482_v14 }
 0x48e   : > { %3855 = vrot.lane.b32.xlu1 %v3788_v28, %s10505_s24  ;;  %3853 = vrot.lane.b32.xlu0 %v3787_v5, %s10505_s24  ;;  %v3804_v28 = vld [vmem:[#allocation3 + $0xe4] sm:$0xff]  ;;  %v3803_v5 = vld [vmem:[#allocation3 + $0xdc] sm:$0xff] }
 0x490   : > { %v3488_v2 = vpop.permute.xlu1 %3487  ;;  %v3486_v35 = vpop.permute.xlu0 %3485 }
 0x491   : > { %3572 = vst.msk [vmem:[#allocation6 + $0x58] sm:$0xff] %vm1362_vm4, %v3488_v2  ;;  %3571 = vst.msk [vmem:[#allocation6 + $0x50] sm:$0xff] %vm1362_vm4, %v3486_v35  ;;  %v3806_v2 = vld [vmem:[#allocation3 + $0xfc] sm:$0xff]  ;;  %v3805_v35 = vld [vmem:[#allocation3 + $0xf4] sm:$0xff] }
 0x492   : > { %3859 = vrot.lane.b32.xlu1 %v3790_v50, %s10505_s24  ;;  %3857 = vrot.lane.b32.xlu0 %v3789_v22, %s10505_s24 }
 0x494   : > { %v3492_v26 = vpop.permute.xlu1 %3491  ;;  %v3490_v56 = vpop.permute.xlu0 %3489 }
 0x495   : > { %3574 = vst.msk [vmem:[#allocation6 + $0x68] sm:$0xff] %vm1362_vm4, %v3492_v26  ;;  %3573 = vst.msk [vmem:[#allocation6 + $0x60] sm:$0xff] %vm1362_vm4, %v3490_v56  ;;  %v3808_v26 = vld [vmem:[#allocation3 + $0x114] sm:$0xff]  ;;  %v3807_v56 = vld [vmem:[#allocation3 + $0x10c] sm:$0xff] }
 0x496   : > { %3863 = vrot.lane.b32.xlu1 %v3792_v15, %s10505_s24  ;;  %3861 = vrot.lane.b32.xlu0 %v3791_v36, %s10505_s24 }
 0x498   : > { %v3496_v30 = vpop.permute.xlu1 %3495  ;;  %v3494_v34 = vpop.permute.xlu0 %3493 }
 0x499   : > { %3576 = vst.msk [vmem:[#allocation6 + $0x78] sm:$0xff] %vm1362_vm4, %v3496_v30  ;;  %3575 = vst.msk [vmem:[#allocation6 + $0x70] sm:$0xff] %vm1362_vm4, %v3494_v34  ;;  %v3810_v30 = vld [vmem:[#allocation3 + $0x12c] sm:$0xff]  ;;  %v3809_v34 = vld [vmem:[#allocation3 + $0x124] sm:$0xff] }
 0x49a   : > { %3867 = vrot.lane.b32.xlu1 %v3794_v20, %s10505_s24  ;;  %3865 = vrot.lane.b32.xlu0 %v3793_v45, %s10505_s24 }
 0x49c   : > { %v3500_v39 = vpop.permute.xlu1 %3499  ;;  %v3498_v53 = vpop.permute.xlu0 %3497 }
 0x49d   : > { %3578 = vst.msk [vmem:[#allocation6 + $0x88] sm:$0xff] %vm1362_vm4, %v3500_v39  ;;  %3577 = vst.msk [vmem:[#allocation6 + $0x80] sm:$0xff] %vm1362_vm4, %v3498_v53  ;;  %v3812_v39 = vld [vmem:[#allocation3 + $0x144] sm:$0xff]  ;;  %v3811_v53 = vld [vmem:[#allocation3 + $0x13c] sm:$0xff] }
 0x49e   : > { %3871 = vrot.lane.b32.xlu1 %v3796_v48, %s10505_s24  ;;  %3869 = vrot.lane.b32.xlu0 %v3795_v6, %s10505_s24 }
 0x4a0   : > { %v3504_v19 = vpop.permute.xlu1 %3503  ;;  %v3502_v63 = vpop.permute.xlu0 %3501 }
 0x4a1   : > { %3580 = vst.msk [vmem:[#allocation6 + $0x98] sm:$0xff] %vm1362_vm4, %v3504_v19  ;;  %3579 = vst.msk [vmem:[#allocation6 + $0x90] sm:$0xff] %vm1362_vm4, %v3502_v63  ;;  %v3814_v19 = vld [vmem:[#allocation3 + $0x15c] sm:$0xff]  ;;  %v3813_v63 = vld [vmem:[#allocation3 + $0x154] sm:$0xff] }
 0x4a2   : > { %3875 = vrot.lane.b32.xlu1 %v3798_v49, %s10505_s24  ;;  %3873 = vrot.lane.b32.xlu0 %v3797_v61, %s10505_s24 }
 0x4a4   : > { %v3508_v0 = vpop.permute.xlu1 %3507  ;;  %v3506_v10 = vpop.permute.xlu0 %3505 }
 0x4a5   : > { %3582 = vst.msk [vmem:[#allocation6 + $0xa8] sm:$0xff] %vm1362_vm4, %v3508_v0  ;;  %3581 = vst.msk [vmem:[#allocation6 + $0xa0] sm:$0xff] %vm1362_vm4, %v3506_v10  ;;  %v3816_v0 = vld [vmem:[#allocation3 + $0x174] sm:$0xff]  ;;  %v3815_v10 = vld [vmem:[#allocation3 + $0x16c] sm:$0xff] }
 0x4a6   : > { %3879 = vrot.lane.b32.xlu1 %v3800_v17, %s10505_s24  ;;  %3877 = vrot.lane.b32.xlu0 %v3799_v54, %s10505_s24 }
 0x4a8   : > { %v3512_v41 = vpop.permute.xlu1 %3511  ;;  %v3510_v44 = vpop.permute.xlu0 %3509 }
 0x4a9   : > { %3584 = vst.msk [vmem:[#allocation6 + $0xb8] sm:$0xff] %vm1362_vm4, %v3512_v41  ;;  %3583 = vst.msk [vmem:[#allocation6 + $0xb0] sm:$0xff] %vm1362_vm4, %v3510_v44 }
 0x4aa   : > { %3883 = vrot.lane.b32.xlu1 %v3802_v3, %s10505_s24  ;;  %3881 = vrot.lane.b32.xlu0 %v3801_v1, %s10505_s24 }
 0x4ac   : > { %v3516_v25 = vpop.permute.xlu1 %3515  ;;  %v3514_v37 = vpop.permute.xlu0 %3513 }
 0x4ad   : > { %3586 = vst.msk [vmem:[#allocation6 + $0xc8] sm:$0xff] %vm1362_vm4, %v3516_v25  ;;  %3585 = vst.msk [vmem:[#allocation6 + $0xc0] sm:$0xff] %vm1362_vm4, %v3514_v37  ;;  %v4171_v25 = vld [vmem:[#allocation3 + $0x21] sm:$0xff]  ;;  %v4170_v37 = vld [vmem:[#allocation3 + $0x19] sm:$0xff] }
 0x4ae   : > { %3887 = vrot.lane.b32.xlu1 %v3804_v28, %s10505_s24  ;;  %3885 = vrot.lane.b32.xlu0 %v3803_v5, %s10505_s24 }
 0x4b0   : > { %v3520_v40 = vpop.permute.xlu1 %3519  ;;  %v3518_v14 = vpop.permute.xlu0 %3517 }
 0x4b1   : > { %3588 = vst.msk [vmem:[#allocation6 + $0xd8] sm:$0xff] %vm1362_vm4, %v3520_v40  ;;  %3587 = vst.msk [vmem:[#allocation6 + $0xd0] sm:$0xff] %vm1362_vm4, %v3518_v14  ;;  %v4173_v40 = vld [vmem:[#allocation3 + $0x39] sm:$0xff]  ;;  %v4172_v14 = vld [vmem:[#allocation3 + $0x31] sm:$0xff] }
 0x4b2   : > { %3891 = vrot.lane.b32.xlu1 %v3806_v2, %s10505_s24  ;;  %3889 = vrot.lane.b32.xlu0 %v3805_v35, %s10505_s24 }
 0x4b4   : > { %v3524_v50 = vpop.permute.xlu1 %3523  ;;  %v3522_v22 = vpop.permute.xlu0 %3521 }
 0x4b5   : > { %3590 = vst.msk [vmem:[#allocation6 + $0xe8] sm:$0xff] %vm1362_vm4, %v3524_v50  ;;  %3589 = vst.msk [vmem:[#allocation6 + $0xe0] sm:$0xff] %vm1362_vm4, %v3522_v22  ;;  %v4175_v50 = vld [vmem:[#allocation3 + $0x51] sm:$0xff]  ;;  %v4174_v22 = vld [vmem:[#allocation3 + $0x49] sm:$0xff] }
 0x4b6   : > { %3895 = vrot.lane.b32.xlu1 %v3808_v26, %s10505_s24  ;;  %3893 = vrot.lane.b32.xlu0 %v3807_v56, %s10505_s24 }
 0x4b8   : > { %v3528_v15 = vpop.permute.xlu1 %3527  ;;  %v3526_v36 = vpop.permute.xlu0 %3525 }
 0x4b9   : > { %3592 = vst.msk [vmem:[#allocation6 + $0xf8] sm:$0xff] %vm1362_vm4, %v3528_v15  ;;  %3591 = vst.msk [vmem:[#allocation6 + $0xf0] sm:$0xff] %vm1362_vm4, %v3526_v36  ;;  %v4177_v15 = vld [vmem:[#allocation3 + $0x69] sm:$0xff]  ;;  %v4176_v36 = vld [vmem:[#allocation3 + $0x61] sm:$0xff]  ;;  %vm5678_vm4 = vcmask 458144  }
 0x4ba   : > { %3899 = vrot.lane.b32.xlu1 %v3810_v30, %s10505_s24  ;;  %3897 = vrot.lane.b32.xlu0 %v3809_v34, %s10505_s24 }
 0x4bc   : > { %v3660_v20 = vpop.permute.xlu1 %3659  ;;  %v3658_v45 = vpop.permute.xlu0 %3657 }
 0x4bd   : > { %3754 = vst.msk [vmem:[#allocation6 + $0x8] sm:$0xff] %vm1555_vm6, %v3660_v20  ;;  %3753 = vst.msk [vmem:[#allocation6] sm:$0xff] %vm1555_vm6, %v3658_v45  ;;  %v4179_v20 = vld [vmem:[#allocation3 + $0x81] sm:$0xff]  ;;  %v4178_v45 = vld [vmem:[#allocation3 + $0x79] sm:$0xff] }
 0x4be   : > { %3903 = vrot.lane.b32.xlu1 %v3812_v39, %s10505_s24  ;;  %3901 = vrot.lane.b32.xlu0 %v3811_v53, %s10505_s24 }
 0x4c0   : > { %v3664_v48 = vpop.permute.xlu1 %3663  ;;  %v3662_v6 = vpop.permute.xlu0 %3661 }
 0x4c1   : > { %3756 = vst.msk [vmem:[#allocation6 + $0x18] sm:$0xff] %vm1555_vm6, %v3664_v48  ;;  %3755 = vst.msk [vmem:[#allocation6 + $0x10] sm:$0xff] %vm1555_vm6, %v3662_v6  ;;  %v4181_v48 = vld [vmem:[#allocation3 + $0x99] sm:$0xff]  ;;  %v4180_v6 = vld [vmem:[#allocation3 + $0x91] sm:$0xff] }
 0x4c2   : > { %3907 = vrot.lane.b32.xlu1 %v3814_v19, %s10505_s24  ;;  %3905 = vrot.lane.b32.xlu0 %v3813_v63, %s10505_s24 }
 0x4c4   : > { %v3668_v49 = vpop.permute.xlu1 %3667  ;;  %v3666_v61 = vpop.permute.xlu0 %3665 }
 0x4c5   : > { %3758 = vst.msk [vmem:[#allocation6 + $0x28] sm:$0xff] %vm1555_vm6, %v3668_v49  ;;  %3757 = vst.msk [vmem:[#allocation6 + $0x20] sm:$0xff] %vm1555_vm6, %v3666_v61  ;;  %v4183_v49 = vld [vmem:[#allocation3 + $0xb1] sm:$0xff]  ;;  %v4182_v61 = vld [vmem:[#allocation3 + $0xa9] sm:$0xff] }
 0x4c6   : > { %3911 = vrot.lane.b32.xlu1 %v3816_v0, %s10505_s24  ;;  %3909 = vrot.lane.b32.xlu0 %v3815_v10, %s10505_s24 }
 0x4c8   : > { %v3672_v17 = vpop.permute.xlu1 %3671  ;;  %v3670_v54 = vpop.permute.xlu0 %3669 }
 0x4c9   : > { %3760 = vst.msk [vmem:[#allocation6 + $0x38] sm:$0xff] %vm1555_vm6, %v3672_v17  ;;  %3759 = vst.msk [vmem:[#allocation6 + $0x30] sm:$0xff] %vm1555_vm6, %v3670_v54  ;;  %v4185_v17 = vld [vmem:[#allocation3 + $0xc9] sm:$0xff]  ;;  %v4184_v54 = vld [vmem:[#allocation3 + $0xc1] sm:$0xff] }
 0x4ca   : > { %4044 = vrot.lane.b32.xlu1 %v12224_v62, %s10506_s25  ;;  %4042 = vrot.lane.b32.xlu0 %v12226_v46, %s10506_s25 }
 0x4cc   : > { %v3676_v41 = vpop.permute.xlu1 %3675  ;;  %v3674_v44 = vpop.permute.xlu0 %3673 }
 0x4cd   : > { %3762 = vst.msk [vmem:[#allocation6 + $0x48] sm:$0xff] %vm1555_vm6, %v3676_v41  ;;  %3761 = vst.msk [vmem:[#allocation6 + $0x40] sm:$0xff] %vm1555_vm6, %v3674_v44 }
 0x4ce   : > { %4048 = vrot.lane.b32.xlu1 %v12253_v8, %s10506_s25  ;;  %4046 = vrot.lane.b32.xlu0 %v12255_v43, %s10506_s25 }
 0x4d0   : > { %v3680_v3 = vpop.permute.xlu1 %3679  ;;  %v3678_v1 = vpop.permute.xlu0 %3677 }
 0x4d1   : > { %3764 = vst.msk [vmem:[#allocation6 + $0x58] sm:$0xff] %vm1555_vm6, %v3680_v3  ;;  %3763 = vst.msk [vmem:[#allocation6 + $0x50] sm:$0xff] %vm1555_vm6, %v3678_v1  ;;  %v4187_v3 = vld [vmem:[#allocation3 + $0xe1] sm:$0xff]  ;;  %v4186_v1 = vld [vmem:[#allocation3 + $0xd9] sm:$0xff] }
 0x4d2   : > { %4052 = vrot.lane.b32.xlu1 %v12265_v23, %s10506_s25  ;;  %4050 = vrot.lane.b32.xlu0 %v12267_v52, %s10506_s25 }
 0x4d4   : > { %v3684_v62 = vpop.permute.xlu1 %3683  ;;  %v3682_v46 = vpop.permute.xlu0 %3681 }
 0x4d5   : > { %3766 = vst.msk [vmem:[#allocation6 + $0x68] sm:$0xff] %vm1555_vm6, %v3684_v62  ;;  %3765 = vst.msk [vmem:[#allocation6 + $0x60] sm:$0xff] %vm1555_vm6, %v3682_v46 }
 0x4d6   : > { %4056 = vrot.lane.b32.xlu1 %v12277_v4, %s10506_s25  ;;  %4054 = vrot.lane.b32.xlu0 %v12279_v7, %s10506_s25 }
 0x4d8   : > { %v3688_v8 = vpop.permute.xlu1 %3687  ;;  %v3686_v43 = vpop.permute.xlu0 %3685 }
 0x4d9   : > { %3768 = vst.msk [vmem:[#allocation6 + $0x78] sm:$0xff] %vm1555_vm6, %v3688_v8  ;;  %3767 = vst.msk [vmem:[#allocation6 + $0x70] sm:$0xff] %vm1555_vm6, %v3686_v43  ;;  %v4189_v8 = vld [vmem:[#allocation3 + $0xf9] sm:$0xff]  ;;  %v4188_v43 = vld [vmem:[#allocation3 + $0xf1] sm:$0xff] }
 0x4da   : > { %4060 = vrot.lane.b32.xlu1 %v12289_v16, %s10506_s25  ;;  %4058 = vrot.lane.b32.xlu0 %v12291_v33, %s10506_s25 }
 0x4dc   : > { %v3692_v23 = vpop.permute.xlu1 %3691  ;;  %v3690_v52 = vpop.permute.xlu0 %3689 }
 0x4dd   : > { %3770 = vst.msk [vmem:[#allocation6 + $0x88] sm:$0xff] %vm1555_vm6, %v3692_v23  ;;  %3769 = vst.msk [vmem:[#allocation6 + $0x80] sm:$0xff] %vm1555_vm6, %v3690_v52 }
 0x4de   : > { %4064 = vrot.lane.b32.xlu1 %v12301_v27, %s10506_s25  ;;  %4062 = vrot.lane.b32.xlu0 %v12303_v51, %s10506_s25 }
 0x4e0   : > { %v3696_v4 = vpop.permute.xlu1 %3695  ;;  %v3694_v7 = vpop.permute.xlu0 %3693 }
 0x4e1   : > { %3772 = vst.msk [vmem:[#allocation6 + $0x98] sm:$0xff] %vm1555_vm6, %v3696_v4  ;;  %3771 = vst.msk [vmem:[#allocation6 + $0x90] sm:$0xff] %vm1555_vm6, %v3694_v7  ;;  %v4191_v4 = vld [vmem:[#allocation3 + $0x111] sm:$0xff]  ;;  %v4190_v7 = vld [vmem:[#allocation3 + $0x109] sm:$0xff] }
 0x4e2   : > { %4068 = vrot.lane.b32.xlu1 %v12313_v31, %s10506_s25  ;;  %4066 = vrot.lane.b32.xlu0 %v12315_v57, %s10506_s25 }
 0x4e4   : > { %v3700_v16 = vpop.permute.xlu1 %3699  ;;  %v3698_v33 = vpop.permute.xlu0 %3697 }
 0x4e5   : > { %3774 = vst.msk [vmem:[#allocation6 + $0xa8] sm:$0xff] %vm1555_vm6, %v3700_v16  ;;  %3773 = vst.msk [vmem:[#allocation6 + $0xa0] sm:$0xff] %vm1555_vm6, %v3698_v33 }
 0x4e6   : > { %4072 = vrot.lane.b32.xlu1 %v12325_v9, %s10506_s25  ;;  %4070 = vrot.lane.b32.xlu0 %v12327_v18, %s10506_s25 }
 0x4e8   : > { %v3704_v27 = vpop.permute.xlu1 %3703  ;;  %v3702_v51 = vpop.permute.xlu0 %3701 }
 0x4e9   : > { %3776 = vst.msk [vmem:[#allocation6 + $0xb8] sm:$0xff] %vm1555_vm6, %v3704_v27  ;;  %3775 = vst.msk [vmem:[#allocation6 + $0xb0] sm:$0xff] %vm1555_vm6, %v3702_v51  ;;  %v4193_v27 = vld [vmem:[#allocation3 + $0x129] sm:$0xff]  ;;  %v4192_v51 = vld [vmem:[#allocation3 + $0x121] sm:$0xff] }
 0x4ea   : > { %4076 = vrot.lane.b32.xlu1 %v12337_v11, %s10506_s25  ;;  %4074 = vrot.lane.b32.xlu0 %v12339_v24, %s10506_s25 }
 0x4ec   : > { %v3708_v31 = vpop.permute.xlu1 %3707  ;;  %v3706_v57 = vpop.permute.xlu0 %3705 }
 0x4ed   : > { %3778 = vst.msk [vmem:[#allocation6 + $0xc8] sm:$0xff] %vm1555_vm6, %v3708_v31  ;;  %3777 = vst.msk [vmem:[#allocation6 + $0xc0] sm:$0xff] %vm1555_vm6, %v3706_v57 }
 0x4ee   : > { %4080 = vrot.lane.b32.xlu1 %v12349_v47, %s10506_s25  ;;  %4078 = vrot.lane.b32.xlu0 %v12351_v21, %s10506_s25 }
 0x4f0   : > { %v3712_v9 = vpop.permute.xlu1 %3711  ;;  %v3710_v18 = vpop.permute.xlu0 %3709 }
 0x4f1   : > { %3780 = vst.msk [vmem:[#allocation6 + $0xd8] sm:$0xff] %vm1555_vm6, %v3712_v9  ;;  %3779 = vst.msk [vmem:[#allocation6 + $0xd0] sm:$0xff] %vm1555_vm6, %v3710_v18  ;;  %v4195_v9 = vld [vmem:[#allocation3 + $0x141] sm:$0xff]  ;;  %v4194_v18 = vld [vmem:[#allocation3 + $0x139] sm:$0xff] }
 0x4f2   : > { %4084 = vrot.lane.b32.xlu1 %v12361_v12, %s10506_s25  ;;  %4082 = vrot.lane.b32.xlu0 %v12363_v32, %s10506_s25 }
 0x4f4   : > { %v3716_v11 = vpop.permute.xlu1 %3715  ;;  %v3714_v24 = vpop.permute.xlu0 %3713 }
 0x4f5   : > { %3782 = vst.msk [vmem:[#allocation6 + $0xe8] sm:$0xff] %vm1555_vm6, %v3716_v11  ;;  %3781 = vst.msk [vmem:[#allocation6 + $0xe0] sm:$0xff] %vm1555_vm6, %v3714_v24 }
 0x4f6   : > { %4088 = vrot.lane.b32.xlu1 %v12373_v60, %s10506_s25  ;;  %4086 = vrot.lane.b32.xlu0 %v12375_v29, %s10506_s25 }
 0x4f8   : > { %v3720_v47 = vpop.permute.xlu1 %3719  ;;  %v3718_v21 = vpop.permute.xlu0 %3717 }
 0x4f9   : > { %3784 = vst.msk [vmem:[#allocation6 + $0xf8] sm:$0xff] %vm1555_vm6, %v3720_v47  ;;  %3783 = vst.msk [vmem:[#allocation6 + $0xf0] sm:$0xff] %vm1555_vm6, %v3718_v21  ;;  %v4197_v47 = vld [vmem:[#allocation3 + $0x159] sm:$0xff]  ;;  %v4196_v21 = vld [vmem:[#allocation3 + $0x151] sm:$0xff]  ;;  %vm6065_vm6 = vcmask 523744  }
 0x4fa   : > { %4092 = vrot.lane.b32.xlu1 %v12385_v55, %s10506_s25  ;;  %4090 = vrot.lane.b32.xlu0 %v12387_v58, %s10506_s25 }
 0x4fc   : > { %v3852_v12 = vpop.permute.xlu1 %3851  ;;  %v3850_v32 = vpop.permute.xlu0 %3849 }
 0x4fd   : > { %3946 = vst.msk [vmem:[#allocation6 + $0x8] sm:$0xff] %vm1748_vm7, %v3852_v12  ;;  %3945 = vst.msk [vmem:[#allocation6] sm:$0xff] %vm1748_vm7, %v3850_v32 }
 0x4fe   : > { %4096 = vrot.lane.b32.xlu1 %v12397_v59, %s10506_s25  ;;  %4094 = vrot.lane.b32.xlu0 %v12399_v13, %s10506_s25  ;;  %v4009_v59 = vld [vmem:[#allocation3 + $0x188] sm:$0xff]  ;;  %v4008_v13 = vld [vmem:[#allocation3 + $0x180] sm:$0xff] }
 0x500   : > { %v3856_v60 = vpop.permute.xlu1 %3855  ;;  %v3854_v29 = vpop.permute.xlu0 %3853 }
 0x501   : > { %3948 = vst.msk [vmem:[#allocation6 + $0x18] sm:$0xff] %vm1748_vm7, %v3856_v60  ;;  %3947 = vst.msk [vmem:[#allocation6 + $0x10] sm:$0xff] %vm1748_vm7, %v3854_v29  ;;  %v4199_v60 = vld [vmem:[#allocation3 + $0x171] sm:$0xff]  ;;  %v4198_v29 = vld [vmem:[#allocation3 + $0x169] sm:$0xff] }
 0x502   : > { %4100 = vrot.lane.b32.xlu1 %v12408_v38, %s10506_s25  ;;  %4098 = vrot.lane.b32.xlu0 %v12410_v42, %s10506_s25 }
 0x504   : > { %v3860_v55 = vpop.permute.xlu1 %3859  ;;  %v3858_v58 = vpop.permute.xlu0 %3857 }
 0x505   : > { %3950 = vst.msk [vmem:[#allocation6 + $0x28] sm:$0xff] %vm1748_vm7, %v3860_v55  ;;  %3949 = vst.msk [vmem:[#allocation6 + $0x20] sm:$0xff] %vm1748_vm7, %v3858_v58 }
 0x506   : > { %4104 = vrot.lane.b32.xlu1 %v4009_v59, %s10506_s25  ;;  %4102 = vrot.lane.b32.xlu0 %v4008_v13, %s10506_s25  ;;  %v4201_v59 = vld [vmem:[#allocation3 + $0x189] sm:$0xff]  ;;  %v4200_v13 = vld [vmem:[#allocation3 + $0x181] sm:$0xff]  ;;  %s10513_s25 = smov 40  }
 0x508   : > { %v3864_v28 = vpop.permute.xlu1 %3863  ;;  %v3862_v5 = vpop.permute.xlu0 %3861 }
 0x509   : > { %3952 = vst.msk [vmem:[#allocation6 + $0x38] sm:$0xff] %vm1748_vm7, %v3864_v28  ;;  %3951 = vst.msk [vmem:[#allocation6 + $0x30] sm:$0xff] %vm1748_vm7, %v3862_v5 }
 0x50a   : > { %4236 = vrot.lane.b32.xlu1 %v4171_v25, %s10508_s27  ;;  %4234 = vrot.lane.b32.xlu0 %v4170_v37, %s10508_s27  ;;  %v4363_v25 = vld [vmem:[#allocation3 + $0x22] sm:$0xff]  ;;  %v4362_v37 = vld [vmem:[#allocation3 + $0x1a] sm:$0xff] }
 0x50c   : > { %v3868_v38 = vpop.permute.xlu1 %3867  ;;  %v3866_v42 = vpop.permute.xlu0 %3865 }
 0x50d   : > { %3954 = vst.msk [vmem:[#allocation6 + $0x48] sm:$0xff] %vm1748_vm7, %v3868_v38  ;;  %3953 = vst.msk [vmem:[#allocation6 + $0x40] sm:$0xff] %vm1748_vm7, %v3866_v42 }
 0x50e   : > { %4240 = vrot.lane.b32.xlu1 %v4173_v40, %s10508_s27  ;;  %4238 = vrot.lane.b32.xlu0 %v4172_v14, %s10508_s27  ;;  %v4365_v40 = vld [vmem:[#allocation3 + $0x3a] sm:$0xff]  ;;  %v4364_v14 = vld [vmem:[#allocation3 + $0x32] sm:$0xff] }
 0x510   : > { %v3872_v2 = vpop.permute.xlu1 %3871  ;;  %v3870_v35 = vpop.permute.xlu0 %3869 }
 0x511   : > { %3956 = vst.msk [vmem:[#allocation6 + $0x58] sm:$0xff] %vm1748_vm7, %v3872_v2  ;;  %3955 = vst.msk [vmem:[#allocation6 + $0x50] sm:$0xff] %vm1748_vm7, %v3870_v35 }
 0x512   : > { %4244 = vrot.lane.b32.xlu1 %v4175_v50, %s10508_s27  ;;  %4242 = vrot.lane.b32.xlu0 %v4174_v22, %s10508_s27  ;;  %v4367_v50 = vld [vmem:[#allocation3 + $0x52] sm:$0xff]  ;;  %v4366_v22 = vld [vmem:[#allocation3 + $0x4a] sm:$0xff] }
 0x514   : > { %v3876_v26 = vpop.permute.xlu1 %3875  ;;  %v3874_v56 = vpop.permute.xlu0 %3873 }
 0x515   : > { %3958 = vst.msk [vmem:[#allocation6 + $0x68] sm:$0xff] %vm1748_vm7, %v3876_v26  ;;  %3957 = vst.msk [vmem:[#allocation6 + $0x60] sm:$0xff] %vm1748_vm7, %v3874_v56 }
 0x516   : > { %4248 = vrot.lane.b32.xlu1 %v4177_v15, %s10508_s27  ;;  %4246 = vrot.lane.b32.xlu0 %v4176_v36, %s10508_s27  ;;  %v4369_v15 = vld [vmem:[#allocation3 + $0x6a] sm:$0xff]  ;;  %v4368_v36 = vld [vmem:[#allocation3 + $0x62] sm:$0xff] }
 0x518   : > { %v3880_v30 = vpop.permute.xlu1 %3879  ;;  %v3878_v34 = vpop.permute.xlu0 %3877 }
 0x519   : > { %3960 = vst.msk [vmem:[#allocation6 + $0x78] sm:$0xff] %vm1748_vm7, %v3880_v30  ;;  %3959 = vst.msk [vmem:[#allocation6 + $0x70] sm:$0xff] %vm1748_vm7, %v3878_v34 }
 0x51a   : > { %4252 = vrot.lane.b32.xlu1 %v4179_v20, %s10508_s27  ;;  %4250 = vrot.lane.b32.xlu0 %v4178_v45, %s10508_s27  ;;  %v4371_v20 = vld [vmem:[#allocation3 + $0x82] sm:$0xff]  ;;  %v4370_v45 = vld [vmem:[#allocation3 + $0x7a] sm:$0xff] }
 0x51c   : > { %v3884_v39 = vpop.permute.xlu1 %3883  ;;  %v3882_v53 = vpop.permute.xlu0 %3881 }
 0x51d   : > { %3962 = vst.msk [vmem:[#allocation6 + $0x88] sm:$0xff] %vm1748_vm7, %v3884_v39  ;;  %3961 = vst.msk [vmem:[#allocation6 + $0x80] sm:$0xff] %vm1748_vm7, %v3882_v53 }
 0x51e   : > { %4256 = vrot.lane.b32.xlu1 %v4181_v48, %s10508_s27  ;;  %4254 = vrot.lane.b32.xlu0 %v4180_v6, %s10508_s27  ;;  %v4373_v48 = vld [vmem:[#allocation3 + $0x9a] sm:$0xff]  ;;  %v4372_v6 = vld [vmem:[#allocation3 + $0x92] sm:$0xff] }
 0x520   : > { %v3888_v19 = vpop.permute.xlu1 %3887  ;;  %v3886_v63 = vpop.permute.xlu0 %3885 }
 0x521   : > { %3964 = vst.msk [vmem:[#allocation6 + $0x98] sm:$0xff] %vm1748_vm7, %v3888_v19  ;;  %3963 = vst.msk [vmem:[#allocation6 + $0x90] sm:$0xff] %vm1748_vm7, %v3886_v63 }
 0x522   : > { %4260 = vrot.lane.b32.xlu1 %v4183_v49, %s10508_s27  ;;  %4258 = vrot.lane.b32.xlu0 %v4182_v61, %s10508_s27  ;;  %v4375_v49 = vld [vmem:[#allocation3 + $0xb2] sm:$0xff]  ;;  %v4374_v61 = vld [vmem:[#allocation3 + $0xaa] sm:$0xff] }
 0x524   : > { %v3892_v0 = vpop.permute.xlu1 %3891  ;;  %v3890_v10 = vpop.permute.xlu0 %3889 }
 0x525   : > { %3966 = vst.msk [vmem:[#allocation6 + $0xa8] sm:$0xff] %vm1748_vm7, %v3892_v0  ;;  %3965 = vst.msk [vmem:[#allocation6 + $0xa0] sm:$0xff] %vm1748_vm7, %v3890_v10 }
 0x526   : > { %4264 = vrot.lane.b32.xlu1 %v4185_v17, %s10508_s27  ;;  %4262 = vrot.lane.b32.xlu0 %v4184_v54, %s10508_s27  ;;  %v4377_v17 = vld [vmem:[#allocation3 + $0xca] sm:$0xff]  ;;  %v4376_v54 = vld [vmem:[#allocation3 + $0xc2] sm:$0xff] }
 0x528   : > { %v3896_v41 = vpop.permute.xlu1 %3895  ;;  %v3894_v44 = vpop.permute.xlu0 %3893 }
 0x529   : > { %3968 = vst.msk [vmem:[#allocation6 + $0xb8] sm:$0xff] %vm1748_vm7, %v3896_v41  ;;  %3967 = vst.msk [vmem:[#allocation6 + $0xb0] sm:$0xff] %vm1748_vm7, %v3894_v44 }
 0x52a   : > { %4268 = vrot.lane.b32.xlu1 %v4187_v3, %s10508_s27  ;;  %4266 = vrot.lane.b32.xlu0 %v4186_v1, %s10508_s27  ;;  %v4379_v3 = vld [vmem:[#allocation3 + $0xe2] sm:$0xff]  ;;  %v4378_v1 = vld [vmem:[#allocation3 + $0xda] sm:$0xff] }
 0x52c   : > { %v3900_v62 = vpop.permute.xlu1 %3899  ;;  %v3898_v46 = vpop.permute.xlu0 %3897 }
 0x52d   : > { %3970 = vst.msk [vmem:[#allocation6 + $0xc8] sm:$0xff] %vm1748_vm7, %v3900_v62  ;;  %3969 = vst.msk [vmem:[#allocation6 + $0xc0] sm:$0xff] %vm1748_vm7, %v3898_v46 }
 0x52e   : > { %4272 = vrot.lane.b32.xlu1 %v4189_v8, %s10508_s27  ;;  %4270 = vrot.lane.b32.xlu0 %v4188_v43, %s10508_s27  ;;  %v4381_v8 = vld [vmem:[#allocation3 + $0xfa] sm:$0xff]  ;;  %v4380_v43 = vld [vmem:[#allocation3 + $0xf2] sm:$0xff] }
 0x530   : > { %v3904_v23 = vpop.permute.xlu1 %3903  ;;  %v3902_v52 = vpop.permute.xlu0 %3901 }
 0x531   : > { %3972 = vst.msk [vmem:[#allocation6 + $0xd8] sm:$0xff] %vm1748_vm7, %v3904_v23  ;;  %3971 = vst.msk [vmem:[#allocation6 + $0xd0] sm:$0xff] %vm1748_vm7, %v3902_v52 }
 0x532   : > { %4276 = vrot.lane.b32.xlu1 %v4191_v4, %s10508_s27  ;;  %4274 = vrot.lane.b32.xlu0 %v4190_v7, %s10508_s27  ;;  %v4383_v4 = vld [vmem:[#allocation3 + $0x112] sm:$0xff]  ;;  %v4382_v7 = vld [vmem:[#allocation3 + $0x10a] sm:$0xff] }
 0x534   : > { %v3908_v16 = vpop.permute.xlu1 %3907  ;;  %v3906_v33 = vpop.permute.xlu0 %3905 }
 0x535   : > { %3974 = vst.msk [vmem:[#allocation6 + $0xe8] sm:$0xff] %vm1748_vm7, %v3908_v16  ;;  %3973 = vst.msk [vmem:[#allocation6 + $0xe0] sm:$0xff] %vm1748_vm7, %v3906_v33 }
 0x536   : > { %4280 = vrot.lane.b32.xlu1 %v4193_v27, %s10508_s27  ;;  %4278 = vrot.lane.b32.xlu0 %v4192_v51, %s10508_s27  ;;  %v4385_v27 = vld [vmem:[#allocation3 + $0x12a] sm:$0xff]  ;;  %v4384_v51 = vld [vmem:[#allocation3 + $0x122] sm:$0xff] }
 0x538   : > { %v3912_v31 = vpop.permute.xlu1 %3911  ;;  %v3910_v57 = vpop.permute.xlu0 %3909 }
 0x539   : > { %3976 = vst.msk [vmem:[#allocation6 + $0xf8] sm:$0xff] %vm1748_vm7, %v3912_v31  ;;  %3975 = vst.msk [vmem:[#allocation6 + $0xf0] sm:$0xff] %vm1748_vm7, %v3910_v57  ;;  %vm6258_vm7 = vcmask 556544  }
 0x53a   : > { %4284 = vrot.lane.b32.xlu1 %v4195_v9, %s10508_s27  ;;  %4282 = vrot.lane.b32.xlu0 %v4194_v18, %s10508_s27  ;;  %v4387_v9 = vld [vmem:[#allocation3 + $0x142] sm:$0xff]  ;;  %v4386_v18 = vld [vmem:[#allocation3 + $0x13a] sm:$0xff] }
 0x53c   : > { %v4045_v11 = vpop.permute.xlu1 %4044  ;;  %v4043_v24 = vpop.permute.xlu0 %4042 }
 0x53d   : > { %4139 = vst.msk [vmem:[#allocation6 + $0x8] sm:$0xff] %vm1941_vm8, %v4045_v11  ;;  %4138 = vst.msk [vmem:[#allocation6] sm:$0xff] %vm1941_vm8, %v4043_v24 }
 0x53e   : > { %4288 = vrot.lane.b32.xlu1 %v4197_v47, %s10508_s27  ;;  %4286 = vrot.lane.b32.xlu0 %v4196_v21, %s10508_s27  ;;  %v4389_v47 = vld [vmem:[#allocation3 + $0x15a] sm:$0xff]  ;;  %v4388_v21 = vld [vmem:[#allocation3 + $0x152] sm:$0xff] }
 0x540   : > { %v4049_v12 = vpop.permute.xlu1 %4048  ;;  %v4047_v32 = vpop.permute.xlu0 %4046 }
 0x541   : > { %4141 = vst.msk [vmem:[#allocation6 + $0x18] sm:$0xff] %vm1941_vm8, %v4049_v12  ;;  %4140 = vst.msk [vmem:[#allocation6 + $0x10] sm:$0xff] %vm1941_vm8, %v4047_v32 }
 0x542   : > { %4292 = vrot.lane.b32.xlu1 %v4199_v60, %s10508_s27  ;;  %4290 = vrot.lane.b32.xlu0 %v4198_v29, %s10508_s27  ;;  %v4391_v60 = vld [vmem:[#allocation3 + $0x172] sm:$0xff]  ;;  %v4390_v29 = vld [vmem:[#allocation3 + $0x16a] sm:$0xff] }
 0x544   : > { %v4053_v55 = vpop.permute.xlu1 %4052  ;;  %v4051_v58 = vpop.permute.xlu0 %4050 }
 0x545   : > { %4143 = vst.msk [vmem:[#allocation6 + $0x28] sm:$0xff] %vm1941_vm8, %v4053_v55  ;;  %4142 = vst.msk [vmem:[#allocation6 + $0x20] sm:$0xff] %vm1941_vm8, %v4051_v58 }
 0x546   : > { %4296 = vrot.lane.b32.xlu1 %v4201_v59, %s10508_s27  ;;  %4294 = vrot.lane.b32.xlu0 %v4200_v13, %s10508_s27  ;;  %v4393_v59 = vld [vmem:[#allocation3 + $0x18a] sm:$0xff]  ;;  %v4392_v13 = vld [vmem:[#allocation3 + $0x182] sm:$0xff] }
 0x548   : > { %v4057_v28 = vpop.permute.xlu1 %4056  ;;  %v4055_v5 = vpop.permute.xlu0 %4054 }
 0x549   : > { %4145 = vst.msk [vmem:[#allocation6 + $0x38] sm:$0xff] %vm1941_vm8, %v4057_v28  ;;  %4144 = vst.msk [vmem:[#allocation6 + $0x30] sm:$0xff] %vm1941_vm8, %v4055_v5 }
 0x54a   : > { %4428 = vrot.lane.b32.xlu1 %v4363_v25, %s10509_s16  ;;  %4426 = vrot.lane.b32.xlu0 %v4362_v37, %s10509_s16  ;;  %v4555_v25 = vld [vmem:[#allocation3 + $0x23] sm:$0xff]  ;;  %v4554_v37 = vld [vmem:[#allocation3 + $0x1b] sm:$0xff] }
 0x54c   : > { %v4061_v38 = vpop.permute.xlu1 %4060  ;;  %v4059_v42 = vpop.permute.xlu0 %4058 }
 0x54d   : > { %4147 = vst.msk [vmem:[#allocation6 + $0x48] sm:$0xff] %vm1941_vm8, %v4061_v38  ;;  %4146 = vst.msk [vmem:[#allocation6 + $0x40] sm:$0xff] %vm1941_vm8, %v4059_v42 }
 0x54e   : > { %4432 = vrot.lane.b32.xlu1 %v4365_v40, %s10509_s16  ;;  %4430 = vrot.lane.b32.xlu0 %v4364_v14, %s10509_s16  ;;  %v4557_v40 = vld [vmem:[#allocation3 + $0x3b] sm:$0xff]  ;;  %v4556_v14 = vld [vmem:[#allocation3 + $0x33] sm:$0xff] }
 0x550   : > { %v4065_v2 = vpop.permute.xlu1 %4064  ;;  %v4063_v35 = vpop.permute.xlu0 %4062 }
 0x551   : > { %4149 = vst.msk [vmem:[#allocation6 + $0x58] sm:$0xff] %vm1941_vm8, %v4065_v2  ;;  %4148 = vst.msk [vmem:[#allocation6 + $0x50] sm:$0xff] %vm1941_vm8, %v4063_v35 }
 0x552   : > { %4436 = vrot.lane.b32.xlu1 %v4367_v50, %s10509_s16  ;;  %4434 = vrot.lane.b32.xlu0 %v4366_v22, %s10509_s16  ;;  %v4559_v50 = vld [vmem:[#allocation3 + $0x53] sm:$0xff]  ;;  %v4558_v22 = vld [vmem:[#allocation3 + $0x4b] sm:$0xff] }
 0x554   : > { %v4069_v26 = vpop.permute.xlu1 %4068  ;;  %v4067_v56 = vpop.permute.xlu0 %4066 }
 0x555   : > { %4151 = vst.msk [vmem:[#allocation6 + $0x68] sm:$0xff] %vm1941_vm8, %v4069_v26  ;;  %4150 = vst.msk [vmem:[#allocation6 + $0x60] sm:$0xff] %vm1941_vm8, %v4067_v56 }
 0x556   : > { %4440 = vrot.lane.b32.xlu1 %v4369_v15, %s10509_s16  ;;  %4438 = vrot.lane.b32.xlu0 %v4368_v36, %s10509_s16  ;;  %v4561_v15 = vld [vmem:[#allocation3 + $0x6b] sm:$0xff]  ;;  %v4560_v36 = vld [vmem:[#allocation3 + $0x63] sm:$0xff] }
 0x558   : > { %v4073_v30 = vpop.permute.xlu1 %4072  ;;  %v4071_v34 = vpop.permute.xlu0 %4070 }
 0x559   : > { %4153 = vst.msk [vmem:[#allocation6 + $0x78] sm:$0xff] %vm1941_vm8, %v4073_v30  ;;  %4152 = vst.msk [vmem:[#allocation6 + $0x70] sm:$0xff] %vm1941_vm8, %v4071_v34 }
 0x55a   : > { %4444 = vrot.lane.b32.xlu1 %v4371_v20, %s10509_s16  ;;  %4442 = vrot.lane.b32.xlu0 %v4370_v45, %s10509_s16  ;;  %v4563_v20 = vld [vmem:[#allocation3 + $0x83] sm:$0xff]  ;;  %v4562_v45 = vld [vmem:[#allocation3 + $0x7b] sm:$0xff] }
 0x55c   : > { %v4077_v39 = vpop.permute.xlu1 %4076  ;;  %v4075_v53 = vpop.permute.xlu0 %4074 }
 0x55d   : > { %4155 = vst.msk [vmem:[#allocation6 + $0x88] sm:$0xff] %vm1941_vm8, %v4077_v39  ;;  %4154 = vst.msk [vmem:[#allocation6 + $0x80] sm:$0xff] %vm1941_vm8, %v4075_v53 }
 0x55e   : > { %4448 = vrot.lane.b32.xlu1 %v4373_v48, %s10509_s16  ;;  %4446 = vrot.lane.b32.xlu0 %v4372_v6, %s10509_s16  ;;  %v4565_v48 = vld [vmem:[#allocation3 + $0x9b] sm:$0xff]  ;;  %v4564_v6 = vld [vmem:[#allocation3 + $0x93] sm:$0xff] }
 0x560   : > { %v4081_v19 = vpop.permute.xlu1 %4080  ;;  %v4079_v63 = vpop.permute.xlu0 %4078 }
 0x561   : > { %4157 = vst.msk [vmem:[#allocation6 + $0x98] sm:$0xff] %vm1941_vm8, %v4081_v19  ;;  %4156 = vst.msk [vmem:[#allocation6 + $0x90] sm:$0xff] %vm1941_vm8, %v4079_v63 }
 0x562   : > { %4452 = vrot.lane.b32.xlu1 %v4375_v49, %s10509_s16  ;;  %4450 = vrot.lane.b32.xlu0 %v4374_v61, %s10509_s16  ;;  %v4567_v49 = vld [vmem:[#allocation3 + $0xb3] sm:$0xff]  ;;  %v4566_v61 = vld [vmem:[#allocation3 + $0xab] sm:$0xff] }
 0x564   : > { %v4085_v0 = vpop.permute.xlu1 %4084  ;;  %v4083_v10 = vpop.permute.xlu0 %4082 }
 0x565   : > { %4159 = vst.msk [vmem:[#allocation6 + $0xa8] sm:$0xff] %vm1941_vm8, %v4085_v0  ;;  %4158 = vst.msk [vmem:[#allocation6 + $0xa0] sm:$0xff] %vm1941_vm8, %v4083_v10 }
 0x566   : > { %4456 = vrot.lane.b32.xlu1 %v4377_v17, %s10509_s16  ;;  %4454 = vrot.lane.b32.xlu0 %v4376_v54, %s10509_s16  ;;  %v4569_v17 = vld [vmem:[#allocation3 + $0xcb] sm:$0xff]  ;;  %v4568_v54 = vld [vmem:[#allocation3 + $0xc3] sm:$0xff] }
 0x568   : > { %v4089_v41 = vpop.permute.xlu1 %4088  ;;  %v4087_v44 = vpop.permute.xlu0 %4086 }
 0x569   : > { %4161 = vst.msk [vmem:[#allocation6 + $0xb8] sm:$0xff] %vm1941_vm8, %v4089_v41  ;;  %4160 = vst.msk [vmem:[#allocation6 + $0xb0] sm:$0xff] %vm1941_vm8, %v4087_v44 }
 0x56a   : > { %4460 = vrot.lane.b32.xlu1 %v4379_v3, %s10509_s16  ;;  %4458 = vrot.lane.b32.xlu0 %v4378_v1, %s10509_s16  ;;  %v4571_v3 = vld [vmem:[#allocation3 + $0xe3] sm:$0xff]  ;;  %v4570_v1 = vld [vmem:[#allocation3 + $0xdb] sm:$0xff] }
 0x56c   : > { %v4093_v62 = vpop.permute.xlu1 %4092  ;;  %v4091_v46 = vpop.permute.xlu0 %4090 }
 0x56d   : > { %4163 = vst.msk [vmem:[#allocation6 + $0xc8] sm:$0xff] %vm1941_vm8, %v4093_v62  ;;  %4162 = vst.msk [vmem:[#allocation6 + $0xc0] sm:$0xff] %vm1941_vm8, %v4091_v46 }
 0x56e   : > { %4464 = vrot.lane.b32.xlu1 %v4381_v8, %s10509_s16  ;;  %4462 = vrot.lane.b32.xlu0 %v4380_v43, %s10509_s16  ;;  %v4573_v8 = vld [vmem:[#allocation3 + $0xfb] sm:$0xff]  ;;  %v4572_v43 = vld [vmem:[#allocation3 + $0xf3] sm:$0xff] }
 0x570   : > { %v4097_v23 = vpop.permute.xlu1 %4096  ;;  %v4095_v52 = vpop.permute.xlu0 %4094 }
 0x571   : > { %4165 = vst.msk [vmem:[#allocation6 + $0xd8] sm:$0xff] %vm1941_vm8, %v4097_v23  ;;  %4164 = vst.msk [vmem:[#allocation6 + $0xd0] sm:$0xff] %vm1941_vm8, %v4095_v52 }
 0x572   : > { %4468 = vrot.lane.b32.xlu1 %v4383_v4, %s10509_s16  ;;  %4466 = vrot.lane.b32.xlu0 %v4382_v7, %s10509_s16  ;;  %v4575_v4 = vld [vmem:[#allocation3 + $0x113] sm:$0xff]  ;;  %v4574_v7 = vld [vmem:[#allocation3 + $0x10b] sm:$0xff] }
 0x574   : > { %v4101_v16 = vpop.permute.xlu1 %4100  ;;  %v4099_v33 = vpop.permute.xlu0 %4098 }
 0x575   : > { %4167 = vst.msk [vmem:[#allocation6 + $0xe8] sm:$0xff] %vm1941_vm8, %v4101_v16  ;;  %4166 = vst.msk [vmem:[#allocation6 + $0xe0] sm:$0xff] %vm1941_vm8, %v4099_v33 }
 0x576   : > { %4472 = vrot.lane.b32.xlu1 %v4385_v27, %s10509_s16  ;;  %4470 = vrot.lane.b32.xlu0 %v4384_v51, %s10509_s16  ;;  %v4577_v27 = vld [vmem:[#allocation3 + $0x12b] sm:$0xff]  ;;  %v4576_v51 = vld [vmem:[#allocation3 + $0x123] sm:$0xff] }
 0x578   : > { %v4105_v31 = vpop.permute.xlu1 %4104  ;;  %v4103_v57 = vpop.permute.xlu0 %4102 }
 0x579   : > { %4169 = vst.msk [vmem:[#allocation6 + $0xf8] sm:$0xff] %vm1941_vm8, %v4105_v31  ;;  %4168 = vst.msk [vmem:[#allocation6 + $0xf0] sm:$0xff] %vm1941_vm8, %v4103_v57  ;;  %vm6451_vm8 = vcmask 589344  }
 0x57a   : > { %4476 = vrot.lane.b32.xlu1 %v4387_v9, %s10509_s16  ;;  %4474 = vrot.lane.b32.xlu0 %v4386_v18, %s10509_s16  ;;  %v4579_v9 = vld [vmem:[#allocation3 + $0x143] sm:$0xff]  ;;  %v4578_v18 = vld [vmem:[#allocation3 + $0x13b] sm:$0xff] }
 0x57c   : > { %v4237_v11 = vpop.permute.xlu1 %4236  ;;  %v4235_v24 = vpop.permute.xlu0 %4234 }
 0x57d   : > { %4331 = vst.msk [vmem:[#allocation6 + $0x8] sm:$0xff] %vm2135_vm9, %v4237_v11  ;;  %4330 = vst.msk [vmem:[#allocation6] sm:$0xff] %vm2135_vm9, %v4235_v24 }
 0x57e   : > { %4480 = vrot.lane.b32.xlu1 %v4389_v47, %s10509_s16  ;;  %4478 = vrot.lane.b32.xlu0 %v4388_v21, %s10509_s16  ;;  %v4581_v47 = vld [vmem:[#allocation3 + $0x15b] sm:$0xff]  ;;  %v4580_v21 = vld [vmem:[#allocation3 + $0x153] sm:$0xff] }
 0x580   : > { %v4241_v12 = vpop.permute.xlu1 %4240  ;;  %v4239_v32 = vpop.permute.xlu0 %4238 }
 0x581   : > { %4333 = vst.msk [vmem:[#allocation6 + $0x18] sm:$0xff] %vm2135_vm9, %v4241_v12  ;;  %4332 = vst.msk [vmem:[#allocation6 + $0x10] sm:$0xff] %vm2135_vm9, %v4239_v32 }
 0x582   : > { %4484 = vrot.lane.b32.xlu1 %v4391_v60, %s10509_s16  ;;  %4482 = vrot.lane.b32.xlu0 %v4390_v29, %s10509_s16  ;;  %v4583_v60 = vld [vmem:[#allocation3 + $0x173] sm:$0xff]  ;;  %v4582_v29 = vld [vmem:[#allocation3 + $0x16b] sm:$0xff] }
 0x584   : > { %v4245_v55 = vpop.permute.xlu1 %4244  ;;  %v4243_v58 = vpop.permute.xlu0 %4242 }
 0x585   : > { %4335 = vst.msk [vmem:[#allocation6 + $0x28] sm:$0xff] %vm2135_vm9, %v4245_v55  ;;  %4334 = vst.msk [vmem:[#allocation6 + $0x20] sm:$0xff] %vm2135_vm9, %v4243_v58 }
 0x586   : > { %4488 = vrot.lane.b32.xlu1 %v4393_v59, %s10509_s16  ;;  %4486 = vrot.lane.b32.xlu0 %v4392_v13, %s10509_s16  ;;  %v4585_v59 = vld [vmem:[#allocation3 + $0x18b] sm:$0xff]  ;;  %v4584_v13 = vld [vmem:[#allocation3 + $0x183] sm:$0xff]  ;;  %s10515_s16 = smov 48  }
 0x588   : > { %v4249_v28 = vpop.permute.xlu1 %4248  ;;  %v4247_v5 = vpop.permute.xlu0 %4246 }
 0x589   : > { %4337 = vst.msk [vmem:[#allocation6 + $0x38] sm:$0xff] %vm2135_vm9, %v4249_v28  ;;  %4336 = vst.msk [vmem:[#allocation6 + $0x30] sm:$0xff] %vm2135_vm9, %v4247_v5 }
 0x58a   : > { %4620 = vrot.lane.b32.xlu1 %v4555_v25, %s10510_s14  ;;  %4618 = vrot.lane.b32.xlu0 %v4554_v37, %s10510_s14  ;;  %v4747_v25 = vld [vmem:[#allocation3 + $0x24] sm:$0xff]  ;;  %v4746_v37 = vld [vmem:[#allocation3 + $0x1c] sm:$0xff] }
 0x58c   : > { %v4253_v38 = vpop.permute.xlu1 %4252  ;;  %v4251_v42 = vpop.permute.xlu0 %4250 }
 0x58d   : > { %4339 = vst.msk [vmem:[#allocation6 + $0x48] sm:$0xff] %vm2135_vm9, %v4253_v38  ;;  %4338 = vst.msk [vmem:[#allocation6 + $0x40] sm:$0xff] %vm2135_vm9, %v4251_v42 }
 0x58e   : > { %4624 = vrot.lane.b32.xlu1 %v4557_v40, %s10510_s14  ;;  %4622 = vrot.lane.b32.xlu0 %v4556_v14, %s10510_s14  ;;  %v4749_v40 = vld [vmem:[#allocation3 + $0x3c] sm:$0xff]  ;;  %v4748_v14 = vld [vmem:[#allocation3 + $0x34] sm:$0xff] }
 0x590   : > { %v4257_v2 = vpop.permute.xlu1 %4256  ;;  %v4255_v35 = vpop.permute.xlu0 %4254 }
 0x591   : > { %4341 = vst.msk [vmem:[#allocation6 + $0x58] sm:$0xff] %vm2135_vm9, %v4257_v2  ;;  %4340 = vst.msk [vmem:[#allocation6 + $0x50] sm:$0xff] %vm2135_vm9, %v4255_v35 }
 0x592   : > { %4628 = vrot.lane.b32.xlu1 %v4559_v50, %s10510_s14  ;;  %4626 = vrot.lane.b32.xlu0 %v4558_v22, %s10510_s14  ;;  %v4751_v50 = vld [vmem:[#allocation3 + $0x54] sm:$0xff]  ;;  %v4750_v22 = vld [vmem:[#allocation3 + $0x4c] sm:$0xff] }
 0x594   : > { %v4261_v26 = vpop.permute.xlu1 %4260  ;;  %v4259_v56 = vpop.permute.xlu0 %4258 }
 0x595   : > { %4343 = vst.msk [vmem:[#allocation6 + $0x68] sm:$0xff] %vm2135_vm9, %v4261_v26  ;;  %4342 = vst.msk [vmem:[#allocation6 + $0x60] sm:$0xff] %vm2135_vm9, %v4259_v56 }
 0x596   : > { %4632 = vrot.lane.b32.xlu1 %v4561_v15, %s10510_s14  ;;  %4630 = vrot.lane.b32.xlu0 %v4560_v36, %s10510_s14  ;;  %v4753_v15 = vld [vmem:[#allocation3 + $0x6c] sm:$0xff]  ;;  %v4752_v36 = vld [vmem:[#allocation3 + $0x64] sm:$0xff] }
 0x598   : > { %v4265_v30 = vpop.permute.xlu1 %4264  ;;  %v4263_v34 = vpop.permute.xlu0 %4262 }
 0x599   : > { %4345 = vst.msk [vmem:[#allocation6 + $0x78] sm:$0xff] %vm2135_vm9, %v4265_v30  ;;  %4344 = vst.msk [vmem:[#allocation6 + $0x70] sm:$0xff] %vm2135_vm9, %v4263_v34 }
 0x59a   : > { %4636 = vrot.lane.b32.xlu1 %v4563_v20, %s10510_s14  ;;  %4634 = vrot.lane.b32.xlu0 %v4562_v45, %s10510_s14  ;;  %v4755_v20 = vld [vmem:[#allocation3 + $0x84] sm:$0xff]  ;;  %v4754_v45 = vld [vmem:[#allocation3 + $0x7c] sm:$0xff] }
 0x59c   : > { %v4269_v39 = vpop.permute.xlu1 %4268  ;;  %v4267_v53 = vpop.permute.xlu0 %4266 }
 0x59d   : > { %4347 = vst.msk [vmem:[#allocation6 + $0x88] sm:$0xff] %vm2135_vm9, %v4269_v39  ;;  %4346 = vst.msk [vmem:[#allocation6 + $0x80] sm:$0xff] %vm2135_vm9, %v4267_v53 }
 0x59e   : > { %4640 = vrot.lane.b32.xlu1 %v4565_v48, %s10510_s14  ;;  %4638 = vrot.lane.b32.xlu0 %v4564_v6, %s10510_s14  ;;  %v4757_v48 = vld [vmem:[#allocation3 + $0x9c] sm:$0xff]  ;;  %v4756_v6 = vld [vmem:[#allocation3 + $0x94] sm:$0xff] }
 0x5a0   : > { %v4273_v19 = vpop.permute.xlu1 %4272  ;;  %v4271_v63 = vpop.permute.xlu0 %4270 }
 0x5a1   : > { %4349 = vst.msk [vmem:[#allocation6 + $0x98] sm:$0xff] %vm2135_vm9, %v4273_v19  ;;  %4348 = vst.msk [vmem:[#allocation6 + $0x90] sm:$0xff] %vm2135_vm9, %v4271_v63 }
 0x5a2   : > { %4644 = vrot.lane.b32.xlu1 %v4567_v49, %s10510_s14  ;;  %4642 = vrot.lane.b32.xlu0 %v4566_v61, %s10510_s14  ;;  %v4759_v49 = vld [vmem:[#allocation3 + $0xb4] sm:$0xff]  ;;  %v4758_v61 = vld [vmem:[#allocation3 + $0xac] sm:$0xff] }
 0x5a4   : > { %v4277_v0 = vpop.permute.xlu1 %4276  ;;  %v4275_v10 = vpop.permute.xlu0 %4274 }
 0x5a5   : > { %4351 = vst.msk [vmem:[#allocation6 + $0xa8] sm:$0xff] %vm2135_vm9, %v4277_v0  ;;  %4350 = vst.msk [vmem:[#allocation6 + $0xa0] sm:$0xff] %vm2135_vm9, %v4275_v10 }
 0x5a6   : > { %4648 = vrot.lane.b32.xlu1 %v4569_v17, %s10510_s14  ;;  %4646 = vrot.lane.b32.xlu0 %v4568_v54, %s10510_s14  ;;  %v4761_v17 = vld [vmem:[#allocation3 + $0xcc] sm:$0xff]  ;;  %v4760_v54 = vld [vmem:[#allocation3 + $0xc4] sm:$0xff] }
 0x5a8   : > { %v4281_v41 = vpop.permute.xlu1 %4280  ;;  %v4279_v44 = vpop.permute.xlu0 %4278 }
 0x5a9   : > { %4353 = vst.msk [vmem:[#allocation6 + $0xb8] sm:$0xff] %vm2135_vm9, %v4281_v41  ;;  %4352 = vst.msk [vmem:[#allocation6 + $0xb0] sm:$0xff] %vm2135_vm9, %v4279_v44 }
 0x5aa   : > { %4652 = vrot.lane.b32.xlu1 %v4571_v3, %s10510_s14  ;;  %4650 = vrot.lane.b32.xlu0 %v4570_v1, %s10510_s14  ;;  %v4763_v3 = vld [vmem:[#allocation3 + $0xe4] sm:$0xff]  ;;  %v4762_v1 = vld [vmem:[#allocation3 + $0xdc] sm:$0xff] }
 0x5ac   : > { %v4285_v62 = vpop.permute.xlu1 %4284  ;;  %v4283_v46 = vpop.permute.xlu0 %4282 }
 0x5ad   : > { %4355 = vst.msk [vmem:[#allocation6 + $0xc8] sm:$0xff] %vm2135_vm9, %v4285_v62  ;;  %4354 = vst.msk [vmem:[#allocation6 + $0xc0] sm:$0xff] %vm2135_vm9, %v4283_v46 }
 0x5ae   : > { %4656 = vrot.lane.b32.xlu1 %v4573_v8, %s10510_s14  ;;  %4654 = vrot.lane.b32.xlu0 %v4572_v43, %s10510_s14  ;;  %v4765_v8 = vld [vmem:[#allocation3 + $0xfc] sm:$0xff]  ;;  %v4764_v43 = vld [vmem:[#allocation3 + $0xf4] sm:$0xff] }
 0x5b0   : > { %v4289_v23 = vpop.permute.xlu1 %4288  ;;  %v4287_v52 = vpop.permute.xlu0 %4286 }
 0x5b1   : > { %4357 = vst.msk [vmem:[#allocation6 + $0xd8] sm:$0xff] %vm2135_vm9, %v4289_v23  ;;  %4356 = vst.msk [vmem:[#allocation6 + $0xd0] sm:$0xff] %vm2135_vm9, %v4287_v52 }
 0x5b2   : > { %4660 = vrot.lane.b32.xlu1 %v4575_v4, %s10510_s14  ;;  %4658 = vrot.lane.b32.xlu0 %v4574_v7, %s10510_s14  ;;  %v4767_v4 = vld [vmem:[#allocation3 + $0x114] sm:$0xff]  ;;  %v4766_v7 = vld [vmem:[#allocation3 + $0x10c] sm:$0xff] }
 0x5b4   : > { %v4293_v16 = vpop.permute.xlu1 %4292  ;;  %v4291_v33 = vpop.permute.xlu0 %4290 }
 0x5b5   : > { %4359 = vst.msk [vmem:[#allocation6 + $0xe8] sm:$0xff] %vm2135_vm9, %v4293_v16  ;;  %4358 = vst.msk [vmem:[#allocation6 + $0xe0] sm:$0xff] %vm2135_vm9, %v4291_v33 }
 0x5b6   : > { %4664 = vrot.lane.b32.xlu1 %v4577_v27, %s10510_s14  ;;  %4662 = vrot.lane.b32.xlu0 %v4576_v51, %s10510_s14  ;;  %v4769_v27 = vld [vmem:[#allocation3 + $0x12c] sm:$0xff]  ;;  %v4768_v51 = vld [vmem:[#allocation3 + $0x124] sm:$0xff] }
 0x5b8   : > { %v4297_v31 = vpop.permute.xlu1 %4296  ;;  %v4295_v57 = vpop.permute.xlu0 %4294 }
 0x5b9   : > { %4361 = vst.msk [vmem:[#allocation6 + $0xf8] sm:$0xff] %vm2135_vm9, %v4297_v31  ;;  %4360 = vst.msk [vmem:[#allocation6 + $0xf0] sm:$0xff] %vm2135_vm9, %v4295_v57  ;;  %vm6644_vm9 = vcmask 622144  }
 0x5ba   : > { %4668 = vrot.lane.b32.xlu1 %v4579_v9, %s10510_s14  ;;  %4666 = vrot.lane.b32.xlu0 %v4578_v18, %s10510_s14  ;;  %v4771_v9 = vld [vmem:[#allocation3 + $0x144] sm:$0xff]  ;;  %v4770_v18 = vld [vmem:[#allocation3 + $0x13c] sm:$0xff] }
 0x5bc   : > { %v4429_v11 = vpop.permute.xlu1 %4428  ;;  %v4427_v24 = vpop.permute.xlu0 %4426 }
 0x5bd   : > { %4523 = vst.msk [vmem:[#allocation6 + $0x8] sm:$0xff] %vm2328_vm11, %v4429_v11  ;;  %4522 = vst.msk [vmem:[#allocation6] sm:$0xff] %vm2328_vm11, %v4427_v24 }
 0x5be   : > { %4672 = vrot.lane.b32.xlu1 %v4581_v47, %s10510_s14  ;;  %4670 = vrot.lane.b32.xlu0 %v4580_v21, %s10510_s14  ;;  %v4773_v47 = vld [vmem:[#allocation3 + $0x15c] sm:$0xff]  ;;  %v4772_v21 = vld [vmem:[#allocation3 + $0x154] sm:$0xff] }
 0x5c0   : > { %v4433_v12 = vpop.permute.xlu1 %4432  ;;  %v4431_v32 = vpop.permute.xlu0 %4430 }
 0x5c1   : > { %4525 = vst.msk [vmem:[#allocation6 + $0x18] sm:$0xff] %vm2328_vm11, %v4433_v12  ;;  %4524 = vst.msk [vmem:[#allocation6 + $0x10] sm:$0xff] %vm2328_vm11, %v4431_v32 }
 0x5c2   : > { %4676 = vrot.lane.b32.xlu1 %v4583_v60, %s10510_s14  ;;  %4674 = vrot.lane.b32.xlu0 %v4582_v29, %s10510_s14  ;;  %v4775_v60 = vld [vmem:[#allocation3 + $0x174] sm:$0xff]  ;;  %v4774_v29 = vld [vmem:[#allocation3 + $0x16c] sm:$0xff] }
 0x5c4   : > { %v4437_v55 = vpop.permute.xlu1 %4436  ;;  %v4435_v58 = vpop.permute.xlu0 %4434 }
 0x5c5   : > { %4527 = vst.msk [vmem:[#allocation6 + $0x28] sm:$0xff] %vm2328_vm11, %v4437_v55  ;;  %4526 = vst.msk [vmem:[#allocation6 + $0x20] sm:$0xff] %vm2328_vm11, %v4435_v58 }
 0x5c6   : > { %4680 = vrot.lane.b32.xlu1 %v4585_v59, %s10510_s14  ;;  %4678 = vrot.lane.b32.xlu0 %v4584_v13, %s10510_s14  ;;  %v4777_v59 = vld [vmem:[#allocation3 + $0x18c] sm:$0xff]  ;;  %v4776_v13 = vld [vmem:[#allocation3 + $0x184] sm:$0xff]  ;;  %s10518_s14 = smov 60  }
 0x5c8   : > { %v4441_v28 = vpop.permute.xlu1 %4440  ;;  %v4439_v5 = vpop.permute.xlu0 %4438 }
 0x5c9   : > { %4529 = vst.msk [vmem:[#allocation6 + $0x38] sm:$0xff] %vm2328_vm11, %v4441_v28  ;;  %4528 = vst.msk [vmem:[#allocation6 + $0x30] sm:$0xff] %vm2328_vm11, %v4439_v5  ;;  %v4940_v28 = vld [vmem:[#allocation3 + $0x38] sm:$0xff]  ;;  %v4939_v5 = vld [vmem:[#allocation3 + $0x30] sm:$0xff] }
 0x5ca   : > { %4812 = vrot.lane.b32.xlu1 %v4747_v25, %s10512_s28  ;;  %4810 = vrot.lane.b32.xlu0 %v4746_v37, %s10512_s28 }
 0x5cc   : > { %v4445_v38 = vpop.permute.xlu1 %4444  ;;  %v4443_v42 = vpop.permute.xlu0 %4442 }
 0x5cd   : > { %4531 = vst.msk [vmem:[#allocation6 + $0x48] sm:$0xff] %vm2328_vm11, %v4445_v38  ;;  %4530 = vst.msk [vmem:[#allocation6 + $0x40] sm:$0xff] %vm2328_vm11, %v4443_v42 }
 0x5ce   : > { %4816 = vrot.lane.b32.xlu1 %v4749_v40, %s10512_s28  ;;  %4814 = vrot.lane.b32.xlu0 %v4748_v14, %s10512_s28  ;;  %v4942_v40 = vld [vmem:[#allocation3 + $0x50] sm:$0xff]  ;;  %v4941_v14 = vld [vmem:[#allocation3 + $0x48] sm:$0xff] }
 0x5d0   : > { %v4449_v2 = vpop.permute.xlu1 %4448  ;;  %v4447_v35 = vpop.permute.xlu0 %4446 }
 0x5d1   : > { %4533 = vst.msk [vmem:[#allocation6 + $0x58] sm:$0xff] %vm2328_vm11, %v4449_v2  ;;  %4532 = vst.msk [vmem:[#allocation6 + $0x50] sm:$0xff] %vm2328_vm11, %v4447_v35 }
 0x5d2   : > { %4820 = vrot.lane.b32.xlu1 %v4751_v50, %s10512_s28  ;;  %4818 = vrot.lane.b32.xlu0 %v4750_v22, %s10512_s28  ;;  %v4944_v50 = vld [vmem:[#allocation3 + $0x68] sm:$0xff]  ;;  %v4943_v22 = vld [vmem:[#allocation3 + $0x60] sm:$0xff] }
 0x5d4   : > { %v4453_v26 = vpop.permute.xlu1 %4452  ;;  %v4451_v56 = vpop.permute.xlu0 %4450 }
 0x5d5   : > { %4535 = vst.msk [vmem:[#allocation6 + $0x68] sm:$0xff] %vm2328_vm11, %v4453_v26  ;;  %4534 = vst.msk [vmem:[#allocation6 + $0x60] sm:$0xff] %vm2328_vm11, %v4451_v56 }
 0x5d6   : > { %4824 = vrot.lane.b32.xlu1 %v4753_v15, %s10512_s28  ;;  %4822 = vrot.lane.b32.xlu0 %v4752_v36, %s10512_s28  ;;  %v4946_v15 = vld [vmem:[#allocation3 + $0x80] sm:$0xff]  ;;  %v4945_v36 = vld [vmem:[#allocation3 + $0x78] sm:$0xff] }
 0x5d8   : > { %v4457_v30 = vpop.permute.xlu1 %4456  ;;  %v4455_v34 = vpop.permute.xlu0 %4454 }
 0x5d9   : > { %4537 = vst.msk [vmem:[#allocation6 + $0x78] sm:$0xff] %vm2328_vm11, %v4457_v30  ;;  %4536 = vst.msk [vmem:[#allocation6 + $0x70] sm:$0xff] %vm2328_vm11, %v4455_v34 }
 0x5da   : > { %4828 = vrot.lane.b32.xlu1 %v4755_v20, %s10512_s28  ;;  %4826 = vrot.lane.b32.xlu0 %v4754_v45, %s10512_s28  ;;  %v4948_v20 = vld [vmem:[#allocation3 + $0x98] sm:$0xff]  ;;  %v4947_v45 = vld [vmem:[#allocation3 + $0x90] sm:$0xff] }
 0x5dc   : > { %v4461_v39 = vpop.permute.xlu1 %4460  ;;  %v4459_v53 = vpop.permute.xlu0 %4458 }
 0x5dd   : > { %4539 = vst.msk [vmem:[#allocation6 + $0x88] sm:$0xff] %vm2328_vm11, %v4461_v39  ;;  %4538 = vst.msk [vmem:[#allocation6 + $0x80] sm:$0xff] %vm2328_vm11, %v4459_v53 }
 0x5de   : > { %4832 = vrot.lane.b32.xlu1 %v4757_v48, %s10512_s28  ;;  %4830 = vrot.lane.b32.xlu0 %v4756_v6, %s10512_s28  ;;  %v4950_v48 = vld [vmem:[#allocation3 + $0xb0] sm:$0xff]  ;;  %v4949_v6 = vld [vmem:[#allocation3 + $0xa8] sm:$0xff] }
 0x5e0   : > { %v4465_v19 = vpop.permute.xlu1 %4464  ;;  %v4463_v63 = vpop.permute.xlu0 %4462 }
 0x5e1   : > { %4541 = vst.msk [vmem:[#allocation6 + $0x98] sm:$0xff] %vm2328_vm11, %v4465_v19  ;;  %4540 = vst.msk [vmem:[#allocation6 + $0x90] sm:$0xff] %vm2328_vm11, %v4463_v63 }
 0x5e2   : > { %4836 = vrot.lane.b32.xlu1 %v4759_v49, %s10512_s28  ;;  %4834 = vrot.lane.b32.xlu0 %v4758_v61, %s10512_s28  ;;  %v4952_v49 = vld [vmem:[#allocation3 + $0xc8] sm:$0xff]  ;;  %v4951_v61 = vld [vmem:[#allocation3 + $0xc0] sm:$0xff] }
 0x5e4   : > { %v4469_v0 = vpop.permute.xlu1 %4468  ;;  %v4467_v10 = vpop.permute.xlu0 %4466 }
 0x5e5   : > { %4543 = vst.msk [vmem:[#allocation6 + $0xa8] sm:$0xff] %vm2328_vm11, %v4469_v0  ;;  %4542 = vst.msk [vmem:[#allocation6 + $0xa0] sm:$0xff] %vm2328_vm11, %v4467_v10 }
 0x5e6   : > { %4840 = vrot.lane.b32.xlu1 %v4761_v17, %s10512_s28  ;;  %4838 = vrot.lane.b32.xlu0 %v4760_v54, %s10512_s28  ;;  %v4954_v17 = vld [vmem:[#allocation3 + $0xe0] sm:$0xff]  ;;  %v4953_v54 = vld [vmem:[#allocation3 + $0xd8] sm:$0xff] }
 0x5e8   : > { %v4473_v41 = vpop.permute.xlu1 %4472  ;;  %v4471_v44 = vpop.permute.xlu0 %4470 }
 0x5e9   : > { %4545 = vst.msk [vmem:[#allocation6 + $0xb8] sm:$0xff] %vm2328_vm11, %v4473_v41  ;;  %4544 = vst.msk [vmem:[#allocation6 + $0xb0] sm:$0xff] %vm2328_vm11, %v4471_v44 }
 0x5ea   : > { %4844 = vrot.lane.b32.xlu1 %v4763_v3, %s10512_s28  ;;  %4842 = vrot.lane.b32.xlu0 %v4762_v1, %s10512_s28  ;;  %v4956_v3 = vld [vmem:[#allocation3 + $0xf8] sm:$0xff]  ;;  %v4955_v1 = vld [vmem:[#allocation3 + $0xf0] sm:$0xff] }
 0x5ec   : > { %v4477_v62 = vpop.permute.xlu1 %4476  ;;  %v4475_v46 = vpop.permute.xlu0 %4474 }
 0x5ed   : > { %4547 = vst.msk [vmem:[#allocation6 + $0xc8] sm:$0xff] %vm2328_vm11, %v4477_v62  ;;  %4546 = vst.msk [vmem:[#allocation6 + $0xc0] sm:$0xff] %vm2328_vm11, %v4475_v46 }
 0x5ee   : > { %4848 = vrot.lane.b32.xlu1 %v4765_v8, %s10512_s28  ;;  %4846 = vrot.lane.b32.xlu0 %v4764_v43, %s10512_s28  ;;  %v4958_v8 = vld [vmem:[#allocation3 + $0x110] sm:$0xff]  ;;  %v4957_v43 = vld [vmem:[#allocation3 + $0x108] sm:$0xff] }
 0x5f0   : > { %v4481_v23 = vpop.permute.xlu1 %4480  ;;  %v4479_v52 = vpop.permute.xlu0 %4478 }
 0x5f1   : > { %4549 = vst.msk [vmem:[#allocation6 + $0xd8] sm:$0xff] %vm2328_vm11, %v4481_v23  ;;  %4548 = vst.msk [vmem:[#allocation6 + $0xd0] sm:$0xff] %vm2328_vm11, %v4479_v52 }
 0x5f2   : > { %4852 = vrot.lane.b32.xlu1 %v4767_v4, %s10512_s28  ;;  %4850 = vrot.lane.b32.xlu0 %v4766_v7, %s10512_s28  ;;  %v4960_v4 = vld [vmem:[#allocation3 + $0x128] sm:$0xff]  ;;  %v4959_v7 = vld [vmem:[#allocation3 + $0x120] sm:$0xff] }
 0x5f4   : > { %v4485_v16 = vpop.permute.xlu1 %4484  ;;  %v4483_v33 = vpop.permute.xlu0 %4482 }
 0x5f5   : > { %4551 = vst.msk [vmem:[#allocation6 + $0xe8] sm:$0xff] %vm2328_vm11, %v4485_v16  ;;  %4550 = vst.msk [vmem:[#allocation6 + $0xe0] sm:$0xff] %vm2328_vm11, %v4483_v33 }
 0x5f6   : > { %4856 = vrot.lane.b32.xlu1 %v4769_v27, %s10512_s28  ;;  %4854 = vrot.lane.b32.xlu0 %v4768_v51, %s10512_s28  ;;  %v4962_v27 = vld [vmem:[#allocation3 + $0x140] sm:$0xff]  ;;  %v4961_v51 = vld [vmem:[#allocation3 + $0x138] sm:$0xff] }
 0x5f8   : > { %v4489_v31 = vpop.permute.xlu1 %4488  ;;  %v4487_v57 = vpop.permute.xlu0 %4486 }
 0x5f9   : > { %4553 = vst.msk [vmem:[#allocation6 + $0xf8] sm:$0xff] %vm2328_vm11, %v4489_v31  ;;  %4552 = vst.msk [vmem:[#allocation6 + $0xf0] sm:$0xff] %vm2328_vm11, %v4487_v57  ;;  %vm7031_vm11 = vcmask 687744  }
 0x5fa   : > { %4860 = vrot.lane.b32.xlu1 %v4771_v9, %s10512_s28  ;;  %4858 = vrot.lane.b32.xlu0 %v4770_v18, %s10512_s28  ;;  %v4964_v9 = vld [vmem:[#allocation3 + $0x158] sm:$0xff]  ;;  %v4963_v18 = vld [vmem:[#allocation3 + $0x150] sm:$0xff] }
 0x5fc   : > { %v4621_v11 = vpop.permute.xlu1 %4620  ;;  %v4619_v24 = vpop.permute.xlu0 %4618 }
 0x5fd   : > { %4715 = vst.msk [vmem:[#allocation6 + $0x8] sm:$0xff] %vm2521_vm12, %v4621_v11  ;;  %4714 = vst.msk [vmem:[#allocation6] sm:$0xff] %vm2521_vm12, %v4619_v24 }
 0x5fe   : > { %4864 = vrot.lane.b32.xlu1 %v4773_v47, %s10512_s28  ;;  %4862 = vrot.lane.b32.xlu0 %v4772_v21, %s10512_s28  ;;  %v4966_v47 = vld [vmem:[#allocation3 + $0x170] sm:$0xff]  ;;  %v4965_v21 = vld [vmem:[#allocation3 + $0x168] sm:$0xff] }
 0x600   : > { %v4625_v12 = vpop.permute.xlu1 %4624  ;;  %v4623_v32 = vpop.permute.xlu0 %4622 }
 0x601   : > { %4717 = vst.msk [vmem:[#allocation6 + $0x18] sm:$0xff] %vm2521_vm12, %v4625_v12  ;;  %4716 = vst.msk [vmem:[#allocation6 + $0x10] sm:$0xff] %vm2521_vm12, %v4623_v32 }
 0x602   : > { %4868 = vrot.lane.b32.xlu1 %v4775_v60, %s10512_s28  ;;  %4866 = vrot.lane.b32.xlu0 %v4774_v29, %s10512_s28  ;;  %v4968_v60 = vld [vmem:[#allocation3 + $0x188] sm:$0xff]  ;;  %v4967_v29 = vld [vmem:[#allocation3 + $0x180] sm:$0xff] }
 0x604   : > { %v4629_v55 = vpop.permute.xlu1 %4628  ;;  %v4627_v58 = vpop.permute.xlu0 %4626 }
 0x605   : > { %4719 = vst.msk [vmem:[#allocation6 + $0x28] sm:$0xff] %vm2521_vm12, %v4629_v55  ;;  %4718 = vst.msk [vmem:[#allocation6 + $0x20] sm:$0xff] %vm2521_vm12, %v4627_v58 }
 0x606   : > { %4872 = vrot.lane.b32.xlu1 %v4777_v59, %s10512_s28  ;;  %4870 = vrot.lane.b32.xlu0 %v4776_v13, %s10512_s28  ;;  %v4970_v59 = vld [vmem:[#allocation3 + $0x1a0] sm:$0xff]  ;;  %v4969_v13 = vld [vmem:[#allocation3 + $0x198] sm:$0xff]  ;;  %s10520_s28 = smov 68  }
 0x608   : > { %v4633_v25 = vpop.permute.xlu1 %4632  ;;  %v4631_v37 = vpop.permute.xlu0 %4630 }
 0x609   : > { %4721 = vst.msk [vmem:[#allocation6 + $0x38] sm:$0xff] %vm2521_vm12, %v4633_v25  ;;  %4720 = vst.msk [vmem:[#allocation6 + $0x30] sm:$0xff] %vm2521_vm12, %v4631_v37 }
 0x60a   : > { %5005 = vrot.lane.b32.xlu1 %v4940_v28, %s10513_s25  ;;  %5003 = vrot.lane.b32.xlu0 %v4939_v5, %s10513_s25  ;;  %v5133_v28 = vld [vmem:[#allocation3 + $0x39] sm:$0xff]  ;;  %v5132_v5 = vld [vmem:[#allocation3 + $0x31] sm:$0xff] }
 0x60c   : > { %v4637_v38 = vpop.permute.xlu1 %4636  ;;  %v4635_v42 = vpop.permute.xlu0 %4634 }
 0x60d   : > { %4723 = vst.msk [vmem:[#allocation6 + $0x48] sm:$0xff] %vm2521_vm12, %v4637_v38  ;;  %4722 = vst.msk [vmem:[#allocation6 + $0x40] sm:$0xff] %vm2521_vm12, %v4635_v42 }
 0x60e   : > { %5009 = vrot.lane.b32.xlu1 %v4942_v40, %s10513_s25  ;;  %5007 = vrot.lane.b32.xlu0 %v4941_v14, %s10513_s25  ;;  %v5135_v40 = vld [vmem:[#allocation3 + $0x51] sm:$0xff]  ;;  %v5134_v14 = vld [vmem:[#allocation3 + $0x49] sm:$0xff] }
 0x610   : > { %v4641_v2 = vpop.permute.xlu1 %4640  ;;  %v4639_v35 = vpop.permute.xlu0 %4638 }
 0x611   : > { %4725 = vst.msk [vmem:[#allocation6 + $0x58] sm:$0xff] %vm2521_vm12, %v4641_v2  ;;  %4724 = vst.msk [vmem:[#allocation6 + $0x50] sm:$0xff] %vm2521_vm12, %v4639_v35 }
 0x612   : > { %5013 = vrot.lane.b32.xlu1 %v4944_v50, %s10513_s25  ;;  %5011 = vrot.lane.b32.xlu0 %v4943_v22, %s10513_s25  ;;  %v5137_v50 = vld [vmem:[#allocation3 + $0x69] sm:$0xff]  ;;  %v5136_v22 = vld [vmem:[#allocation3 + $0x61] sm:$0xff] }
 0x614   : > { %v4645_v26 = vpop.permute.xlu1 %4644  ;;  %v4643_v56 = vpop.permute.xlu0 %4642 }
 0x615   : > { %4727 = vst.msk [vmem:[#allocation6 + $0x68] sm:$0xff] %vm2521_vm12, %v4645_v26  ;;  %4726 = vst.msk [vmem:[#allocation6 + $0x60] sm:$0xff] %vm2521_vm12, %v4643_v56 }
 0x616   : > { %5017 = vrot.lane.b32.xlu1 %v4946_v15, %s10513_s25  ;;  %5015 = vrot.lane.b32.xlu0 %v4945_v36, %s10513_s25  ;;  %v5139_v15 = vld [vmem:[#allocation3 + $0x81] sm:$0xff]  ;;  %v5138_v36 = vld [vmem:[#allocation3 + $0x79] sm:$0xff] }
 0x618   : > { %v4649_v30 = vpop.permute.xlu1 %4648  ;;  %v4647_v34 = vpop.permute.xlu0 %4646 }
 0x619   : > { %4729 = vst.msk [vmem:[#allocation6 + $0x78] sm:$0xff] %vm2521_vm12, %v4649_v30  ;;  %4728 = vst.msk [vmem:[#allocation6 + $0x70] sm:$0xff] %vm2521_vm12, %v4647_v34 }
 0x61a   : > { %5021 = vrot.lane.b32.xlu1 %v4948_v20, %s10513_s25  ;;  %5019 = vrot.lane.b32.xlu0 %v4947_v45, %s10513_s25  ;;  %v5141_v20 = vld [vmem:[#allocation3 + $0x99] sm:$0xff]  ;;  %v5140_v45 = vld [vmem:[#allocation3 + $0x91] sm:$0xff] }
 0x61c   : > { %v4653_v39 = vpop.permute.xlu1 %4652  ;;  %v4651_v53 = vpop.permute.xlu0 %4650 }
 0x61d   : > { %4731 = vst.msk [vmem:[#allocation6 + $0x88] sm:$0xff] %vm2521_vm12, %v4653_v39  ;;  %4730 = vst.msk [vmem:[#allocation6 + $0x80] sm:$0xff] %vm2521_vm12, %v4651_v53 }
 0x61e   : > { %5025 = vrot.lane.b32.xlu1 %v4950_v48, %s10513_s25  ;;  %5023 = vrot.lane.b32.xlu0 %v4949_v6, %s10513_s25  ;;  %v5143_v48 = vld [vmem:[#allocation3 + $0xb1] sm:$0xff]  ;;  %v5142_v6 = vld [vmem:[#allocation3 + $0xa9] sm:$0xff] }
 0x620   : > { %v4657_v19 = vpop.permute.xlu1 %4656  ;;  %v4655_v63 = vpop.permute.xlu0 %4654 }
 0x621   : > { %4733 = vst.msk [vmem:[#allocation6 + $0x98] sm:$0xff] %vm2521_vm12, %v4657_v19  ;;  %4732 = vst.msk [vmem:[#allocation6 + $0x90] sm:$0xff] %vm2521_vm12, %v4655_v63 }
 0x622   : > { %5029 = vrot.lane.b32.xlu1 %v4952_v49, %s10513_s25  ;;  %5027 = vrot.lane.b32.xlu0 %v4951_v61, %s10513_s25  ;;  %v5145_v49 = vld [vmem:[#allocation3 + $0xc9] sm:$0xff]  ;;  %v5144_v61 = vld [vmem:[#allocation3 + $0xc1] sm:$0xff] }
 0x624   : > { %v4661_v0 = vpop.permute.xlu1 %4660  ;;  %v4659_v10 = vpop.permute.xlu0 %4658 }
 0x625   : > { %4735 = vst.msk [vmem:[#allocation6 + $0xa8] sm:$0xff] %vm2521_vm12, %v4661_v0  ;;  %4734 = vst.msk [vmem:[#allocation6 + $0xa0] sm:$0xff] %vm2521_vm12, %v4659_v10 }
 0x626   : > { %5033 = vrot.lane.b32.xlu1 %v4954_v17, %s10513_s25  ;;  %5031 = vrot.lane.b32.xlu0 %v4953_v54, %s10513_s25  ;;  %v5147_v17 = vld [vmem:[#allocation3 + $0xe1] sm:$0xff]  ;;  %v5146_v54 = vld [vmem:[#allocation3 + $0xd9] sm:$0xff] }
 0x628   : > { %v4665_v41 = vpop.permute.xlu1 %4664  ;;  %v4663_v44 = vpop.permute.xlu0 %4662 }
 0x629   : > { %4737 = vst.msk [vmem:[#allocation6 + $0xb8] sm:$0xff] %vm2521_vm12, %v4665_v41  ;;  %4736 = vst.msk [vmem:[#allocation6 + $0xb0] sm:$0xff] %vm2521_vm12, %v4663_v44 }
 0x62a   : > { %5037 = vrot.lane.b32.xlu1 %v4956_v3, %s10513_s25  ;;  %5035 = vrot.lane.b32.xlu0 %v4955_v1, %s10513_s25  ;;  %v5149_v3 = vld [vmem:[#allocation3 + $0xf9] sm:$0xff]  ;;  %v5148_v1 = vld [vmem:[#allocation3 + $0xf1] sm:$0xff] }
 0x62c   : > { %v4669_v62 = vpop.permute.xlu1 %4668  ;;  %v4667_v46 = vpop.permute.xlu0 %4666 }
 0x62d   : > { %4739 = vst.msk [vmem:[#allocation6 + $0xc8] sm:$0xff] %vm2521_vm12, %v4669_v62  ;;  %4738 = vst.msk [vmem:[#allocation6 + $0xc0] sm:$0xff] %vm2521_vm12, %v4667_v46 }
 0x62e   : > { %5041 = vrot.lane.b32.xlu1 %v4958_v8, %s10513_s25  ;;  %5039 = vrot.lane.b32.xlu0 %v4957_v43, %s10513_s25  ;;  %v5151_v8 = vld [vmem:[#allocation3 + $0x111] sm:$0xff]  ;;  %v5150_v43 = vld [vmem:[#allocation3 + $0x109] sm:$0xff] }
 0x630   : > { %v4673_v23 = vpop.permute.xlu1 %4672  ;;  %v4671_v52 = vpop.permute.xlu0 %4670 }
 0x631   : > { %4741 = vst.msk [vmem:[#allocation6 + $0xd8] sm:$0xff] %vm2521_vm12, %v4673_v23  ;;  %4740 = vst.msk [vmem:[#allocation6 + $0xd0] sm:$0xff] %vm2521_vm12, %v4671_v52 }
 0x632   : > { %5045 = vrot.lane.b32.xlu1 %v4960_v4, %s10513_s25  ;;  %5043 = vrot.lane.b32.xlu0 %v4959_v7, %s10513_s25  ;;  %v5153_v4 = vld [vmem:[#allocation3 + $0x129] sm:$0xff]  ;;  %v5152_v7 = vld [vmem:[#allocation3 + $0x121] sm:$0xff] }
 0x634   : > { %v4677_v16 = vpop.permute.xlu1 %4676  ;;  %v4675_v33 = vpop.permute.xlu0 %4674 }
 0x635   : > { %4743 = vst.msk [vmem:[#allocation6 + $0xe8] sm:$0xff] %vm2521_vm12, %v4677_v16  ;;  %4742 = vst.msk [vmem:[#allocation6 + $0xe0] sm:$0xff] %vm2521_vm12, %v4675_v33 }
 0x636   : > { %5049 = vrot.lane.b32.xlu1 %v4962_v27, %s10513_s25  ;;  %5047 = vrot.lane.b32.xlu0 %v4961_v51, %s10513_s25  ;;  %v5155_v27 = vld [vmem:[#allocation3 + $0x141] sm:$0xff]  ;;  %v5154_v51 = vld [vmem:[#allocation3 + $0x139] sm:$0xff] }
 0x638   : > { %v4681_v31 = vpop.permute.xlu1 %4680  ;;  %v4679_v57 = vpop.permute.xlu0 %4678 }
 0x639   : > { %4745 = vst.msk [vmem:[#allocation6 + $0xf8] sm:$0xff] %vm2521_vm12, %v4681_v31  ;;  %4744 = vst.msk [vmem:[#allocation6 + $0xf0] sm:$0xff] %vm2521_vm12, %v4679_v57  ;;  %vm7224_vm12 = vcmask 720544  }
 0x63a   : > { %5053 = vrot.lane.b32.xlu1 %v4964_v9, %s10513_s25  ;;  %5051 = vrot.lane.b32.xlu0 %v4963_v18, %s10513_s25  ;;  %v5157_v9 = vld [vmem:[#allocation3 + $0x159] sm:$0xff]  ;;  %v5156_v18 = vld [vmem:[#allocation3 + $0x151] sm:$0xff] }
 0x63c   : > { %v4813_v11 = vpop.permute.xlu1 %4812  ;;  %v4811_v24 = vpop.permute.xlu0 %4810 }
 0x63d   : > { %4908 = vst.msk [vmem:[#allocation6 + $0x8] sm:$0xff] %vm4906_vm14, %v4813_v11  ;;  %4907 = vst.msk [vmem:[#allocation6] sm:$0xff] %vm4906_vm14, %v4811_v24 }
 0x63e   : > { %5057 = vrot.lane.b32.xlu1 %v4966_v47, %s10513_s25  ;;  %5055 = vrot.lane.b32.xlu0 %v4965_v21, %s10513_s25  ;;  %v5159_v47 = vld [vmem:[#allocation3 + $0x171] sm:$0xff]  ;;  %v5158_v21 = vld [vmem:[#allocation3 + $0x169] sm:$0xff] }
 0x640   : > { %v4817_v12 = vpop.permute.xlu1 %4816  ;;  %v4815_v32 = vpop.permute.xlu0 %4814 }
 0x641   : > { %4910 = vst.msk [vmem:[#allocation6 + $0x18] sm:$0xff] %vm4906_vm14, %v4817_v12  ;;  %4909 = vst.msk [vmem:[#allocation6 + $0x10] sm:$0xff] %vm4906_vm14, %v4815_v32 }
 0x642   : > { %5061 = vrot.lane.b32.xlu1 %v4968_v60, %s10513_s25  ;;  %5059 = vrot.lane.b32.xlu0 %v4967_v29, %s10513_s25  ;;  %v5161_v60 = vld [vmem:[#allocation3 + $0x189] sm:$0xff]  ;;  %v5160_v29 = vld [vmem:[#allocation3 + $0x181] sm:$0xff] }
 0x644   : > { %v4821_v55 = vpop.permute.xlu1 %4820  ;;  %v4819_v58 = vpop.permute.xlu0 %4818 }
 0x645   : > { %4912 = vst.msk [vmem:[#allocation6 + $0x28] sm:$0xff] %vm4906_vm14, %v4821_v55  ;;  %4911 = vst.msk [vmem:[#allocation6 + $0x20] sm:$0xff] %vm4906_vm14, %v4819_v58 }
 0x646   : > { %5065 = vrot.lane.b32.xlu1 %v4970_v59, %s10513_s25  ;;  %5063 = vrot.lane.b32.xlu0 %v4969_v13, %s10513_s25  ;;  %v5163_v59 = vld [vmem:[#allocation3 + $0x1a1] sm:$0xff]  ;;  %v5162_v13 = vld [vmem:[#allocation3 + $0x199] sm:$0xff]  ;;  %s10521_s25 = smov 72  }
 0x648   : > { %v4825_v25 = vpop.permute.xlu1 %4824  ;;  %v4823_v37 = vpop.permute.xlu0 %4822 }
 0x649   : > { %4914 = vst.msk [vmem:[#allocation6 + $0x38] sm:$0xff] %vm4906_vm14, %v4825_v25  ;;  %4913 = vst.msk [vmem:[#allocation6 + $0x30] sm:$0xff] %vm4906_vm14, %v4823_v37 }
 0x64a   : > { %5198 = vrot.lane.b32.xlu1 %v5133_v28, %s10514_s26  ;;  %5196 = vrot.lane.b32.xlu0 %v5132_v5, %s10514_s26  ;;  %v5326_v28 = vld [vmem:[#allocation3 + $0x3a] sm:$0xff]  ;;  %v5325_v5 = vld [vmem:[#allocation3 + $0x32] sm:$0xff] }
 0x64c   : > { %v4829_v38 = vpop.permute.xlu1 %4828  ;;  %v4827_v42 = vpop.permute.xlu0 %4826 }
 0x64d   : > { %4916 = vst.msk [vmem:[#allocation6 + $0x48] sm:$0xff] %vm4906_vm14, %v4829_v38  ;;  %4915 = vst.msk [vmem:[#allocation6 + $0x40] sm:$0xff] %vm4906_vm14, %v4827_v42 }
 0x64e   : > { %5202 = vrot.lane.b32.xlu1 %v5135_v40, %s10514_s26  ;;  %5200 = vrot.lane.b32.xlu0 %v5134_v14, %s10514_s26  ;;  %v5328_v40 = vld [vmem:[#allocation3 + $0x52] sm:$0xff]  ;;  %v5327_v14 = vld [vmem:[#allocation3 + $0x4a] sm:$0xff] }
 0x650   : > { %v4833_v2 = vpop.permute.xlu1 %4832  ;;  %v4831_v35 = vpop.permute.xlu0 %4830 }
 0x651   : > { %4918 = vst.msk [vmem:[#allocation6 + $0x58] sm:$0xff] %vm4906_vm14, %v4833_v2  ;;  %4917 = vst.msk [vmem:[#allocation6 + $0x50] sm:$0xff] %vm4906_vm14, %v4831_v35 }
 0x652   : > { %5206 = vrot.lane.b32.xlu1 %v5137_v50, %s10514_s26  ;;  %5204 = vrot.lane.b32.xlu0 %v5136_v22, %s10514_s26  ;;  %v5330_v50 = vld [vmem:[#allocation3 + $0x6a] sm:$0xff]  ;;  %v5329_v22 = vld [vmem:[#allocation3 + $0x62] sm:$0xff] }
 0x654   : > { %v4837_v26 = vpop.permute.xlu1 %4836  ;;  %v4835_v56 = vpop.permute.xlu0 %4834 }
 0x655   : > { %4920 = vst.msk [vmem:[#allocation6 + $0x68] sm:$0xff] %vm4906_vm14, %v4837_v26  ;;  %4919 = vst.msk [vmem:[#allocation6 + $0x60] sm:$0xff] %vm4906_vm14, %v4835_v56 }
 0x656   : > { %5210 = vrot.lane.b32.xlu1 %v5139_v15, %s10514_s26  ;;  %5208 = vrot.lane.b32.xlu0 %v5138_v36, %s10514_s26  ;;  %v5332_v15 = vld [vmem:[#allocation3 + $0x82] sm:$0xff]  ;;  %v5331_v36 = vld [vmem:[#allocation3 + $0x7a] sm:$0xff] }
 0x658   : > { %v4841_v30 = vpop.permute.xlu1 %4840  ;;  %v4839_v34 = vpop.permute.xlu0 %4838 }
 0x659   : > { %4922 = vst.msk [vmem:[#allocation6 + $0x78] sm:$0xff] %vm4906_vm14, %v4841_v30  ;;  %4921 = vst.msk [vmem:[#allocation6 + $0x70] sm:$0xff] %vm4906_vm14, %v4839_v34 }
 0x65a   : > { %5214 = vrot.lane.b32.xlu1 %v5141_v20, %s10514_s26  ;;  %5212 = vrot.lane.b32.xlu0 %v5140_v45, %s10514_s26  ;;  %v5334_v20 = vld [vmem:[#allocation3 + $0x9a] sm:$0xff]  ;;  %v5333_v45 = vld [vmem:[#allocation3 + $0x92] sm:$0xff] }
 0x65c   : > { %v4845_v39 = vpop.permute.xlu1 %4844  ;;  %v4843_v53 = vpop.permute.xlu0 %4842 }
 0x65d   : > { %4924 = vst.msk [vmem:[#allocation6 + $0x88] sm:$0xff] %vm4906_vm14, %v4845_v39  ;;  %4923 = vst.msk [vmem:[#allocation6 + $0x80] sm:$0xff] %vm4906_vm14, %v4843_v53 }
 0x65e   : > { %5218 = vrot.lane.b32.xlu1 %v5143_v48, %s10514_s26  ;;  %5216 = vrot.lane.b32.xlu0 %v5142_v6, %s10514_s26  ;;  %v5336_v48 = vld [vmem:[#allocation3 + $0xb2] sm:$0xff]  ;;  %v5335_v6 = vld [vmem:[#allocation3 + $0xaa] sm:$0xff] }
 0x660   : > { %v4849_v19 = vpop.permute.xlu1 %4848  ;;  %v4847_v63 = vpop.permute.xlu0 %4846 }
 0x661   : > { %4926 = vst.msk [vmem:[#allocation6 + $0x98] sm:$0xff] %vm4906_vm14, %v4849_v19  ;;  %4925 = vst.msk [vmem:[#allocation6 + $0x90] sm:$0xff] %vm4906_vm14, %v4847_v63 }
 0x662   : > { %5222 = vrot.lane.b32.xlu1 %v5145_v49, %s10514_s26  ;;  %5220 = vrot.lane.b32.xlu0 %v5144_v61, %s10514_s26  ;;  %v5338_v49 = vld [vmem:[#allocation3 + $0xca] sm:$0xff]  ;;  %v5337_v61 = vld [vmem:[#allocation3 + $0xc2] sm:$0xff] }
 0x664   : > { %v4853_v0 = vpop.permute.xlu1 %4852  ;;  %v4851_v10 = vpop.permute.xlu0 %4850 }
 0x665   : > { %4928 = vst.msk [vmem:[#allocation6 + $0xa8] sm:$0xff] %vm4906_vm14, %v4853_v0  ;;  %4927 = vst.msk [vmem:[#allocation6 + $0xa0] sm:$0xff] %vm4906_vm14, %v4851_v10 }
 0x666   : > { %5226 = vrot.lane.b32.xlu1 %v5147_v17, %s10514_s26  ;;  %5224 = vrot.lane.b32.xlu0 %v5146_v54, %s10514_s26  ;;  %v5340_v17 = vld [vmem:[#allocation3 + $0xe2] sm:$0xff]  ;;  %v5339_v54 = vld [vmem:[#allocation3 + $0xda] sm:$0xff] }
 0x668   : > { %v4857_v41 = vpop.permute.xlu1 %4856  ;;  %v4855_v44 = vpop.permute.xlu0 %4854 }
 0x669   : > { %4930 = vst.msk [vmem:[#allocation6 + $0xb8] sm:$0xff] %vm4906_vm14, %v4857_v41  ;;  %4929 = vst.msk [vmem:[#allocation6 + $0xb0] sm:$0xff] %vm4906_vm14, %v4855_v44 }
 0x66a   : > { %5230 = vrot.lane.b32.xlu1 %v5149_v3, %s10514_s26  ;;  %5228 = vrot.lane.b32.xlu0 %v5148_v1, %s10514_s26  ;;  %v5342_v3 = vld [vmem:[#allocation3 + $0xfa] sm:$0xff]  ;;  %v5341_v1 = vld [vmem:[#allocation3 + $0xf2] sm:$0xff] }
 0x66c   : > { %v4861_v62 = vpop.permute.xlu1 %4860  ;;  %v4859_v46 = vpop.permute.xlu0 %4858 }
 0x66d   : > { %4932 = vst.msk [vmem:[#allocation6 + $0xc8] sm:$0xff] %vm4906_vm14, %v4861_v62  ;;  %4931 = vst.msk [vmem:[#allocation6 + $0xc0] sm:$0xff] %vm4906_vm14, %v4859_v46 }
 0x66e   : > { %5234 = vrot.lane.b32.xlu1 %v5151_v8, %s10514_s26  ;;  %5232 = vrot.lane.b32.xlu0 %v5150_v43, %s10514_s26  ;;  %v5344_v8 = vld [vmem:[#allocation3 + $0x112] sm:$0xff]  ;;  %v5343_v43 = vld [vmem:[#allocation3 + $0x10a] sm:$0xff] }
 0x670   : > { %v4865_v23 = vpop.permute.xlu1 %4864  ;;  %v4863_v52 = vpop.permute.xlu0 %4862 }
 0x671   : > { %4934 = vst.msk [vmem:[#allocation6 + $0xd8] sm:$0xff] %vm4906_vm14, %v4865_v23  ;;  %4933 = vst.msk [vmem:[#allocation6 + $0xd0] sm:$0xff] %vm4906_vm14, %v4863_v52 }
 0x672   : > { %5238 = vrot.lane.b32.xlu1 %v5153_v4, %s10514_s26  ;;  %5236 = vrot.lane.b32.xlu0 %v5152_v7, %s10514_s26  ;;  %v5346_v4 = vld [vmem:[#allocation3 + $0x12a] sm:$0xff]  ;;  %v5345_v7 = vld [vmem:[#allocation3 + $0x122] sm:$0xff] }
 0x674   : > { %v4869_v16 = vpop.permute.xlu1 %4868  ;;  %v4867_v33 = vpop.permute.xlu0 %4866 }
 0x675   : > { %4936 = vst.msk [vmem:[#allocation6 + $0xe8] sm:$0xff] %vm4906_vm14, %v4869_v16  ;;  %4935 = vst.msk [vmem:[#allocation6 + $0xe0] sm:$0xff] %vm4906_vm14, %v4867_v33 }
 0x676   : > { %5242 = vrot.lane.b32.xlu1 %v5155_v27, %s10514_s26  ;;  %5240 = vrot.lane.b32.xlu0 %v5154_v51, %s10514_s26  ;;  %v5348_v27 = vld [vmem:[#allocation3 + $0x142] sm:$0xff]  ;;  %v5347_v51 = vld [vmem:[#allocation3 + $0x13a] sm:$0xff] }
 0x678   : > { %v4873_v31 = vpop.permute.xlu1 %4872  ;;  %v4871_v57 = vpop.permute.xlu0 %4870 }
 0x679   : > { %4938 = vst.msk [vmem:[#allocation6 + $0xf8] sm:$0xff] %vm4906_vm14, %v4873_v31  ;;  %4937 = vst.msk [vmem:[#allocation6 + $0xf0] sm:$0xff] %vm4906_vm14, %v4871_v57  ;;  %vm7610_vm14 = vcmask 786144  }
 0x67a   : > { %5246 = vrot.lane.b32.xlu1 %v5157_v9, %s10514_s26  ;;  %5244 = vrot.lane.b32.xlu0 %v5156_v18, %s10514_s26  ;;  %v5350_v9 = vld [vmem:[#allocation3 + $0x15a] sm:$0xff]  ;;  %v5349_v18 = vld [vmem:[#allocation3 + $0x152] sm:$0xff] }
 0x67c   : > { %v5006_v11 = vpop.permute.xlu1 %5005  ;;  %v5004_v24 = vpop.permute.xlu0 %5003 }
 0x67d   : > { %5101 = vst.msk [vmem:[#allocation6 + $0x8] sm:$0xff] %vm5099_vm15, %v5006_v11  ;;  %5100 = vst.msk [vmem:[#allocation6] sm:$0xff] %vm5099_vm15, %v5004_v24 }
 0x67e   : > { %5250 = vrot.lane.b32.xlu1 %v5159_v47, %s10514_s26  ;;  %5248 = vrot.lane.b32.xlu0 %v5158_v21, %s10514_s26  ;;  %v5352_v47 = vld [vmem:[#allocation3 + $0x172] sm:$0xff]  ;;  %v5351_v21 = vld [vmem:[#allocation3 + $0x16a] sm:$0xff] }
 0x680   : > { %v5010_v12 = vpop.permute.xlu1 %5009  ;;  %v5008_v32 = vpop.permute.xlu0 %5007 }
 0x681   : > { %5103 = vst.msk [vmem:[#allocation6 + $0x18] sm:$0xff] %vm5099_vm15, %v5010_v12  ;;  %5102 = vst.msk [vmem:[#allocation6 + $0x10] sm:$0xff] %vm5099_vm15, %v5008_v32 }
 0x682   : > { %5254 = vrot.lane.b32.xlu1 %v5161_v60, %s10514_s26  ;;  %5252 = vrot.lane.b32.xlu0 %v5160_v29, %s10514_s26  ;;  %v5354_v60 = vld [vmem:[#allocation3 + $0x18a] sm:$0xff]  ;;  %v5353_v29 = vld [vmem:[#allocation3 + $0x182] sm:$0xff] }
 0x684   : > { %v5014_v55 = vpop.permute.xlu1 %5013  ;;  %v5012_v58 = vpop.permute.xlu0 %5011 }
 0x685   : > { %5105 = vst.msk [vmem:[#allocation6 + $0x28] sm:$0xff] %vm5099_vm15, %v5014_v55  ;;  %5104 = vst.msk [vmem:[#allocation6 + $0x20] sm:$0xff] %vm5099_vm15, %v5012_v58 }
 0x686   : > { %5258 = vrot.lane.b32.xlu1 %v5163_v59, %s10514_s26  ;;  %5256 = vrot.lane.b32.xlu0 %v5162_v13, %s10514_s26  ;;  %v5356_v59 = vld [vmem:[#allocation3 + $0x1a2] sm:$0xff]  ;;  %v5355_v13 = vld [vmem:[#allocation3 + $0x19a] sm:$0xff]  ;;  %s10522_s26 = smov 76  }
 0x688   : > { %v5018_v25 = vpop.permute.xlu1 %5017  ;;  %v5016_v37 = vpop.permute.xlu0 %5015 }
 0x689   : > { %5107 = vst.msk [vmem:[#allocation6 + $0x38] sm:$0xff] %vm5099_vm15, %v5018_v25  ;;  %5106 = vst.msk [vmem:[#allocation6 + $0x30] sm:$0xff] %vm5099_vm15, %v5016_v37 }
 0x68a   : > { %5391 = vrot.lane.b32.xlu1 %v5326_v28, %s10515_s16  ;;  %5389 = vrot.lane.b32.xlu0 %v5325_v5, %s10515_s16  ;;  %v5519_v28 = vld [vmem:[#allocation3 + $0x3b] sm:$0xff]  ;;  %v5518_v5 = vld [vmem:[#allocation3 + $0x33] sm:$0xff] }
 0x68c   : > { %v5022_v38 = vpop.permute.xlu1 %5021  ;;  %v5020_v42 = vpop.permute.xlu0 %5019 }
 0x68d   : > { %5109 = vst.msk [vmem:[#allocation6 + $0x48] sm:$0xff] %vm5099_vm15, %v5022_v38  ;;  %5108 = vst.msk [vmem:[#allocation6 + $0x40] sm:$0xff] %vm5099_vm15, %v5020_v42 }
 0x68e   : > { %5395 = vrot.lane.b32.xlu1 %v5328_v40, %s10515_s16  ;;  %5393 = vrot.lane.b32.xlu0 %v5327_v14, %s10515_s16  ;;  %v5521_v40 = vld [vmem:[#allocation3 + $0x53] sm:$0xff]  ;;  %v5520_v14 = vld [vmem:[#allocation3 + $0x4b] sm:$0xff] }
 0x690   : > { %v5026_v2 = vpop.permute.xlu1 %5025  ;;  %v5024_v35 = vpop.permute.xlu0 %5023 }
 0x691   : > { %5111 = vst.msk [vmem:[#allocation6 + $0x58] sm:$0xff] %vm5099_vm15, %v5026_v2  ;;  %5110 = vst.msk [vmem:[#allocation6 + $0x50] sm:$0xff] %vm5099_vm15, %v5024_v35 }
 0x692   : > { %5399 = vrot.lane.b32.xlu1 %v5330_v50, %s10515_s16  ;;  %5397 = vrot.lane.b32.xlu0 %v5329_v22, %s10515_s16  ;;  %v5523_v50 = vld [vmem:[#allocation3 + $0x6b] sm:$0xff]  ;;  %v5522_v22 = vld [vmem:[#allocation3 + $0x63] sm:$0xff] }
 0x694   : > { %v5030_v26 = vpop.permute.xlu1 %5029  ;;  %v5028_v56 = vpop.permute.xlu0 %5027 }
 0x695   : > { %5113 = vst.msk [vmem:[#allocation6 + $0x68] sm:$0xff] %vm5099_vm15, %v5030_v26  ;;  %5112 = vst.msk [vmem:[#allocation6 + $0x60] sm:$0xff] %vm5099_vm15, %v5028_v56 }
 0x696   : > { %5403 = vrot.lane.b32.xlu1 %v5332_v15, %s10515_s16  ;;  %5401 = vrot.lane.b32.xlu0 %v5331_v36, %s10515_s16  ;;  %v5525_v15 = vld [vmem:[#allocation3 + $0x83] sm:$0xff]  ;;  %v5524_v36 = vld [vmem:[#allocation3 + $0x7b] sm:$0xff] }
 0x698   : > { %v5034_v30 = vpop.permute.xlu1 %5033  ;;  %v5032_v34 = vpop.permute.xlu0 %5031 }
 0x699   : > { %5115 = vst.msk [vmem:[#allocation6 + $0x78] sm:$0xff] %vm5099_vm15, %v5034_v30  ;;  %5114 = vst.msk [vmem:[#allocation6 + $0x70] sm:$0xff] %vm5099_vm15, %v5032_v34 }
 0x69a   : > { %5407 = vrot.lane.b32.xlu1 %v5334_v20, %s10515_s16  ;;  %5405 = vrot.lane.b32.xlu0 %v5333_v45, %s10515_s16  ;;  %v5527_v20 = vld [vmem:[#allocation3 + $0x9b] sm:$0xff]  ;;  %v5526_v45 = vld [vmem:[#allocation3 + $0x93] sm:$0xff] }
 0x69c   : > { %v5038_v39 = vpop.permute.xlu1 %5037  ;;  %v5036_v53 = vpop.permute.xlu0 %5035 }
 0x69d   : > { %5117 = vst.msk [vmem:[#allocation6 + $0x88] sm:$0xff] %vm5099_vm15, %v5038_v39  ;;  %5116 = vst.msk [vmem:[#allocation6 + $0x80] sm:$0xff] %vm5099_vm15, %v5036_v53 }
 0x69e   : > { %5411 = vrot.lane.b32.xlu1 %v5336_v48, %s10515_s16  ;;  %5409 = vrot.lane.b32.xlu0 %v5335_v6, %s10515_s16  ;;  %v5529_v48 = vld [vmem:[#allocation3 + $0xb3] sm:$0xff]  ;;  %v5528_v6 = vld [vmem:[#allocation3 + $0xab] sm:$0xff] }
 0x6a0   : > { %v5042_v19 = vpop.permute.xlu1 %5041  ;;  %v5040_v63 = vpop.permute.xlu0 %5039 }
 0x6a1   : > { %5119 = vst.msk [vmem:[#allocation6 + $0x98] sm:$0xff] %vm5099_vm15, %v5042_v19  ;;  %5118 = vst.msk [vmem:[#allocation6 + $0x90] sm:$0xff] %vm5099_vm15, %v5040_v63 }
 0x6a2   : > { %5415 = vrot.lane.b32.xlu1 %v5338_v49, %s10515_s16  ;;  %5413 = vrot.lane.b32.xlu0 %v5337_v61, %s10515_s16  ;;  %v5531_v49 = vld [vmem:[#allocation3 + $0xcb] sm:$0xff]  ;;  %v5530_v61 = vld [vmem:[#allocation3 + $0xc3] sm:$0xff] }
 0x6a4   : > { %v5046_v0 = vpop.permute.xlu1 %5045  ;;  %v5044_v10 = vpop.permute.xlu0 %5043 }
 0x6a5   : > { %5121 = vst.msk [vmem:[#allocation6 + $0xa8] sm:$0xff] %vm5099_vm15, %v5046_v0  ;;  %5120 = vst.msk [vmem:[#allocation6 + $0xa0] sm:$0xff] %vm5099_vm15, %v5044_v10 }
 0x6a6   : > { %5419 = vrot.lane.b32.xlu1 %v5340_v17, %s10515_s16  ;;  %5417 = vrot.lane.b32.xlu0 %v5339_v54, %s10515_s16  ;;  %v5533_v17 = vld [vmem:[#allocation3 + $0xe3] sm:$0xff]  ;;  %v5532_v54 = vld [vmem:[#allocation3 + $0xdb] sm:$0xff] }
 0x6a8   : > { %v5050_v41 = vpop.permute.xlu1 %5049  ;;  %v5048_v44 = vpop.permute.xlu0 %5047 }
 0x6a9   : > { %5123 = vst.msk [vmem:[#allocation6 + $0xb8] sm:$0xff] %vm5099_vm15, %v5050_v41  ;;  %5122 = vst.msk [vmem:[#allocation6 + $0xb0] sm:$0xff] %vm5099_vm15, %v5048_v44 }
 0x6aa   : > { %5423 = vrot.lane.b32.xlu1 %v5342_v3, %s10515_s16  ;;  %5421 = vrot.lane.b32.xlu0 %v5341_v1, %s10515_s16  ;;  %v5535_v3 = vld [vmem:[#allocation3 + $0xfb] sm:$0xff]  ;;  %v5534_v1 = vld [vmem:[#allocation3 + $0xf3] sm:$0xff] }
 0x6ac   : > { %v5054_v62 = vpop.permute.xlu1 %5053  ;;  %v5052_v46 = vpop.permute.xlu0 %5051 }
 0x6ad   : > { %5125 = vst.msk [vmem:[#allocation6 + $0xc8] sm:$0xff] %vm5099_vm15, %v5054_v62  ;;  %5124 = vst.msk [vmem:[#allocation6 + $0xc0] sm:$0xff] %vm5099_vm15, %v5052_v46 }
 0x6ae   : > { %5427 = vrot.lane.b32.xlu1 %v5344_v8, %s10515_s16  ;;  %5425 = vrot.lane.b32.xlu0 %v5343_v43, %s10515_s16  ;;  %v5537_v8 = vld [vmem:[#allocation3 + $0x113] sm:$0xff]  ;;  %v5536_v43 = vld [vmem:[#allocation3 + $0x10b] sm:$0xff] }
 0x6b0   : > { %v5058_v23 = vpop.permute.xlu1 %5057  ;;  %v5056_v52 = vpop.permute.xlu0 %5055 }
 0x6b1   : > { %5127 = vst.msk [vmem:[#allocation6 + $0xd8] sm:$0xff] %vm5099_vm15, %v5058_v23  ;;  %5126 = vst.msk [vmem:[#allocation6 + $0xd0] sm:$0xff] %vm5099_vm15, %v5056_v52 }
 0x6b2   : > { %5431 = vrot.lane.b32.xlu1 %v5346_v4, %s10515_s16  ;;  %5429 = vrot.lane.b32.xlu0 %v5345_v7, %s10515_s16  ;;  %v5539_v4 = vld [vmem:[#allocation3 + $0x12b] sm:$0xff]  ;;  %v5538_v7 = vld [vmem:[#allocation3 + $0x123] sm:$0xff] }
 0x6b4   : > { %v5062_v16 = vpop.permute.xlu1 %5061  ;;  %v5060_v33 = vpop.permute.xlu0 %5059 }
 0x6b5   : > { %5129 = vst.msk [vmem:[#allocation6 + $0xe8] sm:$0xff] %vm5099_vm15, %v5062_v16  ;;  %5128 = vst.msk [vmem:[#allocation6 + $0xe0] sm:$0xff] %vm5099_vm15, %v5060_v33 }
 0x6b6   : > { %5435 = vrot.lane.b32.xlu1 %v5348_v27, %s10515_s16  ;;  %5433 = vrot.lane.b32.xlu0 %v5347_v51, %s10515_s16  ;;  %v5541_v27 = vld [vmem:[#allocation3 + $0x143] sm:$0xff]  ;;  %v5540_v51 = vld [vmem:[#allocation3 + $0x13b] sm:$0xff] }
 0x6b8   : > { %v5066_v31 = vpop.permute.xlu1 %5065  ;;  %v5064_v57 = vpop.permute.xlu0 %5063 }
 0x6b9   : > { %5131 = vst.msk [vmem:[#allocation6 + $0xf8] sm:$0xff] %vm5099_vm15, %v5066_v31  ;;  %5130 = vst.msk [vmem:[#allocation6 + $0xf0] sm:$0xff] %vm5099_vm15, %v5064_v57  ;;  %vm7803_vm15 = vcmask 818944  }
 0x6ba   : > { %5439 = vrot.lane.b32.xlu1 %v5350_v9, %s10515_s16  ;;  %5437 = vrot.lane.b32.xlu0 %v5349_v18, %s10515_s16  ;;  %v5543_v9 = vld [vmem:[#allocation3 + $0x15b] sm:$0xff]  ;;  %v5542_v18 = vld [vmem:[#allocation3 + $0x153] sm:$0xff] }
 0x6bc   : > { %v5199_v11 = vpop.permute.xlu1 %5198  ;;  %v5197_v24 = vpop.permute.xlu0 %5196 }
 0x6bd   : > { %5294 = vst.msk [vmem:[#allocation6 + $0x8] sm:$0xff] %vm5292_vm2, %v5199_v11  ;;  %5293 = vst.msk [vmem:[#allocation6] sm:$0xff] %vm5292_vm2, %v5197_v24 }
 0x6be   : > { %5443 = vrot.lane.b32.xlu1 %v5352_v47, %s10515_s16  ;;  %5441 = vrot.lane.b32.xlu0 %v5351_v21, %s10515_s16  ;;  %v5545_v47 = vld [vmem:[#allocation3 + $0x173] sm:$0xff]  ;;  %v5544_v21 = vld [vmem:[#allocation3 + $0x16b] sm:$0xff] }
 0x6c0   : > { %v5203_v12 = vpop.permute.xlu1 %5202  ;;  %v5201_v32 = vpop.permute.xlu0 %5200 }
 0x6c1   : > { %5296 = vst.msk [vmem:[#allocation6 + $0x18] sm:$0xff] %vm5292_vm2, %v5203_v12  ;;  %5295 = vst.msk [vmem:[#allocation6 + $0x10] sm:$0xff] %vm5292_vm2, %v5201_v32 }
 0x6c2   : > { %5447 = vrot.lane.b32.xlu1 %v5354_v60, %s10515_s16  ;;  %5445 = vrot.lane.b32.xlu0 %v5353_v29, %s10515_s16  ;;  %v5547_v60 = vld [vmem:[#allocation3 + $0x18b] sm:$0xff]  ;;  %v5546_v29 = vld [vmem:[#allocation3 + $0x183] sm:$0xff] }
 0x6c4   : > { %v5207_v55 = vpop.permute.xlu1 %5206  ;;  %v5205_v58 = vpop.permute.xlu0 %5204 }
 0x6c5   : > { %5298 = vst.msk [vmem:[#allocation6 + $0x28] sm:$0xff] %vm5292_vm2, %v5207_v55  ;;  %5297 = vst.msk [vmem:[#allocation6 + $0x20] sm:$0xff] %vm5292_vm2, %v5205_v58 }
 0x6c6   : > { %5451 = vrot.lane.b32.xlu1 %v5356_v59, %s10515_s16  ;;  %5449 = vrot.lane.b32.xlu0 %v5355_v13, %s10515_s16  ;;  %v5549_v59 = vld [vmem:[#allocation3 + $0x1a3] sm:$0xff]  ;;  %v5548_v13 = vld [vmem:[#allocation3 + $0x19b] sm:$0xff]  ;;  %s10523_s16 = smov 80  }
 0x6c8   : > { %v5211_v25 = vpop.permute.xlu1 %5210  ;;  %v5209_v37 = vpop.permute.xlu0 %5208 }
 0x6c9   : > { %5300 = vst.msk [vmem:[#allocation6 + $0x38] sm:$0xff] %vm5292_vm2, %v5211_v25  ;;  %5299 = vst.msk [vmem:[#allocation6 + $0x30] sm:$0xff] %vm5292_vm2, %v5209_v37 }
 0x6ca   : > { %5584 = vrot.lane.b32.xlu1 %v5519_v28, %s10516_s17  ;;  %5582 = vrot.lane.b32.xlu0 %v5518_v5, %s10516_s17  ;;  %v5712_v28 = vld [vmem:[#allocation3 + $0x3c] sm:$0xff]  ;;  %v5711_v5 = vld [vmem:[#allocation3 + $0x34] sm:$0xff] }
 0x6cc   : > { %v5215_v38 = vpop.permute.xlu1 %5214  ;;  %v5213_v42 = vpop.permute.xlu0 %5212 }
 0x6cd   : > { %5302 = vst.msk [vmem:[#allocation6 + $0x48] sm:$0xff] %vm5292_vm2, %v5215_v38  ;;  %5301 = vst.msk [vmem:[#allocation6 + $0x40] sm:$0xff] %vm5292_vm2, %v5213_v42 }
 0x6ce   : > { %5588 = vrot.lane.b32.xlu1 %v5521_v40, %s10516_s17  ;;  %5586 = vrot.lane.b32.xlu0 %v5520_v14, %s10516_s17  ;;  %v5714_v40 = vld [vmem:[#allocation3 + $0x54] sm:$0xff]  ;;  %v5713_v14 = vld [vmem:[#allocation3 + $0x4c] sm:$0xff] }
 0x6d0   : > { %v5219_v2 = vpop.permute.xlu1 %5218  ;;  %v5217_v35 = vpop.permute.xlu0 %5216 }
 0x6d1   : > { %5304 = vst.msk [vmem:[#allocation6 + $0x58] sm:$0xff] %vm5292_vm2, %v5219_v2  ;;  %5303 = vst.msk [vmem:[#allocation6 + $0x50] sm:$0xff] %vm5292_vm2, %v5217_v35 }
 0x6d2   : > { %5592 = vrot.lane.b32.xlu1 %v5523_v50, %s10516_s17  ;;  %5590 = vrot.lane.b32.xlu0 %v5522_v22, %s10516_s17  ;;  %v5716_v50 = vld [vmem:[#allocation3 + $0x6c] sm:$0xff]  ;;  %v5715_v22 = vld [vmem:[#allocation3 + $0x64] sm:$0xff] }
 0x6d4   : > { %v5223_v26 = vpop.permute.xlu1 %5222  ;;  %v5221_v56 = vpop.permute.xlu0 %5220 }
 0x6d5   : > { %5306 = vst.msk [vmem:[#allocation6 + $0x68] sm:$0xff] %vm5292_vm2, %v5223_v26  ;;  %5305 = vst.msk [vmem:[#allocation6 + $0x60] sm:$0xff] %vm5292_vm2, %v5221_v56 }
 0x6d6   : > { %5596 = vrot.lane.b32.xlu1 %v5525_v15, %s10516_s17  ;;  %5594 = vrot.lane.b32.xlu0 %v5524_v36, %s10516_s17  ;;  %v5718_v15 = vld [vmem:[#allocation3 + $0x84] sm:$0xff]  ;;  %v5717_v36 = vld [vmem:[#allocation3 + $0x7c] sm:$0xff] }
 0x6d8   : > { %v5227_v30 = vpop.permute.xlu1 %5226  ;;  %v5225_v34 = vpop.permute.xlu0 %5224 }
 0x6d9   : > { %5308 = vst.msk [vmem:[#allocation6 + $0x78] sm:$0xff] %vm5292_vm2, %v5227_v30  ;;  %5307 = vst.msk [vmem:[#allocation6 + $0x70] sm:$0xff] %vm5292_vm2, %v5225_v34 }
 0x6da   : > { %5600 = vrot.lane.b32.xlu1 %v5527_v20, %s10516_s17  ;;  %5598 = vrot.lane.b32.xlu0 %v5526_v45, %s10516_s17  ;;  %v5720_v20 = vld [vmem:[#allocation3 + $0x9c] sm:$0xff]  ;;  %v5719_v45 = vld [vmem:[#allocation3 + $0x94] sm:$0xff] }
 0x6dc   : > { %v5231_v39 = vpop.permute.xlu1 %5230  ;;  %v5229_v53 = vpop.permute.xlu0 %5228 }
 0x6dd   : > { %5310 = vst.msk [vmem:[#allocation6 + $0x88] sm:$0xff] %vm5292_vm2, %v5231_v39  ;;  %5309 = vst.msk [vmem:[#allocation6 + $0x80] sm:$0xff] %vm5292_vm2, %v5229_v53 }
 0x6de   : > { %5604 = vrot.lane.b32.xlu1 %v5529_v48, %s10516_s17  ;;  %5602 = vrot.lane.b32.xlu0 %v5528_v6, %s10516_s17  ;;  %v5722_v48 = vld [vmem:[#allocation3 + $0xb4] sm:$0xff]  ;;  %v5721_v6 = vld [vmem:[#allocation3 + $0xac] sm:$0xff] }
 0x6e0   : > { %v5235_v19 = vpop.permute.xlu1 %5234  ;;  %v5233_v63 = vpop.permute.xlu0 %5232 }
 0x6e1   : > { %5312 = vst.msk [vmem:[#allocation6 + $0x98] sm:$0xff] %vm5292_vm2, %v5235_v19  ;;  %5311 = vst.msk [vmem:[#allocation6 + $0x90] sm:$0xff] %vm5292_vm2, %v5233_v63 }
 0x6e2   : > { %5608 = vrot.lane.b32.xlu1 %v5531_v49, %s10516_s17  ;;  %5606 = vrot.lane.b32.xlu0 %v5530_v61, %s10516_s17  ;;  %v5724_v49 = vld [vmem:[#allocation3 + $0xcc] sm:$0xff]  ;;  %v5723_v61 = vld [vmem:[#allocation3 + $0xc4] sm:$0xff] }
 0x6e4   : > { %v5239_v0 = vpop.permute.xlu1 %5238  ;;  %v5237_v10 = vpop.permute.xlu0 %5236 }
 0x6e5   : > { %5314 = vst.msk [vmem:[#allocation6 + $0xa8] sm:$0xff] %vm5292_vm2, %v5239_v0  ;;  %5313 = vst.msk [vmem:[#allocation6 + $0xa0] sm:$0xff] %vm5292_vm2, %v5237_v10 }
 0x6e6   : > { %5612 = vrot.lane.b32.xlu1 %v5533_v17, %s10516_s17  ;;  %5610 = vrot.lane.b32.xlu0 %v5532_v54, %s10516_s17  ;;  %v5726_v17 = vld [vmem:[#allocation3 + $0xe4] sm:$0xff]  ;;  %v5725_v54 = vld [vmem:[#allocation3 + $0xdc] sm:$0xff] }
 0x6e8   : > { %v5243_v41 = vpop.permute.xlu1 %5242  ;;  %v5241_v44 = vpop.permute.xlu0 %5240 }
 0x6e9   : > { %5316 = vst.msk [vmem:[#allocation6 + $0xb8] sm:$0xff] %vm5292_vm2, %v5243_v41  ;;  %5315 = vst.msk [vmem:[#allocation6 + $0xb0] sm:$0xff] %vm5292_vm2, %v5241_v44 }
 0x6ea   : > { %5616 = vrot.lane.b32.xlu1 %v5535_v3, %s10516_s17  ;;  %5614 = vrot.lane.b32.xlu0 %v5534_v1, %s10516_s17  ;;  %v5728_v3 = vld [vmem:[#allocation3 + $0xfc] sm:$0xff]  ;;  %v5727_v1 = vld [vmem:[#allocation3 + $0xf4] sm:$0xff] }
 0x6ec   : > { %v5247_v62 = vpop.permute.xlu1 %5246  ;;  %v5245_v46 = vpop.permute.xlu0 %5244 }
 0x6ed   : > { %5318 = vst.msk [vmem:[#allocation6 + $0xc8] sm:$0xff] %vm5292_vm2, %v5247_v62  ;;  %5317 = vst.msk [vmem:[#allocation6 + $0xc0] sm:$0xff] %vm5292_vm2, %v5245_v46 }
 0x6ee   : > { %5620 = vrot.lane.b32.xlu1 %v5537_v8, %s10516_s17  ;;  %5618 = vrot.lane.b32.xlu0 %v5536_v43, %s10516_s17  ;;  %v5730_v8 = vld [vmem:[#allocation3 + $0x114] sm:$0xff]  ;;  %v5729_v43 = vld [vmem:[#allocation3 + $0x10c] sm:$0xff] }
 0x6f0   : > { %v5251_v23 = vpop.permute.xlu1 %5250  ;;  %v5249_v52 = vpop.permute.xlu0 %5248 }
 0x6f1   : > { %5320 = vst.msk [vmem:[#allocation6 + $0xd8] sm:$0xff] %vm5292_vm2, %v5251_v23  ;;  %5319 = vst.msk [vmem:[#allocation6 + $0xd0] sm:$0xff] %vm5292_vm2, %v5249_v52 }
 0x6f2   : > { %5624 = vrot.lane.b32.xlu1 %v5539_v4, %s10516_s17  ;;  %5622 = vrot.lane.b32.xlu0 %v5538_v7, %s10516_s17  ;;  %v5732_v4 = vld [vmem:[#allocation3 + $0x12c] sm:$0xff]  ;;  %v5731_v7 = vld [vmem:[#allocation3 + $0x124] sm:$0xff] }
 0x6f4   : > { %v5255_v16 = vpop.permute.xlu1 %5254  ;;  %v5253_v33 = vpop.permute.xlu0 %5252 }
 0x6f5   : > { %5322 = vst.msk [vmem:[#allocation6 + $0xe8] sm:$0xff] %vm5292_vm2, %v5255_v16  ;;  %5321 = vst.msk [vmem:[#allocation6 + $0xe0] sm:$0xff] %vm5292_vm2, %v5253_v33 }
 0x6f6   : > { %5628 = vrot.lane.b32.xlu1 %v5541_v27, %s10516_s17  ;;  %5626 = vrot.lane.b32.xlu0 %v5540_v51, %s10516_s17  ;;  %v5734_v27 = vld [vmem:[#allocation3 + $0x144] sm:$0xff]  ;;  %v5733_v51 = vld [vmem:[#allocation3 + $0x13c] sm:$0xff] }
 0x6f8   : > { %v5259_v31 = vpop.permute.xlu1 %5258  ;;  %v5257_v57 = vpop.permute.xlu0 %5256 }
 0x6f9   : > { %5324 = vst.msk [vmem:[#allocation6 + $0xf8] sm:$0xff] %vm5292_vm2, %v5259_v31  ;;  %5323 = vst.msk [vmem:[#allocation6 + $0xf0] sm:$0xff] %vm5292_vm2, %v5257_v57  ;;  %vm7888_vm2 = vcmask 818176  }
 0x6fa   : > { %5632 = vrot.lane.b32.xlu1 %v5543_v9, %s10516_s17  ;;  %5630 = vrot.lane.b32.xlu0 %v5542_v18, %s10516_s17  ;;  %v5736_v9 = vld [vmem:[#allocation3 + $0x15c] sm:$0xff]  ;;  %v5735_v18 = vld [vmem:[#allocation3 + $0x154] sm:$0xff] }
 0x6fc   : > { %v5392_v11 = vpop.permute.xlu1 %5391  ;;  %v5390_v24 = vpop.permute.xlu0 %5389 }
 0x6fd   : > { %5487 = vst.msk [vmem:[#allocation6 + $0x8] sm:$0xff] %vm5485_vm3, %v5392_v11  ;;  %5486 = vst.msk [vmem:[#allocation6] sm:$0xff] %vm5485_vm3, %v5390_v24 }
 0x6fe   : > { %5636 = vrot.lane.b32.xlu1 %v5545_v47, %s10516_s17  ;;  %5634 = vrot.lane.b32.xlu0 %v5544_v21, %s10516_s17  ;;  %v5738_v47 = vld [vmem:[#allocation3 + $0x174] sm:$0xff]  ;;  %v5737_v21 = vld [vmem:[#allocation3 + $0x16c] sm:$0xff] }
 0x700   : > { %v5396_v12 = vpop.permute.xlu1 %5395  ;;  %v5394_v32 = vpop.permute.xlu0 %5393 }
 0x701   : > { %5489 = vst.msk [vmem:[#allocation6 + $0x18] sm:$0xff] %vm5485_vm3, %v5396_v12  ;;  %5488 = vst.msk [vmem:[#allocation6 + $0x10] sm:$0xff] %vm5485_vm3, %v5394_v32 }
 0x702   : > { %5640 = vrot.lane.b32.xlu1 %v5547_v60, %s10516_s17  ;;  %5638 = vrot.lane.b32.xlu0 %v5546_v29, %s10516_s17  ;;  %v5740_v60 = vld [vmem:[#allocation3 + $0x18c] sm:$0xff]  ;;  %v5739_v29 = vld [vmem:[#allocation3 + $0x184] sm:$0xff] }
 0x704   : > { %v5400_v55 = vpop.permute.xlu1 %5399  ;;  %v5398_v58 = vpop.permute.xlu0 %5397 }
 0x705   : > { %5491 = vst.msk [vmem:[#allocation6 + $0x28] sm:$0xff] %vm5485_vm3, %v5400_v55  ;;  %5490 = vst.msk [vmem:[#allocation6 + $0x20] sm:$0xff] %vm5485_vm3, %v5398_v58 }
 0x706   : > { %5644 = vrot.lane.b32.xlu1 %v5549_v59, %s10516_s17  ;;  %5642 = vrot.lane.b32.xlu0 %v5548_v13, %s10516_s17  ;;  %v5742_v59 = vld [vmem:[#allocation3 + $0x1a4] sm:$0xff]  ;;  %v5741_v13 = vld [vmem:[#allocation3 + $0x19c] sm:$0xff]  ;;  %s10524_s17 = smov 84  }
 0x708   : > { %v5404_v25 = vpop.permute.xlu1 %5403  ;;  %v5402_v37 = vpop.permute.xlu0 %5401 }
 0x709   : > { %5493 = vst.msk [vmem:[#allocation6 + $0x38] sm:$0xff] %vm5485_vm3, %v5404_v25  ;;  %5492 = vst.msk [vmem:[#allocation6 + $0x30] sm:$0xff] %vm5485_vm3, %v5402_v37 }
 0x70a   : > { %5777 = vrot.lane.b32.xlu1 %v5712_v28, %s10517_s21  ;;  %5775 = vrot.lane.b32.xlu0 %v5711_v5, %s10517_s21  ;;  %v5906_v28 = vld [vmem:[#allocation3 + $0x50] sm:$0xff]  ;;  %v5905_v5 = vld [vmem:[#allocation3 + $0x48] sm:$0xff] }
 0x70c   : > { %v5408_v38 = vpop.permute.xlu1 %5407  ;;  %v5406_v42 = vpop.permute.xlu0 %5405 }
 0x70d   : > { %5495 = vst.msk [vmem:[#allocation6 + $0x48] sm:$0xff] %vm5485_vm3, %v5408_v38  ;;  %5494 = vst.msk [vmem:[#allocation6 + $0x40] sm:$0xff] %vm5485_vm3, %v5406_v42 }
 0x70e   : > { %5781 = vrot.lane.b32.xlu1 %v5714_v40, %s10517_s21  ;;  %5779 = vrot.lane.b32.xlu0 %v5713_v14, %s10517_s21  ;;  %v5908_v40 = vld [vmem:[#allocation3 + $0x68] sm:$0xff]  ;;  %v5907_v14 = vld [vmem:[#allocation3 + $0x60] sm:$0xff] }
 0x710   : > { %v5412_v2 = vpop.permute.xlu1 %5411  ;;  %v5410_v35 = vpop.permute.xlu0 %5409 }
 0x711   : > { %5497 = vst.msk [vmem:[#allocation6 + $0x58] sm:$0xff] %vm5485_vm3, %v5412_v2  ;;  %5496 = vst.msk [vmem:[#allocation6 + $0x50] sm:$0xff] %vm5485_vm3, %v5410_v35 }
 0x712   : > { %5785 = vrot.lane.b32.xlu1 %v5716_v50, %s10517_s21  ;;  %5783 = vrot.lane.b32.xlu0 %v5715_v22, %s10517_s21  ;;  %v5910_v50 = vld [vmem:[#allocation3 + $0x80] sm:$0xff]  ;;  %v5909_v22 = vld [vmem:[#allocation3 + $0x78] sm:$0xff] }
 0x714   : > { %v5416_v26 = vpop.permute.xlu1 %5415  ;;  %v5414_v56 = vpop.permute.xlu0 %5413 }
 0x715   : > { %5499 = vst.msk [vmem:[#allocation6 + $0x68] sm:$0xff] %vm5485_vm3, %v5416_v26  ;;  %5498 = vst.msk [vmem:[#allocation6 + $0x60] sm:$0xff] %vm5485_vm3, %v5414_v56 }
 0x716   : > { %5789 = vrot.lane.b32.xlu1 %v5718_v15, %s10517_s21  ;;  %5787 = vrot.lane.b32.xlu0 %v5717_v36, %s10517_s21  ;;  %v5912_v15 = vld [vmem:[#allocation3 + $0x98] sm:$0xff]  ;;  %v5911_v36 = vld [vmem:[#allocation3 + $0x90] sm:$0xff] }
 0x718   : > { %v5420_v30 = vpop.permute.xlu1 %5419  ;;  %v5418_v34 = vpop.permute.xlu0 %5417 }
 0x719   : > { %5501 = vst.msk [vmem:[#allocation6 + $0x78] sm:$0xff] %vm5485_vm3, %v5420_v30  ;;  %5500 = vst.msk [vmem:[#allocation6 + $0x70] sm:$0xff] %vm5485_vm3, %v5418_v34 }
 0x71a   : > { %5793 = vrot.lane.b32.xlu1 %v5720_v20, %s10517_s21  ;;  %5791 = vrot.lane.b32.xlu0 %v5719_v45, %s10517_s21  ;;  %v5914_v20 = vld [vmem:[#allocation3 + $0xb0] sm:$0xff]  ;;  %v5913_v45 = vld [vmem:[#allocation3 + $0xa8] sm:$0xff] }
 0x71c   : > { %v5424_v39 = vpop.permute.xlu1 %5423  ;;  %v5422_v53 = vpop.permute.xlu0 %5421 }
 0x71d   : > { %5503 = vst.msk [vmem:[#allocation6 + $0x88] sm:$0xff] %vm5485_vm3, %v5424_v39  ;;  %5502 = vst.msk [vmem:[#allocation6 + $0x80] sm:$0xff] %vm5485_vm3, %v5422_v53 }
 0x71e   : > { %5797 = vrot.lane.b32.xlu1 %v5722_v48, %s10517_s21  ;;  %5795 = vrot.lane.b32.xlu0 %v5721_v6, %s10517_s21  ;;  %v5916_v48 = vld [vmem:[#allocation3 + $0xc8] sm:$0xff]  ;;  %v5915_v6 = vld [vmem:[#allocation3 + $0xc0] sm:$0xff] }
 0x720   : > { %v5428_v19 = vpop.permute.xlu1 %5427  ;;  %v5426_v63 = vpop.permute.xlu0 %5425 }
 0x721   : > { %5505 = vst.msk [vmem:[#allocation6 + $0x98] sm:$0xff] %vm5485_vm3, %v5428_v19  ;;  %5504 = vst.msk [vmem:[#allocation6 + $0x90] sm:$0xff] %vm5485_vm3, %v5426_v63 }
 0x722   : > { %5801 = vrot.lane.b32.xlu1 %v5724_v49, %s10517_s21  ;;  %5799 = vrot.lane.b32.xlu0 %v5723_v61, %s10517_s21  ;;  %v5918_v49 = vld [vmem:[#allocation3 + $0xe0] sm:$0xff]  ;;  %v5917_v61 = vld [vmem:[#allocation3 + $0xd8] sm:$0xff] }
 0x724   : > { %v5432_v0 = vpop.permute.xlu1 %5431  ;;  %v5430_v10 = vpop.permute.xlu0 %5429 }
 0x725   : > { %5507 = vst.msk [vmem:[#allocation6 + $0xa8] sm:$0xff] %vm5485_vm3, %v5432_v0  ;;  %5506 = vst.msk [vmem:[#allocation6 + $0xa0] sm:$0xff] %vm5485_vm3, %v5430_v10 }
 0x726   : > { %5805 = vrot.lane.b32.xlu1 %v5726_v17, %s10517_s21  ;;  %5803 = vrot.lane.b32.xlu0 %v5725_v54, %s10517_s21  ;;  %v5920_v17 = vld [vmem:[#allocation3 + $0xf8] sm:$0xff]  ;;  %v5919_v54 = vld [vmem:[#allocation3 + $0xf0] sm:$0xff] }
 0x728   : > { %v5436_v41 = vpop.permute.xlu1 %5435  ;;  %v5434_v44 = vpop.permute.xlu0 %5433 }
 0x729   : > { %5509 = vst.msk [vmem:[#allocation6 + $0xb8] sm:$0xff] %vm5485_vm3, %v5436_v41  ;;  %5508 = vst.msk [vmem:[#allocation6 + $0xb0] sm:$0xff] %vm5485_vm3, %v5434_v44 }
 0x72a   : > { %5809 = vrot.lane.b32.xlu1 %v5728_v3, %s10517_s21  ;;  %5807 = vrot.lane.b32.xlu0 %v5727_v1, %s10517_s21  ;;  %v5922_v3 = vld [vmem:[#allocation3 + $0x110] sm:$0xff]  ;;  %v5921_v1 = vld [vmem:[#allocation3 + $0x108] sm:$0xff] }
 0x72c   : > { %v5440_v62 = vpop.permute.xlu1 %5439  ;;  %v5438_v46 = vpop.permute.xlu0 %5437 }
 0x72d   : > { %5511 = vst.msk [vmem:[#allocation6 + $0xc8] sm:$0xff] %vm5485_vm3, %v5440_v62  ;;  %5510 = vst.msk [vmem:[#allocation6 + $0xc0] sm:$0xff] %vm5485_vm3, %v5438_v46 }
 0x72e   : > { %5813 = vrot.lane.b32.xlu1 %v5730_v8, %s10517_s21  ;;  %5811 = vrot.lane.b32.xlu0 %v5729_v43, %s10517_s21  ;;  %v5924_v8 = vld [vmem:[#allocation3 + $0x128] sm:$0xff]  ;;  %v5923_v43 = vld [vmem:[#allocation3 + $0x120] sm:$0xff] }
 0x730   : > { %v5444_v23 = vpop.permute.xlu1 %5443  ;;  %v5442_v52 = vpop.permute.xlu0 %5441 }
 0x731   : > { %5513 = vst.msk [vmem:[#allocation6 + $0xd8] sm:$0xff] %vm5485_vm3, %v5444_v23  ;;  %5512 = vst.msk [vmem:[#allocation6 + $0xd0] sm:$0xff] %vm5485_vm3, %v5442_v52 }
 0x732   : > { %5817 = vrot.lane.b32.xlu1 %v5732_v4, %s10517_s21  ;;  %5815 = vrot.lane.b32.xlu0 %v5731_v7, %s10517_s21  ;;  %v5926_v4 = vld [vmem:[#allocation3 + $0x140] sm:$0xff]  ;;  %v5925_v7 = vld [vmem:[#allocation3 + $0x138] sm:$0xff] }
 0x734   : > { %v5448_v16 = vpop.permute.xlu1 %5447  ;;  %v5446_v33 = vpop.permute.xlu0 %5445 }
 0x735   : > { %5515 = vst.msk [vmem:[#allocation6 + $0xe8] sm:$0xff] %vm5485_vm3, %v5448_v16  ;;  %5514 = vst.msk [vmem:[#allocation6 + $0xe0] sm:$0xff] %vm5485_vm3, %v5446_v33 }
 0x736   : > { %5821 = vrot.lane.b32.xlu1 %v5734_v27, %s10517_s21  ;;  %5819 = vrot.lane.b32.xlu0 %v5733_v51, %s10517_s21  ;;  %v5928_v27 = vld [vmem:[#allocation3 + $0x158] sm:$0xff]  ;;  %v5927_v51 = vld [vmem:[#allocation3 + $0x150] sm:$0xff] }
 0x738   : > { %v5452_v31 = vpop.permute.xlu1 %5451  ;;  %v5450_v57 = vpop.permute.xlu0 %5449 }
 0x739   : > { %5517 = vst.msk [vmem:[#allocation6 + $0xf8] sm:$0xff] %vm5485_vm3, %v5452_v31  ;;  %5516 = vst.msk [vmem:[#allocation6 + $0xf0] sm:$0xff] %vm5485_vm3, %v5450_v57  ;;  %vm9724_vm3 = vcmask 261312  }
 0x73a   : > { %5825 = vrot.lane.b32.xlu1 %v5736_v9, %s10517_s21  ;;  %5823 = vrot.lane.b32.xlu0 %v5735_v18, %s10517_s21  ;;  %v5930_v9 = vld [vmem:[#allocation3 + $0x170] sm:$0xff]  ;;  %v5929_v18 = vld [vmem:[#allocation3 + $0x168] sm:$0xff] }
 0x73c   : > { %v5585_v11 = vpop.permute.xlu1 %5584  ;;  %v5583_v24 = vpop.permute.xlu0 %5582 }
 0x73d   : > { %5680 = vst.msk [vmem:[#allocation6 + $0x8] sm:$0xff] %vm5678_vm4, %v5585_v11  ;;  %5679 = vst.msk [vmem:[#allocation6] sm:$0xff] %vm5678_vm4, %v5583_v24 }
 0x73e   : > { %5829 = vrot.lane.b32.xlu1 %v5738_v47, %s10517_s21  ;;  %5827 = vrot.lane.b32.xlu0 %v5737_v21, %s10517_s21  ;;  %v5932_v47 = vld [vmem:[#allocation3 + $0x188] sm:$0xff]  ;;  %v5931_v21 = vld [vmem:[#allocation3 + $0x180] sm:$0xff] }
 0x740   : > { %v5589_v12 = vpop.permute.xlu1 %5588  ;;  %v5587_v32 = vpop.permute.xlu0 %5586 }
 0x741   : > { %5682 = vst.msk [vmem:[#allocation6 + $0x18] sm:$0xff] %vm5678_vm4, %v5589_v12  ;;  %5681 = vst.msk [vmem:[#allocation6 + $0x10] sm:$0xff] %vm5678_vm4, %v5587_v32 }
 0x742   : > { %5833 = vrot.lane.b32.xlu1 %v5740_v60, %s10517_s21  ;;  %5831 = vrot.lane.b32.xlu0 %v5739_v29, %s10517_s21  ;;  %v5934_v60 = vld [vmem:[#allocation3 + $0x1a0] sm:$0xff]  ;;  %v5933_v29 = vld [vmem:[#allocation3 + $0x198] sm:$0xff] }
 0x744   : > { %v5593_v55 = vpop.permute.xlu1 %5592  ;;  %v5591_v58 = vpop.permute.xlu0 %5590 }
 0x745   : > { %5684 = vst.msk [vmem:[#allocation6 + $0x28] sm:$0xff] %vm5678_vm4, %v5593_v55  ;;  %5683 = vst.msk [vmem:[#allocation6 + $0x20] sm:$0xff] %vm5678_vm4, %v5591_v58  ;;  %v5936_v55 = vld [vmem:[#allocation3 + $0x1b8] sm:$0xff]  ;;  %v5935_v58 = vld [vmem:[#allocation3 + $0x1b0] sm:$0xff] }
 0x746   : > { %5837 = vrot.lane.b32.xlu1 %v5742_v59, %s10517_s21  ;;  %5835 = vrot.lane.b32.xlu0 %v5741_v13, %s10517_s21  ;;  %s10526_s21 = smov 92  }
 0x748   : > { %v5597_v25 = vpop.permute.xlu1 %5596  ;;  %v5595_v37 = vpop.permute.xlu0 %5594 }
 0x749   : > { %5686 = vst.msk [vmem:[#allocation6 + $0x38] sm:$0xff] %vm5678_vm4, %v5597_v25  ;;  %5685 = vst.msk [vmem:[#allocation6 + $0x30] sm:$0xff] %vm5678_vm4, %v5595_v37 }
 0x74a   : > { %5971 = vrot.lane.b32.xlu1 %v5906_v28, %s10518_s14  ;;  %5969 = vrot.lane.b32.xlu0 %v5905_v5, %s10518_s14  ;;  %v6099_v28 = vld [vmem:[#allocation3 + $0x51] sm:$0xff]  ;;  %v6098_v5 = vld [vmem:[#allocation3 + $0x49] sm:$0xff] }
 0x74c   : > { %v5601_v38 = vpop.permute.xlu1 %5600  ;;  %v5599_v42 = vpop.permute.xlu0 %5598 }
 0x74d   : > { %5688 = vst.msk [vmem:[#allocation6 + $0x48] sm:$0xff] %vm5678_vm4, %v5601_v38  ;;  %5687 = vst.msk [vmem:[#allocation6 + $0x40] sm:$0xff] %vm5678_vm4, %v5599_v42 }
 0x74e   : > { %5975 = vrot.lane.b32.xlu1 %v5908_v40, %s10518_s14  ;;  %5973 = vrot.lane.b32.xlu0 %v5907_v14, %s10518_s14  ;;  %v6101_v40 = vld [vmem:[#allocation3 + $0x69] sm:$0xff]  ;;  %v6100_v14 = vld [vmem:[#allocation3 + $0x61] sm:$0xff] }
 0x750   : > { %v5605_v2 = vpop.permute.xlu1 %5604  ;;  %v5603_v35 = vpop.permute.xlu0 %5602 }
 0x751   : > { %5690 = vst.msk [vmem:[#allocation6 + $0x58] sm:$0xff] %vm5678_vm4, %v5605_v2  ;;  %5689 = vst.msk [vmem:[#allocation6 + $0x50] sm:$0xff] %vm5678_vm4, %v5603_v35 }
 0x752   : > { %5979 = vrot.lane.b32.xlu1 %v5910_v50, %s10518_s14  ;;  %5977 = vrot.lane.b32.xlu0 %v5909_v22, %s10518_s14  ;;  %v6103_v50 = vld [vmem:[#allocation3 + $0x81] sm:$0xff]  ;;  %v6102_v22 = vld [vmem:[#allocation3 + $0x79] sm:$0xff] }
 0x754   : > { %v5609_v26 = vpop.permute.xlu1 %5608  ;;  %v5607_v56 = vpop.permute.xlu0 %5606 }
 0x755   : > { %5692 = vst.msk [vmem:[#allocation6 + $0x68] sm:$0xff] %vm5678_vm4, %v5609_v26  ;;  %5691 = vst.msk [vmem:[#allocation6 + $0x60] sm:$0xff] %vm5678_vm4, %v5607_v56 }
 0x756   : > { %5983 = vrot.lane.b32.xlu1 %v5912_v15, %s10518_s14  ;;  %5981 = vrot.lane.b32.xlu0 %v5911_v36, %s10518_s14  ;;  %v6105_v15 = vld [vmem:[#allocation3 + $0x99] sm:$0xff]  ;;  %v6104_v36 = vld [vmem:[#allocation3 + $0x91] sm:$0xff] }
 0x758   : > { %v5613_v30 = vpop.permute.xlu1 %5612  ;;  %v5611_v34 = vpop.permute.xlu0 %5610 }
 0x759   : > { %5694 = vst.msk [vmem:[#allocation6 + $0x78] sm:$0xff] %vm5678_vm4, %v5613_v30  ;;  %5693 = vst.msk [vmem:[#allocation6 + $0x70] sm:$0xff] %vm5678_vm4, %v5611_v34 }
 0x75a   : > { %5987 = vrot.lane.b32.xlu1 %v5914_v20, %s10518_s14  ;;  %5985 = vrot.lane.b32.xlu0 %v5913_v45, %s10518_s14  ;;  %v6107_v20 = vld [vmem:[#allocation3 + $0xb1] sm:$0xff]  ;;  %v6106_v45 = vld [vmem:[#allocation3 + $0xa9] sm:$0xff] }
 0x75c   : > { %v5617_v39 = vpop.permute.xlu1 %5616  ;;  %v5615_v53 = vpop.permute.xlu0 %5614 }
 0x75d   : > { %5696 = vst.msk [vmem:[#allocation6 + $0x88] sm:$0xff] %vm5678_vm4, %v5617_v39  ;;  %5695 = vst.msk [vmem:[#allocation6 + $0x80] sm:$0xff] %vm5678_vm4, %v5615_v53 }
 0x75e   : > { %5991 = vrot.lane.b32.xlu1 %v5916_v48, %s10518_s14  ;;  %5989 = vrot.lane.b32.xlu0 %v5915_v6, %s10518_s14  ;;  %v6109_v48 = vld [vmem:[#allocation3 + $0xc9] sm:$0xff]  ;;  %v6108_v6 = vld [vmem:[#allocation3 + $0xc1] sm:$0xff] }
 0x760   : > { %v5621_v19 = vpop.permute.xlu1 %5620  ;;  %v5619_v63 = vpop.permute.xlu0 %5618 }
 0x761   : > { %5698 = vst.msk [vmem:[#allocation6 + $0x98] sm:$0xff] %vm5678_vm4, %v5621_v19  ;;  %5697 = vst.msk [vmem:[#allocation6 + $0x90] sm:$0xff] %vm5678_vm4, %v5619_v63 }
 0x762   : > { %5995 = vrot.lane.b32.xlu1 %v5918_v49, %s10518_s14  ;;  %5993 = vrot.lane.b32.xlu0 %v5917_v61, %s10518_s14  ;;  %v6111_v49 = vld [vmem:[#allocation3 + $0xe1] sm:$0xff]  ;;  %v6110_v61 = vld [vmem:[#allocation3 + $0xd9] sm:$0xff] }
 0x764   : > { %v5625_v0 = vpop.permute.xlu1 %5624  ;;  %v5623_v10 = vpop.permute.xlu0 %5622 }
 0x765   : > { %5700 = vst.msk [vmem:[#allocation6 + $0xa8] sm:$0xff] %vm5678_vm4, %v5625_v0  ;;  %5699 = vst.msk [vmem:[#allocation6 + $0xa0] sm:$0xff] %vm5678_vm4, %v5623_v10 }
 0x766   : > { %5999 = vrot.lane.b32.xlu1 %v5920_v17, %s10518_s14  ;;  %5997 = vrot.lane.b32.xlu0 %v5919_v54, %s10518_s14  ;;  %v6113_v17 = vld [vmem:[#allocation3 + $0xf9] sm:$0xff]  ;;  %v6112_v54 = vld [vmem:[#allocation3 + $0xf1] sm:$0xff] }
 0x768   : > { %v5629_v41 = vpop.permute.xlu1 %5628  ;;  %v5627_v44 = vpop.permute.xlu0 %5626 }
 0x769   : > { %5702 = vst.msk [vmem:[#allocation6 + $0xb8] sm:$0xff] %vm5678_vm4, %v5629_v41  ;;  %5701 = vst.msk [vmem:[#allocation6 + $0xb0] sm:$0xff] %vm5678_vm4, %v5627_v44 }
 0x76a   : > { %6003 = vrot.lane.b32.xlu1 %v5922_v3, %s10518_s14  ;;  %6001 = vrot.lane.b32.xlu0 %v5921_v1, %s10518_s14  ;;  %v6115_v3 = vld [vmem:[#allocation3 + $0x111] sm:$0xff]  ;;  %v6114_v1 = vld [vmem:[#allocation3 + $0x109] sm:$0xff] }
 0x76c   : > { %v5633_v62 = vpop.permute.xlu1 %5632  ;;  %v5631_v46 = vpop.permute.xlu0 %5630 }
 0x76d   : > { %5704 = vst.msk [vmem:[#allocation6 + $0xc8] sm:$0xff] %vm5678_vm4, %v5633_v62  ;;  %5703 = vst.msk [vmem:[#allocation6 + $0xc0] sm:$0xff] %vm5678_vm4, %v5631_v46 }
 0x76e   : > { %6007 = vrot.lane.b32.xlu1 %v5924_v8, %s10518_s14  ;;  %6005 = vrot.lane.b32.xlu0 %v5923_v43, %s10518_s14  ;;  %v6117_v8 = vld [vmem:[#allocation3 + $0x129] sm:$0xff]  ;;  %v6116_v43 = vld [vmem:[#allocation3 + $0x121] sm:$0xff] }
 0x770   : > { %v5637_v23 = vpop.permute.xlu1 %5636  ;;  %v5635_v52 = vpop.permute.xlu0 %5634 }
 0x771   : > { %5706 = vst.msk [vmem:[#allocation6 + $0xd8] sm:$0xff] %vm5678_vm4, %v5637_v23  ;;  %5705 = vst.msk [vmem:[#allocation6 + $0xd0] sm:$0xff] %vm5678_vm4, %v5635_v52 }
 0x772   : > { %6011 = vrot.lane.b32.xlu1 %v5926_v4, %s10518_s14  ;;  %6009 = vrot.lane.b32.xlu0 %v5925_v7, %s10518_s14  ;;  %v6119_v4 = vld [vmem:[#allocation3 + $0x141] sm:$0xff]  ;;  %v6118_v7 = vld [vmem:[#allocation3 + $0x139] sm:$0xff] }
 0x774   : > { %v5641_v16 = vpop.permute.xlu1 %5640  ;;  %v5639_v33 = vpop.permute.xlu0 %5638 }
 0x775   : > { %5708 = vst.msk [vmem:[#allocation6 + $0xe8] sm:$0xff] %vm5678_vm4, %v5641_v16  ;;  %5707 = vst.msk [vmem:[#allocation6 + $0xe0] sm:$0xff] %vm5678_vm4, %v5639_v33 }
 0x776   : > { %6015 = vrot.lane.b32.xlu1 %v5928_v27, %s10518_s14  ;;  %6013 = vrot.lane.b32.xlu0 %v5927_v51, %s10518_s14  ;;  %v6121_v27 = vld [vmem:[#allocation3 + $0x159] sm:$0xff]  ;;  %v6120_v51 = vld [vmem:[#allocation3 + $0x151] sm:$0xff] }
 0x778   : > { %v5645_v31 = vpop.permute.xlu1 %5644  ;;  %v5643_v57 = vpop.permute.xlu0 %5642 }
 0x779   : > { %5710 = vst.msk [vmem:[#allocation6 + $0xf8] sm:$0xff] %vm5678_vm4, %v5645_v31  ;;  %5709 = vst.msk [vmem:[#allocation6 + $0xf0] sm:$0xff] %vm5678_vm4, %v5643_v57 }
 0x77a   : > { %6019 = vrot.lane.b32.xlu1 %v5930_v9, %s10518_s14  ;;  %6017 = vrot.lane.b32.xlu0 %v5929_v18, %s10518_s14  ;;  %v6123_v9 = vld [vmem:[#allocation3 + $0x171] sm:$0xff]  ;;  %v6122_v18 = vld [vmem:[#allocation3 + $0x169] sm:$0xff] }
 0x77c   : > { %v5778_v11 = vpop.permute.xlu1 %5777  ;;  %v5776_v24 = vpop.permute.xlu0 %5775 }
 0x77d   : > { %5873 = vst.msk [vmem:[#allocation6 + $0x8] sm:$0xff] %vm5871_vm5, %v5778_v11  ;;  %5872 = vst.msk [vmem:[#allocation6] sm:$0xff] %vm5871_vm5, %v5776_v24 }
 0x77e   : > { %6023 = vrot.lane.b32.xlu1 %v5932_v47, %s10518_s14  ;;  %6021 = vrot.lane.b32.xlu0 %v5931_v21, %s10518_s14  ;;  %v6125_v47 = vld [vmem:[#allocation3 + $0x189] sm:$0xff]  ;;  %v6124_v21 = vld [vmem:[#allocation3 + $0x181] sm:$0xff] }
 0x780   : > { %v5782_v12 = vpop.permute.xlu1 %5781  ;;  %v5780_v32 = vpop.permute.xlu0 %5779 }
 0x781   : > { %5875 = vst.msk [vmem:[#allocation6 + $0x18] sm:$0xff] %vm5871_vm5, %v5782_v12  ;;  %5874 = vst.msk [vmem:[#allocation6 + $0x10] sm:$0xff] %vm5871_vm5, %v5780_v32 }
 0x782   : > { %6027 = vrot.lane.b32.xlu1 %v5934_v60, %s10518_s14  ;;  %6025 = vrot.lane.b32.xlu0 %v5933_v29, %s10518_s14  ;;  %v6127_v60 = vld [vmem:[#allocation3 + $0x1a1] sm:$0xff]  ;;  %v6126_v29 = vld [vmem:[#allocation3 + $0x199] sm:$0xff] }
 0x784   : > { %v5786_v59 = vpop.permute.xlu1 %5785  ;;  %v5784_v13 = vpop.permute.xlu0 %5783 }
 0x785   : > { %5877 = vst.msk [vmem:[#allocation6 + $0x28] sm:$0xff] %vm5871_vm5, %v5786_v59  ;;  %5876 = vst.msk [vmem:[#allocation6 + $0x20] sm:$0xff] %vm5871_vm5, %v5784_v13 }
 0x786   : > { %6031 = vrot.lane.b32.xlu1 %v5936_v55, %s10518_s14  ;;  %6029 = vrot.lane.b32.xlu0 %v5935_v58, %s10518_s14  ;;  %v6129_v55 = vld [vmem:[#allocation3 + $0x1b9] sm:$0xff]  ;;  %v6128_v58 = vld [vmem:[#allocation3 + $0x1b1] sm:$0xff] }
 0x788   : > { %v5790_v25 = vpop.permute.xlu1 %5789  ;;  %v5788_v37 = vpop.permute.xlu0 %5787 }
 0x789   : > { %5879 = vst.msk [vmem:[#allocation6 + $0x38] sm:$0xff] %vm5871_vm5, %v5790_v25  ;;  %5878 = vst.msk [vmem:[#allocation6 + $0x30] sm:$0xff] %vm5871_vm5, %v5788_v37 }
 0x78a   : > { %6164 = vrot.lane.b32.xlu1 %v6099_v28, %s10519_s23  ;;  %6162 = vrot.lane.b32.xlu0 %v6098_v5, %s10519_s23  ;;  %v6292_v28 = vld [vmem:[#allocation3 + $0x52] sm:$0xff]  ;;  %v6291_v5 = vld [vmem:[#allocation3 + $0x4a] sm:$0xff] }
 0x78c   : > { %v5794_v38 = vpop.permute.xlu1 %5793  ;;  %v5792_v42 = vpop.permute.xlu0 %5791 }
 0x78d   : > { %5881 = vst.msk [vmem:[#allocation6 + $0x48] sm:$0xff] %vm5871_vm5, %v5794_v38  ;;  %5880 = vst.msk [vmem:[#allocation6 + $0x40] sm:$0xff] %vm5871_vm5, %v5792_v42 }
 0x78e   : > { %6168 = vrot.lane.b32.xlu1 %v6101_v40, %s10519_s23  ;;  %6166 = vrot.lane.b32.xlu0 %v6100_v14, %s10519_s23  ;;  %v6294_v40 = vld [vmem:[#allocation3 + $0x6a] sm:$0xff]  ;;  %v6293_v14 = vld [vmem:[#allocation3 + $0x62] sm:$0xff] }
 0x790   : > { %v5798_v2 = vpop.permute.xlu1 %5797  ;;  %v5796_v35 = vpop.permute.xlu0 %5795 }
 0x791   : > { %5883 = vst.msk [vmem:[#allocation6 + $0x58] sm:$0xff] %vm5871_vm5, %v5798_v2  ;;  %5882 = vst.msk [vmem:[#allocation6 + $0x50] sm:$0xff] %vm5871_vm5, %v5796_v35 }
 0x792   : > { %6172 = vrot.lane.b32.xlu1 %v6103_v50, %s10519_s23  ;;  %6170 = vrot.lane.b32.xlu0 %v6102_v22, %s10519_s23  ;;  %v6296_v50 = vld [vmem:[#allocation3 + $0x82] sm:$0xff]  ;;  %v6295_v22 = vld [vmem:[#allocation3 + $0x7a] sm:$0xff] }
 0x794   : > { %v5802_v26 = vpop.permute.xlu1 %5801  ;;  %v5800_v56 = vpop.permute.xlu0 %5799 }
 0x795   : > { %5885 = vst.msk [vmem:[#allocation6 + $0x68] sm:$0xff] %vm5871_vm5, %v5802_v26  ;;  %5884 = vst.msk [vmem:[#allocation6 + $0x60] sm:$0xff] %vm5871_vm5, %v5800_v56 }
 0x796   : > { %6176 = vrot.lane.b32.xlu1 %v6105_v15, %s10519_s23  ;;  %6174 = vrot.lane.b32.xlu0 %v6104_v36, %s10519_s23  ;;  %v6298_v15 = vld [vmem:[#allocation3 + $0x9a] sm:$0xff]  ;;  %v6297_v36 = vld [vmem:[#allocation3 + $0x92] sm:$0xff] }
 0x798   : > { %v5806_v30 = vpop.permute.xlu1 %5805  ;;  %v5804_v34 = vpop.permute.xlu0 %5803 }
 0x799   : > { %5887 = vst.msk [vmem:[#allocation6 + $0x78] sm:$0xff] %vm5871_vm5, %v5806_v30  ;;  %5886 = vst.msk [vmem:[#allocation6 + $0x70] sm:$0xff] %vm5871_vm5, %v5804_v34 }
 0x79a   : > { %6180 = vrot.lane.b32.xlu1 %v6107_v20, %s10519_s23  ;;  %6178 = vrot.lane.b32.xlu0 %v6106_v45, %s10519_s23  ;;  %v6300_v20 = vld [vmem:[#allocation3 + $0xb2] sm:$0xff]  ;;  %v6299_v45 = vld [vmem:[#allocation3 + $0xaa] sm:$0xff] }
 0x79c   : > { %v5810_v39 = vpop.permute.xlu1 %5809  ;;  %v5808_v53 = vpop.permute.xlu0 %5807 }
 0x79d   : > { %5889 = vst.msk [vmem:[#allocation6 + $0x88] sm:$0xff] %vm5871_vm5, %v5810_v39  ;;  %5888 = vst.msk [vmem:[#allocation6 + $0x80] sm:$0xff] %vm5871_vm5, %v5808_v53 }
 0x79e   : > { %6184 = vrot.lane.b32.xlu1 %v6109_v48, %s10519_s23  ;;  %6182 = vrot.lane.b32.xlu0 %v6108_v6, %s10519_s23  ;;  %v6302_v48 = vld [vmem:[#allocation3 + $0xca] sm:$0xff]  ;;  %v6301_v6 = vld [vmem:[#allocation3 + $0xc2] sm:$0xff] }
 0x7a0   : > { %v5814_v19 = vpop.permute.xlu1 %5813  ;;  %v5812_v63 = vpop.permute.xlu0 %5811 }
 0x7a1   : > { %5891 = vst.msk [vmem:[#allocation6 + $0x98] sm:$0xff] %vm5871_vm5, %v5814_v19  ;;  %5890 = vst.msk [vmem:[#allocation6 + $0x90] sm:$0xff] %vm5871_vm5, %v5812_v63 }
 0x7a2   : > { %6188 = vrot.lane.b32.xlu1 %v6111_v49, %s10519_s23  ;;  %6186 = vrot.lane.b32.xlu0 %v6110_v61, %s10519_s23  ;;  %v6304_v49 = vld [vmem:[#allocation3 + $0xe2] sm:$0xff]  ;;  %v6303_v61 = vld [vmem:[#allocation3 + $0xda] sm:$0xff] }
 0x7a4   : > { %v5818_v0 = vpop.permute.xlu1 %5817  ;;  %v5816_v10 = vpop.permute.xlu0 %5815 }
 0x7a5   : > { %5893 = vst.msk [vmem:[#allocation6 + $0xa8] sm:$0xff] %vm5871_vm5, %v5818_v0  ;;  %5892 = vst.msk [vmem:[#allocation6 + $0xa0] sm:$0xff] %vm5871_vm5, %v5816_v10 }
 0x7a6   : > { %6192 = vrot.lane.b32.xlu1 %v6113_v17, %s10519_s23  ;;  %6190 = vrot.lane.b32.xlu0 %v6112_v54, %s10519_s23  ;;  %v6306_v17 = vld [vmem:[#allocation3 + $0xfa] sm:$0xff]  ;;  %v6305_v54 = vld [vmem:[#allocation3 + $0xf2] sm:$0xff] }
 0x7a8   : > { %v5822_v41 = vpop.permute.xlu1 %5821  ;;  %v5820_v44 = vpop.permute.xlu0 %5819 }
 0x7a9   : > { %5895 = vst.msk [vmem:[#allocation6 + $0xb8] sm:$0xff] %vm5871_vm5, %v5822_v41  ;;  %5894 = vst.msk [vmem:[#allocation6 + $0xb0] sm:$0xff] %vm5871_vm5, %v5820_v44 }
 0x7aa   : > { %6196 = vrot.lane.b32.xlu1 %v6115_v3, %s10519_s23  ;;  %6194 = vrot.lane.b32.xlu0 %v6114_v1, %s10519_s23  ;;  %v6308_v3 = vld [vmem:[#allocation3 + $0x112] sm:$0xff]  ;;  %v6307_v1 = vld [vmem:[#allocation3 + $0x10a] sm:$0xff] }
 0x7ac   : > { %v5826_v62 = vpop.permute.xlu1 %5825  ;;  %v5824_v46 = vpop.permute.xlu0 %5823 }
 0x7ad   : > { %5897 = vst.msk [vmem:[#allocation6 + $0xc8] sm:$0xff] %vm5871_vm5, %v5826_v62  ;;  %5896 = vst.msk [vmem:[#allocation6 + $0xc0] sm:$0xff] %vm5871_vm5, %v5824_v46 }
 0x7ae   : > { %6200 = vrot.lane.b32.xlu1 %v6117_v8, %s10519_s23  ;;  %6198 = vrot.lane.b32.xlu0 %v6116_v43, %s10519_s23  ;;  %v6310_v8 = vld [vmem:[#allocation3 + $0x12a] sm:$0xff]  ;;  %v6309_v43 = vld [vmem:[#allocation3 + $0x122] sm:$0xff] }
 0x7b0   : > { %v5830_v23 = vpop.permute.xlu1 %5829  ;;  %v5828_v52 = vpop.permute.xlu0 %5827 }
 0x7b1   : > { %5899 = vst.msk [vmem:[#allocation6 + $0xd8] sm:$0xff] %vm5871_vm5, %v5830_v23  ;;  %5898 = vst.msk [vmem:[#allocation6 + $0xd0] sm:$0xff] %vm5871_vm5, %v5828_v52 }
 0x7b2   : > { %6204 = vrot.lane.b32.xlu1 %v6119_v4, %s10519_s23  ;;  %6202 = vrot.lane.b32.xlu0 %v6118_v7, %s10519_s23  ;;  %v6312_v4 = vld [vmem:[#allocation3 + $0x142] sm:$0xff]  ;;  %v6311_v7 = vld [vmem:[#allocation3 + $0x13a] sm:$0xff] }
 0x7b4   : > { %v5834_v16 = vpop.permute.xlu1 %5833  ;;  %v5832_v33 = vpop.permute.xlu0 %5831 }
 0x7b5   : > { %5901 = vst.msk [vmem:[#allocation6 + $0xe8] sm:$0xff] %vm5871_vm5, %v5834_v16  ;;  %5900 = vst.msk [vmem:[#allocation6 + $0xe0] sm:$0xff] %vm5871_vm5, %v5832_v33 }
 0x7b6   : > { %6208 = vrot.lane.b32.xlu1 %v6121_v27, %s10519_s23  ;;  %6206 = vrot.lane.b32.xlu0 %v6120_v51, %s10519_s23  ;;  %v6314_v27 = vld [vmem:[#allocation3 + $0x15a] sm:$0xff]  ;;  %v6313_v51 = vld [vmem:[#allocation3 + $0x152] sm:$0xff] }
 0x7b8   : > { %v5838_v31 = vpop.permute.xlu1 %5837  ;;  %v5836_v57 = vpop.permute.xlu0 %5835 }
 0x7b9   : > { %5903 = vst.msk [vmem:[#allocation6 + $0xf8] sm:$0xff] %vm5871_vm5, %v5838_v31  ;;  %5902 = vst.msk [vmem:[#allocation6 + $0xf0] sm:$0xff] %vm5871_vm5, %v5836_v57 }
 0x7ba   : > { %6212 = vrot.lane.b32.xlu1 %v6123_v9, %s10519_s23  ;;  %6210 = vrot.lane.b32.xlu0 %v6122_v18, %s10519_s23  ;;  %v6316_v9 = vld [vmem:[#allocation3 + $0x172] sm:$0xff]  ;;  %v6315_v18 = vld [vmem:[#allocation3 + $0x16a] sm:$0xff] }
 0x7bc   : > { %v5972_v11 = vpop.permute.xlu1 %5971  ;;  %v5970_v24 = vpop.permute.xlu0 %5969 }
 0x7bd   : > { %6067 = vst.msk [vmem:[#allocation6 + $0x8] sm:$0xff] %vm6065_vm6, %v5972_v11  ;;  %6066 = vst.msk [vmem:[#allocation6] sm:$0xff] %vm6065_vm6, %v5970_v24 }
 0x7be   : > { %6216 = vrot.lane.b32.xlu1 %v6125_v47, %s10519_s23  ;;  %6214 = vrot.lane.b32.xlu0 %v6124_v21, %s10519_s23  ;;  %v6318_v47 = vld [vmem:[#allocation3 + $0x18a] sm:$0xff]  ;;  %v6317_v21 = vld [vmem:[#allocation3 + $0x182] sm:$0xff] }
 0x7c0   : > { %v5976_v12 = vpop.permute.xlu1 %5975  ;;  %v5974_v32 = vpop.permute.xlu0 %5973 }
 0x7c1   : > { %6069 = vst.msk [vmem:[#allocation6 + $0x18] sm:$0xff] %vm6065_vm6, %v5976_v12  ;;  %6068 = vst.msk [vmem:[#allocation6 + $0x10] sm:$0xff] %vm6065_vm6, %v5974_v32 }
 0x7c2   : > { %6220 = vrot.lane.b32.xlu1 %v6127_v60, %s10519_s23  ;;  %6218 = vrot.lane.b32.xlu0 %v6126_v29, %s10519_s23  ;;  %v6320_v60 = vld [vmem:[#allocation3 + $0x1a2] sm:$0xff]  ;;  %v6319_v29 = vld [vmem:[#allocation3 + $0x19a] sm:$0xff] }
 0x7c4   : > { %v5980_v59 = vpop.permute.xlu1 %5979  ;;  %v5978_v13 = vpop.permute.xlu0 %5977 }
 0x7c5   : > { %6071 = vst.msk [vmem:[#allocation6 + $0x28] sm:$0xff] %vm6065_vm6, %v5980_v59  ;;  %6070 = vst.msk [vmem:[#allocation6 + $0x20] sm:$0xff] %vm6065_vm6, %v5978_v13 }
 0x7c6   : > { %6224 = vrot.lane.b32.xlu1 %v6129_v55, %s10519_s23  ;;  %6222 = vrot.lane.b32.xlu0 %v6128_v58, %s10519_s23  ;;  %v6322_v55 = vld [vmem:[#allocation3 + $0x1ba] sm:$0xff]  ;;  %v6321_v58 = vld [vmem:[#allocation3 + $0x1b2] sm:$0xff]  ;;  %s10525_s23 = smov 88  }
 0x7c8   : > { %v5984_v25 = vpop.permute.xlu1 %5983  ;;  %v5982_v37 = vpop.permute.xlu0 %5981 }
 0x7c9   : > { %6073 = vst.msk [vmem:[#allocation6 + $0x38] sm:$0xff] %vm6065_vm6, %v5984_v25  ;;  %6072 = vst.msk [vmem:[#allocation6 + $0x30] sm:$0xff] %vm6065_vm6, %v5982_v37 }
 0x7ca   : > { %6357 = vrot.lane.b32.xlu1 %v6292_v28, %s10520_s28  ;;  %6355 = vrot.lane.b32.xlu0 %v6291_v5, %s10520_s28  ;;  %v6485_v28 = vld [vmem:[#allocation3 + $0x53] sm:$0xff]  ;;  %v6484_v5 = vld [vmem:[#allocation3 + $0x4b] sm:$0xff] }
 0x7cc   : > { %v5988_v38 = vpop.permute.xlu1 %5987  ;;  %v5986_v42 = vpop.permute.xlu0 %5985 }
 0x7cd   : > { %6075 = vst.msk [vmem:[#allocation6 + $0x48] sm:$0xff] %vm6065_vm6, %v5988_v38  ;;  %6074 = vst.msk [vmem:[#allocation6 + $0x40] sm:$0xff] %vm6065_vm6, %v5986_v42 }
 0x7ce   : > { %6361 = vrot.lane.b32.xlu1 %v6294_v40, %s10520_s28  ;;  %6359 = vrot.lane.b32.xlu0 %v6293_v14, %s10520_s28  ;;  %v6487_v40 = vld [vmem:[#allocation3 + $0x6b] sm:$0xff]  ;;  %v6486_v14 = vld [vmem:[#allocation3 + $0x63] sm:$0xff] }
 0x7d0   : > { %v5992_v2 = vpop.permute.xlu1 %5991  ;;  %v5990_v35 = vpop.permute.xlu0 %5989 }
 0x7d1   : > { %6077 = vst.msk [vmem:[#allocation6 + $0x58] sm:$0xff] %vm6065_vm6, %v5992_v2  ;;  %6076 = vst.msk [vmem:[#allocation6 + $0x50] sm:$0xff] %vm6065_vm6, %v5990_v35 }
 0x7d2   : > { %6365 = vrot.lane.b32.xlu1 %v6296_v50, %s10520_s28  ;;  %6363 = vrot.lane.b32.xlu0 %v6295_v22, %s10520_s28  ;;  %v6489_v50 = vld [vmem:[#allocation3 + $0x83] sm:$0xff]  ;;  %v6488_v22 = vld [vmem:[#allocation3 + $0x7b] sm:$0xff] }
 0x7d4   : > { %v5996_v26 = vpop.permute.xlu1 %5995  ;;  %v5994_v56 = vpop.permute.xlu0 %5993 }
 0x7d5   : > { %6079 = vst.msk [vmem:[#allocation6 + $0x68] sm:$0xff] %vm6065_vm6, %v5996_v26  ;;  %6078 = vst.msk [vmem:[#allocation6 + $0x60] sm:$0xff] %vm6065_vm6, %v5994_v56 }
 0x7d6   : > { %6369 = vrot.lane.b32.xlu1 %v6298_v15, %s10520_s28  ;;  %6367 = vrot.lane.b32.xlu0 %v6297_v36, %s10520_s28  ;;  %v6491_v15 = vld [vmem:[#allocation3 + $0x9b] sm:$0xff]  ;;  %v6490_v36 = vld [vmem:[#allocation3 + $0x93] sm:$0xff] }
 0x7d8   : > { %v6000_v30 = vpop.permute.xlu1 %5999  ;;  %v5998_v34 = vpop.permute.xlu0 %5997 }
 0x7d9   : > { %6081 = vst.msk [vmem:[#allocation6 + $0x78] sm:$0xff] %vm6065_vm6, %v6000_v30  ;;  %6080 = vst.msk [vmem:[#allocation6 + $0x70] sm:$0xff] %vm6065_vm6, %v5998_v34 }
 0x7da   : > { %6373 = vrot.lane.b32.xlu1 %v6300_v20, %s10520_s28  ;;  %6371 = vrot.lane.b32.xlu0 %v6299_v45, %s10520_s28  ;;  %v6493_v20 = vld [vmem:[#allocation3 + $0xb3] sm:$0xff]  ;;  %v6492_v45 = vld [vmem:[#allocation3 + $0xab] sm:$0xff] }
 0x7dc   : > { %v6004_v39 = vpop.permute.xlu1 %6003  ;;  %v6002_v53 = vpop.permute.xlu0 %6001 }
 0x7dd   : > { %6083 = vst.msk [vmem:[#allocation6 + $0x88] sm:$0xff] %vm6065_vm6, %v6004_v39  ;;  %6082 = vst.msk [vmem:[#allocation6 + $0x80] sm:$0xff] %vm6065_vm6, %v6002_v53 }
 0x7de   : > { %6377 = vrot.lane.b32.xlu1 %v6302_v48, %s10520_s28  ;;  %6375 = vrot.lane.b32.xlu0 %v6301_v6, %s10520_s28  ;;  %v6495_v48 = vld [vmem:[#allocation3 + $0xcb] sm:$0xff]  ;;  %v6494_v6 = vld [vmem:[#allocation3 + $0xc3] sm:$0xff] }
 0x7e0   : > { %v6008_v19 = vpop.permute.xlu1 %6007  ;;  %v6006_v63 = vpop.permute.xlu0 %6005 }
 0x7e1   : > { %6085 = vst.msk [vmem:[#allocation6 + $0x98] sm:$0xff] %vm6065_vm6, %v6008_v19  ;;  %6084 = vst.msk [vmem:[#allocation6 + $0x90] sm:$0xff] %vm6065_vm6, %v6006_v63 }
 0x7e2   : > { %6381 = vrot.lane.b32.xlu1 %v6304_v49, %s10520_s28  ;;  %6379 = vrot.lane.b32.xlu0 %v6303_v61, %s10520_s28  ;;  %v6497_v49 = vld [vmem:[#allocation3 + $0xe3] sm:$0xff]  ;;  %v6496_v61 = vld [vmem:[#allocation3 + $0xdb] sm:$0xff] }
 0x7e4   : > { %v6012_v0 = vpop.permute.xlu1 %6011  ;;  %v6010_v10 = vpop.permute.xlu0 %6009 }
 0x7e5   : > { %6087 = vst.msk [vmem:[#allocation6 + $0xa8] sm:$0xff] %vm6065_vm6, %v6012_v0  ;;  %6086 = vst.msk [vmem:[#allocation6 + $0xa0] sm:$0xff] %vm6065_vm6, %v6010_v10 }
 0x7e6   : > { %6385 = vrot.lane.b32.xlu1 %v6306_v17, %s10520_s28  ;;  %6383 = vrot.lane.b32.xlu0 %v6305_v54, %s10520_s28  ;;  %v6499_v17 = vld [vmem:[#allocation3 + $0xfb] sm:$0xff]  ;;  %v6498_v54 = vld [vmem:[#allocation3 + $0xf3] sm:$0xff] }
 0x7e8   : > { %v6016_v41 = vpop.permute.xlu1 %6015  ;;  %v6014_v44 = vpop.permute.xlu0 %6013 }
 0x7e9   : > { %6089 = vst.msk [vmem:[#allocation6 + $0xb8] sm:$0xff] %vm6065_vm6, %v6016_v41  ;;  %6088 = vst.msk [vmem:[#allocation6 + $0xb0] sm:$0xff] %vm6065_vm6, %v6014_v44 }
 0x7ea   : > { %6389 = vrot.lane.b32.xlu1 %v6308_v3, %s10520_s28  ;;  %6387 = vrot.lane.b32.xlu0 %v6307_v1, %s10520_s28  ;;  %v6501_v3 = vld [vmem:[#allocation3 + $0x113] sm:$0xff]  ;;  %v6500_v1 = vld [vmem:[#allocation3 + $0x10b] sm:$0xff] }
 0x7ec   : > { %v6020_v62 = vpop.permute.xlu1 %6019  ;;  %v6018_v46 = vpop.permute.xlu0 %6017 }
 0x7ed   : > { %6091 = vst.msk [vmem:[#allocation6 + $0xc8] sm:$0xff] %vm6065_vm6, %v6020_v62  ;;  %6090 = vst.msk [vmem:[#allocation6 + $0xc0] sm:$0xff] %vm6065_vm6, %v6018_v46 }
 0x7ee   : > { %6393 = vrot.lane.b32.xlu1 %v6310_v8, %s10520_s28  ;;  %6391 = vrot.lane.b32.xlu0 %v6309_v43, %s10520_s28  ;;  %v6503_v8 = vld [vmem:[#allocation3 + $0x12b] sm:$0xff]  ;;  %v6502_v43 = vld [vmem:[#allocation3 + $0x123] sm:$0xff] }
 0x7f0   : > { %v6024_v23 = vpop.permute.xlu1 %6023  ;;  %v6022_v52 = vpop.permute.xlu0 %6021 }
 0x7f1   : > { %6093 = vst.msk [vmem:[#allocation6 + $0xd8] sm:$0xff] %vm6065_vm6, %v6024_v23  ;;  %6092 = vst.msk [vmem:[#allocation6 + $0xd0] sm:$0xff] %vm6065_vm6, %v6022_v52 }
 0x7f2   : > { %6397 = vrot.lane.b32.xlu1 %v6312_v4, %s10520_s28  ;;  %6395 = vrot.lane.b32.xlu0 %v6311_v7, %s10520_s28  ;;  %v6505_v4 = vld [vmem:[#allocation3 + $0x143] sm:$0xff]  ;;  %v6504_v7 = vld [vmem:[#allocation3 + $0x13b] sm:$0xff] }
 0x7f4   : > { %v6028_v16 = vpop.permute.xlu1 %6027  ;;  %v6026_v33 = vpop.permute.xlu0 %6025 }
 0x7f5   : > { %6095 = vst.msk [vmem:[#allocation6 + $0xe8] sm:$0xff] %vm6065_vm6, %v6028_v16  ;;  %6094 = vst.msk [vmem:[#allocation6 + $0xe0] sm:$0xff] %vm6065_vm6, %v6026_v33 }
 0x7f6   : > { %6401 = vrot.lane.b32.xlu1 %v6314_v27, %s10520_s28  ;;  %6399 = vrot.lane.b32.xlu0 %v6313_v51, %s10520_s28  ;;  %v6507_v27 = vld [vmem:[#allocation3 + $0x15b] sm:$0xff]  ;;  %v6506_v51 = vld [vmem:[#allocation3 + $0x153] sm:$0xff] }
 0x7f8   : > { %v6032_v31 = vpop.permute.xlu1 %6031  ;;  %v6030_v57 = vpop.permute.xlu0 %6029 }
 0x7f9   : > { %6097 = vst.msk [vmem:[#allocation6 + $0xf8] sm:$0xff] %vm6065_vm6, %v6032_v31  ;;  %6096 = vst.msk [vmem:[#allocation6 + $0xf0] sm:$0xff] %vm6065_vm6, %v6030_v57 }
 0x7fa   : > { %6405 = vrot.lane.b32.xlu1 %v6316_v9, %s10520_s28  ;;  %6403 = vrot.lane.b32.xlu0 %v6315_v18, %s10520_s28  ;;  %v6509_v9 = vld [vmem:[#allocation3 + $0x173] sm:$0xff]  ;;  %v6508_v18 = vld [vmem:[#allocation3 + $0x16b] sm:$0xff] }
 0x7fc   : > { %v6165_v11 = vpop.permute.xlu1 %6164  ;;  %v6163_v24 = vpop.permute.xlu0 %6162 }
 0x7fd   : > { %6260 = vst.msk [vmem:[#allocation6 + $0x8] sm:$0xff] %vm6258_vm7, %v6165_v11  ;;  %6259 = vst.msk [vmem:[#allocation6] sm:$0xff] %vm6258_vm7, %v6163_v24 }
 0x7fe   : > { %6409 = vrot.lane.b32.xlu1 %v6318_v47, %s10520_s28  ;;  %6407 = vrot.lane.b32.xlu0 %v6317_v21, %s10520_s28  ;;  %v6511_v47 = vld [vmem:[#allocation3 + $0x18b] sm:$0xff]  ;;  %v6510_v21 = vld [vmem:[#allocation3 + $0x183] sm:$0xff] }
 0x800   : > { %v6169_v12 = vpop.permute.xlu1 %6168  ;;  %v6167_v32 = vpop.permute.xlu0 %6166 }
 0x801   : > { %6262 = vst.msk [vmem:[#allocation6 + $0x18] sm:$0xff] %vm6258_vm7, %v6169_v12  ;;  %6261 = vst.msk [vmem:[#allocation6 + $0x10] sm:$0xff] %vm6258_vm7, %v6167_v32 }
 0x802   : > { %6413 = vrot.lane.b32.xlu1 %v6320_v60, %s10520_s28  ;;  %6411 = vrot.lane.b32.xlu0 %v6319_v29, %s10520_s28  ;;  %v6513_v60 = vld [vmem:[#allocation3 + $0x1a3] sm:$0xff]  ;;  %v6512_v29 = vld [vmem:[#allocation3 + $0x19b] sm:$0xff] }
 0x804   : > { %v6173_v59 = vpop.permute.xlu1 %6172  ;;  %v6171_v13 = vpop.permute.xlu0 %6170 }
 0x805   : > { %6264 = vst.msk [vmem:[#allocation6 + $0x28] sm:$0xff] %vm6258_vm7, %v6173_v59  ;;  %6263 = vst.msk [vmem:[#allocation6 + $0x20] sm:$0xff] %vm6258_vm7, %v6171_v13 }
 0x806   : > { %6417 = vrot.lane.b32.xlu1 %v6322_v55, %s10520_s28  ;;  %6415 = vrot.lane.b32.xlu0 %v6321_v58, %s10520_s28  ;;  %v6515_v55 = vld [vmem:[#allocation3 + $0x1bb] sm:$0xff]  ;;  %v6514_v58 = vld [vmem:[#allocation3 + $0x1b3] sm:$0xff] }
 0x808   : > { %v6177_v25 = vpop.permute.xlu1 %6176  ;;  %v6175_v37 = vpop.permute.xlu0 %6174 }
 0x809   : > { %6266 = vst.msk [vmem:[#allocation6 + $0x38] sm:$0xff] %vm6258_vm7, %v6177_v25  ;;  %6265 = vst.msk [vmem:[#allocation6 + $0x30] sm:$0xff] %vm6258_vm7, %v6175_v37 }
 0x80a   : > { %6550 = vrot.lane.b32.xlu1 %v6485_v28, %s10521_s25  ;;  %6548 = vrot.lane.b32.xlu0 %v6484_v5, %s10521_s25  ;;  %v6678_v28 = vld [vmem:[#allocation3 + $0x54] sm:$0xff]  ;;  %v6677_v5 = vld [vmem:[#allocation3 + $0x4c] sm:$0xff] }
 0x80c   : > { %v6181_v38 = vpop.permute.xlu1 %6180  ;;  %v6179_v42 = vpop.permute.xlu0 %6178 }
 0x80d   : > { %6268 = vst.msk [vmem:[#allocation6 + $0x48] sm:$0xff] %vm6258_vm7, %v6181_v38  ;;  %6267 = vst.msk [vmem:[#allocation6 + $0x40] sm:$0xff] %vm6258_vm7, %v6179_v42 }
 0x80e   : > { %6554 = vrot.lane.b32.xlu1 %v6487_v40, %s10521_s25  ;;  %6552 = vrot.lane.b32.xlu0 %v6486_v14, %s10521_s25  ;;  %v13514_v40 = vld [vmem:[#allocation3 + $0x6c] sm:$0xff]  ;;  %v13516_v14 = vld [vmem:[#allocation3 + $0x64] sm:$0xff] }
 0x810   : > { %v6185_v2 = vpop.permute.xlu1 %6184  ;;  %v6183_v35 = vpop.permute.xlu0 %6182 }
 0x811   : > { %6270 = vst.msk [vmem:[#allocation6 + $0x58] sm:$0xff] %vm6258_vm7, %v6185_v2  ;;  %6269 = vst.msk [vmem:[#allocation6 + $0x50] sm:$0xff] %vm6258_vm7, %v6183_v35 }
 0x812   : > { %6558 = vrot.lane.b32.xlu1 %v6489_v50, %s10521_s25  ;;  %6556 = vrot.lane.b32.xlu0 %v6488_v22, %s10521_s25  ;;  %v13524_v50 = vld [vmem:[#allocation3 + $0x84] sm:$0xff]  ;;  %v13526_v22 = vld [vmem:[#allocation3 + $0x7c] sm:$0xff] }
 0x814   : > { %v6189_v26 = vpop.permute.xlu1 %6188  ;;  %v6187_v56 = vpop.permute.xlu0 %6186 }
 0x815   : > { %6272 = vst.msk [vmem:[#allocation6 + $0x68] sm:$0xff] %vm6258_vm7, %v6189_v26  ;;  %6271 = vst.msk [vmem:[#allocation6 + $0x60] sm:$0xff] %vm6258_vm7, %v6187_v56 }
 0x816   : > { %6562 = vrot.lane.b32.xlu1 %v6491_v15, %s10521_s25  ;;  %6560 = vrot.lane.b32.xlu0 %v6490_v36, %s10521_s25  ;;  %v13534_v15 = vld [vmem:[#allocation3 + $0x9c] sm:$0xff]  ;;  %v13536_v36 = vld [vmem:[#allocation3 + $0x94] sm:$0xff] }
 0x818   : > { %v6193_v30 = vpop.permute.xlu1 %6192  ;;  %v6191_v34 = vpop.permute.xlu0 %6190 }
 0x819   : > { %6274 = vst.msk [vmem:[#allocation6 + $0x78] sm:$0xff] %vm6258_vm7, %v6193_v30  ;;  %6273 = vst.msk [vmem:[#allocation6 + $0x70] sm:$0xff] %vm6258_vm7, %v6191_v34 }
 0x81a   : > { %6566 = vrot.lane.b32.xlu1 %v6493_v20, %s10521_s25  ;;  %6564 = vrot.lane.b32.xlu0 %v6492_v45, %s10521_s25  ;;  %v13544_v20 = vld [vmem:[#allocation3 + $0xb4] sm:$0xff]  ;;  %v13546_v45 = vld [vmem:[#allocation3 + $0xac] sm:$0xff] }
 0x81c   : > { %v6197_v39 = vpop.permute.xlu1 %6196  ;;  %v6195_v53 = vpop.permute.xlu0 %6194 }
 0x81d   : > { %6276 = vst.msk [vmem:[#allocation6 + $0x88] sm:$0xff] %vm6258_vm7, %v6197_v39  ;;  %6275 = vst.msk [vmem:[#allocation6 + $0x80] sm:$0xff] %vm6258_vm7, %v6195_v53 }
 0x81e   : > { %6570 = vrot.lane.b32.xlu1 %v6495_v48, %s10521_s25  ;;  %6568 = vrot.lane.b32.xlu0 %v6494_v6, %s10521_s25  ;;  %v13554_v48 = vld [vmem:[#allocation3 + $0xcc] sm:$0xff]  ;;  %v13556_v6 = vld [vmem:[#allocation3 + $0xc4] sm:$0xff] }
 0x820   : > { %v6201_v19 = vpop.permute.xlu1 %6200  ;;  %v6199_v63 = vpop.permute.xlu0 %6198 }
 0x821   : > { %6278 = vst.msk [vmem:[#allocation6 + $0x98] sm:$0xff] %vm6258_vm7, %v6201_v19  ;;  %6277 = vst.msk [vmem:[#allocation6 + $0x90] sm:$0xff] %vm6258_vm7, %v6199_v63 }
 0x822   : > { %6574 = vrot.lane.b32.xlu1 %v6497_v49, %s10521_s25  ;;  %6572 = vrot.lane.b32.xlu0 %v6496_v61, %s10521_s25  ;;  %v13564_v49 = vld [vmem:[#allocation3 + $0xe4] sm:$0xff]  ;;  %v13566_v61 = vld [vmem:[#allocation3 + $0xdc] sm:$0xff] }
 0x824   : > { %v6205_v0 = vpop.permute.xlu1 %6204  ;;  %v6203_v10 = vpop.permute.xlu0 %6202 }
 0x825   : > { %6280 = vst.msk [vmem:[#allocation6 + $0xa8] sm:$0xff] %vm6258_vm7, %v6205_v0  ;;  %6279 = vst.msk [vmem:[#allocation6 + $0xa0] sm:$0xff] %vm6258_vm7, %v6203_v10 }
 0x826   : > { %6578 = vrot.lane.b32.xlu1 %v6499_v17, %s10521_s25  ;;  %6576 = vrot.lane.b32.xlu0 %v6498_v54, %s10521_s25  ;;  %v6692_v17 = vld [vmem:[#allocation3 + $0xfc] sm:$0xff]  ;;  %v13574_v54 = vld [vmem:[#allocation3 + $0xf4] sm:$0xff] }
 0x828   : > { %v6209_v41 = vpop.permute.xlu1 %6208  ;;  %v6207_v44 = vpop.permute.xlu0 %6206 }
 0x829   : > { %6282 = vst.msk [vmem:[#allocation6 + $0xb8] sm:$0xff] %vm6258_vm7, %v6209_v41  ;;  %6281 = vst.msk [vmem:[#allocation6 + $0xb0] sm:$0xff] %vm6258_vm7, %v6207_v44 }
 0x82a   : > { %6582 = vrot.lane.b32.xlu1 %v6501_v3, %s10521_s25  ;;  %6580 = vrot.lane.b32.xlu0 %v6500_v1, %s10521_s25  ;;  %v6694_v3 = vld [vmem:[#allocation3 + $0x114] sm:$0xff]  ;;  %v6693_v1 = vld [vmem:[#allocation3 + $0x10c] sm:$0xff] }
 0x82c   : > { %v6213_v62 = vpop.permute.xlu1 %6212  ;;  %v6211_v46 = vpop.permute.xlu0 %6210 }
 0x82d   : > { %6284 = vst.msk [vmem:[#allocation6 + $0xc8] sm:$0xff] %vm6258_vm7, %v6213_v62  ;;  %6283 = vst.msk [vmem:[#allocation6 + $0xc0] sm:$0xff] %vm6258_vm7, %v6211_v46 }
 0x82e   : > { %6586 = vrot.lane.b32.xlu1 %v6503_v8, %s10521_s25  ;;  %6584 = vrot.lane.b32.xlu0 %v6502_v43, %s10521_s25  ;;  %v6696_v8 = vld [vmem:[#allocation3 + $0x12c] sm:$0xff]  ;;  %v6695_v43 = vld [vmem:[#allocation3 + $0x124] sm:$0xff] }
 0x830   : > { %v6217_v23 = vpop.permute.xlu1 %6216  ;;  %v6215_v52 = vpop.permute.xlu0 %6214 }
 0x831   : > { %6286 = vst.msk [vmem:[#allocation6 + $0xd8] sm:$0xff] %vm6258_vm7, %v6217_v23  ;;  %6285 = vst.msk [vmem:[#allocation6 + $0xd0] sm:$0xff] %vm6258_vm7, %v6215_v52 }
 0x832   : > { %6590 = vrot.lane.b32.xlu1 %v6505_v4, %s10521_s25  ;;  %6588 = vrot.lane.b32.xlu0 %v6504_v7, %s10521_s25  ;;  %v6698_v4 = vld [vmem:[#allocation3 + $0x144] sm:$0xff]  ;;  %v6697_v7 = vld [vmem:[#allocation3 + $0x13c] sm:$0xff] }
 0x834   : > { %v6221_v16 = vpop.permute.xlu1 %6220  ;;  %v6219_v33 = vpop.permute.xlu0 %6218 }
 0x835   : > { %6288 = vst.msk [vmem:[#allocation6 + $0xe8] sm:$0xff] %vm6258_vm7, %v6221_v16  ;;  %6287 = vst.msk [vmem:[#allocation6 + $0xe0] sm:$0xff] %vm6258_vm7, %v6219_v33 }
 0x836   : > { %6594 = vrot.lane.b32.xlu1 %v6507_v27, %s10521_s25  ;;  %6592 = vrot.lane.b32.xlu0 %v6506_v51, %s10521_s25  ;;  %v6700_v27 = vld [vmem:[#allocation3 + $0x15c] sm:$0xff]  ;;  %v6699_v51 = vld [vmem:[#allocation3 + $0x154] sm:$0xff] }
 0x838   : > { %v6225_v31 = vpop.permute.xlu1 %6224  ;;  %v6223_v57 = vpop.permute.xlu0 %6222 }
 0x839   : > { %6290 = vst.msk [vmem:[#allocation6 + $0xf8] sm:$0xff] %vm6258_vm7, %v6225_v31  ;;  %6289 = vst.msk [vmem:[#allocation6 + $0xf0] sm:$0xff] %vm6258_vm7, %v6223_v57 }
 0x83a   : > { %6598 = vrot.lane.b32.xlu1 %v6509_v9, %s10521_s25  ;;  %6596 = vrot.lane.b32.xlu0 %v6508_v18, %s10521_s25  ;;  %v6702_v9 = vld [vmem:[#allocation3 + $0x174] sm:$0xff]  ;;  %v6701_v18 = vld [vmem:[#allocation3 + $0x16c] sm:$0xff] }
 0x83c   : > { %v6358_v11 = vpop.permute.xlu1 %6357  ;;  %v6356_v24 = vpop.permute.xlu0 %6355 }
 0x83d   : > { %6453 = vst.msk [vmem:[#allocation6 + $0x8] sm:$0xff] %vm6451_vm8, %v6358_v11  ;;  %6452 = vst.msk [vmem:[#allocation6] sm:$0xff] %vm6451_vm8, %v6356_v24 }
 0x83e   : > { %6602 = vrot.lane.b32.xlu1 %v6511_v47, %s10521_s25  ;;  %6600 = vrot.lane.b32.xlu0 %v6510_v21, %s10521_s25  ;;  %v6704_v47 = vld [vmem:[#allocation3 + $0x18c] sm:$0xff]  ;;  %v6703_v21 = vld [vmem:[#allocation3 + $0x184] sm:$0xff] }
 0x840   : > { %v6362_v12 = vpop.permute.xlu1 %6361  ;;  %v6360_v32 = vpop.permute.xlu0 %6359 }
 0x841   : > { %6455 = vst.msk [vmem:[#allocation6 + $0x18] sm:$0xff] %vm6451_vm8, %v6362_v12  ;;  %6454 = vst.msk [vmem:[#allocation6 + $0x10] sm:$0xff] %vm6451_vm8, %v6360_v32 }
 0x842   : > { %6606 = vrot.lane.b32.xlu1 %v6513_v60, %s10521_s25  ;;  %6604 = vrot.lane.b32.xlu0 %v6512_v29, %s10521_s25  ;;  %v6706_v60 = vld [vmem:[#allocation3 + $0x1a4] sm:$0xff]  ;;  %v6705_v29 = vld [vmem:[#allocation3 + $0x19c] sm:$0xff] }
 0x844   : > { %v6366_v59 = vpop.permute.xlu1 %6365  ;;  %v6364_v13 = vpop.permute.xlu0 %6363 }
 0x845   : > { %6457 = vst.msk [vmem:[#allocation6 + $0x28] sm:$0xff] %vm6451_vm8, %v6366_v59  ;;  %6456 = vst.msk [vmem:[#allocation6 + $0x20] sm:$0xff] %vm6451_vm8, %v6364_v13 }
 0x846   : > { %6610 = vrot.lane.b32.xlu1 %v6515_v55, %s10521_s25  ;;  %6608 = vrot.lane.b32.xlu0 %v6514_v58, %s10521_s25  ;;  %v6708_v55 = vld [vmem:[#allocation3 + $0x1bc] sm:$0xff]  ;;  %v6707_v58 = vld [vmem:[#allocation3 + $0x1b4] sm:$0xff]  ;;  %s10527_s25 = smov 96  }
 0x848   : > { %v6370_v25 = vpop.permute.xlu1 %6369  ;;  %v6368_v37 = vpop.permute.xlu0 %6367 }
 0x849   : > { %6459 = vst.msk [vmem:[#allocation6 + $0x38] sm:$0xff] %vm6451_vm8, %v6370_v25  ;;  %6458 = vst.msk [vmem:[#allocation6 + $0x30] sm:$0xff] %vm6451_vm8, %v6368_v37 }
 0x84a   : > { %6743 = vrot.lane.b32.xlu1 %v6678_v28, %s10522_s26  ;;  %6741 = vrot.lane.b32.xlu0 %v6677_v5, %s10522_s26  ;;  %v6872_v28 = vld [vmem:[#allocation3 + $0x68] sm:$0xff]  ;;  %v6871_v5 = vld [vmem:[#allocation3 + $0x60] sm:$0xff] }
 0x84c   : > { %v6374_v38 = vpop.permute.xlu1 %6373  ;;  %v6372_v42 = vpop.permute.xlu0 %6371 }
 0x84d   : > { %6461 = vst.msk [vmem:[#allocation6 + $0x48] sm:$0xff] %vm6451_vm8, %v6374_v38  ;;  %6460 = vst.msk [vmem:[#allocation6 + $0x40] sm:$0xff] %vm6451_vm8, %v6372_v42 }
 0x84e   : > { %6747 = vrot.lane.b32.xlu1 %v13514_v40, %s10522_s26  ;;  %6745 = vrot.lane.b32.xlu0 %v13516_v14, %s10522_s26 }
 0x850   : > { %v6378_v2 = vpop.permute.xlu1 %6377  ;;  %v6376_v35 = vpop.permute.xlu0 %6375 }
 0x851   : > { %6463 = vst.msk [vmem:[#allocation6 + $0x58] sm:$0xff] %vm6451_vm8, %v6378_v2  ;;  %6462 = vst.msk [vmem:[#allocation6 + $0x50] sm:$0xff] %vm6451_vm8, %v6376_v35  ;;  %v6874_v2 = vld [vmem:[#allocation3 + $0x80] sm:$0xff]  ;;  %v6873_v35 = vld [vmem:[#allocation3 + $0x78] sm:$0xff] }
 0x852   : > { %6751 = vrot.lane.b32.xlu1 %v13524_v50, %s10522_s26  ;;  %6749 = vrot.lane.b32.xlu0 %v13526_v22, %s10522_s26 }
 0x854   : > { %v6382_v26 = vpop.permute.xlu1 %6381  ;;  %v6380_v56 = vpop.permute.xlu0 %6379 }
 0x855   : > { %6465 = vst.msk [vmem:[#allocation6 + $0x68] sm:$0xff] %vm6451_vm8, %v6382_v26  ;;  %6464 = vst.msk [vmem:[#allocation6 + $0x60] sm:$0xff] %vm6451_vm8, %v6380_v56 }
 0x856   : > { %6755 = vrot.lane.b32.xlu1 %v13534_v15, %s10522_s26  ;;  %6753 = vrot.lane.b32.xlu0 %v13536_v36, %s10522_s26 }
 0x858   : > { %v6386_v30 = vpop.permute.xlu1 %6385  ;;  %v6384_v34 = vpop.permute.xlu0 %6383 }
 0x859   : > { %6467 = vst.msk [vmem:[#allocation6 + $0x78] sm:$0xff] %vm6451_vm8, %v6386_v30  ;;  %6466 = vst.msk [vmem:[#allocation6 + $0x70] sm:$0xff] %vm6451_vm8, %v6384_v34  ;;  %v6876_v30 = vld [vmem:[#allocation3 + $0x98] sm:$0xff]  ;;  %v6875_v34 = vld [vmem:[#allocation3 + $0x90] sm:$0xff] }
 0x85a   : > { %6759 = vrot.lane.b32.xlu1 %v13544_v20, %s10522_s26  ;;  %6757 = vrot.lane.b32.xlu0 %v13546_v45, %s10522_s26 }
 0x85c   : > { %v6390_v39 = vpop.permute.xlu1 %6389  ;;  %v6388_v53 = vpop.permute.xlu0 %6387 }
 0x85d   : > { %6469 = vst.msk [vmem:[#allocation6 + $0x88] sm:$0xff] %vm6451_vm8, %v6390_v39  ;;  %6468 = vst.msk [vmem:[#allocation6 + $0x80] sm:$0xff] %vm6451_vm8, %v6388_v53 }
 0x85e   : > { %6763 = vrot.lane.b32.xlu1 %v13554_v48, %s10522_s26  ;;  %6761 = vrot.lane.b32.xlu0 %v13556_v6, %s10522_s26 }
 0x860   : > { %v6394_v19 = vpop.permute.xlu1 %6393  ;;  %v6392_v63 = vpop.permute.xlu0 %6391 }
 0x861   : > { %6471 = vst.msk [vmem:[#allocation6 + $0x98] sm:$0xff] %vm6451_vm8, %v6394_v19  ;;  %6470 = vst.msk [vmem:[#allocation6 + $0x90] sm:$0xff] %vm6451_vm8, %v6392_v63  ;;  %v6878_v19 = vld [vmem:[#allocation3 + $0xb0] sm:$0xff]  ;;  %v6877_v63 = vld [vmem:[#allocation3 + $0xa8] sm:$0xff] }
 0x862   : > { %6767 = vrot.lane.b32.xlu1 %v13564_v49, %s10522_s26  ;;  %6765 = vrot.lane.b32.xlu0 %v13566_v61, %s10522_s26 }
 0x864   : > { %v6398_v0 = vpop.permute.xlu1 %6397  ;;  %v6396_v10 = vpop.permute.xlu0 %6395 }
 0x865   : > { %6473 = vst.msk [vmem:[#allocation6 + $0xa8] sm:$0xff] %vm6451_vm8, %v6398_v0  ;;  %6472 = vst.msk [vmem:[#allocation6 + $0xa0] sm:$0xff] %vm6451_vm8, %v6396_v10 }
 0x866   : > { %6771 = vrot.lane.b32.xlu1 %v6692_v17, %s10522_s26  ;;  %6769 = vrot.lane.b32.xlu0 %v13574_v54, %s10522_s26  ;;  %v6880_v17 = vld [vmem:[#allocation3 + $0xc8] sm:$0xff] }
 0x868   : > { %v6402_v41 = vpop.permute.xlu1 %6401  ;;  %v6400_v44 = vpop.permute.xlu0 %6399 }
 0x869   : > { %6475 = vst.msk [vmem:[#allocation6 + $0xb8] sm:$0xff] %vm6451_vm8, %v6402_v41  ;;  %6474 = vst.msk [vmem:[#allocation6 + $0xb0] sm:$0xff] %vm6451_vm8, %v6400_v44  ;;  %v6879_v41 = vld [vmem:[#allocation3 + $0xc0] sm:$0xff] }
 0x86a   : > { %6775 = vrot.lane.b32.xlu1 %v6694_v3, %s10522_s26  ;;  %6773 = vrot.lane.b32.xlu0 %v6693_v1, %s10522_s26  ;;  %v6882_v1 = vld [vmem:[#allocation3 + $0xe0] sm:$0xff] }
 0x86c   : > { %v6406_v62 = vpop.permute.xlu1 %6405  ;;  %v6404_v46 = vpop.permute.xlu0 %6403 }
 0x86d   : > { %6477 = vst.msk [vmem:[#allocation6 + $0xc8] sm:$0xff] %vm6451_vm8, %v6406_v62  ;;  %6476 = vst.msk [vmem:[#allocation6 + $0xc0] sm:$0xff] %vm6451_vm8, %v6404_v46  ;;  %v6881_v62 = vld [vmem:[#allocation3 + $0xd8] sm:$0xff] }
 0x86e   : > { %6779 = vrot.lane.b32.xlu1 %v6696_v8, %s10522_s26  ;;  %6777 = vrot.lane.b32.xlu0 %v6695_v43, %s10522_s26  ;;  %v6884_v43 = vld [vmem:[#allocation3 + $0xf8] sm:$0xff] }
 0x870   : > { %v6410_v23 = vpop.permute.xlu1 %6409  ;;  %v6408_v52 = vpop.permute.xlu0 %6407 }
 0x871   : > { %6479 = vst.msk [vmem:[#allocation6 + $0xd8] sm:$0xff] %vm6451_vm8, %v6410_v23  ;;  %6478 = vst.msk [vmem:[#allocation6 + $0xd0] sm:$0xff] %vm6451_vm8, %v6408_v52  ;;  %v6883_v23 = vld [vmem:[#allocation3 + $0xf0] sm:$0xff] }
 0x872   : > { %6783 = vrot.lane.b32.xlu1 %v6698_v4, %s10522_s26  ;;  %6781 = vrot.lane.b32.xlu0 %v6697_v7, %s10522_s26  ;;  %v6886_v7 = vld [vmem:[#allocation3 + $0x110] sm:$0xff] }
 0x874   : > { %v6414_v16 = vpop.permute.xlu1 %6413  ;;  %v6412_v33 = vpop.permute.xlu0 %6411 }
 0x875   : > { %6481 = vst.msk [vmem:[#allocation6 + $0xe8] sm:$0xff] %vm6451_vm8, %v6414_v16  ;;  %6480 = vst.msk [vmem:[#allocation6 + $0xe0] sm:$0xff] %vm6451_vm8, %v6412_v33  ;;  %v6885_v16 = vld [vmem:[#allocation3 + $0x108] sm:$0xff] }
 0x876   : > { %6787 = vrot.lane.b32.xlu1 %v6700_v27, %s10522_s26  ;;  %6785 = vrot.lane.b32.xlu0 %v6699_v51, %s10522_s26  ;;  %v6888_v51 = vld [vmem:[#allocation3 + $0x128] sm:$0xff] }
 0x878   : > { %v6418_v31 = vpop.permute.xlu1 %6417  ;;  %v6416_v57 = vpop.permute.xlu0 %6415 }
 0x879   : > { %6483 = vst.msk [vmem:[#allocation6 + $0xf8] sm:$0xff] %vm6451_vm8, %v6418_v31  ;;  %6482 = vst.msk [vmem:[#allocation6 + $0xf0] sm:$0xff] %vm6451_vm8, %v6416_v57  ;;  %v6887_v31 = vld [vmem:[#allocation3 + $0x120] sm:$0xff] }
 0x87a   : > { %6791 = vrot.lane.b32.xlu1 %v6702_v9, %s10522_s26  ;;  %6789 = vrot.lane.b32.xlu0 %v6701_v18, %s10522_s26  ;;  %v6890_v18 = vld [vmem:[#allocation3 + $0x140] sm:$0xff] }
 0x87c   : > { %v6551_v11 = vpop.permute.xlu1 %6550  ;;  %v6549_v24 = vpop.permute.xlu0 %6548 }
 0x87d   : > { %6646 = vst.msk [vmem:[#allocation6 + $0x8] sm:$0xff] %vm6644_vm9, %v6551_v11  ;;  %6645 = vst.msk [vmem:[#allocation6] sm:$0xff] %vm6644_vm9, %v6549_v24  ;;  %v6889_v11 = vld [vmem:[#allocation3 + $0x138] sm:$0xff] }
 0x87e   : > { %6795 = vrot.lane.b32.xlu1 %v6704_v47, %s10522_s26  ;;  %6793 = vrot.lane.b32.xlu0 %v6703_v21, %s10522_s26  ;;  %v6892_v21 = vld [vmem:[#allocation3 + $0x158] sm:$0xff] }
 0x880   : > { %v6555_v12 = vpop.permute.xlu1 %6554  ;;  %v6553_v32 = vpop.permute.xlu0 %6552 }
 0x881   : > { %6648 = vst.msk [vmem:[#allocation6 + $0x18] sm:$0xff] %vm6644_vm9, %v6555_v12  ;;  %6647 = vst.msk [vmem:[#allocation6 + $0x10] sm:$0xff] %vm6644_vm9, %v6553_v32  ;;  %v6891_v12 = vld [vmem:[#allocation3 + $0x150] sm:$0xff] }
 0x882   : > { %6799 = vrot.lane.b32.xlu1 %v6706_v60, %s10522_s26  ;;  %6797 = vrot.lane.b32.xlu0 %v6705_v29, %s10522_s26  ;;  %v6894_v29 = vld [vmem:[#allocation3 + $0x170] sm:$0xff] }
 0x884   : > { %v6559_v59 = vpop.permute.xlu1 %6558  ;;  %v6557_v13 = vpop.permute.xlu0 %6556 }
 0x885   : > { %6650 = vst.msk [vmem:[#allocation6 + $0x28] sm:$0xff] %vm6644_vm9, %v6559_v59  ;;  %6649 = vst.msk [vmem:[#allocation6 + $0x20] sm:$0xff] %vm6644_vm9, %v6557_v13  ;;  %v6896_v13 = vld [vmem:[#allocation3 + $0x188] sm:$0xff] }
 0x886   : > { %6803 = vrot.lane.b32.xlu1 %v6708_v55, %s10522_s26  ;;  %6801 = vrot.lane.b32.xlu0 %v6707_v58, %s10522_s26  ;;  %v6893_v55 = vld [vmem:[#allocation3 + $0x168] sm:$0xff] }
 0x888   : > { %v6563_v25 = vpop.permute.xlu1 %6562  ;;  %v6561_v37 = vpop.permute.xlu0 %6560 }
 0x889   : > { %6652 = vst.msk [vmem:[#allocation6 + $0x38] sm:$0xff] %vm6644_vm9, %v6563_v25  ;;  %6651 = vst.msk [vmem:[#allocation6 + $0x30] sm:$0xff] %vm6644_vm9, %v6561_v37  ;;  %v6895_v25 = vld [vmem:[#allocation3 + $0x180] sm:$0xff] }
 0x88a   : > { %6937 = vrot.lane.b32.xlu1 %v6872_v28, %s10523_s16  ;;  %6935 = vrot.lane.b32.xlu0 %v6871_v5, %s10523_s16  ;;  %v6898_v5 = vld [vmem:[#allocation3 + $0x1a0] sm:$0xff] }
 0x88c   : > { %v6567_v38 = vpop.permute.xlu1 %6566  ;;  %v6565_v42 = vpop.permute.xlu0 %6564 }
 0x88d   : > { %6654 = vst.msk [vmem:[#allocation6 + $0x48] sm:$0xff] %vm6644_vm9, %v6567_v38  ;;  %6653 = vst.msk [vmem:[#allocation6 + $0x40] sm:$0xff] %vm6644_vm9, %v6565_v42  ;;  %v6897_v38 = vld [vmem:[#allocation3 + $0x198] sm:$0xff] }
 0x88e   : > { %6941 = vrot.lane.b32.xlu1 %v6874_v2, %s10523_s16  ;;  %6939 = vrot.lane.b32.xlu0 %v6873_v35, %s10523_s16  ;;  %v6900_v42 = vld [vmem:[#allocation3 + $0x1b8] sm:$0xff]  ;;  %v6899_v2 = vld [vmem:[#allocation3 + $0x1b0] sm:$0xff] }
 0x890   : > { %v6571_v26 = vpop.permute.xlu1 %6570  ;;  %v6569_v56 = vpop.permute.xlu0 %6568 }
 0x891   : > { %6656 = vst.msk [vmem:[#allocation6 + $0x58] sm:$0xff] %vm6644_vm9, %v6571_v26  ;;  %6655 = vst.msk [vmem:[#allocation6 + $0x50] sm:$0xff] %vm6644_vm9, %v6569_v56  ;;  %v6902_v56 = vld [vmem:[#allocation3 + $0x1d0] sm:$0xff] }
 0x892   : > { %6945 = vrot.lane.b32.xlu1 %v6876_v30, %s10523_s16  ;;  %6943 = vrot.lane.b32.xlu0 %v6875_v34, %s10523_s16  ;;  %v6901_v30 = vld [vmem:[#allocation3 + $0x1c8] sm:$0xff] }
 0x894   : > { %v6575_v39 = vpop.permute.xlu1 %6574  ;;  %v6573_v53 = vpop.permute.xlu0 %6572 }
 0x895   : > { %6658 = vst.msk [vmem:[#allocation6 + $0x68] sm:$0xff] %vm6644_vm9, %v6575_v39  ;;  %6657 = vst.msk [vmem:[#allocation6 + $0x60] sm:$0xff] %vm6644_vm9, %v6573_v53 }
 0x896   : > { %6949 = vrot.lane.b32.xlu1 %v6878_v19, %s10523_s16  ;;  %6947 = vrot.lane.b32.xlu0 %v6877_v63, %s10523_s16  ;;  %v7065_v63 = vld [vmem:[#allocation3 + $0x69] sm:$0xff] }
 0x898   : > { %v6579_v0 = vpop.permute.xlu1 %6578  ;;  %v6577_v10 = vpop.permute.xlu0 %6576 }
 0x899   : > { %6660 = vst.msk [vmem:[#allocation6 + $0x78] sm:$0xff] %vm6644_vm9, %v6579_v0  ;;  %6659 = vst.msk [vmem:[#allocation6 + $0x70] sm:$0xff] %vm6644_vm9, %v6577_v10  ;;  %v7064_v0 = vld [vmem:[#allocation3 + $0x61] sm:$0xff] }
 0x89a   : > { %6953 = vrot.lane.b32.xlu1 %v6880_v17, %s10523_s16  ;;  %6951 = vrot.lane.b32.xlu0 %v6879_v41, %s10523_s16  ;;  %v7067_v41 = vld [vmem:[#allocation3 + $0x81] sm:$0xff] }
 0x89c   : > { %v6583_v44 = vpop.permute.xlu1 %6582  ;;  %v6581_v3 = vpop.permute.xlu0 %6580 }
 0x89d   : > { %6662 = vst.msk [vmem:[#allocation6 + $0x88] sm:$0xff] %vm6644_vm9, %v6583_v44  ;;  %6661 = vst.msk [vmem:[#allocation6 + $0x80] sm:$0xff] %vm6644_vm9, %v6581_v3  ;;  %v7066_v44 = vld [vmem:[#allocation3 + $0x79] sm:$0xff] }
 0x89e   : > { %6957 = vrot.lane.b32.xlu1 %v6882_v1, %s10523_s16  ;;  %6955 = vrot.lane.b32.xlu0 %v6881_v62, %s10523_s16  ;;  %v7069_v62 = vld [vmem:[#allocation3 + $0x99] sm:$0xff] }
 0x8a0   : > { %v6587_v46 = vpop.permute.xlu1 %6586  ;;  %v6585_v8 = vpop.permute.xlu0 %6584 }
 0x8a1   : > { %6664 = vst.msk [vmem:[#allocation6 + $0x98] sm:$0xff] %vm6644_vm9, %v6587_v46  ;;  %6663 = vst.msk [vmem:[#allocation6 + $0x90] sm:$0xff] %vm6644_vm9, %v6585_v8  ;;  %v7068_v46 = vld [vmem:[#allocation3 + $0x91] sm:$0xff] }
 0x8a2   : > { %6961 = vrot.lane.b32.xlu1 %v6884_v43, %s10523_s16  ;;  %6959 = vrot.lane.b32.xlu0 %v6883_v23, %s10523_s16  ;;  %v7071_v23 = vld [vmem:[#allocation3 + $0xb1] sm:$0xff] }
 0x8a4   : > { %v6591_v52 = vpop.permute.xlu1 %6590  ;;  %v6589_v4 = vpop.permute.xlu0 %6588 }
 0x8a5   : > { %6666 = vst.msk [vmem:[#allocation6 + $0xa8] sm:$0xff] %vm6644_vm9, %v6591_v52  ;;  %6665 = vst.msk [vmem:[#allocation6 + $0xa0] sm:$0xff] %vm6644_vm9, %v6589_v4  ;;  %v7070_v52 = vld [vmem:[#allocation3 + $0xa9] sm:$0xff] }
 0x8a6   : > { %6965 = vrot.lane.b32.xlu1 %v6886_v7, %s10523_s16  ;;  %6963 = vrot.lane.b32.xlu0 %v6885_v16, %s10523_s16  ;;  %v7073_v16 = vld [vmem:[#allocation3 + $0xc9] sm:$0xff] }
 0x8a8   : > { %v6595_v33 = vpop.permute.xlu1 %6594  ;;  %v6593_v27 = vpop.permute.xlu0 %6592 }
 0x8a9   : > { %6668 = vst.msk [vmem:[#allocation6 + $0xb8] sm:$0xff] %vm6644_vm9, %v6595_v33  ;;  %6667 = vst.msk [vmem:[#allocation6 + $0xb0] sm:$0xff] %vm6644_vm9, %v6593_v27  ;;  %v7072_v33 = vld [vmem:[#allocation3 + $0xc1] sm:$0xff] }
 0x8aa   : > { %6969 = vrot.lane.b32.xlu1 %v6888_v51, %s10523_s16  ;;  %6967 = vrot.lane.b32.xlu0 %v6887_v31, %s10523_s16  ;;  %v7075_v31 = vld [vmem:[#allocation3 + $0xe1] sm:$0xff] }
 0x8ac   : > { %v6599_v57 = vpop.permute.xlu1 %6598  ;;  %v6597_v9 = vpop.permute.xlu0 %6596 }
 0x8ad   : > { %6670 = vst.msk [vmem:[#allocation6 + $0xc8] sm:$0xff] %vm6644_vm9, %v6599_v57  ;;  %6669 = vst.msk [vmem:[#allocation6 + $0xc0] sm:$0xff] %vm6644_vm9, %v6597_v9  ;;  %v7074_v57 = vld [vmem:[#allocation3 + $0xd9] sm:$0xff] }
 0x8ae   : > { %6973 = vrot.lane.b32.xlu1 %v6890_v18, %s10523_s16  ;;  %6971 = vrot.lane.b32.xlu0 %v6889_v11, %s10523_s16  ;;  %v7077_v11 = vld [vmem:[#allocation3 + $0xf9] sm:$0xff] }
 0x8b0   : > { %v6603_v24 = vpop.permute.xlu1 %6602  ;;  %v6601_v47 = vpop.permute.xlu0 %6600 }
 0x8b1   : > { %6672 = vst.msk [vmem:[#allocation6 + $0xd8] sm:$0xff] %vm6644_vm9, %v6603_v24  ;;  %6671 = vst.msk [vmem:[#allocation6 + $0xd0] sm:$0xff] %vm6644_vm9, %v6601_v47  ;;  %v7076_v24 = vld [vmem:[#allocation3 + $0xf1] sm:$0xff] }
 0x8b2   : > { %6977 = vrot.lane.b32.xlu1 %v6892_v21, %s10523_s16  ;;  %6975 = vrot.lane.b32.xlu0 %v6891_v12, %s10523_s16  ;;  %v7079_v12 = vld [vmem:[#allocation3 + $0x111] sm:$0xff] }
 0x8b4   : > { %v6607_v32 = vpop.permute.xlu1 %6606  ;;  %v6605_v60 = vpop.permute.xlu0 %6604 }
 0x8b5   : > { %6674 = vst.msk [vmem:[#allocation6 + $0xe8] sm:$0xff] %vm6644_vm9, %v6607_v32  ;;  %6673 = vst.msk [vmem:[#allocation6 + $0xe0] sm:$0xff] %vm6644_vm9, %v6605_v60  ;;  %v7078_v32 = vld [vmem:[#allocation3 + $0x109] sm:$0xff] }
 0x8b6   : > { %6981 = vrot.lane.b32.xlu1 %v6894_v29, %s10523_s16  ;;  %6979 = vrot.lane.b32.xlu0 %v6893_v55, %s10523_s16  ;;  %v7081_v55 = vld [vmem:[#allocation3 + $0x129] sm:$0xff] }
 0x8b8   : > { %v6611_v58 = vpop.permute.xlu1 %6610  ;;  %v6609_v59 = vpop.permute.xlu0 %6608 }
 0x8b9   : > { %6676 = vst.msk [vmem:[#allocation6 + $0xf8] sm:$0xff] %vm6644_vm9, %v6611_v58  ;;  %6675 = vst.msk [vmem:[#allocation6 + $0xf0] sm:$0xff] %vm6644_vm9, %v6609_v59  ;;  %v7080_v58 = vld [vmem:[#allocation3 + $0x121] sm:$0xff] }
 0x8ba   : > { %6985 = vrot.lane.b32.xlu1 %v6896_v13, %s10523_s16  ;;  %6983 = vrot.lane.b32.xlu0 %v6895_v25, %s10523_s16  ;;  %v7083_v25 = vld [vmem:[#allocation3 + $0x141] sm:$0xff] }
 0x8bc   : > { %v6744_v37 = vpop.permute.xlu1 %6743  ;;  %v6742_v28 = vpop.permute.xlu0 %6741 }
 0x8bd   : > { %6839 = vst.msk [vmem:[#allocation6 + $0x8] sm:$0xff] %vm6837_vm10, %v6744_v37  ;;  %6838 = vst.msk [vmem:[#allocation6] sm:$0xff] %vm6837_vm10, %v6742_v28  ;;  %v7082_v37 = vld [vmem:[#allocation3 + $0x139] sm:$0xff]  ;;  %v7880_v28 = vld [vmem:[%s14957_s5 + $0x60] sm:$0xf] }
 0x8be   : > { %6989 = vrot.lane.b32.xlu1 %v6898_v5, %s10523_s16  ;;  %6987 = vrot.lane.b32.xlu0 %v6897_v38, %s10523_s16 }
 0x8bf   : > { %10239 = vmatprep.subr.msk.mxu0 %vm468_vm0, %v7880_v28 }
 0x8c0   : > { %v6748_v35 = vpop.permute.xlu1 %6747  ;;  %v6746_v26 = vpop.permute.xlu0 %6745  ;;  %10240 = vmatpush3.msk.msra.mxu0 %vm468_vm0, %v7880_v28 }
 0x8c1   : > { %6841 = vst.msk [vmem:[#allocation6 + $0x18] sm:$0xff] %vm6837_vm10, %v6748_v35  ;;  %6840 = vst.msk [vmem:[#allocation6 + $0x10] sm:$0xff] %vm6837_vm10, %v6746_v26  ;;  %v7879_v35 = vld [vmem:[%s14957_s5 + $0x58] sm:$0xff]  ;;  %v7878_v26 = vld [vmem:[%s14957_s5 + $0x50] sm:$0xff] }
 0x8c2   : > { %6993 = vrot.lane.b32.xlu1 %v6900_v42, %s10523_s16  ;;  %6991 = vrot.lane.b32.xlu0 %v6899_v2, %s10523_s16  ;;  %v7085_v42 = vld [vmem:[#allocation3 + $0x159] sm:$0xff]  ;;  %v7084_v2 = vld [vmem:[#allocation3 + $0x151] sm:$0xff] }
 0x8c3   : > { %10241 = vmatprep.subr.mxu0 %v7879_v35 }
 0x8c4   : > { %v6752_v34 = vpop.permute.xlu1 %6751  ;;  %v6750_v39 = vpop.permute.xlu0 %6749  ;;  %10242 = vmatpush3.msra.mxu0 %v7879_v35  ;;  %v7455_v35 = vld [vmem:[#allocation3 + $0x9b] sm:$0xff] }
 0x8c5   : > { %6843 = vst.msk [vmem:[#allocation6 + $0x28] sm:$0xff] %vm6837_vm10, %v6752_v34  ;;  %6842 = vst.msk [vmem:[#allocation6 + $0x20] sm:$0xff] %vm6837_vm10, %v6750_v39  ;;  %v7087_v34 = vld [vmem:[#allocation3 + $0x171] sm:$0xff]  ;;  %v7086_v39 = vld [vmem:[#allocation3 + $0x169] sm:$0xff]  ;;  %10243 = vmatprep.subr.mxu0 %v7878_v26 }
 0x8c6   : > { %6997 = vrot.lane.b32.xlu1 %v6902_v56, %s10523_s16  ;;  %6995 = vrot.lane.b32.xlu0 %v6901_v30, %s10523_s16 }
 0x8c7   : > { %10244 = vmatpush3.msra.mxu0 %v7878_v26 }
 0x8c8   : > { %v6756_v53 = vpop.permute.xlu1 %6755  ;;  %v6754_v19 = vpop.permute.xlu0 %6753 }
 0x8c9   : > { %6845 = vst.msk [vmem:[#allocation6 + $0x38] sm:$0xff] %vm6837_vm10, %v6756_v53  ;;  %6844 = vst.msk [vmem:[#allocation6 + $0x30] sm:$0xff] %vm6837_vm10, %v6754_v19  ;;  %v7877_v53 = vld [vmem:[%s14957_s5 + $0x48] sm:$0xff] }
 0x8ca   : > { %7130 = vrot.lane.b32.xlu1 %v7065_v63, %s10524_s17  ;;  %7128 = vrot.lane.b32.xlu0 %v7064_v0, %s10524_s17  ;;  %v7876_v0 = vld [vmem:[%s14957_s5 + $0x40] sm:$0xff] }
 0x8cb   : > { %10245 = vmatprep.subr.mxu0 %v7877_v53 }
 0x8cc   : > { %v6760_v10 = vpop.permute.xlu1 %6759  ;;  %v6758_v17 = vpop.permute.xlu0 %6757  ;;  %10246 = vmatpush3.msra.mxu0 %v7877_v53 }
 0x8cd   : > { %6847 = vst.msk [vmem:[#allocation6 + $0x48] sm:$0xff] %vm6837_vm10, %v6760_v10  ;;  %6846 = vst.msk [vmem:[#allocation6 + $0x40] sm:$0xff] %vm6837_vm10, %v6758_v17  ;;  %v7089_v10 = vld [vmem:[#allocation3 + $0x189] sm:$0xff]  ;;  %v7088_v17 = vld [vmem:[#allocation3 + $0x181] sm:$0xff]  ;;  %10247 = vmatprep.subr.mxu0 %v7876_v0 }
 0x8ce   : > { %7134 = vrot.lane.b32.xlu1 %v7067_v41, %s10524_s17  ;;  %7132 = vrot.lane.b32.xlu0 %v7066_v44, %s10524_s17  ;;  %v7875_v41 = vld [vmem:[%s14957_s5 + $0x38] sm:$0xff] }
 0x8cf   : > { %10248 = vmatpush3.msra.mxu0 %v7876_v0 }
 0x8d0   : > { %v6764_v3 = vpop.permute.xlu1 %6763  ;;  %v6762_v1 = vpop.permute.xlu0 %6761  ;;  %10249 = vmatprep.subr.mxu0 %v7875_v41 }
 0x8d1   : > { %6849 = vst.msk [vmem:[#allocation6 + $0x58] sm:$0xff] %vm6837_vm10, %v6764_v3  ;;  %6848 = vst.msk [vmem:[#allocation6 + $0x50] sm:$0xff] %vm6837_vm10, %v6762_v1  ;;  %v7091_v1 = vld [vmem:[#allocation3 + $0x1a1] sm:$0xff]  ;;  %10250 = vmatpush3.msra.mxu0 %v7875_v41 }
 0x8d2   : > { %7138 = vrot.lane.b32.xlu1 %v7069_v62, %s10524_s17  ;;  %7136 = vrot.lane.b32.xlu0 %v7068_v46, %s10524_s17  ;;  %v7090_v62 = vld [vmem:[#allocation3 + $0x199] sm:$0xff] }
 0x8d3   : > { %v7874_v46 = vld [vmem:[%s14957_s5 + $0x30] sm:$0xff] }
 0x8d4   : > { %v6768_v8 = vpop.permute.xlu1 %6767  ;;  %v6766_v43 = vpop.permute.xlu0 %6765  ;;  %10251 = vmatprep.subr.mxu0 %v7874_v46 }
 0x8d5   : > { %6851 = vst.msk [vmem:[#allocation6 + $0x68] sm:$0xff] %vm6837_vm10, %v6768_v8  ;;  %6850 = vst.msk [vmem:[#allocation6 + $0x60] sm:$0xff] %vm6837_vm10, %v6766_v43  ;;  %v7092_v8 = vld [vmem:[#allocation3 + $0x1b1] sm:$0xff]  ;;  %10252 = vmatpush3.msra.mxu0 %v7874_v46 }
 0x8d6   : > { %7142 = vrot.lane.b32.xlu1 %v7071_v23, %s10524_s17  ;;  %7140 = vrot.lane.b32.xlu0 %v7070_v52, %s10524_s17  ;;  %v7873_v52 = vld [vmem:[%s14957_s5 + $0x28] sm:$0xff] }
 0x8d7   : > { %10253 = vmatprep.subr.mxu0 %v7873_v52 }
 0x8d8   : > { %v6772_v4 = vpop.permute.xlu1 %6771  ;;  %v6770_v7 = vpop.permute.xlu0 %6769  ;;  %10254 = vmatpush3.msra.mxu0 %v7873_v52  ;;  %v7268_v52 = vld [vmem:[#allocation3 + $0xe2] sm:$0xff] }
 0x8d9   : > { %6853 = vst.msk [vmem:[#allocation6 + $0x78] sm:$0xff] %vm6837_vm10, %v6772_v4  ;;  %6852 = vst.msk [vmem:[#allocation6 + $0x70] sm:$0xff] %vm6837_vm10, %v6770_v7  ;;  %v7257_v4 = vld [vmem:[#allocation3 + $0x62] sm:$0xff]  ;;  %v7872_v7 = vld [vmem:[%s14957_s5 + $0x20] sm:$0xff] }
 0x8da   : > { %7146 = vrot.lane.b32.xlu1 %v7073_v16, %s10524_s17  ;;  %7144 = vrot.lane.b32.xlu0 %v7072_v33, %s10524_s17 }
 0x8db   : > { %10255 = vmatprep.subr.mxu0 %v7872_v7 }
 0x8dc   : > { %v6776_v27 = vpop.permute.xlu1 %6775  ;;  %v6774_v51 = vpop.permute.xlu0 %6773  ;;  %10256 = vmatpush3.msra.mxu0 %v7872_v7 }
 0x8dd   : > { %6855 = vst.msk [vmem:[#allocation6 + $0x88] sm:$0xff] %vm6837_vm10, %v6776_v27  ;;  %6854 = vst.msk [vmem:[#allocation6 + $0x80] sm:$0xff] %vm6837_vm10, %v6774_v51  ;;  %v7258_v27 = vld [vmem:[#allocation3 + $0x6a] sm:$0xff] }
 0x8de   : > { %7150 = vrot.lane.b32.xlu1 %v7075_v31, %s10524_s17  ;;  %7148 = vrot.lane.b32.xlu0 %v7074_v57, %s10524_s17  ;;  %v7871_v51 = vld [vmem:[%s14957_s5 + $0x18] sm:$0xff] }
 0x8df   : > { %v10433_v31 = vld [vmem:[#allocation3 + $0x63] sm:$0xff]  ;;  %10257 = vmatprep.subr.mxu0 %v7871_v51 }
 0x8e0   : > { %v6780_v9 = vpop.permute.xlu1 %6779  ;;  %v6778_v18 = vpop.permute.xlu0 %6777  ;;  %10258 = vmatpush3.msra.mxu0 %v7871_v51 }
 0x8e1   : > { %6857 = vst.msk [vmem:[#allocation6 + $0x98] sm:$0xff] %vm6837_vm10, %v6780_v9  ;;  %6856 = vst.msk [vmem:[#allocation6 + $0x90] sm:$0xff] %vm6837_vm10, %v6778_v18  ;;  %v7870_v18 = vld [vmem:[%s14957_s5 + $0x10] sm:$0xff] }
 0x8e2   : > { %7154 = vrot.lane.b32.xlu1 %v7077_v11, %s10524_s17  ;;  %7152 = vrot.lane.b32.xlu0 %v7076_v24, %s10524_s17  ;;  %v7451_v11 = vld [vmem:[#allocation3 + $0x6b] sm:$0xff]  ;;  %v7869_v24 = vld [vmem:[%s14957_s5 + $0x8] sm:$0xff] }
 0x8e3   : > { %10259 = vmatprep.subr.mxu0 %v7870_v18 }
 0x8e4   : > { %v6784_v47 = vpop.permute.xlu1 %6783  ;;  %v6782_v21 = vpop.permute.xlu0 %6781  ;;  %10260 = vmatpush3.msra.mxu0 %v7870_v18 }
 0x8e5   : > { %6859 = vst.msk [vmem:[#allocation6 + $0xa8] sm:$0xff] %vm6837_vm10, %v6784_v47  ;;  %6858 = vst.msk [vmem:[#allocation6 + $0xa0] sm:$0xff] %vm6837_vm10, %v6782_v21  ;;  %10261 = vmatprep.subr.mxu0 %v7869_v24 }
 0x8e6   : > { %7158 = vrot.lane.b32.xlu1 %v7079_v12, %s10524_s17  ;;  %7156 = vrot.lane.b32.xlu0 %v7078_v32, %s10524_s17  ;;  %v7259_v12 = vld [vmem:[#allocation3 + $0x7a] sm:$0xff] }
 0x8e7   : > { %10262 = vmatpush3.msra.mxu0 %v7869_v24 }
 0x8e8   : > { %v6788_v60 = vpop.permute.xlu1 %6787  ;;  %v6786_v29 = vpop.permute.xlu0 %6785 }
 0x8e9   : > { %6861 = vst.msk [vmem:[#allocation6 + $0xb8] sm:$0xff] %vm6837_vm10, %v6788_v60  ;;  %6860 = vst.msk [vmem:[#allocation6 + $0xb0] sm:$0xff] %vm6837_vm10, %v6786_v29  ;;  %v7452_v29 = vld [vmem:[#allocation3 + $0x7b] sm:$0xff] }
 0x8ea   : > { %7162 = vrot.lane.b32.xlu1 %v7081_v55, %s10524_s17  ;;  %7160 = vrot.lane.b32.xlu0 %v7080_v58, %s10524_s17  ;;  %v7260_v55 = vld [vmem:[#allocation3 + $0x82] sm:$0xff] }
 0x8ec   : > { %v6792_v59 = vpop.permute.xlu1 %6791  ;;  %v6790_v13 = vpop.permute.xlu0 %6789 }
 0x8ed   : > { %6863 = vst.msk [vmem:[#allocation6 + $0xc8] sm:$0xff] %vm6837_vm10, %v6792_v59  ;;  %6862 = vst.msk [vmem:[#allocation6 + $0xc0] sm:$0xff] %vm6837_vm10, %v6790_v13 }
 0x8ee   : > { %7166 = vrot.lane.b32.xlu1 %v7083_v25, %s10524_s17  ;;  %7164 = vrot.lane.b32.xlu0 %v7082_v37, %s10524_s17  ;;  %v7261_v37 = vld [vmem:[#allocation3 + $0x92] sm:$0xff] }
 0x8f0   : > { %v6796_v5 = vpop.permute.xlu1 %6795  ;;  %v6794_v38 = vpop.permute.xlu0 %6793 }
 0x8f1   : > { %6865 = vst.msk [vmem:[#allocation6 + $0xd8] sm:$0xff] %vm6837_vm10, %v6796_v5  ;;  %6864 = vst.msk [vmem:[#allocation6 + $0xd0] sm:$0xff] %vm6837_vm10, %v6794_v38  ;;  %v7262_v38 = vld [vmem:[#allocation3 + $0x9a] sm:$0xff] }
 0x8f2   : > { %7170 = vrot.lane.b32.xlu1 %v7085_v42, %s10524_s17  ;;  %7168 = vrot.lane.b32.xlu0 %v7084_v2, %s10524_s17 }
 0x8f4   : > { %v6800_v56 = vpop.permute.xlu1 %6799  ;;  %v6798_v30 = vpop.permute.xlu0 %6797 }
 0x8f5   : > { %6867 = vst.msk [vmem:[#allocation6 + $0xe8] sm:$0xff] %vm6837_vm10, %v6800_v56  ;;  %6866 = vst.msk [vmem:[#allocation6 + $0xe0] sm:$0xff] %vm6837_vm10, %v6798_v30  ;;  %v7263_v56 = vld [vmem:[#allocation3 + $0xaa] sm:$0xff] }
 0x8f6   : > { %7174 = vrot.lane.b32.xlu1 %v7087_v34, %s10524_s17  ;;  %7172 = vrot.lane.b32.xlu0 %v7086_v39, %s10524_s17  ;;  %v7264_v39 = vld [vmem:[#allocation3 + $0xb2] sm:$0xff] }
 0x8f8   : > { %v6804_v19 = vpop.permute.xlu1 %6803  ;;  %v6802_v63 = vpop.permute.xlu0 %6801 }
 0x8f9   : > { %6869 = vst.msk [vmem:[#allocation6 + $0xf8] sm:$0xff] %vm6837_vm10, %v6804_v19  ;;  %6868 = vst.msk [vmem:[#allocation6 + $0xf0] sm:$0xff] %vm6837_vm10, %v6802_v63  ;;  %v7457_v63 = vld [vmem:[#allocation3 + $0xb3] sm:$0xff] }
 0x8fa   : > { %7178 = vrot.lane.b32.xlu1 %v7089_v10, %s10524_s17  ;;  %7176 = vrot.lane.b32.xlu0 %v7088_v17, %s10524_s17  ;;  %v7265_v10 = vld [vmem:[#allocation3 + $0xc2] sm:$0xff] }
 0x8fc   : > { %v6938_v44 = vpop.permute.xlu1 %6937  ;;  %v6936_v3 = vpop.permute.xlu0 %6935 }
 0x8fd   : > { %7033 = vst.msk [vmem:[#allocation6 + $0x8] sm:$0xff] %vm7031_vm11, %v6938_v44  ;;  %7032 = vst.msk [vmem:[#allocation6] sm:$0xff] %vm7031_vm11, %v6936_v3  ;;  %v7266_v44 = vld [vmem:[#allocation3 + $0xca] sm:$0xff] }
 0x8fe   : > { %7182 = vrot.lane.b32.xlu1 %v7091_v1, %s10524_s17  ;;  %7180 = vrot.lane.b32.xlu0 %v7090_v62, %s10524_s17  ;;  %v7459_v62 = vld [vmem:[#allocation3 + $0xcb] sm:$0xff] }
 0x900   : > { %v6942_v43 = vpop.permute.xlu1 %6941  ;;  %v6940_v23 = vpop.permute.xlu0 %6939 }
 0x901   : > { %7035 = vst.msk [vmem:[#allocation6 + $0x18] sm:$0xff] %vm7031_vm11, %v6942_v43  ;;  %7034 = vst.msk [vmem:[#allocation6 + $0x10] sm:$0xff] %vm7031_vm11, %v6940_v23 }
 0x902   : > { %7321 = vrot.lane.b32.xlu1 %v7257_v4, %s10525_s23  ;;  %7184 = vrot.lane.b32.xlu0 %v7092_v8, %s10524_s17  ;;  %v7267_v8 = vld [vmem:[#allocation3 + $0xda] sm:$0xff] }
 0x904   : > { %v6946_v16 = vpop.permute.xlu1 %6945  ;;  %v6944_v33 = vpop.permute.xlu0 %6943 }
 0x905   : > { %7037 = vst.msk [vmem:[#allocation6 + $0x28] sm:$0xff] %vm7031_vm11, %v6946_v16  ;;  %7036 = vst.msk [vmem:[#allocation6 + $0x20] sm:$0xff] %vm7031_vm11, %v6944_v33  ;;  %v7461_v16 = vld [vmem:[#allocation3 + $0xe3] sm:$0xff] }
 0x906   : > { %7514 = vrot.lane.b32.xlu1 %v10433_v31, %s10526_s21  ;;  %7323 = vrot.lane.b32.xlu0 %v7258_v27, %s10525_s23  ;;  %v7269_v27 = vld [vmem:[#allocation3 + $0xf2] sm:$0xff] }
 0x908   : > { %v6950_v57 = vpop.permute.xlu1 %6949  ;;  %v6948_v9 = vpop.permute.xlu0 %6947 }
 0x909   : > { %7039 = vst.msk [vmem:[#allocation6 + $0x38] sm:$0xff] %vm7031_vm11, %v6950_v57  ;;  %7038 = vst.msk [vmem:[#allocation6 + $0x30] sm:$0xff] %vm7031_vm11, %v6948_v9  ;;  %v7270_v57 = vld [vmem:[#allocation3 + $0xfa] sm:$0xff] }
 0x90a   : > { %7707 = vrot.lane.b32.xlu1 %v13516_v14, %s10527_s25  ;;  %7516 = vrot.lane.b32.xlu0 %v7451_v11, %s10526_s21  ;;  %v7868_v14 = vld [vmem:[%s14957_s5] sm:$0xff]  ;;  %v7463_v11 = vld [vmem:[#allocation3 + $0xfb] sm:$0xff] }
 0x90b   : > { %10263 = vmatprep.subr.mxu0 %v7868_v14 }
 0x90c   : > { %v6954_v47 = vpop.permute.xlu1 %6953  ;;  %v6952_v21 = vpop.permute.xlu0 %6951  ;;  %10264 = vmatpush3.msra.mxu0 %v7868_v14 }
 0x90d   : > { %7041 = vst.msk [vmem:[#allocation6 + $0x48] sm:$0xff] %vm7031_vm11, %v6954_v47  ;;  %7040 = vst.msk [vmem:[#allocation6 + $0x40] sm:$0xff] %vm7031_vm11, %v6952_v21  ;;  %v7271_v47 = vld [vmem:[#allocation3 + $0x10a] sm:$0xff]  ;;  %v13871_v21 = vpop.f32.mrf.mxu1 }
 0x90e   : > { %7325 = vrot.lane.b32.xlu1 %v7259_v12, %s10525_s23  ;;  %7709 = vrot.lane.b32.xlu0 %v13514_v40, %s10527_s25  ;;  %v7453_v40 = vld [vmem:[#allocation3 + $0x83] sm:$0xff] }
 0x90f   : > { %v10434_v12 = vld [vmem:[#allocation3 + $0xfc] sm:$0xff] }
 0x910   : > { %v6958_v32 = vpop.permute.xlu1 %6957  ;;  %v6956_v60 = vpop.permute.xlu0 %6955 }
 0x911   : > { %7043 = vst.msk [vmem:[#allocation6 + $0x58] sm:$0xff] %vm7031_vm11, %v6958_v32  ;;  %7042 = vst.msk [vmem:[#allocation6 + $0x50] sm:$0xff] %vm7031_vm11, %v6956_v60  ;;  %v7272_v60 = vld [vmem:[#allocation3 + $0x112] sm:$0xff] }
 0x912   : > { %7518 = vrot.lane.b32.xlu1 %v7452_v29, %s10526_s21  ;;  %7327 = vrot.lane.b32.xlu0 %v7260_v55, %s10525_s23  ;;  %v13877_v29 = vpop.f32.mrf.mxu1 }
 0x914   : > { %v6962_v58 = vpop.permute.xlu1 %6961  ;;  %v6960_v59 = vpop.permute.xlu0 %6959 }
 0x915   : > { %7045 = vst.msk [vmem:[#allocation6 + $0x68] sm:$0xff] %vm7031_vm11, %v6962_v58  ;;  %7044 = vst.msk [vmem:[#allocation6 + $0x60] sm:$0xff] %vm7031_vm11, %v6960_v59  ;;  %v7465_v59 = vld [vmem:[#allocation3 + $0x113] sm:$0xff] }
 0x916   : > { %7711 = vrot.lane.b32.xlu1 %v13526_v22, %s10527_s25  ;;  %7520 = vrot.lane.b32.xlu0 %v7453_v40, %s10526_s21  ;;  %v7454_v22 = vld [vmem:[#allocation3 + $0x93] sm:$0xff]  ;;  %v13883_v40 = vpop.f32.mrf.mxu1 }
 0x918   : > { %v6966_v13 = vpop.permute.xlu1 %6965  ;;  %v6964_v25 = vpop.permute.xlu0 %6963 }
 0x919   : > { %7047 = vst.msk [vmem:[#allocation6 + $0x78] sm:$0xff] %vm7031_vm11, %v6966_v13  ;;  %7046 = vst.msk [vmem:[#allocation6 + $0x70] sm:$0xff] %vm7031_vm11, %v6964_v25  ;;  %v10435_v13 = vld [vmem:[#allocation3 + $0x10c] sm:$0xff] }
 0x91a   : > { %7329 = vrot.lane.b32.xlu1 %v7261_v37, %s10525_s23  ;;  %7713 = vrot.lane.b32.xlu0 %v13524_v50, %s10527_s25 }
 0x91c   : > { %v6970_v28 = vpop.permute.xlu1 %6969  ;;  %v6968_v5 = vpop.permute.xlu0 %6967 }
 0x91d   : > { %7049 = vst.msk [vmem:[#allocation6 + $0x88] sm:$0xff] %vm7031_vm11, %v6970_v28  ;;  %7048 = vst.msk [vmem:[#allocation6 + $0x80] sm:$0xff] %vm7031_vm11, %v6968_v5  ;;  %v7273_v28 = vld [vmem:[#allocation3 + $0x122] sm:$0xff]  ;;  %v13889_v5 = vpop.f32.mrf.mxu1 }
 0x91e   : > { %7522 = vrot.lane.b32.xlu1 %v7454_v22, %s10526_s21  ;;  %7331 = vrot.lane.b32.xlu0 %v7262_v38, %s10525_s23  ;;  %v10436_v22 = vld [vmem:[#allocation3 + $0x114] sm:$0xff] }
 0x920   : > { %v6974_v42 = vpop.permute.xlu1 %6973  ;;  %v6972_v2 = vpop.permute.xlu0 %6971 }
 0x921   : > { %7051 = vst.msk [vmem:[#allocation6 + $0x98] sm:$0xff] %vm7031_vm11, %v6974_v42  ;;  %7050 = vst.msk [vmem:[#allocation6 + $0x90] sm:$0xff] %vm7031_vm11, %v6972_v2  ;;  %v7466_v2 = vld [vmem:[#allocation3 + $0x123] sm:$0xff] }
 0x922   : > { %7715 = vrot.lane.b32.xlu1 %v13536_v36, %s10527_s25  ;;  %7524 = vrot.lane.b32.xlu0 %v7455_v35, %s10526_s21  ;;  %v7456_v36 = vld [vmem:[#allocation3 + $0xab] sm:$0xff] }
 0x923   : > { %v7274_v35 = vld [vmem:[#allocation3 + $0x12a] sm:$0xff] }
 0x924   : > { %v6978_v50 = vpop.permute.xlu1 %6977  ;;  %v6976_v26 = vpop.permute.xlu0 %6975 }
 0x925   : > { %7053 = vst.msk [vmem:[#allocation6 + $0xa8] sm:$0xff] %vm7031_vm11, %v6978_v50  ;;  %7052 = vst.msk [vmem:[#allocation6 + $0xa0] sm:$0xff] %vm7031_vm11, %v6976_v26  ;;  %v13895_v50 = vpop.f32.mrf.mxu1 }
 0x926   : > { %7333 = vrot.lane.b32.xlu1 %v7263_v56, %s10525_s23  ;;  %7717 = vrot.lane.b32.xlu0 %v13534_v15, %s10527_s25 }
 0x928   : > { %v6982_v30 = vpop.permute.xlu1 %6981  ;;  %v6980_v34 = vpop.permute.xlu0 %6979 }
 0x929   : > { %7055 = vst.msk [vmem:[#allocation6 + $0xb8] sm:$0xff] %vm7031_vm11, %v6982_v30  ;;  %7054 = vst.msk [vmem:[#allocation6 + $0xb0] sm:$0xff] %vm7031_vm11, %v6980_v34  ;;  %v7467_v30 = vld [vmem:[#allocation3 + $0x12b] sm:$0xff]  ;;  %v13901_v34 = vpop.f32.mrf.mxu1 }
 0x92a   : > { %7526 = vrot.lane.b32.xlu1 %v7456_v36, %s10526_s21  ;;  %7335 = vrot.lane.b32.xlu0 %v7264_v39, %s10525_s23  ;;  %v10437_v36 = vld [vmem:[#allocation3 + $0x124] sm:$0xff] }
 0x92c   : > { %v6986_v53 = vpop.permute.xlu1 %6985  ;;  %v6984_v19 = vpop.permute.xlu0 %6983 }
 0x92d   : > { %7057 = vst.msk [vmem:[#allocation6 + $0xc8] sm:$0xff] %vm7031_vm11, %v6986_v53  ;;  %7056 = vst.msk [vmem:[#allocation6 + $0xc0] sm:$0xff] %vm7031_vm11, %v6984_v19  ;;  %v7275_v19 = vld [vmem:[#allocation3 + $0x13a] sm:$0xff] }
 0x92e   : > { %7719 = vrot.lane.b32.xlu1 %v13546_v45, %s10527_s25  ;;  %7528 = vrot.lane.b32.xlu0 %v7457_v63, %s10526_s21  ;;  %v7458_v45 = vld [vmem:[#allocation3 + $0xc3] sm:$0xff]  ;;  %v7660_v63 = vld [vmem:[#allocation3 + $0x12c] sm:$0xff] }
 0x930   : > { %v6990_v15 = vpop.permute.xlu1 %6989  ;;  %v6988_v0 = vpop.permute.xlu0 %6987 }
 0x931   : > { %7059 = vst.msk [vmem:[#allocation6 + $0xd8] sm:$0xff] %vm7031_vm11, %v6990_v15  ;;  %7058 = vst.msk [vmem:[#allocation6 + $0xd0] sm:$0xff] %vm7031_vm11, %v6988_v0  ;;  %v13907_v15 = vpop.f32.mrf.mxu1 }
 0x932   : > { %7337 = vrot.lane.b32.xlu1 %v7265_v10, %s10525_s23  ;;  %7721 = vrot.lane.b32.xlu0 %v13544_v20, %s10527_s25 }
 0x934   : > { %v6994_v17 = vpop.permute.xlu1 %6993  ;;  %v6992_v41 = vpop.permute.xlu0 %6991 }
 0x935   : > { %7061 = vst.msk [vmem:[#allocation6 + $0xe8] sm:$0xff] %vm7031_vm11, %v6994_v17  ;;  %7060 = vst.msk [vmem:[#allocation6 + $0xe0] sm:$0xff] %vm7031_vm11, %v6992_v41  ;;  %v7468_v17 = vld [vmem:[#allocation3 + $0x13b] sm:$0xff] }
 0x936   : > { %7530 = vrot.lane.b32.xlu1 %v7458_v45, %s10526_s21  ;;  %7339 = vrot.lane.b32.xlu0 %v7266_v44, %s10525_s23  ;;  %v7276_v41 = vld [vmem:[#allocation3 + $0x142] sm:$0xff]  ;;  %v13913_v45 = vpop.f32.mrf.mxu1 }
 0x938   : > { %v6998_v3 = vpop.permute.xlu1 %6997  ;;  %v6996_v1 = vpop.permute.xlu0 %6995 }
 0x939   : > { %7063 = vst.msk [vmem:[#allocation6 + $0xf8] sm:$0xff] %vm7031_vm11, %v6998_v3  ;;  %7062 = vst.msk [vmem:[#allocation6 + $0xf0] sm:$0xff] %vm7031_vm11, %v6996_v1  ;;  %v7661_v1 = vld [vmem:[#allocation3 + $0x13c] sm:$0xff] }
 0x93a   : > { %7723 = vrot.lane.b32.xlu1 %v13556_v6, %s10527_s25  ;;  %7532 = vrot.lane.b32.xlu0 %v7459_v62, %s10526_s21  ;;  %v7460_v6 = vld [vmem:[#allocation3 + $0xdb] sm:$0xff]  ;;  %v7469_v62 = vld [vmem:[#allocation3 + $0x143] sm:$0xff] }
 0x93c   : > { %v7131_v20 = vpop.permute.xlu1 %7130  ;;  %v7129_v46 = vpop.permute.xlu0 %7128 }
 0x93d   : > { %7226 = vst.msk [vmem:[#allocation6 + $0x8] sm:$0xff] %vm7224_vm12, %v7131_v20  ;;  %7225 = vst.msk [vmem:[#allocation6] sm:$0xff] %vm7224_vm12, %v7129_v46  ;;  %v13919_v20 = vpop.f32.mrf.mxu1 }
 0x93e   : > { %7341 = vrot.lane.b32.xlu1 %v7267_v8, %s10525_s23  ;;  %7725 = vrot.lane.b32.xlu0 %v13554_v48, %s10527_s25 }
 0x940   : > { %v7135_v43 = vpop.permute.xlu1 %7134  ;;  %v7133_v23 = vpop.permute.xlu0 %7132 }
 0x941   : > { %7228 = vst.msk [vmem:[#allocation6 + $0x18] sm:$0xff] %vm7224_vm12, %v7135_v43  ;;  %7227 = vst.msk [vmem:[#allocation6 + $0x10] sm:$0xff] %vm7224_vm12, %v7133_v23  ;;  %v7277_v43 = vld [vmem:[#allocation3 + $0x152] sm:$0xff]  ;;  %v7662_v23 = vld [vmem:[#allocation3 + $0x144] sm:$0xff] }
 0x942   : > { %7534 = vrot.lane.b32.xlu1 %v7460_v6, %s10526_s21  ;;  %7343 = vrot.lane.b32.xlu0 %v7268_v52, %s10525_s23  ;;  %v13925_v6 = vpop.f32.mrf.mxu1 }
 0x944   : > { %v7139_v4 = vpop.permute.xlu1 %7138  ;;  %v7137_v7 = vpop.permute.xlu0 %7136 }
 0x945   : > { %7230 = vst.msk [vmem:[#allocation6 + $0x28] sm:$0xff] %vm7224_vm12, %v7139_v4  ;;  %7229 = vst.msk [vmem:[#allocation6 + $0x20] sm:$0xff] %vm7224_vm12, %v7137_v7  ;;  %v7470_v7 = vld [vmem:[#allocation3 + $0x153] sm:$0xff] }
 0x946   : > { %7727 = vrot.lane.b32.xlu1 %v13566_v61, %s10527_s25  ;;  %7536 = vrot.lane.b32.xlu0 %v7461_v16, %s10526_s21  ;;  %v7462_v61 = vld [vmem:[#allocation3 + $0xf3] sm:$0xff] }
 0x947   : > { %v7278_v16 = vld [vmem:[#allocation3 + $0x15a] sm:$0xff] }
 0x948   : > { %v7143_v48 = vpop.permute.xlu1 %7142  ;;  %v7141_v33 = vpop.permute.xlu0 %7140 }
 0x949   : > { %7232 = vst.msk [vmem:[#allocation6 + $0x38] sm:$0xff] %vm7224_vm12, %v7143_v48  ;;  %7231 = vst.msk [vmem:[#allocation6 + $0x30] sm:$0xff] %vm7224_vm12, %v7141_v33  ;;  %v13931_v48 = vpop.f32.mrf.mxu1 }
 0x94a   : > { %7345 = vrot.lane.b32.xlu1 %v7269_v27, %s10525_s23  ;;  %7729 = vrot.lane.b32.xlu0 %v13564_v49, %s10527_s25 }
 0x94c   : > { %v7147_v51 = vpop.permute.xlu1 %7146  ;;  %v7145_v31 = vpop.permute.xlu0 %7144 }
 0x94d   : > { %7234 = vst.msk [vmem:[#allocation6 + $0x48] sm:$0xff] %vm7224_vm12, %v7147_v51  ;;  %7233 = vst.msk [vmem:[#allocation6 + $0x40] sm:$0xff] %vm7224_vm12, %v7145_v31  ;;  %v7663_v51 = vld [vmem:[#allocation3 + $0x154] sm:$0xff] }
 0x94e   : > { %7538 = vrot.lane.b32.xlu1 %v7462_v61, %s10526_s21  ;;  %7347 = vrot.lane.b32.xlu0 %v7270_v57, %s10525_s23  ;;  %v7471_v31 = vld [vmem:[#allocation3 + $0x15b] sm:$0xff]  ;;  %v13937_v61 = vpop.f32.mrf.mxu1 }
 0x950   : > { %v7151_v9 = vpop.permute.xlu1 %7150  ;;  %v7149_v18 = vpop.permute.xlu0 %7148 }
 0x951   : > { %7236 = vst.msk [vmem:[#allocation6 + $0x58] sm:$0xff] %vm7224_vm12, %v7151_v9  ;;  %7235 = vst.msk [vmem:[#allocation6 + $0x50] sm:$0xff] %vm7224_vm12, %v7149_v18 }
 0x952   : > { %7731 = vrot.lane.b32.xlu1 %v13574_v54, %s10527_s25  ;;  %7540 = vrot.lane.b32.xlu0 %v7463_v11, %s10526_s21  ;;  %v7464_v54 = vld [vmem:[#allocation3 + $0x10b] sm:$0xff] }
 0x953   : > { %v7279_v11 = vld [vmem:[#allocation3 + $0x16a] sm:$0xff] }
 0x954   : > { %v7155_v49 = vpop.permute.xlu1 %7154  ;;  %v7153_v24 = vpop.permute.xlu0 %7152 }
 0x955   : > { %7238 = vst.msk [vmem:[#allocation6 + $0x68] sm:$0xff] %vm7224_vm12, %v7155_v49  ;;  %7237 = vst.msk [vmem:[#allocation6 + $0x60] sm:$0xff] %vm7224_vm12, %v7153_v24  ;;  %v7664_v49 = vld [vmem:[#allocation3 + $0x15c] sm:$0xff]  ;;  %v8877_v24 = vld [vmem:[%s14959_s7] sm:$0xf] }
 0x956   : > { %7349 = vrot.lane.b32.xlu1 %v7271_v47, %s10525_s23  ;;  %7733 = vrot.lane.b32.xlu0 %v10434_v12, %s10527_s25  ;;  %v13947_v47 = vpop.f32.mrf.mxu1 }
 0x957   : > { %10313 = vmatprep.subr.msk.mxu0 %vm468_vm0, %v8877_v24  ;;  %10363 = vmatprep.subr.msk.mxu1 %vm468_vm0, %v8877_v24 }
 0x958   : > { %v7159_v14 = vpop.permute.xlu1 %7158  ;;  %v7157_v32 = vpop.permute.xlu0 %7156  ;;  %10364 = vmatpush3.msk.msra.mxu1 %vm468_vm0, %v8877_v24 }
 0x959   : > { %7240 = vst.msk [vmem:[#allocation6 + $0x78] sm:$0xff] %vm7224_vm12, %v7159_v14  ;;  %7239 = vst.msk [vmem:[#allocation6 + $0x70] sm:$0xff] %vm7224_vm12, %v7157_v32 }
 0x95a   : > { %7542 = vrot.lane.b32.xlu1 %v7464_v54, %s10526_s21  ;;  %7351 = vrot.lane.b32.xlu0 %v7272_v60, %s10525_s23  ;;  %v7472_v54 = vld [vmem:[#allocation3 + $0x16b] sm:$0xff] }
 0x95b   : > { %v7280_v60 = vld [vmem:[#allocation3 + $0x172] sm:$0xff] }
 0x95c   : > { %v7163_v55 = vpop.permute.xlu1 %7162  ;;  %v7161_v58 = vpop.permute.xlu0 %7160 }
 0x95d   : > { %7242 = vst.msk [vmem:[#allocation6 + $0x88] sm:$0xff] %vm7224_vm12, %v7163_v55  ;;  %7241 = vst.msk [vmem:[#allocation6 + $0x80] sm:$0xff] %vm7224_vm12, %v7161_v58  ;;  %v13957_v55 = vpop.f32.mrf.mxu1 }
 0x95e   : > { %7735 = vrot.lane.b32.xlu1 %v10435_v13, %s10527_s25  ;;  %7544 = vrot.lane.b32.xlu0 %v7465_v59, %s10526_s21  ;;  %v7665_v13 = vld [vmem:[#allocation3 + $0x16c] sm:$0xff] }
 0x960   : > { %v7167_v25 = vpop.permute.xlu1 %7166  ;;  %v7165_v37 = vpop.permute.xlu0 %7164 }
 0x961   : > { %7244 = vst.msk [vmem:[#allocation6 + $0x98] sm:$0xff] %vm7224_vm12, %v7167_v25  ;;  %7243 = vst.msk [vmem:[#allocation6 + $0x90] sm:$0xff] %vm7224_vm12, %v7165_v37  ;;  %v7473_v25 = vld [vmem:[#allocation3 + $0x173] sm:$0xff]  ;;  %v13964_v37 = vpop.f32.mrf.mxu1 }
 0x962   : > { %7353 = vrot.lane.b32.xlu1 %v7273_v28, %s10525_s23  ;;  %7737 = vrot.lane.b32.xlu0 %v10436_v22, %s10527_s25 }
 0x964   : > { %v7171_v38 = vpop.permute.xlu1 %7170  ;;  %v7169_v42 = vpop.permute.xlu0 %7168 }
 0x965   : > { %7246 = vst.msk [vmem:[#allocation6 + $0xa8] sm:$0xff] %vm7224_vm12, %v7171_v38  ;;  %7245 = vst.msk [vmem:[#allocation6 + $0xa0] sm:$0xff] %vm7224_vm12, %v7169_v42  ;;  %v7281_v42 = vld [vmem:[#allocation3 + $0x182] sm:$0xff] }
 0x966   : > { %7546 = vrot.lane.b32.xlu1 %v7466_v2, %s10526_s21  ;;  %7355 = vrot.lane.b32.xlu0 %v7274_v35, %s10525_s23  ;;  %v7666_v2 = vld [vmem:[#allocation3 + $0x174] sm:$0xff]  ;;  %v13971_v35 = vpop.f32.mrf.mxu1 }
 0x968   : > { %v7175_v26 = vpop.permute.xlu1 %7174  ;;  %v7173_v56 = vpop.permute.xlu0 %7172 }
 0x969   : > { %7248 = vst.msk [vmem:[#allocation6 + $0xb8] sm:$0xff] %vm7224_vm12, %v7175_v26  ;;  %7247 = vst.msk [vmem:[#allocation6 + $0xb0] sm:$0xff] %vm7224_vm12, %v7173_v56 }
 0x96a   : > { %7739 = vrot.lane.b32.xlu1 %v10437_v36, %s10527_s25  ;;  %7548 = vrot.lane.b32.xlu0 %v7467_v30, %s10526_s21  ;;  %v7474_v36 = vld [vmem:[#allocation3 + $0x183] sm:$0xff] }
 0x96c   : > { %v7179_v39 = vpop.permute.xlu1 %7178  ;;  %v7177_v53 = vpop.permute.xlu0 %7176 }
 0x96d   : > { %7250 = vst.msk [vmem:[#allocation6 + $0xc8] sm:$0xff] %vm7224_vm12, %v7179_v39  ;;  %7249 = vst.msk [vmem:[#allocation6 + $0xc0] sm:$0xff] %vm7224_vm12, %v7177_v53  ;;  %v7282_v39 = vld [vmem:[#allocation3 + $0x18a] sm:$0xff]  ;;  %v13978_v53 = vpop.f32.mrf.mxu1 }
 0x96e   : > { %7357 = vrot.lane.b32.xlu1 %v7275_v19, %s10525_s23  ;;  %7741 = vrot.lane.b32.xlu0 %v7660_v63, %s10527_s25 }
 0x970   : > { %v7183_v0 = vpop.permute.xlu1 %7182  ;;  %v7181_v10 = vpop.permute.xlu0 %7180 }
 0x971   : > { %7252 = vst.msk [vmem:[#allocation6 + $0xd8] sm:$0xff] %vm7224_vm12, %v7183_v0  ;;  %7251 = vst.msk [vmem:[#allocation6 + $0xd0] sm:$0xff] %vm7224_vm12, %v7181_v10  ;;  %v7667_v0 = vld [vmem:[#allocation3 + $0x184] sm:$0xff] }
 0x972   : > { %7550 = vrot.lane.b32.xlu1 %v7468_v17, %s10526_s21  ;;  %7359 = vrot.lane.b32.xlu0 %v7276_v41, %s10525_s23  ;;  %v7475_v10 = vld [vmem:[#allocation3 + $0x18b] sm:$0xff]  ;;  %v13984_v17 = vpop.f32.mrf.mxu1 }
 0x974   : > { %v7322_v44 = vpop.permute.xlu1 %7321  ;;  %v7185_v3 = vpop.permute.xlu0 %7184 }
 0x975   : > { %7418 = vst.msk [vmem:[#allocation6] sm:$0xff] %vm7417_vm13, %v7322_v44 }
 0x976   : > { %7253 = vst.msk [vmem:[#allocation6 + $0xe0] sm:$0xff] %vm7224_vm12, %v7185_v3  ;;  %7743 = vrot.lane.b32.xlu1 %v7661_v1, %s10527_s25  ;;  %7552 = vrot.lane.b32.xlu0 %v7469_v62, %s10526_s21  ;;  %v7283_v1 = vld [vmem:[#allocation3 + $0x19a] sm:$0xff]  ;;  %v7668_v62 = vld [vmem:[#allocation3 + $0x18c] sm:$0xff] }
 0x978   : > { %v7515_v46 = vpop.permute.xlu1 %7514  ;;  %v7324_v8 = vpop.permute.xlu0 %7323 }
 0x979   : > { %7611 = vst.msk [vmem:[#allocation6] sm:$0xff] %vm7610_vm14, %v7515_v46  ;;  %v13991_v46 = vpop.f32.mrf.mxu1 }
 0x97a   : > { %7419 = vst.msk [vmem:[#allocation6 + $0x8] sm:$0xff] %vm7417_vm13, %v7324_v8  ;;  %7361 = vrot.lane.b32.xlu1 %v7277_v43, %s10525_s23  ;;  %7745 = vrot.lane.b32.xlu0 %v7662_v23, %s10527_s25 }
 0x97c   : > { %v7708_v52 = vpop.permute.xlu1 %7707  ;;  %v7517_v4 = vpop.permute.xlu0 %7516 }
 0x97d   : > { %7804 = vst.msk [vmem:[#allocation6] sm:$0xff] %vm7803_vm15, %v7708_v52  ;;  %v7476_v52 = vld [vmem:[#allocation3 + $0x19b] sm:$0xff] }
 0x97e   : > { %7612 = vst.msk [vmem:[#allocation6 + $0x8] sm:$0xff] %vm7610_vm14, %v7517_v4  ;;  %7554 = vrot.lane.b32.xlu1 %v7470_v7, %s10526_s21  ;;  %7363 = vrot.lane.b32.xlu0 %v7278_v16, %s10525_s23  ;;  %v7284_v4 = vld [vmem:[#allocation3 + $0x1a2] sm:$0xff]  ;;  %v13998_v7 = vpop.f32.mrf.mxu1 }
 0x980   : > { %v7326_v33 = vpop.permute.xlu1 %7325  ;;  %v7710_v27 = vpop.permute.xlu0 %7709 }
 0x981   : > { %7420 = vst.msk [vmem:[#allocation6 + $0x10] sm:$0xff] %vm7417_vm13, %v7326_v33 }
 0x982   : > { %7805 = vst.msk [vmem:[#allocation6 + $0x8] sm:$0xff] %vm7803_vm15, %v7710_v27  ;;  %7747 = vrot.lane.b32.xlu1 %v7663_v51, %s10527_s25  ;;  %7556 = vrot.lane.b32.xlu0 %v7471_v31, %s10526_s21  ;;  %v7669_v27 = vld [vmem:[#allocation3 + $0x19c] sm:$0xff]  ;;  %v14004_v31 = vpop.f32.mrf.mxu1 }
 0x983   : > { %v7477_v51 = vld [vmem:[#allocation3 + $0x1a3] sm:$0xff] }
 0x984   : > { %v7519_v57 = vpop.permute.xlu1 %7518  ;;  %v7328_v9 = vpop.permute.xlu0 %7327  ;;  %v7836_v18 = vld [vmem:[#allocation6] sm:$0xff] }
 0x985   : > { %7613 = vst.msk [vmem:[#allocation6 + $0x10] sm:$0xff] %vm7610_vm14, %v7519_v57  ;;  %10265 = vmatprep.mubr.msk.f32.mxu0 %vm7888_vm2, %v7836_v18  ;;  %v7093_v57 = vld [vmem:[#allocation3 + $0x1b9] sm:$0xff] }
 0x986   : > { %7421 = vst.msk [vmem:[#allocation6 + $0x18] sm:$0xff] %vm7417_vm13, %v7328_v9  ;;  %7365 = vrot.lane.b32.xlu1 %v7279_v11, %s10525_s23  ;;  %7749 = vrot.lane.b32.xlu0 %v7664_v49, %s10527_s25  ;;  %v7670_v49 = vld [vmem:[#allocation3 + $0x1a4] sm:$0xff] }
 0x988   : > { %v7712_v12 = vpop.permute.xlu1 %7711  ;;  %v7521_v14 = vpop.permute.xlu0 %7520 }
 0x989   : > { %v7837_v32 = vld [vmem:[#allocation6 + $0x8] sm:$0xff]  ;;  %7806 = vst.msk [vmem:[#allocation6 + $0x10] sm:$0xff] %vm7803_vm15, %v7712_v12 }
 0x98a   : > { %7614 = vst.msk [vmem:[#allocation6 + $0x18] sm:$0xff] %vm7610_vm14, %v7521_v14  ;;  %10266 = vmatmul.mubr.msk.f32.vlgmr.msra.gmra.mxu0 %vm7888_vm2, %v7837_v32  ;;  %7558 = vrot.lane.b32.xlu1 %v7472_v54, %s10526_s21  ;;  %v7286_v12 = vld [vmem:[#allocation3 + $0x1ba] sm:$0xff]  ;;  %v7285_v14 = vld [vmem:[#allocation3 + $0x1b2] sm:$0xff] }
 0x98b   : > { %7367 = vrot.lane.b32.xlu0 %v7280_v60, %s10525_s23  ;;  %10314 = vmatpush3.msk.msra.mxu0 %vm468_vm0, %v8877_v24  ;;  %v14011_v24 = vpop.f32.mrf.mxu1  ;;  %vm9402_vm0 = vcmask 130112  }
 0x98c   : > { %v7330_v58 = vpop.permute.xlu1 %7329  ;;  %v7714_v59 = vpop.permute.xlu0 %7713 }
 0x98d   : > { %7422 = vst.msk [vmem:[#allocation6 + $0x20] sm:$0xff] %vm7417_vm13, %v7330_v58  ;;  %v14018_v58 = vpop.f32.mrf.mxu1 }
 0x98e   : > { %7807 = vst.msk [vmem:[#allocation6 + $0x18] sm:$0xff] %vm7803_vm15, %v7714_v59  ;;  %7751 = vrot.lane.b32.xlu1 %v7665_v13, %s10527_s25  ;;  %v7479_v59 = vld [vmem:[#allocation3 + $0x1bb] sm:$0xff]  ;;  %v7478_v13 = vld [vmem:[#allocation3 + $0x1b3] sm:$0xff] }
 0x98f   : > { %7560 = vrot.lane.b32.xlu0 %v7473_v25, %s10526_s21 }
 0x990   : > { %v7523_v28 = vpop.permute.xlu1 %7522  ;;  %v7332_v22 = vpop.permute.xlu0 %7331  ;;  %v7838_v38 = vld [vmem:[#allocation6 + $0x10] sm:$0xff] }
 0x991   : > { %7615 = vst.msk [vmem:[#allocation6 + $0x20] sm:$0xff] %vm7610_vm14, %v7523_v28  ;;  %10268 = vmatprep.mubr.msk.f32.mxu0 %vm7888_vm2, %v7838_v38  ;;  %v7094_v38 = vld [vmem:[#allocation3 + $0x1c9] sm:$0xff] }
 0x992   : > { %7423 = vst.msk [vmem:[#allocation6 + $0x28] sm:$0xff] %vm7417_vm13, %v7332_v22  ;;  %7369 = vrot.lane.b32.xlu1 %v7281_v42, %s10525_s23  ;;  %v14024_v22 = vpop.f32.mrf.mxu1  ;;  %v7671_v42 = vld [vmem:[#allocation3 + $0x1b4] sm:$0xff] }
 0x993   : > { %7753 = vrot.lane.b32.xlu0 %v7666_v2, %s10527_s25 }
 0x994   : > { %v7716_v26 = vpop.permute.xlu1 %7715  ;;  %v7525_v56 = vpop.permute.xlu0 %7524 }
 0x995   : > { %v7839_v30 = vld [vmem:[#allocation6 + $0x18] sm:$0xff]  ;;  %7808 = vst.msk [vmem:[#allocation6 + $0x20] sm:$0xff] %vm7803_vm15, %v7716_v26 }
 0x996   : > { %7616 = vst.msk [vmem:[#allocation6 + $0x28] sm:$0xff] %vm7610_vm14, %v7525_v56  ;;  %10269 = vmatmul.mubr.msk.f32.gmra.mxu0 %vm7888_vm2, %v7839_v30  ;;  %7562 = vrot.lane.b32.xlu1 %v7474_v36, %s10526_s21  ;;  %v14031_v30 = vpop.f32.mrf.mxu1  ;;  %v7095_v36 = vld [vmem:[#allocation3 + $0x1d1] sm:$0xff] }
 0x997   : > { %7371 = vrot.lane.b32.xlu0 %v7282_v39, %s10525_s23  ;;  %v7672_v39 = vld [vmem:[#allocation3 + $0x1bc] sm:$0xff] }
 0x998   : > { %v7334_v19 = vpop.permute.xlu1 %7333  ;;  %v7718_v63 = vpop.permute.xlu0 %7717 }
 0x999   : > { %7424 = vst.msk [vmem:[#allocation6 + $0x30] sm:$0xff] %vm7417_vm13, %v7334_v19 }
 0x99a   : > { %7809 = vst.msk [vmem:[#allocation6 + $0x28] sm:$0xff] %vm7803_vm15, %v7718_v63  ;;  %7755 = vrot.lane.b32.xlu1 %v7667_v0, %s10527_s25 }
 0x99b   : > { %7564 = vrot.lane.b32.xlu0 %v7475_v10, %s10526_s21  ;;  %v14038_v10 = vpop.f32.mrf.mxu1 }
 0x99c   : > { %v7527_v41 = vpop.permute.xlu1 %7526  ;;  %v7336_v44 = vpop.permute.xlu0 %7335  ;;  %v7840_v3 = vld [vmem:[#allocation6 + $0x20] sm:$0xff] }
 0x99d   : > { %7617 = vst.msk [vmem:[#allocation6 + $0x30] sm:$0xff] %vm7610_vm14, %v7527_v41  ;;  %10271 = vmatprep.mubr.msk.f32.mxu0 %vm7888_vm2, %v7840_v3  ;;  %v14045_v41 = vld [vmem:[%s14956_s4] ss:$0 sm:$0xff] }
 0x99e   : > { %7425 = vst.msk [vmem:[#allocation6 + $0x38] sm:$0xff] %vm7417_vm13, %v7336_v44  ;;  %7373 = vrot.lane.b32.xlu1 %v7283_v1, %s10525_s23  ;;  %v7288_v44 = vld [vmem:[#allocation3 + $0x1d2] sm:$0xff]  ;;  %v7287_v3 = vld [vmem:[#allocation3 + $0x1ca] sm:$0xff] }
 0x99f   : > { %7757 = vrot.lane.b32.xlu0 %v7668_v62, %s10527_s25 }
 0x9a0   : > { %v7720_v8 = vpop.permute.xlu1 %7719  ;;  %v7529_v43 = vpop.permute.xlu0 %7528 }
 0x9a1   : > { %v7841_v23 = vld [vmem:[#allocation6 + $0x28] sm:$0xff]  ;;  %7810 = vst.msk [vmem:[#allocation6 + $0x30] sm:$0xff] %vm7803_vm15, %v7720_v8  ;;  %v14051_v8 = vadd.f32 %v13871_v21, %v14045_v41  ;;  %v14071_v21 = vadd.f32 %v13895_v50, %v14045_v41 }
 0x9a2   : > { %7618 = vst.msk [vmem:[#allocation6 + $0x38] sm:$0xff] %vm7610_vm14, %v7529_v43  ;;  %10272 = vmatmul.mubr.msk.f32.gmra.mxu0 %vm7888_vm2, %v7841_v23  ;;  %7566 = vrot.lane.b32.xlu1 %v7476_v52, %s10526_s21  ;;  %v14053_v43 = vpop.f32.mrf.mxu1  ;;  %v14059_v23 = vadd.f32 %v14045_v41, %v13877_v29  ;;  %v14063_v52 = vadd.f32 %v13883_v40, %v14045_v41 }
 0x9a3   : > { %7375 = vrot.lane.b32.xlu0 %v7284_v4, %s10525_s23  ;;  %v14067_v4 = vadd.f32 %v14045_v41, %v13889_v5  ;;  %v14079_v29 = vadd.f32 %v13907_v15, %v14045_v41  ;;  %v14083_v40 = vadd.f32 %v14045_v41, %v13913_v45  ;;  %v14087_v5 = vadd.f32 %v13919_v20, %v14045_v41 }
 0x9a4   : > { %v7338_v16 = vpop.permute.xlu1 %7337  ;;  %v7722_v33 = vpop.permute.xlu0 %7721  ;;  %v14099_v15 = vadd.f32 %v14045_v41, %v13937_v61  ;;  %v2924_v45 = vmax.f32 %v14051_v8, 0.0  ;;  %v14107_v20 = vadd.f32 %v13947_v47, %v14045_v41  ;;  %v2926_v61 = vmax.f32 %v14063_v52, 0.0 }
 0x9a5   : > { %7426 = vst.msk [vmem:[#allocation6 + $0x40] sm:$0xff] %vm7417_vm13, %v7338_v16  ;;  %v7481_v16 = vld [vmem:[#allocation3 + $0x1d3] sm:$0xff]  ;;  %v2930_v47 = vmax.f32 %v14079_v29, 0.0 }
 0x9a6   : > { %7811 = vst.msk [vmem:[#allocation6 + $0x38] sm:$0xff] %vm7803_vm15, %v7722_v33  ;;  %7759 = vrot.lane.b32.xlu1 %v7669_v27, %s10527_s25  ;;  %v7480_v33 = vld [vmem:[#allocation3 + $0x1cb] sm:$0xff]  ;;  %v14075_v27 = vadd.f32 %v14045_v41, %v13901_v34  ;;  %v14095_v34 = vadd.f32 %v13931_v48, %v14045_v41  ;;  %v2923_v48 = vmax.f32 %v14059_v23, 0.0  ;;  %v14156_v23 = vadd.f32 %v13991_v46, %v14045_v41 }
 0x9a7   : > { %7568 = vrot.lane.b32.xlu0 %v7477_v51, %s10526_s21  ;;  %v14172_v46 = vadd.f32 %v14018_v58, %v14045_v41 }
 0x9a8   : > { %v7531_v9 = vpop.permute.xlu1 %7530  ;;  %v7340_v18 = vpop.permute.xlu0 %7339  ;;  %v7842_v11 = vld [vmem:[#allocation6 + $0x30] sm:$0xff] }
 0x9a9   : > { %7619 = vst.msk [vmem:[#allocation6 + $0x40] sm:$0xff] %vm7610_vm14, %v7531_v9  ;;  %10274 = vmatprep.mubr.msk.f32.mxu0 %vm7888_vm2, %v7842_v11  ;;  %v14091_v9 = vadd.f32 %v14045_v41, %v13925_v6  ;;  %v14109_v6 = vpop.f32.mrf.mxu1  ;;  %v2928_v11 = vmax.f32 %v14071_v21, 0.0 }
 0x9aa   : > { %7427 = vst.msk [vmem:[#allocation6 + $0x48] sm:$0xff] %vm7417_vm13, %v7340_v18  ;;  %7186 = vrot.lane.b32.xlu1 %v7093_v57, %s10524_s17  ;;  %v2925_v18 = vmax.f32 %v14067_v4, 0.0 }
 0x9ab   : > { %7761 = vrot.lane.b32.xlu0 %v7670_v49, %s10527_s25  ;;  %v7674_v49 = vld [vmem:[#allocation3 + $0x1d4] sm:$0xff] }
 0x9ac   : > { %v7724_v32 = vpop.permute.xlu1 %7723  ;;  %v7533_v54 = vpop.permute.xlu0 %7532 }
 0x9ad   : > { %v7843_v60 = vld [vmem:[#allocation6 + $0x38] sm:$0xff]  ;;  %7812 = vst.msk [vmem:[#allocation6 + $0x40] sm:$0xff] %vm7803_vm15, %v7724_v32  ;;  %v2929_v32 = vmax.f32 %v14083_v40, 0.0 }
 0x9ae   : > { %7620 = vst.msk [vmem:[#allocation6 + $0x48] sm:$0xff] %vm7610_vm14, %v7533_v54  ;;  %10275 = vmatmul.mubr.msk.f32.gmra.mxu0 %vm7888_vm2, %v7843_v60  ;;  %7379 = vrot.lane.b32.xlu1 %v7286_v12, %s10525_s23  ;;  %v7673_v12 = vld [vmem:[#allocation3 + $0x1cc] sm:$0xff] }
 0x9af   : > { %7377 = vrot.lane.b32.xlu0 %v7285_v14, %s10525_s23  ;;  %v2927_v14 = vmax.f32 %v14075_v27, 0.0 }
 0x9b0   : > { %v7342_v25 = vpop.permute.xlu1 %7341  ;;  %v7726_v28 = vpop.permute.xlu0 %7725 }
 0x9b1   : > { %7428 = vst.msk [vmem:[#allocation6 + $0x50] sm:$0xff] %vm7417_vm13, %v7342_v25  ;;  %v8753_v25 = vld [vmem:[#allocation4 + $0x61] sm:$0xff] }
 0x9b2   : > { %7813 = vst.msk [vmem:[#allocation6 + $0x48] sm:$0xff] %vm7803_vm15, %v7726_v28  ;;  %7572 = vrot.lane.b32.xlu1 %v7479_v59, %s10526_s21 }
 0x9b3   : > { %7570 = vrot.lane.b32.xlu0 %v7478_v13, %s10526_s21 }
 0x9b4   : > { %v7535_v2 = vpop.permute.xlu1 %7534  ;;  %v7344_v26 = vpop.permute.xlu0 %7343  ;;  %v7844_v56 = vld [vmem:[#allocation6 + $0x40] sm:$0xff] }
 0x9b5   : > { %7621 = vst.msk [vmem:[#allocation6 + $0x50] sm:$0xff] %vm7610_vm14, %v7535_v2  ;;  %10277 = vmatprep.mubr.msk.f32.mxu0 %vm7888_vm2, %v7844_v56  ;;  %v8364_v2 = vld [vmem:[#allocation4 + $0x1] sm:$0xff]  ;;  %v14218_v56 = vld [vmem:[#allocation4 + $0x51] sm:$0xff] }
 0x9b6   : > { %7429 = vst.msk [vmem:[#allocation6 + $0x58] sm:$0xff] %vm7417_vm13, %v7344_v26  ;;  %7188 = vrot.lane.b32.xlu1 %v7094_v38, %s10524_s17  ;;  %v8428_v26 = vld [vmem:[#allocation4 + $0x2] sm:$0xff] }
 0x9b7   : > { %7763 = vrot.lane.b32.xlu0 %v7671_v42, %s10527_s25  ;;  %v8332_v42 = vld [vmem:[#allocation4] sm:$0xff] }
 0x9b8   : > { %v7728_v19 = vpop.permute.xlu1 %7727  ;;  %v7537_v63 = vpop.permute.xlu0 %7536 }
 0x9b9   : > { %v7845_v0 = vld [vmem:[#allocation6 + $0x48] sm:$0xff]  ;;  %7814 = vst.msk [vmem:[#allocation6 + $0x50] sm:$0xff] %vm7803_vm15, %v7728_v19  ;;  %v10235_v19 = vpop.f32.mrf.mxu1 }
 0x9ba   : > { %7622 = vst.msk [vmem:[#allocation6 + $0x58] sm:$0xff] %vm7610_vm14, %v7537_v63  ;;  %10278 = vmatmul.mubr.msk.f32.gmra.mxu0 %vm7888_vm2, %v7845_v0  ;;  %7190 = vrot.lane.b32.xlu1 %v7095_v36, %s10524_s17  ;;  %v14130_v36 = vadd.f32 %v14045_v41, %v13957_v55  ;;  %v8396_v63 = vmax.f32 %v8332_v42, %v8364_v2  ;;  %v8492_v0 = vld [vmem:[#allocation4 + $0x18] sm:$0xff] }
 0x9bb   : > { %7765 = vrot.lane.b32.xlu0 %v7672_v39, %s10527_s25  ;;  %v14134_v39 = vadd.f32 %v13964_v37, %v14045_v41  ;;  %v14146_v55 = vadd.f32 %v13978_v53, %v14045_v41  ;;  %v14150_v37 = vadd.f32 %v14045_v41, %v13984_v17  ;;  %v8333_v17 = vld [vmem:[#allocation4 + $0x8] sm:$0xff]  ;;  %v2904_v42 = vpop.f32.mrf.mxu1 }
 0x9bc   : > { %v7346_v1 = vpop.permute.xlu1 %7345  ;;  %v7730_v62 = vpop.permute.xlu0 %7729 }
 0x9bd   : > { %7430 = vst.msk [vmem:[#allocation6 + $0x60] sm:$0xff] %vm7417_vm13, %v7346_v1  ;;  %v14142_v1 = vadd.f32 %v14045_v41, %v13971_v35  ;;  %v14164_v35 = vadd.f32 %v14004_v31, %v14045_v41  ;;  %v8493_v31 = vld [vmem:[#allocation4 + $0x20] sm:$0xff] }
 0x9be   : > { %7815 = vst.msk [vmem:[#allocation6 + $0x58] sm:$0xff] %vm7803_vm15, %v7730_v62  ;;  %7383 = vrot.lane.b32.xlu1 %v7288_v44, %s10525_s23  ;;  %v8556_v44 = vld [vmem:[#allocation4 + $0x19] sm:$0xff]  ;;  %v14152_v62 = vld [vmem:[#allocation4 + $0x30] sm:$0xff] }
 0x9bf   : > { %7381 = vrot.lane.b32.xlu0 %v7287_v3, %s10525_s23  ;;  %v14138_v3 = vld [vmem:[#allocation4 + $0x1a] sm:$0xff]  ;;  %v8398_v8 = vmax.f32 %v8492_v0, %v8556_v44  ;;  %s10528_s23 = smov [#allocation7]  }
 0x9c0   : > { %v7539_v50 = vpop.permute.xlu1 %7538  ;;  %v7348_v51 = vpop.permute.xlu0 %7347  ;;  %v7846_v57 = vld [vmem:[#allocation6 + $0x50] sm:$0xff] }
 0x9c1   : > { %7623 = vst.msk [vmem:[#allocation6 + $0x60] sm:$0xff] %vm7610_vm14, %v7539_v50  ;;  %10280 = vmatprep.mubr.msk.f32.mxu0 %vm7888_vm2, %v7846_v57  ;;  %v8460_v50 = vmax.f32 %v8396_v63, %v8428_v26  ;;  %v8429_v57 = vld [vmem:[#allocation4 + $0xa] sm:$0xff]  ;;  %v14188_v26 = vadd.f32 %v14031_v30, %v14045_v41  ;;  %v14192_v63 = vadd.f32 %v14045_v41, %v14038_v10 }
 0x9c2   : > { %7431 = vst.msk [vmem:[#allocation6 + $0x68] sm:$0xff] %vm7417_vm13, %v7348_v51  ;;  %7576 = vrot.lane.b32.xlu1 %v7481_v16, %s10526_s21  ;;  %v14160_v16 = vadd.f32 %v14045_v41, %v13998_v7  ;;  %v8365_v51 = vld [vmem:[#allocation4 + $0x9] sm:$0xff]  ;;  %v14205_v30 = vadd.f32 %v14045_v41, %v14109_v6 }
 0x9c3   : > { %7574 = vrot.lane.b32.xlu0 %v7480_v33, %s10526_s21  ;;  %v8397_v7 = vmax.f32 %v8333_v17, %v8365_v51  ;;  %v8524_v58 = vmax.f32 %v8460_v50, %v8492_v0  ;;  %v8687_v51 = vld [vmem:[#allocation4 + $0x48] sm:$0xff]  ;;  %s10442_s21 = sshll.u32 %s10528_s23, 4  ;;  %s10443_s21 = int_to_ptr.vmem [resolvable:$false] %s10442_s21 }
 0x9c4   : > { %v7732_v60 = vpop.permute.xlu1 %7731  ;;  %v7541_v59 = vpop.permute.xlu0 %7540 }
 0x9c5   : > { %v7847_v13 = vld [vmem:[#allocation6 + $0x58] sm:$0xff]  ;;  %7816 = vst.msk [vmem:[#allocation6 + $0x60] sm:$0xff] %vm7803_vm15, %v7732_v60  ;;  %v8588_v17 = vmax.f32 %v8524_v58, %v8556_v44  ;;  %v8688_v58 = vld [vmem:[#allocation4 + $0x50] sm:$0xff] }
 0x9c6   : > { %7624 = vst.msk [vmem:[#allocation6 + $0x68] sm:$0xff] %vm7610_vm14, %v7541_v59  ;;  %10281 = vmatmul.mubr.msk.f32.gmra.mxu0 %vm7888_vm2, %v7847_v13  ;;  %7769 = vrot.lane.b32.xlu1 %v7674_v49, %s10527_s25  ;;  %v14168_v49 = vadd.f32 %v14045_v41, %v14011_v24  ;;  %v14176_v60 = vld [vmem:[#allocation4 + $0x22] sm:$0xff]  ;;  %v8462_v59 = vmax.f32 %v8398_v8, %v14138_v3  ;;  %v14194_v8 = vld [vmem:[#allocation4 + $0x31] sm:$0xff] }
 0x9c7   : > { %7767 = vrot.lane.b32.xlu0 %v7673_v12, %s10527_s25  ;;  %v8557_v12 = vld [vmem:[#allocation4 + $0x21] sm:$0xff]  ;;  %v14182_v24 = vadd.f32 %v14045_v41, %v14024_v22  ;;  %v8686_v22 = vld [vmem:[#allocation4 + $0x38] sm:$0xff]  ;;  %v8751_v13 = vld [vmem:[#allocation4 + $0x49] sm:$0xff]  ;;  %s10444_s25 = scalar_lea.vmem %s10443_s21, 8192 }
 0x9c8   : > { %v7350_v53 = vpop.permute.xlu1 %7349  ;;  %v7734_v33 = vpop.permute.xlu0 %7733  ;;  %v8399_v2 = vmax.f32 %v8493_v31, %v8557_v12 }
 0x9c9   : > { %7432 = vst.msk [vmem:[#allocation6 + $0x70] sm:$0xff] %vm7417_vm13, %v7350_v53  ;;  %v8461_v53 = vmax.f32 %v8397_v7, %v8429_v57  ;;  %v14209_v7 = vadd.f32 %v10235_v19, %v14045_v41  ;;  %v8652_v19 = vmax.f32 %v8588_v17, %v14138_v3  ;;  %v14235_v17 = vld [vmem:[#allocation4 + $0x60] sm:$0xff] }
 0x9ca   : > { %7817 = vst.msk [vmem:[#allocation6 + $0x68] sm:$0xff] %vm7803_vm15, %v7734_v33  ;;  %9308 = vrot.lane.b32.xlu1 %v2924_v45, %s10503_s29  ;;  %v14196_v33 = vld [vmem:[#allocation4 + $0x39] sm:$0xff]  ;;  %v8526_v45 = vmax.f32 %v8462_v59, %v14152_v62  ;;  %v8463_v57 = vmax.f32 %v8399_v2, %v14176_v60  ;;  %v14212_v59 = vadd.f32 %v14045_v41, %v2904_v42 }
 0x9cb   : > { %9306 = vrot.lane.b32.xlu0 %v2923_v48, %s10503_s29  ;;  %v14201_v48 = vadd.f32 %v14053_v43, %v14045_v41  ;;  %v8813_v43 = vld [vmem:[#allocation4 + $0x32] sm:$0xff]  ;;  %v8525_v6 = vmax.f32 %v8461_v53, %v8493_v31  ;;  %v8814_v42 = vld [vmem:[#allocation4 + $0x3a] sm:$0xff]  ;;  %v8400_v53 = vmax.f32 %v14152_v62, %v14194_v8  ;;  %v8402_v2 = vmax.f32 %v8687_v51, %v8751_v13 }
 0x9cc   : > { %v7543_v0 = vpop.permute.xlu1 %7542  ;;  %v7352_v50 = vpop.permute.xlu0 %7351  ;;  %v7848_v10 = vld [vmem:[#allocation6 + $0x60] sm:$0xff]  ;;  %v8590_v44 = vmax.f32 %v8526_v45, %v14194_v8  ;;  %v8527_v31 = vmax.f32 %v8463_v57, %v8686_v22  ;;  %v8717_v4 = vmax.f32 %v8652_v19, %v14152_v62  ;;  %v8403_v57 = vmax.f32 %v8688_v58, %v14218_v56 }
 0x9cd   : > { %7625 = vst.msk [vmem:[#allocation6 + $0x70] sm:$0xff] %vm7610_vm14, %v7543_v0  ;;  %10283 = vmatprep.mubr.msk.f32.mxu0 %vm7888_vm2, %v7848_v10  ;;  %v14228_v0 = vld [vmem:[#allocation4 + $0x4a] sm:$0xff]  ;;  %v8589_v45 = vmax.f32 %v8525_v6, %v8557_v12  ;;  %v8401_v10 = vmax.f32 %v8686_v22, %v14196_v33  ;;  %v8464_v3 = vmax.f32 %v8400_v53, %v8813_v43 }
 0x9ce   : > { %7433 = vst.msk [vmem:[#allocation6 + $0x78] sm:$0xff] %vm7417_vm13, %v7352_v50  ;;  %9312 = vrot.lane.b32.xlu1 %v2926_v61, %s10503_s29  ;;  %v8654_v50 = vmax.f32 %v8590_v44, %v8813_v43  ;;  %v8816_v44 = vld [vmem:[#allocation4 + $0x52] sm:$0xff]  ;;  %v8466_v62 = vmax.f32 %v8402_v2, %v14228_v0  ;;  %v8404_v29 = vmax.f32 %v14235_v17, %v8753_v25 }
 0x9cf   : > { %9310 = vrot.lane.b32.xlu0 %v2925_v18, %s10503_s29  ;;  %v8591_v18 = vmax.f32 %v8527_v31, %v14196_v33  ;;  %v8653_v12 = vmax.f32 %v8589_v45, %v14176_v60  ;;  %v8465_v28 = vmax.f32 %v8401_v10, %v8814_v42  ;;  %v8781_v31 = vmax.f32 %v8717_v4, %v14194_v8  ;;  %v8690_v10 = vld [vmem:[#allocation4 + $0x68] sm:$0xff] }
 0x9d0   : > { %v7736_v52 = vpop.permute.xlu1 %7735  ;;  %v7545_v61 = vpop.permute.xlu0 %7544  ;;  %v8719_v6 = vmax.f32 %v8654_v50, %v8687_v51  ;;  %v8528_v53 = vmax.f32 %v8464_v3, %v8687_v51  ;;  %v8530_v2 = vmax.f32 %v8466_v62, %v14235_v17  ;;  %v8467_v54 = vmax.f32 %v8403_v57, %v8816_v44  ;;  %v8754_v8 = vld [vmem:[#allocation4 + $0x69] sm:$0xff] }
 0x9d1   : > { %v7849_v38 = vld [vmem:[#allocation6 + $0x68] sm:$0xff]  ;;  %7818 = vst.msk [vmem:[#allocation6 + $0x70] sm:$0xff] %vm7803_vm15, %v7736_v52  ;;  %v8718_v60 = vmax.f32 %v8653_v12, %v8686_v22  ;;  %v8529_v50 = vmax.f32 %v8465_v28, %v8688_v58  ;;  %v14252_v19 = vmax.f32 %v8781_v31, %v8813_v43  ;;  %v2940_v51 = vmax.f32 %v14146_v55, 0.0  ;;  %v10238_v43 = vpop.f32.mrf.mxu1  ;;  %v8818_v57 = vld [vmem:[#allocation4 + $0x6a] sm:$0xff] }
 0x9d2   : > { %7626 = vst.msk [vmem:[#allocation6 + $0x78] sm:$0xff] %vm7610_vm14, %v7545_v61  ;;  %10284 = vmatmul.mubr.msk.f32.gmra.mxu0 %vm7888_vm2, %v7849_v38  ;;  %9316 = vrot.lane.b32.xlu1 %v2928_v11, %s10503_s29  ;;  %v8655_v38 = vmax.f32 %v8591_v18, %v8814_v42  ;;  %v8783_v45 = vmax.f32 %v8719_v6, %v8751_v13  ;;  %v8755_v31 = vld [vmem:[#allocation4 + $0x79] sm:$0xff] }
 0x9d3   : > { %9314 = vrot.lane.b32.xlu0 %v2927_v14, %s10503_s29  ;;  %v8592_v11 = vmax.f32 %v8528_v53, %v8751_v13  ;;  %v8782_v27 = vmax.f32 %v8718_v60, %v14196_v33  ;;  %v8593_v28 = vmax.f32 %v8529_v50, %v14218_v56  ;;  %v8594_v22 = vmax.f32 %v8530_v2, %v8753_v25  ;;  %v8692_v60 = vld [vmem:[#allocation4 + $0x80] sm:$0xff] }
 0x9d4   : > { %v7354_v52 = vpop.permute.xlu1 %7353  ;;  %v7738_v61 = vpop.permute.xlu0 %7737  ;;  %v8720_v21 = vmax.f32 %v8655_v38, %v8688_v58  ;;  %v8847_v14 = vmax.f32 %v8783_v45, %v14228_v0  ;;  %v8817_v58 = vld [vmem:[#allocation4 + $0x62] sm:$0xff]  ;;  %v8531_v4 = vmax.f32 %v8467_v54, %v8690_v10  ;;  %v8405_v38 = vmax.f32 %v8690_v10, %v8754_v8 }
 0x9d5   : > { %7434 = vst.msk [vmem:[#allocation6 + $0x80] sm:$0xff] %vm7417_vm13, %v7354_v52  ;;  %v8656_v33 = vmax.f32 %v8592_v11, %v14228_v0  ;;  %v14268_v18 = vmax.f32 %v8782_v27, %v8814_v42  ;;  %v8657_v3 = vmax.f32 %v8593_v28, %v8816_v44  ;;  %v8658_v12 = vmax.f32 %v8594_v22, %v8817_v58  ;;  %v8756_v45 = vld [vmem:[#allocation4 + $0x81] sm:$0xff]  ;;  %v8693_v22 = vld [vmem:[#allocation4 + $0x90] sm:$0xff] }
 0x9d6   : > { %7819 = vst.msk [vmem:[#allocation6 + $0x78] sm:$0xff] %vm7803_vm15, %v7738_v61  ;;  %9320 = vrot.lane.b32.xlu1 %v2930_v47, %s10503_s29  ;;  %v8784_v13 = vmax.f32 %v8720_v21, %v14218_v56  ;;  %10318 = vmatprep.mubr.msk.f32.mxu1 %vm371_vm1, %v8847_v14  ;;  %v8691_v56 = vld [vmem:[#allocation4 + $0x78] sm:$0xff]  ;;  %v8595_v0 = vmax.f32 %v8531_v4, %v8754_v8  ;;  %v15031_v50 = vmax.f32 %v14087_v5, 0.0  ;;  %v15032_v2 = vmax.f32 %v14091_v9, 0.0  ;;  %v8820_v14 = vld [vmem:[#allocation4 + $0x82] sm:$0xff] }
 0x9d7   : > { %9318 = vrot.lane.b32.xlu0 %v2929_v32, %s10503_s29  ;;  %v8721_v32 = vmax.f32 %v8656_v33, %v14235_v17  ;;  %v14274_v54 = vadd.f32 %v10238_v43, %v14045_v41  ;;  %v8722_v42 = vmax.f32 %v8657_v3, %v8690_v10  ;;  %v8723_v53 = vmax.f32 %v8658_v12, %v8691_v56  ;;  %v8819_v61 = vld [vmem:[#allocation4 + $0x7a] sm:$0xff]  ;;  %v14287_v43 = vld [vmem:[#allocation4 + $0x91] sm:$0xff] }
 0x9d8   : > { %v7547_v47 = vpop.permute.xlu1 %7546  ;;  %v7356_v6 = vpop.permute.xlu0 %7355  ;;  %v7850_v62 = vld [vmem:[#allocation6 + $0x70] sm:$0xff]  ;;  %v8848_v40 = vmax.f32 %v8784_v13, %v8816_v44  ;;  %v8468_v44 = vmax.f32 %v8404_v29, %v8817_v58  ;;  %v2939_v17 = vmax.f32 %v14150_v37, 0.0  ;;  %v8659_v21 = vmax.f32 %v8595_v0, %v8818_v57  ;;  %v14366_v37 = vld [vmem:[#allocation4 + $0xf1] sm:$0xff] }
 0x9d9   : > { %7627 = vst.msk [vmem:[#allocation6 + $0x80] sm:$0xff] %vm7610_vm14, %v7547_v47  ;;  %10286 = vmatprep.mubr.msk.f32.mxu0 %vm7888_vm2, %v7850_v62  ;;  %v8785_v52 = vmax.f32 %v8721_v32, %v8753_v25  ;;  %v8469_v11 = vmax.f32 %v8405_v38, %v8818_v57  ;;  %v8786_v10 = vmax.f32 %v8722_v42, %v8754_v8  ;;  %v8694_v25 = vld [vmem:[#allocation4 + $0x98] sm:$0xff]  ;;  %v8695_v32 = vld [vmem:[#allocation4 + $0xa8] sm:$0xff]  ;;  %v15033_v0 = vmax.f32 %v14095_v34, 0.0 }
 0x9da   : > { %7435 = vst.msk [vmem:[#allocation6 + $0x88] sm:$0xff] %vm7417_vm13, %v7356_v6  ;;  %9324 = vrot.lane.b32.xlu1 %v15031_v50, %s10503_s29  ;;  %10319 = vmatmul.mubr.msk.f32.vlgmr.msra.gmra.mxu1 %vm371_vm1, %v8848_v40  ;;  %v8787_v27 = vmax.f32 %v8723_v53, %v8755_v31  ;;  %v8532_v28 = vmax.f32 %v8468_v44, %v8691_v56  ;;  %v14289_v29 = vld [vmem:[#allocation4 + $0x99] sm:$0xff]  ;;  %v15034_v38 = vmax.f32 %v14099_v15, 0.0 }
 0x9db   : > { %9322 = vrot.lane.b32.xlu0 %v15032_v2, %s10503_s29  ;;  %v8406_v13 = vmax.f32 %v8691_v56, %v8755_v31  ;;  %v8849_v3 = vmax.f32 %v8785_v52, %v8817_v58  ;;  %v8724_v9 = vmax.f32 %v8659_v21, %v8692_v60  ;;  %v8533_v12 = vmax.f32 %v8469_v11, %v8692_v60  ;;  %v14294_v56 = vld [vmem:[#allocation4 + $0xa9] sm:$0xff]  ;;  %v8821_v53 = vld [vmem:[#allocation4 + $0x92] sm:$0xff] }
 0x9dc   : > { %v7740_v5 = vpop.permute.xlu1 %7739  ;;  %v7549_v33 = vpop.permute.xlu0 %7548  ;;  %v8407_v47 = vmax.f32 %v8692_v60, %v8756_v45  ;;  %v8850_v8 = vmax.f32 %v8786_v10, %v8818_v57  ;;  %v8851_v6 = vmax.f32 %v8787_v27, %v8819_v61  ;;  %v8596_v62 = vmax.f32 %v8532_v28, %v8755_v31  ;;  %v8822_v57 = vld [vmem:[#allocation4 + $0x9a] sm:$0xff]  ;;  %v14304_v2 = vld [vmem:[#allocation4 + $0xaa] sm:$0xff] }
 0x9dd   : > { %v7851_v4 = vld [vmem:[#allocation6 + $0x78] sm:$0xff]  ;;  %7820 = vst.msk [vmem:[#allocation6 + $0x80] sm:$0xff] %vm7803_vm15, %v7740_v5  ;;  %v8470_v40 = vmax.f32 %v8406_v13, %v8819_v61  ;;  %v2942_v58 = vmax.f32 %v14156_v23, 0.0  ;;  %v8788_v42 = vmax.f32 %v8724_v9, %v8756_v45  ;;  %v8597_v60 = vmax.f32 %v8533_v12, %v8756_v45  ;;  %10321 = vmatprep.mubr.msk.f32.mxu1 %vm371_vm1, %v8849_v3  ;;  %v8696_v45 = vld [vmem:[#allocation4 + $0xb0] sm:$0xff] }
 0x9de   : > { %7628 = vst.msk [vmem:[#allocation6 + $0x88] sm:$0xff] %vm7610_vm14, %v7549_v33  ;;  %10287 = vmatmul.mubr.msk.f32.gmra.mxu0 %vm7888_vm2, %v7851_v4  ;;  %9328 = vrot.lane.b32.xlu1 %v15033_v0, %s10503_s29  ;;  %v8471_v44 = vmax.f32 %v8407_v47, %v8820_v14  ;;  %v8660_v31 = vmax.f32 %v8596_v62, %v8819_v61  ;;  %v14314_v5 = vld [vmem:[#allocation4 + $0xb1] sm:$0xff]  ;;  %v14316_v4 = vld [vmem:[#allocation4 + $0xc0] sm:$0xff]  ;;  %v15035_v9 = vmax.f32 %v14107_v20, 0.0  ;;  %v15036_v12 = vmax.f32 %v14130_v36, 0.0 }
 0x9df   : > { %9326 = vrot.lane.b32.xlu0 %v15034_v38, %s10503_s29  ;;  %v8534_v50 = vmax.f32 %v8470_v40, %v8693_v22  ;;  %v8408_v52 = vmax.f32 %v8693_v22, %v14287_v43  ;;  %v8409_v34 = vmax.f32 %v8694_v25, %v14289_v29  ;;  %10322 = vmatmul.mubr.msk.f32.gmra.mxu1 %vm371_vm1, %v8850_v8  ;;  %v8824_v36 = vld [vmem:[#allocation4 + $0xb2] sm:$0xff] }
 0x9e0   : > { %v7358_v21 = vpop.permute.xlu1 %7357  ;;  %v7742_v11 = vpop.permute.xlu0 %7741  ;;  %v8852_v15 = vmax.f32 %v8788_v42, %v8820_v14  ;;  %v8661_v10 = vmax.f32 %v8597_v60, %v8820_v14  ;;  %v8535_v27 = vmax.f32 %v8471_v44, %v8694_v25  ;;  %v8410_v28 = vmax.f32 %v8695_v32, %v14294_v56  ;;  %10324 = vmatprep.mubr.msk.f32.mxu1 %vm371_vm1, %v8851_v6 }
 0x9e1   : > { %7436 = vst.msk [vmem:[#allocation6 + $0x90] sm:$0xff] %vm7417_vm13, %v7358_v21  ;;  %v8725_v61 = vmax.f32 %v8660_v31, %v8693_v22  ;;  %v8598_v13 = vmax.f32 %v8534_v50, %v14287_v43  ;;  %v8472_v33 = vmax.f32 %v8408_v52, %v8821_v53  ;;  %v8473_v3 = vmax.f32 %v8409_v34, %v8822_v57  ;;  %v8761_v34 = vld [vmem:[#allocation4 + $0xc1] sm:$0xff] }
 0x9e2   : > { %7821 = vst.msk [vmem:[#allocation6 + $0x88] sm:$0xff] %vm7803_vm15, %v7742_v11  ;;  %v2941_v14 = vmax.f32 %v14160_v16, 0.0  ;;  %9332 = vrot.lane.b32.xlu1 %v15035_v9, %s10503_s29  ;;  %v8726_v47 = vmax.f32 %v8661_v10, %v8694_v25  ;;  %v8599_v22 = vmax.f32 %v8535_v27, %v14289_v29  ;;  %v8474_v8 = vmax.f32 %v8410_v28, %v14304_v2  ;;  %v8762_v11 = vld [vmem:[#allocation4 + $0xc9] sm:$0xff] }
 0x9e3   : > { %9330 = vrot.lane.b32.xlu0 %v15036_v12, %s10503_s29  ;;  %v8789_v6 = vmax.f32 %v8725_v61, %v14287_v43  ;;  %v8662_v62 = vmax.f32 %v8598_v13, %v8821_v53  ;;  %v8536_v40 = vmax.f32 %v8472_v33, %v8695_v32  ;;  %v8537_v0 = vmax.f32 %v8473_v3, %v8696_v45  ;;  %v8825_v33 = vld [vmem:[#allocation4 + $0xc2] sm:$0xff] }
 0x9e4   : > { %v7551_v38 = vpop.permute.xlu1 %7550  ;;  %v7360_v42 = vpop.permute.xlu0 %7359  ;;  %v7852_v60 = vld [vmem:[#allocation6 + $0x80] sm:$0xff]  ;;  %10325 = vmatmul.mubr.msk.f32.gmra.mxu1 %vm371_vm1, %v8852_v15  ;;  %v8790_v20 = vmax.f32 %v8726_v47, %v14289_v29  ;;  %v8663_v44 = vmax.f32 %v8599_v22, %v8822_v57  ;;  %v8538_v25 = vmax.f32 %v8474_v8, %v14316_v4  ;;  %v8411_v31 = vmax.f32 %v8696_v45, %v14314_v5  ;;  %v8698_v29 = vld [vmem:[#allocation4 + $0xc8] sm:$0xff] }
 0x9e5   : > { %7629 = vst.msk [vmem:[#allocation6 + $0x90] sm:$0xff] %vm7610_vm14, %v7551_v38  ;;  %10289 = vmatprep.mubr.msk.f32.mxu0 %vm7888_vm2, %v7852_v60  ;;  %v8853_v43 = vmax.f32 %v8789_v6, %v8821_v53  ;;  %v8727_v50 = vmax.f32 %v8662_v62, %v8695_v32  ;;  %v8600_v52 = vmax.f32 %v8536_v40, %v14294_v56  ;;  %v2944_v15 = vmax.f32 %v14164_v35, 0.0  ;;  %v8826_v22 = vld [vmem:[#allocation4 + $0xca] sm:$0xff] }
 0x9e6   : > { %7437 = vst.msk [vmem:[#allocation6 + $0x98] sm:$0xff] %vm7417_vm13, %v7360_v42  ;;  %v8601_v21 = vmax.f32 %v8537_v0, %v14314_v5  ;;  %v15037_v10 = vmax.f32 %v14134_v39, 0.0  ;;  %v15038_v27 = vmax.f32 %v14142_v1, 0.0  ;;  %v8854_v28 = vmax.f32 %v8790_v20, %v8822_v57  ;;  %v8763_v0 = vld [vmem:[#allocation4 + $0xd9] sm:$0xff]  ;;  %v14355_v42 = vld [vmem:[#allocation4 + $0xe1] sm:$0xff] }
 0x9e7   : > { %v8728_v53 = vmax.f32 %v8663_v44, %v8696_v45  ;;  %v8602_v32 = vmax.f32 %v8538_v25, %v8761_v34  ;;  %10327 = vmatprep.mubr.msk.f32.mxu1 %vm371_vm1, %v8853_v43  ;;  %v8791_v61 = vmax.f32 %v8727_v50, %v14294_v56  ;;  %v8664_v13 = vmax.f32 %v8600_v52, %v14304_v2  ;;  %v8699_v45 = vld [vmem:[#allocation4 + $0xd8] sm:$0xff] }
 0x9e8   : > { %9336 = vrot.lane.b32.xlu1 %v15037_v10, %s10503_s29  ;;  %9334 = vrot.lane.b32.xlu0 %v15038_v27, %s10503_s29  ;;  %v8665_v3 = vmax.f32 %v8601_v21, %v8824_v36  ;;  %v8475_v9 = vmax.f32 %v8411_v31, %v8824_v36  ;;  %v7744_v12 = vpop.permute.xlu1 %7743  ;;  %v7553_v47 = vpop.permute.xlu0 %7552  ;;  %v8412_v8 = vmax.f32 %v14316_v4, %v8761_v34  ;;  %v2943_v60 = vmax.f32 %v14168_v49, 0.0  ;;  %v8827_v31 = vld [vmem:[#allocation4 + $0xda] sm:$0xff]  ;;  %v8701_v10 = vld [vmem:[#allocation4 + $0xf0] sm:$0xff] }
 0x9e9   : > { %v7853_v39 = vld [vmem:[#allocation6 + $0x88] sm:$0xff]  ;;  %10328 = vmatmul.mubr.msk.f32.gmra.mxu1 %vm371_vm1, %v8854_v28  ;;  %v8792_v1 = vmax.f32 %v8728_v53, %v14314_v5  ;;  %v8666_v57 = vmax.f32 %v8602_v32, %v8825_v33  ;;  %v8413_v6 = vmax.f32 %v8698_v29, %v8762_v11  ;;  %7822 = vst.msk [vmem:[#allocation6 + $0x90] sm:$0xff] %vm7803_vm15, %v7744_v12  ;;  %v8700_v5 = vld [vmem:[#allocation4 + $0xe0] sm:$0xff]  ;;  %v2914_v27 = vpop.f32.mrf.mxu1 }
 0x9ea   : > { %7630 = vst.msk [vmem:[#allocation6 + $0x98] sm:$0xff] %vm7610_vm14, %v7553_v47  ;;  %10290 = vmatmul.mubr.msk.f32.gmra.mxu0 %vm7888_vm2, %v7853_v39  ;;  %v8855_v56 = vmax.f32 %v8791_v61, %v14304_v2  ;;  %v8729_v62 = vmax.f32 %v8664_v13, %v14316_v4  ;;  %v8730_v40 = vmax.f32 %v8665_v3, %v8698_v29  ;;  %v8702_v32 = vld [vmem:[#allocation4 + $0xf8] sm:$0xff]  ;;  %v2946_v13 = vmax.f32 %v14172_v46, 0.0 }
 0x9eb   : > { %v8539_v38 = vmax.f32 %v8475_v9, %v8698_v29  ;;  %v8856_v20 = vmax.f32 %v8792_v1, %v8824_v36  ;;  %v8731_v2 = vmax.f32 %v8666_v57, %v8699_v45  ;;  %v8476_v44 = vmax.f32 %v8412_v8, %v8825_v33  ;;  %v14371_v61 = vld [vmem:[#allocation4 + $0xf9] sm:$0xff] }
 0x9ec   : > { %9340 = vrot.lane.b32.xlu1 %v2940_v51, %s10503_s29  ;;  %9338 = vrot.lane.b32.xlu0 %v2939_v17, %s10503_s29  ;;  %v8793_v4 = vmax.f32 %v8729_v62, %v8761_v34  ;;  %v8794_v25 = vmax.f32 %v8730_v40, %v8762_v11  ;;  %v8477_v50 = vmax.f32 %v8413_v6, %v8826_v22  ;;  %v7362_v52 = vpop.permute.xlu1 %7361  ;;  %v7746_v21 = vpop.permute.xlu0 %7745  ;;  %v8828_v51 = vld [vmem:[#allocation4 + $0xe2] sm:$0xff]  ;;  %v8829_v47 = vld [vmem:[#allocation4 + $0xf2] sm:$0xff]  ;;  %v2945_v6 = vmax.f32 %v14182_v24, 0.0 }
 0x9ed   : > { %10330 = vmatprep.mubr.msk.f32.mxu1 %vm371_vm1, %v8855_v56  ;;  %v8603_v43 = vmax.f32 %v8539_v38, %v8762_v11  ;;  %v8795_v55 = vmax.f32 %v8731_v2, %v8763_v0  ;;  %v8540_v29 = vmax.f32 %v8476_v44, %v8699_v45  ;;  %v8414_v17 = vmax.f32 %v8699_v45, %v8763_v0  ;;  %v8703_v62 = vld [vmem:[#allocation4 + $0x108] sm:$0xff] }
 0x9ee   : > { %10331 = vmatmul.mubr.msk.f32.gmra.mxu1 %vm371_vm1, %v8856_v20  ;;  %v8415_v36 = vmax.f32 %v8700_v5, %v14355_v42  ;;  %7438 = vst.msk [vmem:[#allocation6 + $0xa0] sm:$0xff] %vm7417_vm13, %v7362_v52  ;;  %v8857_v34 = vmax.f32 %v8793_v4, %v8825_v33  ;;  %v8858_v11 = vmax.f32 %v8794_v25, %v8826_v22  ;;  %v14394_v40 = vld [vmem:[#allocation4 + $0x109] sm:$0xff]  ;;  %v2948_v38 = vmax.f32 %v14188_v26, 0.0 }
 0x9ef   : > { %7823 = vst.msk [vmem:[#allocation6 + $0x98] sm:$0xff] %vm7803_vm15, %v7746_v21  ;;  %v8667_v28 = vmax.f32 %v8603_v43, %v8826_v22  ;;  %v8541_v53 = vmax.f32 %v8477_v50, %v8700_v5  ;;  %v8859_v3 = vmax.f32 %v8795_v55, %v8827_v31  ;;  %v8604_v9 = vmax.f32 %v8540_v29, %v8763_v0  ;;  %v8704_v20 = vld [vmem:[#allocation4 + $0x110] sm:$0xff]  ;;  %v8705_v29 = vld [vmem:[#allocation4 + $0x120] sm:$0xff] }
 0x9f0   : > { %9344 = vrot.lane.b32.xlu1 %v2942_v58, %s10503_s29  ;;  %9342 = vrot.lane.b32.xlu0 %v2941_v14, %s10503_s29  ;;  %v8478_v12 = vmax.f32 %v8414_v17, %v8827_v31  ;;  %v8479_v1 = vmax.f32 %v8415_v36, %v8828_v51  ;;  %v8416_v46 = vmax.f32 %v8701_v10, %v14366_v37  ;;  %v7555_v23 = vpop.permute.xlu1 %7554  ;;  %v7364_v58 = vpop.permute.xlu0 %7363  ;;  %v7854_v57 = vld [vmem:[#allocation6 + $0x90] sm:$0xff]  ;;  %v8831_v50 = vld [vmem:[#allocation4 + $0x10a] sm:$0xff]  ;;  %v2950_v17 = vmax.f32 %v14201_v48, 0.0 }
 0x9f1   : > { %10333 = vmatprep.mubr.msk.f32.mxu1 %vm371_vm1, %v8857_v34  ;;  %v8732_v33 = vmax.f32 %v8667_v28, %v8700_v5  ;;  %v8605_v39 = vmax.f32 %v8541_v53, %v14355_v42  ;;  %v14384_v22 = vadd.f32 %v14045_v41, %v2914_v27  ;;  %v8668_v16 = vmax.f32 %v8604_v9, %v8827_v31  ;;  %v8830_v14 = vld [vmem:[#allocation4 + $0xfa] sm:$0xff]  ;;  %v8706_v34 = vld [vmem:[#allocation4 + $0x128] sm:$0xff] }
 0x9f2   : > { %10334 = vmatmul.mubr.msk.f32.gmra.mxu1 %vm371_vm1, %v8858_v11  ;;  %v8542_v45 = vmax.f32 %v8478_v12, %v8701_v10  ;;  %v8417_v8 = vmax.f32 %v8702_v32, %v14371_v61  ;;  %7631 = vst.msk [vmem:[#allocation6 + $0xa0] sm:$0xff] %vm7610_vm14, %v7555_v23  ;;  %10292 = vmatprep.mubr.msk.f32.mxu0 %vm7888_vm2, %v7854_v57  ;;  %v8770_v11 = vld [vmem:[#allocation4 + $0x129] sm:$0xff]  ;;  %v8707_v57 = vld [vmem:[#allocation4 + $0x138] sm:$0xff] }
 0x9f3   : > { %7439 = vst.msk [vmem:[#allocation6 + $0xa8] sm:$0xff] %vm7417_vm13, %v7364_v58  ;;  %10336 = vmatprep.mubr.msk.f32.mxu1 %vm371_vm1, %v8859_v3  ;;  %v8796_v41 = vmax.f32 %v8732_v33, %v14355_v42  ;;  %v8669_v56 = vmax.f32 %v8605_v39, %v8828_v51  ;;  %v8543_v0 = vmax.f32 %v8479_v1, %v8702_v32  ;;  %v8833_v33 = vld [vmem:[#allocation4 + $0x122] sm:$0xff]  ;;  %v14425_v23 = vld [vmem:[#allocation4 + $0x12a] sm:$0xff] }
 0x9f4   : > { %9348 = vrot.lane.b32.xlu1 %v2944_v15, %s10503_s29  ;;  %9346 = vrot.lane.b32.xlu0 %v2943_v60, %s10503_s29  ;;  %v8733_v24 = vmax.f32 %v8668_v16, %v8701_v10  ;;  %v8606_v5 = vmax.f32 %v8542_v45, %v14366_v37  ;;  %v8480_v42 = vmax.f32 %v8416_v46, %v8829_v47  ;;  %v7748_v31 = vpop.permute.xlu1 %7747  ;;  %v7557_v26 = vpop.permute.xlu0 %7556  ;;  %v2947_v60 = vmax.f32 %v14192_v63, 0.0  ;;  %v14413_v10 = vld [vmem:[#allocation4 + $0x121] sm:$0xff]  ;;  %v14427_v16 = vld [vmem:[#allocation4 + $0x139] sm:$0xff] }
 0x9f5   : > { %v8860_v2 = vmax.f32 %v8796_v41, %v8828_v51  ;;  %v8734_v44 = vmax.f32 %v8669_v56, %v8702_v32  ;;  %v8607_v4 = vmax.f32 %v8543_v0, %v14371_v61  ;;  %v8481_v25 = vmax.f32 %v8417_v8, %v8830_v14  ;;  %7824 = vst.msk [vmem:[#allocation6 + $0xa0] sm:$0xff] %vm7803_vm15, %v7748_v31  ;;  %v8768_v51 = vld [vmem:[#allocation4 + $0x111] sm:$0xff]  ;;  %v8708_v0 = vld [vmem:[#allocation4 + $0x140] sm:$0xff] }
 0x9f6   : > { %v7855_v43 = vld [vmem:[#allocation6 + $0x98] sm:$0xff]  ;;  %v8797_v35 = vmax.f32 %v8733_v24, %v14366_v37  ;;  %v8670_v15 = vmax.f32 %v8606_v5, %v8829_v47  ;;  %v8544_v52 = vmax.f32 %v8480_v42, %v8703_v62  ;;  %v8418_v49 = vmax.f32 %v8703_v62, %v14394_v40  ;;  %7632 = vst.msk [vmem:[#allocation6 + $0xa8] sm:$0xff] %vm7610_vm14, %v7557_v26  ;;  %v8832_v32 = vld [vmem:[#allocation4 + $0x112] sm:$0xff] }
 0x9f7   : > { %10293 = vmatmul.mubr.msk.f32.gmra.mxu0 %vm7888_vm2, %v7855_v43  ;;  %10337 = vmatmul.mubr.msk.f32.gmra.mxu1 %vm371_vm1, %v8860_v2  ;;  %v8798_v21 = vmax.f32 %v8734_v44, %v14371_v61  ;;  %v8671_v55 = vmax.f32 %v8607_v4, %v8830_v14  ;;  %v8545_v37 = vmax.f32 %v8481_v25, %v8704_v20  ;;  %v2949_v45 = vmax.f32 %v14205_v30, 0.0  ;;  %v8835_v2 = vld [vmem:[#allocation4 + $0x13a] sm:$0xff] }
 0x9f8   : > { %9352 = vrot.lane.b32.xlu1 %v2946_v13, %s10503_s29  ;;  %9350 = vrot.lane.b32.xlu0 %v2945_v6, %s10503_s29  ;;  %v8861_v63 = vmax.f32 %v8797_v35, %v8829_v47  ;;  %v8735_v36 = vmax.f32 %v8670_v15, %v8703_v62  ;;  %v8608_v27 = vmax.f32 %v8544_v52, %v14394_v40  ;;  %v7366_v9 = vpop.permute.xlu1 %7365  ;;  %v7750_v12 = vpop.permute.xlu0 %7749  ;;  %v2952_v25 = vmax.f32 %v14209_v7, 0.0  ;;  %v14442_v43 = vld [vmem:[#allocation4 + $0x141] sm:$0xff]  ;;  %v8709_v15 = vld [vmem:[#allocation4 + $0x150] sm:$0xff] }
 0x9f9   : > { %v8862_v28 = vmax.f32 %v8798_v21, %v8830_v14  ;;  %v8736_v53 = vmax.f32 %v8671_v55, %v8704_v20  ;;  %v8609_v61 = vmax.f32 %v8545_v37, %v8768_v51  ;;  %v8482_v3 = vmax.f32 %v8418_v49, %v8831_v50  ;;  %7440 = vst.msk [vmem:[#allocation6 + $0xb0] sm:$0xff] %vm7417_vm13, %v7366_v9 }
 0x9fa   : > { %10339 = vmatprep.mubr.msk.f32.mxu1 %vm371_vm1, %v8861_v63  ;;  %v8799_v48 = vmax.f32 %v8735_v36, %v14394_v40  ;;  %v8672_v13 = vmax.f32 %v8608_v27, %v8831_v50  ;;  %v8419_v39 = vmax.f32 %v8704_v20, %v8768_v51  ;;  %v8420_v47 = vmax.f32 %v8705_v29, %v14413_v10 }
 0x9fb   : > { %7825 = vst.msk [vmem:[#allocation6 + $0xa8] sm:$0xff] %vm7803_vm15, %v7750_v12  ;;  %10340 = vmatmul.mubr.msk.f32.gmra.mxu1 %vm371_vm1, %v8862_v28  ;;  %v8800_v1 = vmax.f32 %v8736_v53, %v8768_v51  ;;  %v8673_v46 = vmax.f32 %v8609_v61, %v8832_v32  ;;  %v8546_v58 = vmax.f32 %v8482_v3, %v8705_v29  ;;  %v2951_v52 = vmax.f32 %v14212_v59, 0.0  ;;  %v8836_v51 = vld [vmem:[#allocation4 + $0x142] sm:$0xff]  ;;  %v8710_v61 = vld [vmem:[#allocation4 + $0x158] sm:$0xff] }
 0x9fc   : > { %v8421_v14 = vmax.f32 %v8706_v34, %v8770_v11  ;;  %9356 = vrot.lane.b32.xlu1 %v2948_v38, %s10503_s29  ;;  %9354 = vrot.lane.b32.xlu0 %v2947_v60, %s10503_s29  ;;  %v8863_v8 = vmax.f32 %v8799_v48, %v8831_v50  ;;  %v8737_v6 = vmax.f32 %v8672_v13, %v8705_v29  ;;  %v7559_v5 = vpop.permute.xlu1 %7558  ;;  %v7856_v42 = vld [vmem:[#allocation6 + $0xa0] sm:$0xff]  ;;  %v2954_v28 = vmax.f32 %v14274_v54, 0.0  ;;  %v8774_v3 = vld [vmem:[#allocation4 + $0x159] sm:$0xff]  ;;  %v8711_v13 = vld [vmem:[#allocation4 + $0x168] sm:$0xff] }
 0x9fd   : > { %v8483_v41 = vmax.f32 %v8419_v39, %v8832_v32  ;;  %v8864_v56 = vmax.f32 %v8800_v1, %v8832_v32  ;;  %v8738_v62 = vmax.f32 %v8673_v46, %v8706_v34  ;;  %v8610_v40 = vmax.f32 %v8546_v58, %v14413_v10  ;;  %v7368_v20 = vpop.permute.xlu0 %7367  ;;  %7633 = vst.msk [vmem:[#allocation6 + $0xb0] sm:$0xff] %vm7610_vm14, %v7559_v5  ;;  %v14444_v50 = vld [vmem:[#allocation4 + $0x151] sm:$0xff] }
 0x9fe   : > { %v8484_v24 = vmax.f32 %v8420_v47, %v8833_v33  ;;  %10342 = vmatprep.mubr.msk.f32.mxu1 %vm371_vm1, %v8863_v8  ;;  %v8801_v30 = vmax.f32 %v8737_v6, %v14413_v10  ;;  %v8485_v44 = vmax.f32 %v8421_v14, %v14425_v23  ;;  %v8422_v4 = vmax.f32 %v8707_v57, %v14427_v16 }
 0x9ff   : > { %v8547_v38 = vmax.f32 %v8483_v41, %v8706_v34  ;;  %7441 = vst.msk [vmem:[#allocation6 + $0xb8] sm:$0xff] %vm7417_vm13, %v7368_v20  ;;  %10295 = vmatprep.mubr.msk.f32.mxu0 %vm7888_vm2, %v7856_v42  ;;  %10343 = vmatmul.mubr.msk.f32.gmra.mxu1 %vm371_vm1, %v8864_v56  ;;  %v8802_v31 = vmax.f32 %v8738_v62, %v8770_v11  ;;  %v2953_v12 = vmax.f32 %v14384_v22, 0.0  ;;  %v8838_v22 = vld [vmem:[#allocation4 + $0x15a] sm:$0xff]  ;;  %v8839_v56 = vld [vmem:[#allocation4 + $0x16a] sm:$0xff] }
 0xa00   : > { %v8674_v26 = vmax.f32 %v8610_v40, %v8833_v33  ;;  %v8548_v35 = vmax.f32 %v8484_v24, %v8707_v57  ;;  %9360 = vrot.lane.b32.xlu1 %v2950_v17, %s10503_s29  ;;  %9358 = vrot.lane.b32.xlu0 %v2949_v45, %s10503_s29  ;;  %v8865_v7 = vmax.f32 %v8801_v30, %v8833_v33  ;;  %v7752_v37 = vpop.permute.xlu1 %7751  ;;  %v8837_v17 = vld [vmem:[#allocation4 + $0x152] sm:$0xff]  ;;  %v8775_v33 = vld [vmem:[#allocation4 + $0x169] sm:$0xff] }
 0xa01   : > { %v8611_v49 = vmax.f32 %v8547_v38, %v8770_v11  ;;  %v8549_v60 = vmax.f32 %v8485_v44, %v8708_v0  ;;  %v8866_v21 = vmax.f32 %v8802_v31, %v14425_v23  ;;  %v8486_v10 = vmax.f32 %v8422_v4, %v8835_v2  ;;  %v7561_v63 = vpop.permute.xlu0 %7560  ;;  %7826 = vst.msk [vmem:[#allocation6 + $0xb0] sm:$0xff] %vm7803_vm15, %v7752_v37  ;;  %v8712_v62 = vld [vmem:[#allocation4 + $0x170] sm:$0xff]  ;;  %v8713_v4 = vld [vmem:[#allocation4 + $0x180] sm:$0xff] }
 0xa02   : > { %v8739_v55 = vmax.f32 %v8674_v26, %v8707_v57  ;;  %v8612_v29 = vmax.f32 %v8548_v35, %v14427_v16  ;;  %v7857_v36 = vld [vmem:[#allocation6 + $0xa8] sm:$0xff]  ;;  %10345 = vmatprep.mubr.msk.f32.mxu1 %vm371_vm1, %v8865_v7  ;;  %v8423_v34 = vmax.f32 %v8708_v0, %v14442_v43  ;;  %v8424_v11 = vmax.f32 %v8709_v15, %v14444_v50 }
 0xa03   : > { %v8675_v59 = vmax.f32 %v8611_v49, %v14425_v23  ;;  %v8613_v27 = vmax.f32 %v8549_v60, %v14442_v43  ;;  %7634 = vst.msk [vmem:[#allocation6 + $0xb8] sm:$0xff] %vm7610_vm14, %v7561_v63  ;;  %10296 = vmatmul.mubr.msk.f32.gmra.mxu0 %vm7888_vm2, %v7857_v36  ;;  %10346 = vmatmul.mubr.msk.f32.gmra.mxu1 %vm371_vm1, %v8866_v21  ;;  %v8776_v40 = vld [vmem:[#allocation4 + $0x171] sm:$0xff]  ;;  %v8777_v60 = vld [vmem:[#allocation4 + $0x181] sm:$0xff] }
 0xa04   : > { %v8803_v53 = vmax.f32 %v8739_v55, %v14427_v16  ;;  %v8676_v32 = vmax.f32 %v8612_v29, %v8835_v2  ;;  %v8550_v9 = vmax.f32 %v8486_v10, %v8709_v15  ;;  %9364 = vrot.lane.b32.xlu1 %v2952_v25, %s10503_s29  ;;  %9362 = vrot.lane.b32.xlu0 %v2951_v52, %s10503_s29  ;;  %v7370_v58 = vpop.permute.xlu1 %7369  ;;  %v8840_v38 = vld [vmem:[#allocation4 + $0x172] sm:$0xff]  ;;  %v8714_v55 = vld [vmem:[#allocation4 + $0x188] sm:$0xff] }
 0xa05   : > { %v8740_v54 = vmax.f32 %v8675_v59, %v8708_v0  ;;  %v8677_v48 = vmax.f32 %v8613_v27, %v8836_v51  ;;  %v8487_v39 = vmax.f32 %v8423_v34, %v8836_v51  ;;  %v8488_v23 = vmax.f32 %v8424_v11, %v8837_v17  ;;  %v7754_v57 = vpop.permute.xlu0 %7753  ;;  %7442 = vst.msk [vmem:[#allocation6 + $0xc0] sm:$0xff] %vm7417_vm13, %v7370_v58  ;;  %v8841_v36 = vld [vmem:[#allocation4 + $0x182] sm:$0xff] }
 0xa06   : > { %v8867_v47 = vmax.f32 %v8803_v53, %v8835_v2  ;;  %v8741_v1 = vmax.f32 %v8676_v32, %v8709_v15  ;;  %v8614_v46 = vmax.f32 %v8550_v9, %v14444_v50  ;;  %v8425_v8 = vmax.f32 %v8710_v61, %v8774_v3  ;;  %7827 = vst.msk [vmem:[#allocation6 + $0xb8] sm:$0xff] %vm7803_vm15, %v7754_v57  ;;  %v8842_v9 = vld [vmem:[#allocation4 + $0x18a] sm:$0xff] }
 0xa07   : > { %v8804_v16 = vmax.f32 %v8740_v54, %v14442_v43  ;;  %v8742_v14 = vmax.f32 %v8677_v48, %v8710_v61  ;;  %v8551_v45 = vmax.f32 %v8487_v39, %v8710_v61  ;;  %v8552_v0 = vmax.f32 %v8488_v23, %v8711_v13 }
 0xa08   : > { %10348 = vmatprep.mubr.msk.f32.mxu1 %vm371_vm1, %v8867_v47  ;;  %v8805_v6 = vmax.f32 %v8741_v1, %v14444_v50  ;;  %v8678_v41 = vmax.f32 %v8614_v46, %v8837_v17  ;;  %v8426_v24 = vmax.f32 %v8711_v13, %v8775_v33  ;;  %9368 = vrot.lane.b32.xlu1 %v2954_v28, %s10503_s29  ;;  %v7563_v31 = vpop.permute.xlu1 %7562  ;;  %v7858_v43 = vld [vmem:[#allocation6 + $0xb0] sm:$0xff] }
 0xa09   : > { %9366 = vrot.lane.b32.xlu0 %v2953_v12, %s10503_s29  ;;  %v8868_v5 = vmax.f32 %v8804_v16, %v8836_v51  ;;  %v8806_v20 = vmax.f32 %v8742_v14, %v8774_v3  ;;  %v8615_v42 = vmax.f32 %v8551_v45, %v8774_v3  ;;  %v8616_v44 = vmax.f32 %v8552_v0, %v8775_v33  ;;  %v7372_v26 = vpop.permute.xlu0 %7371  ;;  %v8715_v12 = vld [vmem:[#allocation4 + $0x198] sm:$0xff]  ;;  %v8716_v1 = vld [vmem:[#allocation4 + $0x1a0] sm:$0xff] }
 0xa0a   : > { %v8869_v30 = vmax.f32 %v8805_v6, %v8837_v17  ;;  %v8743_v2 = vmax.f32 %v8678_v41, %v8711_v13  ;;  %v8489_v25 = vmax.f32 %v8425_v8, %v8838_v22  ;;  %v8490_v50 = vmax.f32 %v8426_v24, %v8839_v56  ;;  %7635 = vst.msk [vmem:[#allocation6 + $0xc0] sm:$0xff] %vm7610_vm14, %v7563_v31  ;;  %v8778_v17 = vld [vmem:[#allocation4 + $0x189] sm:$0xff]  ;;  %v8779_v47 = vld [vmem:[#allocation4 + $0x199] sm:$0xff] }
 0xa0b   : > { %10349 = vmatmul.mubr.msk.f32.gmra.mxu1 %vm371_vm1, %v8868_v5  ;;  %v8870_v35 = vmax.f32 %v8806_v20, %v8838_v22  ;;  %v8679_v15 = vmax.f32 %v8615_v42, %v8838_v22  ;;  %v8427_v52 = vmax.f32 %v8712_v62, %v8776_v40  ;;  %7443 = vst.msk [vmem:[#allocation6 + $0xc8] sm:$0xff] %vm7417_vm13, %v7372_v26  ;;  %v8843_v14 = vld [vmem:[#allocation4 + $0x19a] sm:$0xff]  ;;  %v8844_v41 = vld [vmem:[#allocation4 + $0x1a2] sm:$0xff] }
 0xa0c   : > { %10298 = vmatprep.mubr.msk.f32.mxu0 %vm7888_vm2, %v7858_v43  ;;  %10351 = vmatprep.mubr.msk.f32.mxu1 %vm371_vm1, %v8869_v30  ;;  %v8807_v7 = vmax.f32 %v8743_v2, %v8775_v33  ;;  %v8680_v49 = vmax.f32 %v8616_v44, %v8839_v56  ;;  %v8553_v21 = vmax.f32 %v8489_v25, %v8712_v62  ;;  %v7756_v27 = vpop.permute.xlu1 %7755  ;;  %v8780_v22 = vld [vmem:[#allocation4 + $0x1a1] sm:$0xff] }
 0xa0d   : > { %v8744_v51 = vmax.f32 %v8679_v15, %v8712_v62  ;;  %v8554_v29 = vmax.f32 %v8490_v50, %v8713_v4  ;;  %v8491_v10 = vmax.f32 %v8427_v52, %v8840_v38  ;;  %v7565_v34 = vpop.permute.xlu0 %7564  ;;  %v7859_v11 = vld [vmem:[#allocation6 + $0xb8] sm:$0xff]  ;;  %7828 = vst.msk [vmem:[#allocation6 + $0xc0] sm:$0xff] %vm7803_vm15, %v7756_v27 }
 0xa0e   : > { %v8871_v37 = vmax.f32 %v8807_v7, %v8839_v56  ;;  %v8745_v63 = vmax.f32 %v8680_v49, %v8713_v4  ;;  %v8617_v59 = vmax.f32 %v8553_v21, %v8776_v40  ;;  %7636 = vst.msk [vmem:[#allocation6 + $0xc8] sm:$0xff] %vm7610_vm14, %v7565_v34  ;;  %10299 = vmatmul.mubr.msk.f32.gmra.mxu0 %vm7888_vm2, %v7859_v11 }
 0xa0f   : > { %10352 = vmatmul.mubr.msk.f32.gmra.mxu1 %vm371_vm1, %v8870_v35  ;;  %v8808_v28 = vmax.f32 %v8744_v51, %v8776_v40  ;;  %v8618_v53 = vmax.f32 %v8554_v29, %v8777_v60  ;;  %v8555_v32 = vmax.f32 %v8491_v10, %v8714_v55 }
 0xa10   : > { %10354 = vmatprep.mubr.msk.f32.mxu1 %vm371_vm1, %v8871_v37  ;;  %v8809_v61 = vmax.f32 %v8745_v63, %v8777_v60  ;;  %v8681_v3 = vmax.f32 %v8617_v59, %v8840_v38  ;;  %v7374_v46 = vpop.permute.xlu1 %7373 }
 0xa11   : > { %v8872_v54 = vmax.f32 %v8808_v28, %v8840_v38  ;;  %v8682_v48 = vmax.f32 %v8618_v53, %v8841_v36  ;;  %v8619_v13 = vmax.f32 %v8555_v32, %v8778_v17  ;;  %v7758_v23 = vpop.permute.xlu0 %7757  ;;  %7444 = vst.msk [vmem:[#allocation6 + $0xd0] sm:$0xff] %vm7417_vm13, %v7374_v46  ;;  %v14537_v28 = vld [vmem:[%s14958_s6] ss:$0 sm:$0xff] }
 0xa12   : > { %v8873_v33 = vmax.f32 %v8809_v61, %v8841_v36  ;;  %v8746_v39 = vmax.f32 %v8681_v3, %v8714_v55  ;;  %7829 = vst.msk [vmem:[#allocation6 + $0xc8] sm:$0xff] %vm7803_vm15, %v7758_v23 }
 0xa13   : > { %10355 = vmatmul.mubr.msk.f32.gmra.mxu1 %vm371_vm1, %v8872_v54  ;;  %v8747_v58 = vmax.f32 %v8682_v48, %v8715_v12  ;;  %v8683_v57 = vmax.f32 %v8619_v13, %v8842_v9 }
 0xa14   : > { %10357 = vmatprep.mubr.msk.f32.mxu1 %vm371_vm1, %v8873_v33  ;;  %v8810_v16 = vmax.f32 %v8746_v39, %v8778_v17  ;;  %v7567_v56 = vpop.permute.xlu1 %7566  ;;  %v7860_v40 = vld [vmem:[#allocation6 + $0xc0] sm:$0xff] }
 0xa15   : > { %v8811_v45 = vmax.f32 %v8747_v58, %v8779_v47  ;;  %v8748_v8 = vmax.f32 %v8683_v57, %v8716_v1  ;;  %v7376_v62 = vpop.permute.xlu0 %7375  ;;  %7637 = vst.msk [vmem:[#allocation6 + $0xd0] sm:$0xff] %vm7610_vm14, %v7567_v56  ;;  %10301 = vmatprep.mubr.msk.f32.mxu0 %vm7888_vm2, %v7860_v40 }
 0xa16   : > { %v8874_v6 = vmax.f32 %v8810_v16, %v8842_v9  ;;  %7445 = vst.msk [vmem:[#allocation6 + $0xd8] sm:$0xff] %vm7417_vm13, %v7376_v62 }
 0xa17   : > { %v8875_v0 = vmax.f32 %v8811_v45, %v8843_v14  ;;  %v8812_v24 = vmax.f32 %v8748_v8, %v8780_v22 }
 0xa18   : > { %10358 = vmatmul.mubr.msk.f32.gmra.mxu1 %vm371_vm1, %v8874_v6  ;;  %v7760_v20 = vpop.permute.xlu1 %7759 }
 0xa19   : > { %10360 = vmatprep.mubr.msk.f32.mxu1 %vm371_vm1, %v8875_v0  ;;  %v8876_v5 = vmax.f32 %v8812_v24, %v8844_v41  ;;  %v7569_v42 = vpop.permute.xlu0 %7568  ;;  %v7861_v30 = vld [vmem:[#allocation6 + $0xc8] sm:$0xff]  ;;  %7830 = vst.msk [vmem:[#allocation6 + $0xd0] sm:$0xff] %vm7803_vm15, %v7760_v20 }
 0xa1a   : > { %7638 = vst.msk [vmem:[#allocation6 + $0xd8] sm:$0xff] %vm7610_vm14, %v7569_v42  ;;  %10302 = vmatmul.mubr.msk.f32.gmra.mxu0 %vm7888_vm2, %v7861_v30 }
 0xa1c   : > { %10361 = vmatmul.mubr.msk.f32.gmra.mxu1 %vm371_vm1, %v8876_v5  ;;  %v7187_v2 = vpop.permute.xlu1 %7186 }
 0xa1d   : > { %v7762_v38 = vpop.permute.xlu0 %7761  ;;  %7254 = vst.msk [vmem:[#allocation6 + $0xe8] sm:$0xff] %vm7224_vm12, %v7187_v2 }
 0xa1e   : > { %7831 = vst.msk [vmem:[#allocation6 + $0xd8] sm:$0xff] %vm7803_vm15, %v7762_v38 }
 0xa20   : > { %v7380_v44 = vpop.permute.xlu1 %7379  ;;  %v7862_v25 = vld [vmem:[#allocation6 + $0xd0] sm:$0xff] }
 0xa21   : > { %v7378_v4 = vpop.permute.xlu0 %7377  ;;  %7447 = vst.msk [vmem:[#allocation6 + $0xe8] sm:$0xff] %vm7417_vm13, %v7380_v44  ;;  %10304 = vmatprep.mubr.msk.f32.mxu0 %vm7888_vm2, %v7862_v25 }
 0xa22   : > { %7446 = vst.msk [vmem:[#allocation6 + $0xe0] sm:$0xff] %vm7417_vm13, %v7378_v4 }
 0xa24   : > { %v7573_v31 = vpop.permute.xlu1 %7572 }
 0xa25   : > { %v7571_v26 = vpop.permute.xlu0 %7570  ;;  %v7863_v43 = vld [vmem:[#allocation6 + $0xd8] sm:$0xff]  ;;  %7640 = vst.msk [vmem:[#allocation6 + $0xe8] sm:$0xff] %vm7610_vm14, %v7573_v31 }
 0xa26   : > { %7639 = vst.msk [vmem:[#allocation6 + $0xe0] sm:$0xff] %vm7610_vm14, %v7571_v26  ;;  %10305 = vmatmul.mubr.msk.f32.gmra.mxu0 %vm7888_vm2, %v7863_v43 }
 0xa28   : > { %v7189_v35 = vpop.permute.xlu1 %7188 }
 0xa29   : > { %v7764_v15 = vpop.permute.xlu0 %7763  ;;  %7255 = vst.msk [vmem:[#allocation6 + $0xf0] sm:$0xff] %vm7224_vm12, %v7189_v35 }
 0xa2a   : > { %7832 = vst.msk [vmem:[#allocation6 + $0xe0] sm:$0xff] %vm7803_vm15, %v7764_v15 }
 0xa2c   : > { %v7191_v50 = vpop.permute.xlu1 %7190 }
 0xa2d   : > { %v7766_v52 = vpop.permute.xlu0 %7765  ;;  %7256 = vst.msk [vmem:[#allocation6 + $0xf8] sm:$0xff] %vm7224_vm12, %v7191_v50 }
 0xa2e   : > { %7833 = vst.msk [vmem:[#allocation6 + $0xe8] sm:$0xff] %vm7803_vm15, %v7766_v52 }
 0xa30   : > { %v7384_v7 = vpop.permute.xlu1 %7383 }
 0xa31   : > { %v7382_v49 = vpop.permute.xlu0 %7381  ;;  %v7864_v60 = vld [vmem:[#allocation6 + $0xe0] sm:$0xff]  ;;  %7449 = vst.msk [vmem:[#allocation6 + $0xf8] sm:$0xff] %vm7417_vm13, %v7384_v7 }
 0xa32   : > { %7448 = vst.msk [vmem:[#allocation6 + $0xf0] sm:$0xff] %vm7417_vm13, %v7382_v49  ;;  %10307 = vmatprep.mubr.msk.f32.mxu0 %vm7888_vm2, %v7864_v60 }
 0xa34   : > { %v7577_v21 = vpop.permute.xlu1 %7576 }
 0xa35   : > { %v7575_v55 = vpop.permute.xlu0 %7574  ;;  %v7865_v51 = vld [vmem:[#allocation6 + $0xe8] sm:$0xff]  ;;  %7642 = vst.msk [vmem:[#allocation6 + $0xf8] sm:$0xff] %vm7610_vm14, %v7577_v21 }
 0xa36   : > { %7641 = vst.msk [vmem:[#allocation6 + $0xf0] sm:$0xff] %vm7610_vm14, %v7575_v55  ;;  %10308 = vmatmul.mubr.msk.f32.gmra.mxu0 %vm7888_vm2, %v7865_v51 }
 0xa38   : > { %v7770_v29 = vpop.permute.xlu1 %7769 }
 0xa39   : > { %v7768_v10 = vpop.permute.xlu0 %7767  ;;  %7835 = vst.msk [vmem:[#allocation6 + $0xf8] sm:$0xff] %vm7803_vm15, %v7770_v29 }
 0xa3a   : > { %7834 = vst.msk [vmem:[#allocation6 + $0xf0] sm:$0xff] %vm7803_vm15, %v7768_v10 }
 0xa3c   : > { %v9309_v37 = vpop.permute.xlu1 %9308 }
 0xa3d   : > { %v9307_v63 = vpop.permute.xlu0 %9306  ;;  %9404 = vst.msk [vmem:[%s11005_s22 + $0x8] sm:$0xff] %vm9402_vm0, %v9309_v37 }
 0xa3e   : > { %9403 = vst.msk [vmem:[%s11005_s22] sm:$0xff] %vm9402_vm0, %v9307_v63 }
 0xa40   : > { %v9313_v36 = vpop.permute.xlu1 %9312  ;;  %v7867_v27 = vld [vmem:[#allocation6 + $0xf8] sm:$0xff] }
 0xa41   : > { %v9311_v59 = vpop.permute.xlu0 %9310  ;;  %v7866_v17 = vld [vmem:[#allocation6 + $0xf0] sm:$0xff]  ;;  %9406 = vst.msk [vmem:[%s11005_s22 + $0x18] sm:$0xff] %vm9402_vm0, %v9313_v36 }
 0xa42   : > { %9405 = vst.msk [vmem:[%s11005_s22 + $0x10] sm:$0xff] %vm9402_vm0, %v9311_v59  ;;  %10310 = vmatprep.mubr.msk.f32.mxu0 %vm7888_vm2, %v7866_v17 }
 0xa43   : > { %10311 = vmatmul.mubr.msk.f32.gmra.mxu0 %vm7888_vm2, %v7867_v27 }
 0xa44   : > { %10315 = vmatprep.mubr.msk.f32.mxu0 %vm371_vm1, %v14252_v19  ;;  %v9317_v34 = vpop.permute.xlu1 %9316 }
 0xa45   : > { %v9315_v11 = vpop.permute.xlu0 %9314  ;;  %9408 = vst.msk [vmem:[%s11005_s22 + $0x28] sm:$0xff] %vm9402_vm0, %v9317_v34 }
 0xa46   : > { %9407 = vst.msk [vmem:[%s11005_s22 + $0x20] sm:$0xff] %vm9402_vm0, %v9315_v11 }
 0xa47   : > { %10316 = vmatmul.mubr.msk.f32.vlgmr.msra.gmra.mxu0 %vm371_vm1, %v14268_v18  ;;  %vm9563_vm1 = vcmask 195712  }
 0xa48   : > { %v9321_v53 = vpop.permute.xlu1 %9320 }
 0xa49   : > { %v9319_v32 = vpop.permute.xlu0 %9318  ;;  %9410 = vst.msk [vmem:[%s11005_s22 + $0x38] sm:$0xff] %vm9402_vm0, %v9321_v53 }
 0xa4a   : > { %9409 = vst.msk [vmem:[%s11005_s22 + $0x30] sm:$0xff] %vm9402_vm0, %v9319_v32  ;;  %v10267_v19 = vpop.f32.mrf.mxu0 }
 0xa4b   : > { %v8060_v61 = vadd.f32 %v10267_v19, %v14537_v28 }
 0xa4c   : > { %v8054_v3 = vpop.f32.mrf.mxu0  ;;  %v9325_v12 = vpop.permute.xlu1 %9324 }
 0xa4d   : > { %v8214_v9 = vmax.f32 %v8060_v61, 0.0  ;;  %v8055_v18 = vadd.f32 %v14537_v28, %v8054_v3  ;;  %v9323_v54 = vpop.permute.xlu0 %9322  ;;  %9412 = vst.msk [vmem:[%s11005_s22 + $0x48] sm:$0xff] %vm9402_vm0, %v9325_v12 }
 0xa4e   : > { %9411 = vst.msk [vmem:[%s11005_s22 + $0x40] sm:$0xff] %vm9402_vm0, %v9323_v54 }
 0xa4f   : > { %v8213_v48 = vmax.f32 %v8055_v18, 0.0  ;;  %9469 = vrot.lane.b32.xlu1 %v8214_v9, %s10505_s24 }
 0xa50   : > { %v9329_v13 = vpop.permute.xlu1 %9328 }
 0xa51   : > { %9467 = vrot.lane.b32.xlu0 %v8213_v48, %s10505_s24  ;;  %v9327_v33 = vpop.permute.xlu0 %9326  ;;  %9414 = vst.msk [vmem:[%s11005_s22 + $0x58] sm:$0xff] %vm9402_vm0, %v9329_v13 }
 0xa52   : > { %9413 = vst.msk [vmem:[%s11005_s22 + $0x50] sm:$0xff] %vm9402_vm0, %v9327_v33 }
 0xa54   : > { %v9333_v39 = vpop.permute.xlu1 %9332 }
 0xa55   : > { %v9331_v47 = vpop.permute.xlu0 %9330  ;;  %9416 = vst.msk [vmem:[%s11005_s22 + $0x68] sm:$0xff] %vm9402_vm0, %v9333_v39 }
 0xa56   : > { %9415 = vst.msk [vmem:[%s11005_s22 + $0x60] sm:$0xff] %vm9402_vm0, %v9331_v47  ;;  %v10270_v1 = vpop.f32.mrf.mxu0 }
 0xa57   : > { %v8070_v46 = vadd.f32 %v10270_v1, %v14537_v28 }
 0xa58   : > { %v8064_v23 = vpop.f32.mrf.mxu0 }
 0xa59   : > { %v8216_v58 = vmax.f32 %v8070_v46, 0.0  ;;  %v8065_v57 = vadd.f32 %v14537_v28, %v8064_v23 }
 0xa5a   : > { %v9337_v16 = vpop.permute.xlu1 %9336  ;;  %v9335_v14 = vpop.permute.xlu0 %9334 }
 0xa5b   : > { %9418 = vst.msk [vmem:[%s11005_s22 + $0x78] sm:$0xff] %vm9402_vm0, %v9337_v16  ;;  %9417 = vst.msk [vmem:[%s11005_s22 + $0x70] sm:$0xff] %vm9402_vm0, %v9335_v14  ;;  %v8215_v22 = vmax.f32 %v8065_v57, 0.0  ;;  %9473 = vrot.lane.b32.xlu1 %v8216_v58, %s10505_s24 }
 0xa5d   : > { %9471 = vrot.lane.b32.xlu0 %v8215_v22, %s10505_s24 }
 0xa5e   : > { %v9341_v45 = vpop.permute.xlu1 %9340  ;;  %v9339_v8 = vpop.permute.xlu0 %9338 }
 0xa5f   : > { %9420 = vst.msk [vmem:[%s11005_s22 + $0x88] sm:$0xff] %vm9402_vm0, %v9341_v45  ;;  %9419 = vst.msk [vmem:[%s11005_s22 + $0x80] sm:$0xff] %vm9402_vm0, %v9339_v8 }
 0xa62   : > { %v9345_v6 = vpop.permute.xlu1 %9344  ;;  %v9343_v41 = vpop.permute.xlu0 %9342 }
 0xa63   : > { %9422 = vst.msk [vmem:[%s11005_s22 + $0x98] sm:$0xff] %vm9402_vm0, %v9345_v6  ;;  %9421 = vst.msk [vmem:[%s11005_s22 + $0x90] sm:$0xff] %vm9402_vm0, %v9343_v41  ;;  %v10273_v56 = vpop.f32.mrf.mxu0 }
 0xa64   : > { %v8080_v62 = vadd.f32 %v10273_v56, %v14537_v28 }
 0xa65   : > { %v8074_v40 = vpop.f32.mrf.mxu0 }
 0xa66   : > { %v8218_v0 = vmax.f32 %v8080_v62, 0.0  ;;  %v8075_v24 = vadd.f32 %v14537_v28, %v8074_v40  ;;  %v9349_v5 = vpop.permute.xlu1 %9348  ;;  %v9347_v20 = vpop.permute.xlu0 %9346 }
 0xa67   : > { %9424 = vst.msk [vmem:[%s11005_s22 + $0xa8] sm:$0xff] %vm9402_vm0, %v9349_v5  ;;  %9423 = vst.msk [vmem:[%s11005_s22 + $0xa0] sm:$0xff] %vm9402_vm0, %v9347_v20 }
 0xa68   : > { %v8217_v42 = vmax.f32 %v8075_v24, 0.0  ;;  %9477 = vrot.lane.b32.xlu1 %v8218_v0, %s10505_s24 }
 0xa6a   : > { %v9353_v30 = vpop.permute.xlu1 %9352  ;;  %9475 = vrot.lane.b32.xlu0 %v8217_v42, %s10505_s24  ;;  %v9351_v2 = vpop.permute.xlu0 %9350 }
 0xa6b   : > { %9426 = vst.msk [vmem:[%s11005_s22 + $0xb8] sm:$0xff] %vm9402_vm0, %v9353_v30  ;;  %9425 = vst.msk [vmem:[%s11005_s22 + $0xb0] sm:$0xff] %vm9402_vm0, %v9351_v2 }
 0xa6e   : > { %v9357_v38 = vpop.permute.xlu1 %9356  ;;  %v9355_v44 = vpop.permute.xlu0 %9354 }
 0xa6f   : > { %9428 = vst.msk [vmem:[%s11005_s22 + $0xc8] sm:$0xff] %vm9402_vm0, %v9357_v38  ;;  %9427 = vst.msk [vmem:[%s11005_s22 + $0xc0] sm:$0xff] %vm9402_vm0, %v9355_v44  ;;  %v10276_v4 = vpop.f32.mrf.mxu0 }
 0xa70   : > { %v8090_v25 = vadd.f32 %v10276_v4, %v14537_v28 }
 0xa71   : > { %v8084_v31 = vpop.f32.mrf.mxu0 }
 0xa72   : > { %v8220_v26 = vmax.f32 %v8090_v25, 0.0  ;;  %v8085_v43 = vadd.f32 %v14537_v28, %v8084_v31  ;;  %v9361_v35 = vpop.permute.xlu1 %9360  ;;  %v9359_v15 = vpop.permute.xlu0 %9358 }
 0xa73   : > { %9430 = vst.msk [vmem:[%s11005_s22 + $0xd8] sm:$0xff] %vm9402_vm0, %v9361_v35  ;;  %9429 = vst.msk [vmem:[%s11005_s22 + $0xd0] sm:$0xff] %vm9402_vm0, %v9359_v15 }
 0xa74   : > { %v8219_v50 = vmax.f32 %v8085_v43, 0.0  ;;  %9481 = vrot.lane.b32.xlu1 %v8220_v26, %s10505_s24 }
 0xa76   : > { %v9365_v52 = vpop.permute.xlu1 %9364  ;;  %9479 = vrot.lane.b32.xlu0 %v8219_v50, %s10505_s24  ;;  %v9363_v7 = vpop.permute.xlu0 %9362 }
 0xa77   : > { %9432 = vst.msk [vmem:[%s11005_s22 + $0xe8] sm:$0xff] %vm9402_vm0, %v9365_v52  ;;  %9431 = vst.msk [vmem:[%s11005_s22 + $0xe0] sm:$0xff] %vm9402_vm0, %v9363_v7 }
 0xa7a   : > { %v9369_v49 = vpop.permute.xlu1 %9368  ;;  %v10279_v21 = vpop.f32.mrf.mxu0 }
 0xa7b   : > { %v9367_v60 = vpop.permute.xlu0 %9366  ;;  %9434 = vst.msk [vmem:[%s11005_s22 + $0xf8] sm:$0xff] %vm9402_vm0, %v9369_v49  ;;  %v8100_v55 = vadd.f32 %v10279_v21, %v14537_v28 }
 0xa7c   : > { %9433 = vst.msk [vmem:[%s11005_s22 + $0xf0] sm:$0xff] %vm9402_vm0, %v9367_v60  ;;  %v8094_v51 = vpop.f32.mrf.mxu0 }
 0xa7d   : > { %v8222_v29 = vmax.f32 %v8100_v55, 0.0  ;;  %v8095_v10 = vadd.f32 %v14537_v28, %v8094_v51 }
 0xa7f   : > { %v8221_v37 = vmax.f32 %v8095_v10, 0.0  ;;  %9485 = vrot.lane.b32.xlu1 %v8222_v29, %s10505_s24 }
 0xa81   : > { %9483 = vrot.lane.b32.xlu0 %v8221_v37, %s10505_s24 }
 0xa86   : > { %v10282_v63 = vpop.f32.mrf.mxu0 }
 0xa87   : > { %v8110_v36 = vadd.f32 %v10282_v63, %v14537_v28 }
 0xa88   : > { %v8104_v59 = vpop.f32.mrf.mxu0 }
 0xa89   : > { %v8224_v17 = vmax.f32 %v8110_v36, 0.0  ;;  %v8105_v27 = vadd.f32 %v14537_v28, %v8104_v59 }
 0xa8b   : > { %v8223_v34 = vmax.f32 %v8105_v27, 0.0  ;;  %9489 = vrot.lane.b32.xlu1 %v8224_v17, %s10505_s24 }
 0xa8d   : > { %9487 = vrot.lane.b32.xlu0 %v8223_v34, %s10505_s24 }
 0xa92   : > { %v10285_v11 = vpop.f32.mrf.mxu0 }
 0xa93   : > { %v8120_v53 = vadd.f32 %v10285_v11, %v14537_v28 }
 0xa94   : > { %v8114_v32 = vpop.f32.mrf.mxu0 }
 0xa95   : > { %v8226_v19 = vmax.f32 %v8120_v53, 0.0  ;;  %v8115_v61 = vadd.f32 %v14537_v28, %v8114_v32 }
 0xa97   : > { %v8225_v3 = vmax.f32 %v8115_v61, 0.0  ;;  %9493 = vrot.lane.b32.xlu1 %v8226_v19, %s10505_s24 }
 0xa99   : > { %9491 = vrot.lane.b32.xlu0 %v8225_v3, %s10505_s24 }
 0xa9a   : > { %v14639_v5 = vpop.f32.mrf.mxu1 }
 0xa9c   : > { %v14646_v44 = vpop.f32.mrf.mxu1 }
 0xa9e   : > { %v10288_v9 = vpop.f32.mrf.mxu0 }
 0xa9f   : > { %v8130_v18 = vadd.f32 %v10288_v9, %v14537_v28  ;;  %v14650_v26 = vpop.f32.mrf.mxu1 }
 0xaa0   : > { %v8124_v12 = vpop.f32.mrf.mxu0 }
 0xaa1   : > { %v8228_v54 = vmax.f32 %v8130_v18, 0.0  ;;  %v8125_v48 = vadd.f32 %v14537_v28, %v8124_v12  ;;  %v14653_v43 = vpop.f32.mrf.mxu1 }
 0xaa3   : > { %v8227_v13 = vmax.f32 %v8125_v48, 0.0  ;;  %9497 = vrot.lane.b32.xlu1 %v8228_v54, %s10505_s24 }
 0xaa4   : > { %v14660_v49 = vpop.f32.mrf.mxu1 }
 0xaa5   : > { %9495 = vrot.lane.b32.xlu0 %v8227_v13, %s10505_s24 }
 0xaa6   : > { %v14664_v51 = vpop.f32.mrf.mxu1 }
 0xaa9   : > { %v14667_v29 = vpop.f32.mrf.mxu1 }
 0xaaa   : > { %v10291_v33 = vpop.f32.mrf.mxu0 }
 0xaab   : > { %v8140_v39 = vadd.f32 %v10291_v33, %v14537_v28  ;;  %v14674_v17 = vpop.f32.mrf.mxu1 }
 0xaac   : > { %v8134_v47 = vpop.f32.mrf.mxu0 }
 0xaad   : > { %v8230_v1 = vmax.f32 %v8140_v39, 0.0  ;;  %v8135_v46 = vadd.f32 %v14537_v28, %v8134_v47 }
 0xaae   : > { %v14678_v53 = vpop.f32.mrf.mxu1 }
 0xaaf   : > { %v8229_v23 = vmax.f32 %v8135_v46, 0.0  ;;  %9501 = vrot.lane.b32.xlu1 %v8230_v1, %s10505_s24 }
 0xab0   : > { %v14681_v32 = vpop.f32.mrf.mxu1 }
 0xab1   : > { %9499 = vrot.lane.b32.xlu0 %v8229_v23, %s10505_s24 }
 0xab2   : > { %v14687_v3 = vpop.f32.mrf.mxu1 }
 0xab4   : > { %v14690_v54 = vpop.f32.mrf.mxu1 }
 0xab7   : > { %v10294_v58 = vpop.f32.mrf.mxu0  ;;  %v14694_v39 = vpop.f32.mrf.mxu1 }
 0xab8   : > { %v8150_v57 = vadd.f32 %v10294_v58, %v14537_v28 }
 0xab9   : > { %v8144_v16 = vpop.f32.mrf.mxu0  ;;  %v14701_v46 = vpop.f32.mrf.mxu1 }
 0xaba   : > { %v8232_v14 = vmax.f32 %v8150_v57, 0.0  ;;  %v8145_v22 = vadd.f32 %v14537_v28, %v8144_v16 }
 0xabb   : > { %v14704_v57 = vpop.f32.mrf.mxu1 }
 0xabc   : > { %v8231_v45 = vmax.f32 %v8145_v22, 0.0  ;;  %9505 = vrot.lane.b32.xlu1 %v8232_v14, %s10505_s24  ;;  %v14709_v14 = vld [vmem:[%s14960_s8] ss:$0 sm:$0xff] }
 0xabe   : > { %9503 = vrot.lane.b32.xlu0 %v8231_v45, %s10505_s24 }
 0xac1   : > { %v9470_v8 = vpop.permute.xlu1 %9469 }
 0xac2   : > { %9565 = vst.msk [vmem:[%s11005_s22 + $0x8] sm:$0xff] %vm9563_vm1, %v9470_v8 }
 0xac3   : > { %v10297_v6 = vpop.f32.mrf.mxu0  ;;  %v9468_v56 = vpop.permute.xlu0 %9467 }
 0xac4   : > { %v8160_v41 = vadd.f32 %v10297_v6, %v14537_v28  ;;  %9564 = vst.msk [vmem:[%s11005_s22] sm:$0xff] %vm9563_vm1, %v9468_v56  ;;  %v9066_v56 = vadd.f32 %v14639_v5, %v14709_v14  ;;  %v9076_v5 = vadd.f32 %v14650_v26, %v14709_v14 }
 0xac5   : > { %v8154_v62 = vpop.f32.mrf.mxu0 }
 0xac6   : > { %v8234_v40 = vmax.f32 %v8160_v41, 0.0  ;;  %v8155_v0 = vadd.f32 %v14537_v28, %v8154_v62  ;;  %v14716_v62 = vpop.f32.mrf.mxu1 }
 0xac8   : > { %v8233_v24 = vmax.f32 %v8155_v0, 0.0  ;;  %9509 = vrot.lane.b32.xlu1 %v8234_v40, %s10505_s24 }
 0xaca   : > { %9507 = vrot.lane.b32.xlu0 %v8233_v24, %s10505_s24 }
 0xacd   : > { %v9474_v20 = vpop.permute.xlu1 %9473 }
 0xace   : > { %9567 = vst.msk [vmem:[%s11005_s22 + $0x18] sm:$0xff] %vm9563_vm1, %v9474_v20  ;;  %v10300_v42 = vpop.f32.mrf.mxu0 }
 0xacf   : > { %v8170_v30 = vadd.f32 %v10300_v42, %v14537_v28  ;;  %v9472_v2 = vpop.permute.xlu0 %9471  ;;  %v9212_v42 = vmax.f32 %v9066_v56, 0.0 }
 0xad0   : > { %9566 = vst.msk [vmem:[%s11005_s22 + $0x10] sm:$0xff] %vm9563_vm1, %v9472_v2  ;;  %v8164_v38 = vpop.f32.mrf.mxu0  ;;  %v9061_v2 = vadd.f32 %v14709_v14, %v14646_v44  ;;  %v9086_v44 = vadd.f32 %v14660_v49, %v14709_v14 }
 0xad1   : > { %v8236_v4 = vmax.f32 %v8170_v30, 0.0  ;;  %v8165_v25 = vadd.f32 %v14537_v28, %v8164_v38  ;;  %v10344_v38 = vpop.f32.mrf.mxu1 }
 0xad2   : > { %v9216_v26 = vmax.f32 %v9086_v44, 0.0 }
 0xad3   : > { %v8235_v31 = vmax.f32 %v8165_v25, 0.0  ;;  %9513 = vrot.lane.b32.xlu1 %v8236_v4, %s10505_s24  ;;  %v9211_v4 = vmax.f32 %v9061_v2, 0.0  ;;  %v9214_v25 = vmax.f32 %v9076_v5, 0.0 }
 0xad5   : > { %9511 = vrot.lane.b32.xlu0 %v8235_v31, %s10505_s24  ;;  %v9071_v31 = vadd.f32 %v14709_v14, %v14653_v43 }
 0xada   : > { %v9478_v35 = vpop.permute.xlu1 %9477  ;;  %v10303_v15 = vpop.f32.mrf.mxu0 }
 0xadb   : > { %9569 = vst.msk [vmem:[%s11005_s22 + $0x28] sm:$0xff] %vm9563_vm1, %v9478_v35  ;;  %v8180_v50 = vadd.f32 %v10303_v15, %v14537_v28  ;;  %v9140_v35 = vpop.f32.mrf.mxu1  ;;  %v9213_v15 = vmax.f32 %v9071_v31, 0.0 }
 0xadc   : > { %v9476_v52 = vpop.permute.xlu0 %9475  ;;  %v8174_v7 = vpop.f32.mrf.mxu0 }
 0xadd   : > { %9568 = vst.msk [vmem:[%s11005_s22 + $0x20] sm:$0xff] %vm9563_vm1, %v9476_v52  ;;  %v8238_v60 = vmax.f32 %v8180_v50, 0.0  ;;  %v8175_v21 = vadd.f32 %v14537_v28, %v8174_v7  ;;  %v9081_v50 = vadd.f32 %v14709_v14, %v14664_v51  ;;  %v9096_v52 = vadd.f32 %v14667_v29, %v14709_v14  ;;  %v10347_v7 = vpop.f32.mrf.mxu1 }
 0xade   : > { %v9106_v51 = vadd.f32 %v14678_v53, %v14709_v14 }
 0xadf   : > { %v8237_v55 = vmax.f32 %v8175_v21, 0.0  ;;  %9517 = vrot.lane.b32.xlu1 %v8238_v60, %s10505_s24  ;;  %v9215_v60 = vmax.f32 %v9081_v50, 0.0  ;;  %v9218_v21 = vmax.f32 %v9096_v52, 0.0  ;;  %v9150_v29 = vpop.f32.mrf.mxu1 }
 0xae1   : > { %9515 = vrot.lane.b32.xlu0 %v8237_v55, %s10505_s24  ;;  %v9091_v55 = vadd.f32 %v14709_v14, %v14674_v17 }
 0xae6   : > { %v9482_v10 = vpop.permute.xlu1 %9481  ;;  %v10306_v37 = vpop.f32.mrf.mxu0 }
 0xae7   : > { %9571 = vst.msk [vmem:[%s11005_s22 + $0x38] sm:$0xff] %vm9563_vm1, %v9482_v10  ;;  %v8190_v63 = vadd.f32 %v10306_v37, %v14537_v28  ;;  %v9217_v10 = vmax.f32 %v9091_v55, 0.0  ;;  %v9220_v37 = vmax.f32 %v9106_v51, 0.0 }
 0xae8   : > { %v9480_v36 = vpop.permute.xlu0 %9479  ;;  %v8184_v59 = vpop.f32.mrf.mxu0 }
 0xae9   : > { %9570 = vst.msk [vmem:[%s11005_s22 + $0x30] sm:$0xff] %vm9563_vm1, %v9480_v36  ;;  %v8240_v27 = vmax.f32 %v8190_v63, 0.0  ;;  %v8185_v34 = vadd.f32 %v14537_v28, %v8184_v59  ;;  %v9101_v63 = vadd.f32 %v14709_v14, %v14681_v32  ;;  %v9116_v36 = vadd.f32 %v14687_v3, %v14709_v14  ;;  %v10350_v59 = vpop.f32.mrf.mxu1 }
 0xaeb   : > { %v8239_v11 = vmax.f32 %v8185_v34, 0.0  ;;  %9521 = vrot.lane.b32.xlu1 %v8240_v27, %s10505_s24  ;;  %v9219_v17 = vmax.f32 %v9101_v63, 0.0  ;;  %v9222_v27 = vmax.f32 %v9116_v36, 0.0  ;;  %v9111_v34 = vadd.f32 %v14709_v14, %v14690_v54  ;;  %v9160_v32 = vpop.f32.mrf.mxu1 }
 0xaed   : > { %9519 = vrot.lane.b32.xlu0 %v8239_v11, %s10505_s24  ;;  %v9126_v11 = vadd.f32 %v14694_v39, %v14709_v14 }
 0xaef   : > { %v9224_v3 = vmax.f32 %v9126_v11, 0.0 }
 0xaf1   : > { %v9486_v19 = vpop.permute.xlu1 %9485 }
 0xaf2   : > { %9573 = vst.msk [vmem:[%s11005_s22 + $0x48] sm:$0xff] %vm9563_vm1, %v9486_v19 }
 0xaf3   : > { %v9484_v61 = vpop.permute.xlu0 %9483 }
 0xaf4   : > { %9572 = vst.msk [vmem:[%s11005_s22 + $0x40] sm:$0xff] %vm9563_vm1, %v9484_v61  ;;  %v9221_v61 = vmax.f32 %v9111_v34, 0.0 }
 0xaf6   : > { %v10309_v9 = vpop.f32.mrf.mxu0 }
 0xaf7   : > { %v8200_v18 = vadd.f32 %v10309_v9, %v14537_v28  ;;  %v9121_v9 = vadd.f32 %v14709_v14, %v14701_v46  ;;  %v9141_v46 = vadd.f32 %v14709_v14, %v9140_v35 }
 0xaf8   : > { %v8194_v12 = vpop.f32.mrf.mxu0 }
 0xaf9   : > { %v8242_v48 = vmax.f32 %v8200_v18, 0.0  ;;  %v8195_v13 = vadd.f32 %v14537_v28, %v8194_v12  ;;  %v9136_v18 = vadd.f32 %v14704_v57, %v14709_v14  ;;  %v10353_v12 = vpop.f32.mrf.mxu1  ;;  %v9223_v54 = vmax.f32 %v9121_v9, 0.0 }
 0xafb   : > { %v8241_v33 = vmax.f32 %v8195_v13, 0.0  ;;  %9525 = vrot.lane.b32.xlu1 %v8242_v48, %s10505_s24  ;;  %v9226_v48 = vmax.f32 %v9136_v18, 0.0  ;;  %v9131_v13 = vadd.f32 %v14709_v14, %v14716_v62  ;;  %v9170_v39 = vpop.f32.mrf.mxu1 }
 0xafd   : > { %v9490_v47 = vpop.permute.xlu1 %9489  ;;  %9523 = vrot.lane.b32.xlu0 %v8241_v33, %s10505_s24  ;;  %v9146_v33 = vadd.f32 %v10344_v38, %v14709_v14  ;;  %v10356_v57 = vpop.f32.mrf.mxu1 }
 0xafe   : > { %9575 = vst.msk [vmem:[%s11005_s22 + $0x58] sm:$0xff] %vm9563_vm1, %v9490_v47  ;;  %v9225_v47 = vmax.f32 %v9131_v13, 0.0 }
 0xaff   : > { %v9488_v1 = vpop.permute.xlu0 %9487 }
 0xb00   : > { %9574 = vst.msk [vmem:[%s11005_s22 + $0x50] sm:$0xff] %vm9563_vm1, %v9488_v1  ;;  %v9228_v1 = vmax.f32 %v9146_v33, 0.0 }
 0xb03   : > { %v10312_v23 = vpop.f32.mrf.mxu0 }
 0xb04   : > { %v8210_v58 = vadd.f32 %v10312_v23, %v14537_v28  ;;  %v9156_v23 = vadd.f32 %v10347_v7, %v14709_v14 }
 0xb05   : > { %v8204_v16 = vpop.f32.mrf.mxu0 }
 0xb06   : > { %v8244_v22 = vmax.f32 %v8210_v58, 0.0  ;;  %v8205_v45 = vadd.f32 %v14537_v28, %v8204_v16 }
 0xb07   : > { %v10317_v8 = vpop.f32.mrf.mxu0 }
 0xb08   : > { %v8243_v6 = vmax.f32 %v8205_v45, 0.0  ;;  %v9056_v41 = vadd.f32 %v10317_v8, %v14709_v14  ;;  %9529 = vrot.lane.b32.xlu1 %v8244_v22, %s10505_s24  ;;  %v9227_v22 = vmax.f32 %v9141_v46, 0.0  ;;  %v9230_v45 = vmax.f32 %v9156_v23, 0.0 }
 0xb09   : > { %v9494_v40 = vpop.permute.xlu1 %9493  ;;  %v9050_v0 = vpop.f32.mrf.mxu0  ;;  %v9151_v8 = vadd.f32 %v14709_v14, %v9150_v29 }
 0xb0a   : > { %v9210_v24 = vmax.f32 %v9056_v41, 0.0  ;;  %9577 = vst.msk [vmem:[%s11005_s22 + $0x68] sm:$0xff] %vm9563_vm1, %v9494_v40  ;;  %v9051_v20 = vadd.f32 %v14709_v14, %v9050_v0  ;;  %9527 = vrot.lane.b32.xlu0 %v8243_v6, %s10505_s24  ;;  %v9166_v6 = vadd.f32 %v10350_v59, %v14709_v14  ;;  %v9180_v41 = vpop.f32.mrf.mxu1  ;;  %v9161_v40 = vadd.f32 %v14709_v14, %v9160_v32  ;;  %s9982_s24 = sshll.u32 %s10601_s13, 12  ;;  %s15039_s13 = sand.u32 1, %s10490_s10  }
 0xb0b   : > { %v9492_v28 = vpop.permute.xlu0 %9491  ;;  %v9229_v56 = vmax.f32 %v9151_v8, 0.0  ;;  %v9176_v0 = vadd.f32 %v10353_v12, %v14709_v14  ;;  %v9181_v31 = vadd.f32 %v14709_v14, %v9180_v41  ;;  %s14901_s14 = scalar_lea.hbm %s14961_s9, %s9982_s24  ;;  %s14911_s28 = scalar_lea.sflag [#allocation8], %s15039_s13 }
 0xb0c   : > { %v9209_v30 = vmax.f32 %v9051_v20, 0.0  ;;  %9576 = vst.msk [vmem:[%s11005_s22 + $0x60] sm:$0xff] %vm9563_vm1, %v9492_v28  ;;  %9630 = vrot.lane.b32.xlu1 %v9210_v24, %s10508_s27  ;;  %v9232_v62 = vmax.f32 %v9166_v6, 0.0  ;;  %v10359_v24 = vpop.f32.mrf.mxu1  ;;  %v9231_v20 = vmax.f32 %v9161_v40, 0.0 }
 0xb0d   : > { %v9234_v28 = vmax.f32 %v9176_v0, 0.0  ;;  %v9196_v44 = vadd.f32 %v10359_v24, %v14709_v14 }
 0xb0e   : > { %9628 = vrot.lane.b32.xlu0 %v9209_v30, %s10508_s27  ;;  %v9186_v30 = vadd.f32 %v10356_v57, %v14709_v14  ;;  %v9190_v5 = vpop.f32.mrf.mxu1 }
 0xb0f   : > { %v9191_v50 = vadd.f32 %v14709_v14, %v9190_v5 }
 0xb10   : > { %9634 = vrot.lane.b32.xlu1 %v9212_v42, %s10508_s27  ;;  %v9171_v42 = vadd.f32 %v14709_v14, %v9170_v39  ;;  %v10362_v35 = vpop.f32.mrf.mxu1 }
 0xb11   : > { %v9206_v52 = vadd.f32 %v10362_v35, %v14709_v14  ;;  %v9237_v7 = vmax.f32 %v9191_v50, 0.0 }
 0xb12   : > { %9632 = vrot.lane.b32.xlu0 %v9211_v4, %s10508_s27  ;;  %v9233_v4 = vmax.f32 %v9171_v42, 0.0 }
 0xb14   : > { %9638 = vrot.lane.b32.xlu1 %v9214_v25, %s10508_s27  ;;  %v9236_v25 = vmax.f32 %v9186_v30, 0.0 }
 0xb15   : > { %v9498_v43 = vpop.permute.xlu1 %9497 }
 0xb16   : > { %9579 = vst.msk [vmem:[%s11005_s22 + $0x78] sm:$0xff] %vm9563_vm1, %v9498_v43  ;;  %9636 = vrot.lane.b32.xlu0 %v9213_v15, %s10508_s27  ;;  %v9235_v15 = vmax.f32 %v9181_v31, 0.0  ;;  %v9200_v43 = vpop.f32.mrf.mxu1 }
 0xb17   : > { %v9496_v49 = vpop.permute.xlu0 %9495 }
 0xb18   : > { %9578 = vst.msk [vmem:[%s11005_s22 + $0x70] sm:$0xff] %vm9563_vm1, %v9496_v49  ;;  %9642 = vrot.lane.b32.xlu1 %v9216_v26, %s10508_s27  ;;  %v9238_v26 = vmax.f32 %v9196_v44, 0.0  ;;  %v9240_v49 = vmax.f32 %v9206_v52, 0.0 }
 0xb1a   : > { %9640 = vrot.lane.b32.xlu0 %v9215_v60, %s10508_s27  ;;  %v9201_v60 = vadd.f32 %v14709_v14, %v9200_v43 }
 0xb1c   : > { %9646 = vrot.lane.b32.xlu1 %v9218_v21, %s10508_s27  ;;  %v9239_v51 = vmax.f32 %v9201_v60, 0.0 }
 0xb1e   : > { %9644 = vrot.lane.b32.xlu0 %v9217_v10, %s10508_s27 }
 0xb20   : > { %9650 = vrot.lane.b32.xlu1 %v9220_v37, %s10508_s27 }
 0xb21   : > { %v9502_v53 = vpop.permute.xlu1 %9501 }
 0xb22   : > { %9581 = vst.msk [vmem:[%s11005_s22 + $0x88] sm:$0xff] %vm9563_vm1, %v9502_v53  ;;  %9648 = vrot.lane.b32.xlu0 %v9219_v17, %s10508_s27 }
 0xb23   : > { %v9500_v19 = vpop.permute.xlu0 %9499 }
 0xb24   : > { %9580 = vst.msk [vmem:[%s11005_s22 + $0x80] sm:$0xff] %vm9563_vm1, %v9500_v19  ;;  %9654 = vrot.lane.b32.xlu1 %v9222_v27, %s10508_s27 }
 0xb26   : > { %9652 = vrot.lane.b32.xlu0 %v9221_v61, %s10508_s27 }
 0xb28   : > { %9658 = vrot.lane.b32.xlu1 %v9224_v3, %s10508_s27 }
 0xb2a   : > { %9656 = vrot.lane.b32.xlu0 %v9223_v54, %s10508_s27 }
 0xb2c   : > { %9662 = vrot.lane.b32.xlu1 %v9226_v48, %s10508_s27 }
 0xb2e   : > { %v9506_v58 = vpop.permute.xlu1 %9505  ;;  %9660 = vrot.lane.b32.xlu0 %v9225_v47, %s10508_s27 }
 0xb2f   : > { %9583 = vst.msk [vmem:[%s11005_s22 + $0x98] sm:$0xff] %vm9563_vm1, %v9506_v58 }
 0xb30   : > { %v9504_v16 = vpop.permute.xlu0 %9503  ;;  %9666 = vrot.lane.b32.xlu1 %v9228_v1, %s10508_s27 }
 0xb31   : > { %9582 = vst.msk [vmem:[%s11005_s22 + $0x90] sm:$0xff] %vm9563_vm1, %v9504_v16 }
 0xb32   : > { %9664 = vrot.lane.b32.xlu0 %v9227_v22, %s10508_s27 }
 0xb34   : > { %9670 = vrot.lane.b32.xlu1 %v9230_v45, %s10508_s27 }
 0xb36   : > { %9668 = vrot.lane.b32.xlu0 %v9229_v56, %s10508_s27 }
 0xb38   : > { %9674 = vrot.lane.b32.xlu1 %v9232_v62, %s10508_s27 }
 0xb3a   : > { %v9510_v2 = vpop.permute.xlu1 %9509  ;;  %9672 = vrot.lane.b32.xlu0 %v9231_v20, %s10508_s27 }
 0xb3b   : > { %9585 = vst.msk [vmem:[%s11005_s22 + $0xa8] sm:$0xff] %vm9563_vm1, %v9510_v2 }
 0xb3c   : > { %v9508_v38 = vpop.permute.xlu0 %9507  ;;  %9678 = vrot.lane.b32.xlu1 %v9234_v28, %s10508_s27 }
 0xb3d   : > { %9584 = vst.msk [vmem:[%s11005_s22 + $0xa0] sm:$0xff] %vm9563_vm1, %v9508_v38 }
 0xb3e   : > { %9676 = vrot.lane.b32.xlu0 %v9233_v4, %s10508_s27 }
 0xb40   : > { %9682 = vrot.lane.b32.xlu1 %v9236_v25, %s10508_s27 }
 0xb42   : > { %9680 = vrot.lane.b32.xlu0 %v9235_v15, %s10508_s27 }
 0xb44   : > { %9686 = vrot.lane.b32.xlu1 %v9238_v26, %s10508_s27 }
 0xb45   : > { %v9514_v21 = vpop.permute.xlu1 %9513 }
 0xb46   : > { %9587 = vst.msk [vmem:[%s11005_s22 + $0xb8] sm:$0xff] %vm9563_vm1, %v9514_v21  ;;  %9684 = vrot.lane.b32.xlu0 %v9237_v7, %s10508_s27 }
 0xb47   : > { %v9512_v55 = vpop.permute.xlu0 %9511 }
 0xb48   : > { %9586 = vst.msk [vmem:[%s11005_s22 + $0xb0] sm:$0xff] %vm9563_vm1, %v9512_v55  ;;  %9690 = vrot.lane.b32.xlu1 %v9240_v49, %s10508_s27 }
 0xb4a   : > { %9688 = vrot.lane.b32.xlu0 %v9239_v51, %s10508_s27  ;;  %s9771_s27 = sshll.u32 %s11005_s22, 4  ;;  %s14905_s27 = int_to_ptr.vmem [resolvable:$true] %s9771_s27 }
 0xb4b   : > { %s10438_s17 = scalar_lea.vmem %s14905_s27, 4096  ;;  %p10445_p0 = scmp.lt.s32.totalorder %s14905_s27, %s10443_s21 }
 0xb4c   : > { %p10439_p11 = scmp.ne.s32.totalorder %s14905_s27, %s10438_s17  ;;  %p10446_p1 = scmp.lt.s32.totalorder %s10444_s25, %s10438_s17 }
 0xb4e   : > { %p10440_p12 = pnand %p10439_p11, %p10618_p5  ;;  %p10447_p2 = por %p10446_p1, %p10445_p0 }
 0xb50   : > { %p10441_p13 = pneg %p10440_p12 }
 0xb51   : > { %v9518_v14 = vpop.permute.xlu1 %9517 }
 0xb52   : > { %9589 = vst.msk [vmem:[%s11005_s22 + $0xc8] sm:$0xff] %vm9563_vm1, %v9518_v14  ;;  %p10448_p3 = pnand %p10447_p2, %p10441_p13 }
 0xb53   : > { %v9516_v29 = vpop.permute.xlu0 %9515 }
 0xb54   : > { %9588 = vst.msk [vmem:[%s11005_s22 + $0xc0] sm:$0xff] %vm9563_vm1, %v9516_v29 }
 0xb5d   : > { %v9522_v10 = vpop.permute.xlu1 %9521 }
 0xb5e   : > { %9591 = vst.msk [vmem:[%s11005_s22 + $0xd8] sm:$0xff] %vm9563_vm1, %v9522_v10 }
 0xb5f   : > { %v9520_v37 = vpop.permute.xlu0 %9519 }
 0xb60   : > { %9590 = vst.msk [vmem:[%s11005_s22 + $0xd0] sm:$0xff] %vm9563_vm1, %v9520_v37 }
 0xb6d   : > { %v9526_v63 = vpop.permute.xlu1 %9525 }
 0xb6e   : > { %9593 = vst.msk [vmem:[%s11005_s22 + $0xe8] sm:$0xff] %vm9563_vm1, %v9526_v63 }
 0xb6f   : > { %v9524_v36 = vpop.permute.xlu0 %9523 }
 0xb70   : > { %9592 = vst.msk [vmem:[%s11005_s22 + $0xe0] sm:$0xff] %vm9563_vm1, %v9524_v36 }
 0xb7a   : > { %v9530_v59 = vpop.permute.xlu1 %9529 }
 0xb7b   : > { %9595 = vst.msk [vmem:[%s11005_s22 + $0xf8] sm:$0xff] %vm9563_vm1, %v9530_v59 }
 0xb7c   : > { %v9528_v17 = vpop.permute.xlu0 %9527 }
 0xb7d   : > { %9594 = vst.msk [vmem:[%s11005_s22 + $0xf0] sm:$0xff] %vm9563_vm1, %v9528_v17 }
 0xb7e   : > { %v9631_v27 = vpop.permute.xlu1 %9630 }
 0xb7f   : > { %9726 = vst.msk [vmem:[%s11005_s22 + $0x8] sm:$0xff] %vm9724_vm3, %v9631_v27 }
 0xb80   : > { %v9629_v34 = vpop.permute.xlu0 %9628 }
 0xb81   : > { %9725 = vst.msk [vmem:[%s11005_s22] sm:$0xff] %vm9724_vm3, %v9629_v34 }
 0xb82   : > { %v9635_v11 = vpop.permute.xlu1 %9634 }
 0xb83   : > { %9728 = vst.msk [vmem:[%s11005_s22 + $0x18] sm:$0xff] %vm9724_vm3, %v9635_v11 }
 0xb84   : > { %v9633_v53 = vpop.permute.xlu0 %9632 }
 0xb85   : > { %9727 = vst.msk [vmem:[%s11005_s22 + $0x10] sm:$0xff] %vm9724_vm3, %v9633_v53 }
 0xb86   : > { %v9639_v32 = vpop.permute.xlu1 %9638 }
 0xb87   : > { %9730 = vst.msk [vmem:[%s11005_s22 + $0x28] sm:$0xff] %vm9724_vm3, %v9639_v32 }
 0xb88   : > { %v9637_v19 = vpop.permute.xlu0 %9636 }
 0xb89   : > { %9729 = vst.msk [vmem:[%s11005_s22 + $0x20] sm:$0xff] %vm9724_vm3, %v9637_v19 }
 0xb8a   : > { %v9643_v61 = vpop.permute.xlu1 %9642 }
 0xb8b   : > { %9732 = vst.msk [vmem:[%s11005_s22 + $0x38] sm:$0xff] %vm9724_vm3, %v9643_v61 }
 0xb8c   : > { %v9641_v3 = vpop.permute.xlu0 %9640 }
 0xb8d   : > { %9731 = vst.msk [vmem:[%s11005_s22 + $0x30] sm:$0xff] %vm9724_vm3, %v9641_v3 }
 0xb8e   : > { %v9647_v9 = vpop.permute.xlu1 %9646 }
 0xb8f   : > { %9734 = vst.msk [vmem:[%s11005_s22 + $0x48] sm:$0xff] %vm9724_vm3, %v9647_v9 }
 0xb90   : > { %v9645_v18 = vpop.permute.xlu0 %9644 }
 0xb91   : > { %9733 = vst.msk [vmem:[%s11005_s22 + $0x40] sm:$0xff] %vm9724_vm3, %v9645_v18 }
 0xb92   : > { %v9651_v12 = vpop.permute.xlu1 %9650 }
 0xb93   : > { %9736 = vst.msk [vmem:[%s11005_s22 + $0x58] sm:$0xff] %vm9724_vm3, %v9651_v12 }
 0xb94   : > { %v9649_v54 = vpop.permute.xlu0 %9648 }
 0xb95   : > { %9735 = vst.msk [vmem:[%s11005_s22 + $0x50] sm:$0xff] %vm9724_vm3, %v9649_v54 }
 0xb96   : > { %v9655_v48 = vpop.permute.xlu1 %9654 }
 0xb97   : > { %9738 = vst.msk [vmem:[%s11005_s22 + $0x68] sm:$0xff] %vm9724_vm3, %v9655_v48 }
 0xb98   : > { %v9653_v13 = vpop.permute.xlu0 %9652 }
 0xb99   : > { %9737 = vst.msk [vmem:[%s11005_s22 + $0x60] sm:$0xff] %vm9724_vm3, %v9653_v13 }
 0xb9a   : > { %v9659_v33 = vpop.permute.xlu1 %9658 }
 0xb9b   : > { %9740 = vst.msk [vmem:[%s11005_s22 + $0x78] sm:$0xff] %vm9724_vm3, %v9659_v33 }
 0xb9c   : > { %v9657_v39 = vpop.permute.xlu0 %9656 }
 0xb9d   : > { %9739 = vst.msk [vmem:[%s11005_s22 + $0x70] sm:$0xff] %vm9724_vm3, %v9657_v39 }
 0xb9e   : > { %v9663_v47 = vpop.permute.xlu1 %9662 }
 0xb9f   : > { %9742 = vst.msk [vmem:[%s11005_s22 + $0x88] sm:$0xff] %vm9724_vm3, %v9663_v47 }
 0xba0   : > { %v9661_v1 = vpop.permute.xlu0 %9660 }
 0xba1   : > { %9741 = vst.msk [vmem:[%s11005_s22 + $0x80] sm:$0xff] %vm9724_vm3, %v9661_v1 }
 0xba2   : > { %v9667_v46 = vpop.permute.xlu1 %9666 }
 0xba3   : > { %9744 = vst.msk [vmem:[%s11005_s22 + $0x98] sm:$0xff] %vm9724_vm3, %v9667_v46 }
 0xba4   : > { %v9665_v23 = vpop.permute.xlu0 %9664 }
 0xba5   : > { %9743 = vst.msk [vmem:[%s11005_s22 + $0x90] sm:$0xff] %vm9724_vm3, %v9665_v23 }
 0xba6   : > { %v9671_v58 = vpop.permute.xlu1 %9670 }
 0xba7   : > { %9746 = vst.msk [vmem:[%s11005_s22 + $0xa8] sm:$0xff] %vm9724_vm3, %v9671_v58 }
 0xba8   : > { %v9669_v57 = vpop.permute.xlu0 %9668 }
 0xba9   : > { %9745 = vst.msk [vmem:[%s11005_s22 + $0xa0] sm:$0xff] %vm9724_vm3, %v9669_v57 }
 0xbaa   : > { %v9675_v16 = vpop.permute.xlu1 %9674 }
 0xbab   : > { %9748 = vst.msk [vmem:[%s11005_s22 + $0xb8] sm:$0xff] %vm9724_vm3, %v9675_v16 }
 0xbac   : > { %v9673_v22 = vpop.permute.xlu0 %9672 }
 0xbad   : > { %9747 = vst.msk [vmem:[%s11005_s22 + $0xb0] sm:$0xff] %vm9724_vm3, %v9673_v22 }
 0xbae   : > { %v9679_v45 = vpop.permute.xlu1 %9678 }
 0xbaf   : > { %9750 = vst.msk [vmem:[%s11005_s22 + $0xc8] sm:$0xff] %vm9724_vm3, %v9679_v45 }
 0xbb0   : > { %v9677_v8 = vpop.permute.xlu0 %9676 }
 0xbb1   : > { %9749 = vst.msk [vmem:[%s11005_s22 + $0xc0] sm:$0xff] %vm9724_vm3, %v9677_v8 }
 0xbb2   : > { %v9683_v6 = vpop.permute.xlu1 %9682 }
 0xbb3   : > { %9752 = vst.msk [vmem:[%s11005_s22 + $0xd8] sm:$0xff] %vm9724_vm3, %v9683_v6 }
 0xbb4   : > { %v9681_v41 = vpop.permute.xlu0 %9680 }
 0xbb5   : > { %9751 = vst.msk [vmem:[%s11005_s22 + $0xd0] sm:$0xff] %vm9724_vm3, %v9681_v41 }
 0xbb6   : > { %v9687_v56 = vpop.permute.xlu1 %9686 }
 0xbb7   : > { %9754 = vst.msk [vmem:[%s11005_s22 + $0xe8] sm:$0xff] %vm9724_vm3, %v9687_v56 }
 0xbb8   : > { %v9685_v62 = vpop.permute.xlu0 %9684 }
 0xbb9   : > { %9753 = vst.msk [vmem:[%s11005_s22 + $0xe0] sm:$0xff] %vm9724_vm3, %v9685_v62 }
 0xbba   : > { %v9691_v40 = vpop.permute.xlu1 %9690 }
 0xbbb   : > { %9756 = vst.msk [vmem:[%s11005_s22 + $0xf8] sm:$0xff] %vm9724_vm3, %v9691_v40 }
 0xbbc   : > { %v9689_v0 = vpop.permute.xlu0 %9688 }
 0xbbd   : > { %9755 = vst.msk [vmem:[%s11005_s22 + $0xf0] sm:$0xff] %vm9724_vm3, %v9689_v0 }
 0xbbe   : > { %10451 = shalt.err (!%p10448_p3)
}
 0xbbf   : > { %s10452_s22 = scalar_lea.hbm %s14901_s14, 4096  ;;  %s10456_s16 = scalar_lea.hbm %s14961_s9, 8192 }
 0xbc0   : > { %p10453_p4 = scmp.ne.s32.totalorder %s14901_s14, %s10452_s22  ;;  %p10457_p9 = scmp.lt.s32.totalorder %s14901_s14, %s14961_s9 }
 0xbc1   : > { %p10458_p10 = scmp.lt.s32.totalorder %s10456_s16, %s10452_s22 }
 0xbc2   : > { %p10454_p7 = pnand %p10453_p4, %p10618_p5 }
 0xbc3   : > { %p10459_p11 = por %p10458_p10, %p10457_p9 }
 0xbc4   : > { %p10455_p8 = pneg %p10454_p7 }
 0xbc6   : > { %p10460_p12 = pnand %p10459_p11, %p10455_p8 }
 0xbc8   : > { %10463 = shalt.err (!%p10460_p12)
}
 0xbc9   : > { %s10529_s17 = smov 128  }
 0xbca   : > { %10365 = dma.vmem_to_hbm [thread:$0]  (%p10618_p5), %s14905_s27, 4096, %s14901_s14, %s14911_s28, %s10529_s17, %s10529_s17, %s10503_s29  }
 0xbcb PF: > { %p10371_p13 = scmp.ge.s32.totalorder %s10498_s12, 2  ;;  %s9786_s21 = sand.u32 1, %s10486_s30  }
 0xbcc   : > { %s9787_s25 = scalar_lea.sflag [#allocation8], %s9786_s21 }
 0xbcd   : > { %p10368_p0 = pnand %p10371_p13, %p10622_p6 }
 0xbcf   : > { %p10369_p1 = pneg %p10368_p0 }
 0xbd1   : > { %10481 = dma.done.wait (%p10369_p1), %s9787_s25, 4096  }
 0xbd2   : > { %10483 = vsyncadd (%p10369_p1), %s9787_s25, 4294963200  ;;  %p19_p2 = scmp.ge.s32.totalorder %s10605_s15, 4   ;;  %s15040_s30 = smov %s10490_s10 }
 0xbd3   : > { %s15041_s10 = smov %s10494_s11  ;;  %s15042_s11 = smov %s10616_s18 }
 0xbd4   : > { %s15043_s12 = smov %s10605_s15  ;;  %21 = sbr.rel (!%p19_p2) target bundleno = 3 (0x3), region = 99 }
 0xbd9   :  { %9792 = vsyncpa [#allocation8], 1 }
 0xbda   :  { %9794 = vsyncpa [#allocation8 + $0x1], 1 }

</bundles_post_ra>
